<compile_context>
chip_gen: v7x
topology: tpu7x:2x2x1
jax: 0.10.0
libtpu: 0.0.40
codegen_flags: <defaults>
</compile_context>

<pallas_src>
import jax
import jax.numpy as jnp
import numpy as np
from jax import lax
from jax.experimental import pallas as pl
from jax.experimental.pallas import tpu as pltpu

NEG_SLOPE = 0.1
BN_EPS = 1e-5
LANE = 128


def _round_up(x, m):
    return ((x + m - 1) // m) * m


def _tc_count():
    # v7x has 2 TensorCores per chip; v5e/v6e have 1.  Fall back to 1 on unknowns.
    try:
        kind = jax.devices()[0].device_kind.lower().replace(" ", "")
        if "v7" in kind or "tpu7" in kind:
            return 2
    except Exception:
        pass
    return 1


# ----------------------------- Pallas kernel ------------------------------- #
def _fused_conv_kernel(p_ref, w_ref, scale_ref, shift_ref, o_ref):
    # Single-shot matmul over the FULL K (no reduction grid axis, no scratch):
    # bf16 x bf16 operands with f32 MXU accumulation, then per-channel affine
    # (conv bias / folded BatchNorm) + LeakyReLU(0.1), stored in o_ref's dtype.
    acc = jnp.dot(p_ref[...], w_ref[...], preferred_element_type=jnp.float32)
    acc = acc * scale_ref[...] + shift_ref[...]
    o_ref[...] = jnp.where(acc >= 0, acc, NEG_SLOPE * acc).astype(o_ref.dtype)


# ------------------------------ host-side glue ------------------------------ #
def _im2col(x_nhwc, kh, kw, stride, pad):
    n, h, w, c = x_nhwc.shape
    if pad == 0 and stride == 1 and kh == h and kw == w:
        # Full-window conv (layer 3): patches are just a reshape; the (h, w, c)
        # flattening order already matches the (kh, kw, cin) weight ordering.
        return x_nhwc.reshape(n, kh * kw * c), 1, 1
    if pad:
        x_nhwc = jnp.pad(x_nhwc, ((0, 0), (pad, pad), (pad, pad), (0, 0)))
        h, w = h + 2 * pad, w + 2 * pad
    oh = (h - kh) // stride + 1
    ow = (w - kw) // stride + 1
    cols = []
    for i in range(kh):
        for j in range(kw):
            cols.append(x_nhwc[:, i:i + stride * oh:stride, j:j + stride * ow:stride, :])
    patches = jnp.stack(cols, axis=3)                 # (n, oh, ow, kh*kw, c)
    return patches.reshape(n * oh * ow, kh * kw * c), oh, ow


def fused_conv_layer(x_nhwc, w_oihw, scale, shift, stride, pad,
                     out_dtype=jnp.bfloat16, m_split=1):
    """Conv2d (im2col matmul, bf16/f32-acc) + per-channel affine + LeakyReLU(0.1)."""
    cout, cin, kh, kw = w_oihw.shape
    n = x_nhwc.shape[0]

    patches, oh, ow = _im2col(x_nhwc, kh, kw, stride, pad)    # (M, K)
    m, k = patches.shape

    # One M tile per requested TensorCore, rounded for bf16 sublane packing.
    tm = _round_up(-(-m // m_split), 16)
    m_pad = _round_up(m, tm)
    tn = LANE
    cout_pad = _round_up(cout, LANE)             # lane-dense output tiles

    patches = patches.astype(jnp.bfloat16)
    if m_pad != m:
        patches = jnp.pad(patches, ((0, m_pad - m), (0, 0)))

    # PyTorch weight (Cout, Cin, KH, KW) -> (KH, KW, Cin, Cout) -> (KH*KW*Cin, Cout)
    # matching the (kh, kw, cin) feature ordering of the patches.
    w_mat = jnp.transpose(w_oihw, (2, 3, 1, 0)).reshape(kh * kw * cin, cout)
    w_mat = w_mat.astype(jnp.bfloat16)
    scale2 = scale.reshape(1, cout).astype(jnp.float32)
    shift2 = shift.reshape(1, cout).astype(jnp.float32)
    if cout_pad != cout:
        # Zero-pad channels: padded lanes compute 0*acc + 0 -> 0, sliced off below.
        w_mat = jnp.pad(w_mat, ((0, 0), (0, cout_pad - cout)))
        scale2 = jnp.pad(scale2, ((0, 0), (0, cout_pad - cout)))
        shift2 = jnp.pad(shift2, ((0, 0), (0, cout_pad - cout)))

    grid = (m_pad // tm, cout_pad // tn)

    out = pl.pallas_call(
        _fused_conv_kernel,
        out_shape=jax.ShapeDtypeStruct((m_pad, cout_pad), out_dtype),
        grid_spec=pltpu.PrefetchScalarGridSpec(
            num_scalar_prefetch=0,
            grid=grid,
            in_specs=[
                pl.BlockSpec((tm, k), lambda i, j: (i, 0)),    # patches, full K
                pl.BlockSpec((k, tn), lambda i, j: (0, j)),    # weight column tile
                pl.BlockSpec((1, tn), lambda i, j: (0, j)),    # channel scale
                pl.BlockSpec((1, tn), lambda i, j: (0, j)),    # channel shift
            ],
            out_specs=pl.BlockSpec((tm, tn), lambda i, j: (i, j)),
        ),
        compiler_params=pltpu.CompilerParams(
            dimension_semantics=("parallel", "parallel")),
    )(patches, w_mat, scale2, shift2)

    return out[:m, :cout].reshape(n, oh, ow, cout)   # drop M / Cout padding; NHWC


# ------------------------------- parameters -------------------------------- #
def init_params(key):
    k1, k2, k3, kb = jax.random.split(key, 4)
    std = 0.02
    w1 = jax.random.normal(k1, (64, 1, 4, 4), jnp.float32) * std
    b1 = jax.random.normal(kb, (64,), jnp.float32) * std
    w2 = jax.random.normal(k2, (128, 64, 4, 4), jnp.float32) * std
    w3 = jax.random.normal(k3, (256, 128, 7, 7), jnp.float32) * std
    bn2 = dict(gamma=jnp.ones(128, jnp.float32), beta=jnp.zeros(128, jnp.float32),
               mean=jnp.zeros(128, jnp.float32), var=jnp.ones(128, jnp.float32))
    bn3 = dict(gamma=jnp.ones(256, jnp.float32), beta=jnp.zeros(256, jnp.float32),
               mean=jnp.zeros(256, jnp.float32), var=jnp.ones(256, jnp.float32))
    return dict(w1=w1, b1=b1, w2=w2, w3=w3, bn2=bn2, bn3=bn3)


def _bn_fold(bn):
    inv = bn["gamma"] / jnp.sqrt(bn["var"] + BN_EPS)
    return inv, bn["beta"] - bn["mean"] * inv


def shared_net_forward(params, x_nchw, tc=1):
    x = jnp.transpose(x_nchw, (0, 2, 3, 1))          # NCHW -> NHWC once at entry
    # Conv(1->64, k4 s2 p1) + bias + LeakyReLU(0.1); grid (tc, 1); bf16 out.
    y = fused_conv_layer(x, params["w1"], jnp.ones(64, jnp.float32), params["b1"],
                         stride=2, pad=1, m_split=tc)
    # Conv(64->128, k4 s2 p1, no bias) + BN(128) + LeakyReLU(0.1); grid (tc, 1); bf16 out.
    s2, sh2 = _bn_fold(params["bn2"])
    y = fused_conv_layer(y, params["w2"], s2, sh2, stride=2, pad=1, m_split=tc)
    # Conv(128->256, k7 s1 p0, no bias) + BN(256) + LeakyReLU(0.1);
    # im2col == reshape, full K=6272 in one matmul, grid (1, 2) over Cout; f32 out.
    s3, sh3 = _bn_fold(params["bn3"])
    y = fused_conv_layer(y, params["w3"], s3, sh3, stride=1, pad=0,
                         out_dtype=jnp.float32, m_split=1)
    return jnp.transpose(y, (0, 3, 1, 2))            # NHWC -> NCHW once at exit


# ------------------------------ pure-JAX reference -------------------------- #
def ref_forward(params, x):
    def conv(x, w, stride, pad):
        return lax.conv_general_dilated(
            x, w, (stride, stride), [(pad, pad), (pad, pad)],
            dimension_numbers=("NCHW", "OIHW", "NCHW"),
            precision=lax.Precision.HIGHEST)

    def lrelu(v):
        return jnp.where(v >= 0, v, NEG_SLOPE * v)

    y = lrelu(conv(x, params["w1"], 2, 1) + params["b1"][None, :, None, None])
    s2, sh2 = _bn_fold(params["bn2"])
    y = lrelu(conv(y, params["w2"], 2, 1) * s2[None, :, None, None] + sh2[None, :, None, None])
    s3, sh3 = _bn_fold(params["bn3"])
    y = lrelu(conv(y, params["w3"], 1, 0) * s3[None, :, None, None] + sh3[None, :, None, None])
    return y


if __name__ == "__main__":
    key = jax.random.PRNGKey(0)
    pkey, xkey = jax.random.split(key)
    params = init_params(pkey)

    # 28x28 single-channel input: 28 -> 14 -> 7 -> 1 spatially (matches the k=7 conv).
    x = jax.random.normal(xkey, (2, 1, 28, 28), jnp.float32)

    tc = _tc_count()   # static: 1 grid step/layer on v5e/v6e, 2 parallel on v7x
    fwd = jax.jit(lambda p, xx: shared_net_forward(p, xx, tc=tc))
    ref_fwd = jax.jit(ref_forward)

    out = jax.block_until_ready(fwd(params, x))
    ref = jax.block_until_ready(ref_fwd(params, x))

    assert out.shape == (2, 256, 1, 1), out.shape
    # bf16 operands/intermediates (K up to 6272) vs f32 HIGHEST reference.
    np.testing.assert_allclose(np.asarray(out), np.asarray(ref), rtol=3e-2, atol=3e-3)
    print("KERNEL_OK")
</pallas_src>

<mosaic_0001>
module attributes {stable_mosaic.version = 11 : i64} {
  func.func @_fused_conv_kernel(%arg0: i32, %arg1: i32, %arg2: memref<400x16xbf16, #tpu.memory_space<vmem>>, %arg3: memref<16x128xbf16, #tpu.memory_space<vmem>>, %arg4: memref<1x128xf32, #tpu.memory_space<vmem>>, %arg5: memref<1x128xf32, #tpu.memory_space<vmem>>, %arg6: memref<400x128xbf16, #tpu.memory_space<vmem>>) attributes {dimension_semantics = [#tpu.dimension_semantics<parallel>, #tpu.dimension_semantics<parallel>], iteration_bounds = array<i64: 1, 1>, scalar_prefetch = 0 : i64, scratch_operands = 0 : i64, tpu.core_type = #tpu.core_type<tc>, window_params = [{transform_indices = @transform_0, window_bounds = array<i64: 400, 16>}, {transform_indices = @transform_1, window_bounds = array<i64: 16, 128>}, {transform_indices = @transform_2, window_bounds = array<i64: 1, 128>}, {transform_indices = @transform_3, window_bounds = array<i64: 1, 128>}, {transform_indices = @transform_4, window_bounds = array<i64: 400, 128>}]} {
    %c0 = arith.constant 0 : index
    %c0_0 = arith.constant 0 : index
    %0 = vector.load %arg2[%c0, %c0_0] : memref<400x16xbf16, #tpu.memory_space<vmem>>, vector<400x16xbf16>
    %c0_1 = arith.constant 0 : index
    %c0_2 = arith.constant 0 : index
    %1 = vector.load %arg3[%c0_1, %c0_2] : memref<16x128xbf16, #tpu.memory_space<vmem>>, vector<16x128xbf16>
    %cst = arith.constant dense<0.000000e+00> : vector<400x128xf32>
    %2 = tpu.matmul %0, %1, %cst {dimension_numbers = #tpu.dot_dimension_numbers<[1], [0], [0], [1], [0, 0, 1, 1], [], []>} : vector<400x16xbf16>, vector<16x128xbf16>, vector<400x128xf32> -> vector<400x128xf32>
    %c0_3 = arith.constant 0 : index
    %c0_4 = arith.constant 0 : index
    %3 = vector.load %arg4[%c0_3, %c0_4] : memref<1x128xf32, #tpu.memory_space<vmem>>, vector<1x128xf32>
    %4 = vector.broadcast %3 : vector<1x128xf32> to vector<400x128xf32>
    %5 = arith.mulf %2, %4 : vector<400x128xf32>
    %c0_5 = arith.constant 0 : index
    %c0_6 = arith.constant 0 : index
    %6 = vector.load %arg5[%c0_5, %c0_6] : memref<1x128xf32, #tpu.memory_space<vmem>>, vector<1x128xf32>
    %7 = vector.broadcast %6 : vector<1x128xf32> to vector<400x128xf32>
    %8 = arith.addf %5, %7 : vector<400x128xf32>
    %cst_7 = arith.constant 0.000000e+00 : f32
    %9 = vector.broadcast %cst_7 : f32 to vector<400x128xf32>
    %10 = arith.cmpf oge, %8, %9 : vector<400x128xf32>
    %cst_8 = arith.constant 1.000000e-01 : f32
    %11 = vector.broadcast %cst_8 : f32 to vector<400x128xf32>
    %12 = arith.mulf %11, %8 : vector<400x128xf32>
    %13 = arith.select %10, %8, %12 : vector<400x128xi1>, vector<400x128xf32>
    %14 = arith.truncf %13 : vector<400x128xf32> to vector<400x128xbf16>
    %c0_9 = arith.constant 0 : index
    %c0_10 = arith.constant 0 : index
    %15 = vector.load %arg6[%c0_9, %c0_10] : memref<400x128xbf16, #tpu.memory_space<vmem>>, vector<400x128xbf16>
    tpu.vector_store %arg6[%c0_9, %c0_10], %14 {strides = array<i32>} : memref<400x128xbf16, #tpu.memory_space<vmem>>, vector<400x128xbf16>,
    return
  }
  func.func @transform_0(%arg0: i32, %arg1: i32) -> (i32, i32) {
    %c0_i32 = arith.constant 0 : i32
    %c0_i32_0 = arith.constant 0 : i32
    return %arg0, %c0_i32 : i32, i32
  }
  func.func @transform_1(%arg0: i32, %arg1: i32) -> (i32, i32) {
    %c0_i32 = arith.constant 0 : i32
    %c0_i32_0 = arith.constant 0 : i32
    return %c0_i32, %arg1 : i32, i32
  }
  func.func @transform_2(%arg0: i32, %arg1: i32) -> (i32, i32) {
    %c0_i32 = arith.constant 0 : i32
    %c0_i32_0 = arith.constant 0 : i32
    return %c0_i32, %arg1 : i32, i32
  }
  func.func @transform_3(%arg0: i32, %arg1: i32) -> (i32, i32) {
    %c0_i32 = arith.constant 0 : i32
    %c0_i32_0 = arith.constant 0 : i32
    return %c0_i32, %arg1 : i32, i32
  }
  func.func @transform_4(%arg0: i32, %arg1: i32) -> (i32, i32) {
    %c0_i32 = arith.constant 0 : i32
    return %arg0, %arg1 : i32, i32
  }
}

module attributes {stable_mosaic.version = 11 : i64} {
  func.func @_fused_conv_kernel(%arg0: i32, %arg1: i32, %arg2: memref<112x1024xbf16, #tpu.memory_space<vmem>>, %arg3: memref<1024x128xbf16, #tpu.memory_space<vmem>>, %arg4: memref<1x128xf32, #tpu.memory_space<vmem>>, %arg5: memref<1x128xf32, #tpu.memory_space<vmem>>, %arg6: memref<112x128xbf16, #tpu.memory_space<vmem>>) attributes {dimension_semantics = [#tpu.dimension_semantics<parallel>, #tpu.dimension_semantics<parallel>], iteration_bounds = array<i64: 1, 1>, scalar_prefetch = 0 : i64, scratch_operands = 0 : i64, tpu.core_type = #tpu.core_type<tc>, window_params = [{transform_indices = @transform_0, window_bounds = array<i64: 112, 1024>}, {transform_indices = @transform_1, window_bounds = array<i64: 1024, 128>}, {transform_indices = @transform_2, window_bounds = array<i64: 1, 128>}, {transform_indices = @transform_3, window_bounds = array<i64: 1, 128>}, {transform_indices = @transform_4, window_bounds = array<i64: 112, 128>}]} {
    %c0 = arith.constant 0 : index
    %c0_0 = arith.constant 0 : index
    %0 = vector.load %arg2[%c0, %c0_0] : memref<112x1024xbf16, #tpu.memory_space<vmem>>, vector<112x1024xbf16>
    %c0_1 = arith.constant 0 : index
    %c0_2 = arith.constant 0 : index
    %1 = vector.load %arg3[%c0_1, %c0_2] : memref<1024x128xbf16, #tpu.memory_space<vmem>>, vector<1024x128xbf16>
    %cst = arith.constant dense<0.000000e+00> : vector<112x128xf32>
    %2 = tpu.matmul %0, %1, %cst {dimension_numbers = #tpu.dot_dimension_numbers<[1], [0], [0], [1], [0, 0, 1, 1], [], []>} : vector<112x1024xbf16>, vector<1024x128xbf16>, vector<112x128xf32> -> vector<112x128xf32>
    %c0_3 = arith.constant 0 : index
    %c0_4 = arith.constant 0 : index
    %3 = vector.load %arg4[%c0_3, %c0_4] : memref<1x128xf32, #tpu.memory_space<vmem>>, vector<1x128xf32>
    %4 = vector.broadcast %3 : vector<1x128xf32> to vector<112x128xf32>
    %5 = arith.mulf %2, %4 : vector<112x128xf32>
    %c0_5 = arith.constant 0 : index
    %c0_6 = arith.constant 0 : index
    %6 = vector.load %arg5[%c0_5, %c0_6] : memref<1x128xf32, #tpu.memory_space<vmem>>, vector<1x128xf32>
    %7 = vector.broadcast %6 : vector<1x128xf32> to vector<112x128xf32>
    %8 = arith.addf %5, %7 : vector<112x128xf32>
    %cst_7 = arith.constant 0.000000e+00 : f32
    %9 = vector.broadcast %cst_7 : f32 to vector<112x128xf32>
    %10 = arith.cmpf oge, %8, %9 : vector<112x128xf32>
    %cst_8 = arith.constant 1.000000e-01 : f32
    %11 = vector.broadcast %cst_8 : f32 to vector<112x128xf32>
    %12 = arith.mulf %11, %8 : vector<112x128xf32>
    %13 = arith.select %10, %8, %12 : vector<112x128xi1>, vector<112x128xf32>
    %14 = arith.truncf %13 : vector<112x128xf32> to vector<112x128xbf16>
    %c0_9 = arith.constant 0 : index
    %c0_10 = arith.constant 0 : index
    %15 = vector.load %arg6[%c0_9, %c0_10] : memref<112x128xbf16, #tpu.memory_space<vmem>>, vector<112x128xbf16>
    tpu.vector_store %arg6[%c0_9, %c0_10], %14 {strides = array<i32>} : memref<112x128xbf16, #tpu.memory_space<vmem>>, vector<112x128xbf16>,
    return
  }
  func.func @transform_0(%arg0: i32, %arg1: i32) -> (i32, i32) {
    %c0_i32 = arith.constant 0 : i32
    %c0_i32_0 = arith.constant 0 : i32
    return %arg0, %c0_i32 : i32, i32
  }
  func.func @transform_1(%arg0: i32, %arg1: i32) -> (i32, i32) {
    %c0_i32 = arith.constant 0 : i32
    %c0_i32_0 = arith.constant 0 : i32
    return %c0_i32, %arg1 : i32, i32
  }
  func.func @transform_2(%arg0: i32, %arg1: i32) -> (i32, i32) {
    %c0_i32 = arith.constant 0 : i32
    %c0_i32_0 = arith.constant 0 : i32
    return %c0_i32, %arg1 : i32, i32
  }
  func.func @transform_3(%arg0: i32, %arg1: i32) -> (i32, i32) {
    %c0_i32 = arith.constant 0 : i32
    %c0_i32_0 = arith.constant 0 : i32
    return %c0_i32, %arg1 : i32, i32
  }
  func.func @transform_4(%arg0: i32, %arg1: i32) -> (i32, i32) {
    %c0_i32 = arith.constant 0 : i32
    return %arg0, %arg1 : i32, i32
  }
}

module attributes {stable_mosaic.version = 11 : i64} {
  func.func @_fused_conv_kernel(%arg0: i32, %arg1: i32, %arg2: memref<16x6272xbf16, #tpu.memory_space<vmem>>, %arg3: memref<6272x128xbf16, #tpu.memory_space<vmem>>, %arg4: memref<1x128xf32, #tpu.memory_space<vmem>>, %arg5: memref<1x128xf32, #tpu.memory_space<vmem>>, %arg6: memref<16x128xf32, #tpu.memory_space<vmem>>) attributes {dimension_semantics = [#tpu.dimension_semantics<parallel>, #tpu.dimension_semantics<parallel>], iteration_bounds = array<i64: 1, 2>, scalar_prefetch = 0 : i64, scratch_operands = 0 : i64, tpu.core_type = #tpu.core_type<tc>, window_params = [{transform_indices = @transform_0, window_bounds = array<i64: 16, 6272>}, {transform_indices = @transform_1, window_bounds = array<i64: 6272, 128>}, {transform_indices = @transform_2, window_bounds = array<i64: 1, 128>}, {transform_indices = @transform_3, window_bounds = array<i64: 1, 128>}, {transform_indices = @transform_4, window_bounds = array<i64: 16, 128>}]} {
    %c0 = arith.constant 0 : index
    %c0_0 = arith.constant 0 : index
    %0 = vector.load %arg2[%c0, %c0_0] : memref<16x6272xbf16, #tpu.memory_space<vmem>>, vector<16x6272xbf16>
    %c0_1 = arith.constant 0 : index
    %c0_2 = arith.constant 0 : index
    %1 = vector.load %arg3[%c0_1, %c0_2] : memref<6272x128xbf16, #tpu.memory_space<vmem>>, vector<6272x128xbf16>
    %cst = arith.constant dense<0.000000e+00> : vector<16x128xf32>
    %2 = tpu.matmul %0, %1, %cst {dimension_numbers = #tpu.dot_dimension_numbers<[1], [0], [0], [1], [0, 0, 1, 1], [], []>} : vector<16x6272xbf16>, vector<6272x128xbf16>, vector<16x128xf32> -> vector<16x128xf32>
    %c0_3 = arith.constant 0 : index
    %c0_4 = arith.constant 0 : index
    %3 = vector.load %arg4[%c0_3, %c0_4] : memref<1x128xf32, #tpu.memory_space<vmem>>, vector<1x128xf32>
    %4 = vector.broadcast %3 : vector<1x128xf32> to vector<16x128xf32>
    %5 = arith.mulf %2, %4 : vector<16x128xf32>
    %c0_5 = arith.constant 0 : index
    %c0_6 = arith.constant 0 : index
    %6 = vector.load %arg5[%c0_5, %c0_6] : memref<1x128xf32, #tpu.memory_space<vmem>>, vector<1x128xf32>
    %7 = vector.broadcast %6 : vector<1x128xf32> to vector<16x128xf32>
    %8 = arith.addf %5, %7 : vector<16x128xf32>
    %cst_7 = arith.constant 0.000000e+00 : f32
    %9 = vector.broadcast %cst_7 : f32 to vector<16x128xf32>
    %10 = arith.cmpf oge, %8, %9 : vector<16x128xf32>
    %cst_8 = arith.constant 1.000000e-01 : f32
    %11 = vector.broadcast %cst_8 : f32 to vector<16x128xf32>
    %12 = arith.mulf %11, %8 : vector<16x128xf32>
    %13 = arith.select %10, %8, %12 : vector<16x128xi1>, vector<16x128xf32>
    %c0_9 = arith.constant 0 : index
    %c0_10 = arith.constant 0 : index
    %14 = vector.load %arg6[%c0_9, %c0_10] : memref<16x128xf32, #tpu.memory_space<vmem>>, vector<16x128xf32>
    tpu.vector_store %arg6[%c0_9, %c0_10], %13 {strides = array<i32>} : memref<16x128xf32, #tpu.memory_space<vmem>>, vector<16x128xf32>,
    return
  }
  func.func @transform_0(%arg0: i32, %arg1: i32) -> (i32, i32) {
    %c0_i32 = arith.constant 0 : i32
    %c0_i32_0 = arith.constant 0 : i32
    return %arg0, %c0_i32 : i32, i32
  }
  func.func @transform_1(%arg0: i32, %arg1: i32) -> (i32, i32) {
    %c0_i32 = arith.constant 0 : i32
    %c0_i32_0 = arith.constant 0 : i32
    return %c0_i32, %arg1 : i32, i32
  }
  func.func @transform_2(%arg0: i32, %arg1: i32) -> (i32, i32) {
    %c0_i32 = arith.constant 0 : i32
    %c0_i32_0 = arith.constant 0 : i32
    return %c0_i32, %arg1 : i32, i32
  }
  func.func @transform_3(%arg0: i32, %arg1: i32) -> (i32, i32) {
    %c0_i32 = arith.constant 0 : i32
    %c0_i32_0 = arith.constant 0 : i32
    return %c0_i32, %arg1 : i32, i32
  }
  func.func @transform_4(%arg0: i32, %arg1: i32) -> (i32, i32) {
    %c0_i32 = arith.constant 0 : i32
    return %arg0, %arg1 : i32, i32
  }
}

</mosaic_0001>

<bundles_post_ra>
// kernel: _lambda_.3
= control target key start
LH: loop header
LB: loop body
LE: loop exit
PB: predicated region body
PF: predicated region fallthrough
CT: control target
= control target key end

     0   :  { %v1488_v0 = vmov 0.0   ;;  %vm1489_vm0 = vmmov 0   ;;  %vm201_vm1 = vcmask 130048   ;;  %s1855_s1 = inlined_call_operand.vmem [shape: bf16[16,128], index: 1, kind: input, shape index: {}]   ;;  %s1856_s0 = inlined_call_operand.vmem [shape: bf16[400,16], index: 0, kind: input, shape index: {}]   ;;  %s1857_s2 = inlined_call_operand.vmem [shape: f32[1,128], index: 2, kind: input, shape index: {}]   ;;  %s1858_s3 = inlined_call_operand.vmem [shape: f32[1,128], index: 3, kind: input, shape index: {}]   ;;  %s1859_s4 = inlined_call_operand.vmem [shape: bf16[400,128], index: 4, kind: output, shape index: {}]  }
   0x1   :  { %1356 = vmatprep.subr.bf16.mxu0 %v1488_v0  ;;  %v1462_v1 = vld [vmem:[%s1855_s1] sm:$0xff]   ;;  %1358 = vmatprep.mubr.msk.bf16.mxu0 %vm1489_vm0, %v1488_v0  ;;  %v1464_v3 = vld [vmem:[%s1856_s0 + $0x68] sm:$0xff]   ;;  %v1466_v5 = vld [vmem:[%s1856_s0 + $0x70] sm:$0xff]  }
   0x2   :  { %1458 = vmatprep.subr.bf16.mxu1 %v1488_v0  ;;  %v1463_v2 = vld [vmem:[%s1856_s0] sm:$0xff]   ;;  %1410 = vmatprep.mubr.msk.bf16.mxu1 %vm1489_vm0, %v1488_v0  ;;  %v1465_v4 = vld [vmem:[%s1856_s0 + $0x8] sm:$0xff]   ;;  %v1467_v6 = vld [vmem:[%s1856_s0 + $0x10] sm:$0xff]  }
   0x3   :  { %1357 = vmatpush3.bf16.msra.mxu0 %v1462_v1  ;;  %1459 = vmatpush3.bf16.msra.mxu1 %v1462_v1  ;;  %v1468_v7 = vld [vmem:[%s1856_s0 + $0x78] sm:$0xff]   ;;  %v1470_v9 = vld [vmem:[%s1856_s0 + $0x80] sm:$0xff]   ;;  %v1472_v11 = vld [vmem:[%s1856_s0 + $0x88] sm:$0xff]  }
   0x4   :  { %v1469_v8 = vld [vmem:[%s1856_s0 + $0x18] sm:$0xff]   ;;  %v1471_v10 = vld [vmem:[%s1856_s0 + $0x20] sm:$0xff]   ;;  %v1473_v12 = vld [vmem:[%s1856_s0 + $0x28] sm:$0xff]  }
   0x5   :  { %v1474_v13 = vld [vmem:[%s1856_s0 + $0x90] sm:$0xff]   ;;  %v1476_v15 = vld [vmem:[%s1856_s0 + $0x98] sm:$0xff]   ;;  %v1478_v17 = vld [vmem:[%s1856_s0 + $0xa0] sm:$0xff]  }
   0x6   :  { %1359 = vmatmul.mubr.msk.bf16.vlgmr.msra.gmra.mrb[0].mxu0 %vm201_vm1, %v1463_v2  ;;  %1411 = vmatmul.mubr.msk.bf16.vlgmr.msra.gmra.mrb[0].mxu1 %vm201_vm1, %v1464_v3  ;;  %v1475_v14 = vld [vmem:[%s1856_s0 + $0x30] sm:$0xff]   ;;  %v1477_v16 = vld [vmem:[%s1856_s0 + $0x38] sm:$0xff]   ;;  %v1479_v18 = vld [vmem:[%s1856_s0 + $0x40] sm:$0xff]  }
   0x7   :  { %1362 = vmatprep.mubr.msk.bf16.mxu0 %vm1489_vm0, %v1488_v0  ;;  %1414 = vmatprep.mubr.msk.bf16.mxu1 %vm1489_vm0, %v1488_v0  ;;  %v1480_v19 = vld [vmem:[%s1856_s0 + $0xa8] sm:$0xff]   ;;  %v1482_v21 = vld [vmem:[%s1856_s0 + $0xb0] sm:$0xff]   ;;  %v1484_v23 = vld [vmem:[%s1856_s0 + $0xb8] sm:$0xff]  }
   0x8   :  { %v1481_v20 = vld [vmem:[%s1856_s0 + $0x48] sm:$0xff]   ;;  %v1483_v22 = vld [vmem:[%s1856_s0 + $0x50] sm:$0xff]   ;;  %v1485_v24 = vld [vmem:[%s1856_s0 + $0x58] sm:$0xff]  }
   0x9   :  { %v1486_v25 = vld [vmem:[%s1856_s0 + $0xc0] sm:$0xff]  }
   0xa   :  { %v1487_v26 = vld [vmem:[%s1856_s0 + $0x60] sm:$0xff]  }
   0xb   :  { %v1673_v27 = vld [vmem:[%s1857_s2] ss:$0 sm:$0xff] }
   0xc   :  { %v1678_v29 = vld [vmem:[%s1858_s3] ss:$0 sm:$0xff] }
   0xe   :  { %1363 = vmatmul.mubr.msk.bf16.gmra.mrb[4].mxu0 %vm201_vm1, %v1465_v4  ;;  %1415 = vmatmul.mubr.msk.bf16.gmra.mrb[4].mxu1 %vm201_vm1, %v1466_v5 }
   0xf   :  { %1366 = vmatprep.mubr.msk.bf16.mxu0 %vm1489_vm0, %v1488_v0  ;;  %1418 = vmatprep.mubr.msk.bf16.mxu1 %vm1489_vm0, %v1488_v0 }
  0x16   :  { %1367 = vmatmul.mubr.msk.bf16.gmra.mrb[8].mxu0 %vm201_vm1, %v1467_v6  ;;  %1419 = vmatmul.mubr.msk.bf16.gmra.mrb[8].mxu1 %vm201_vm1, %v1468_v7 }
  0x17   :  { %1370 = vmatprep.mubr.msk.bf16.mxu0 %vm1489_vm0, %v1488_v0  ;;  %1422 = vmatprep.mubr.msk.bf16.mxu1 %vm1489_vm0, %v1488_v0 }
  0x1e   :  { %1371 = vmatmul.mubr.msk.bf16.gmra.mrb[12].mxu0 %vm201_vm1, %v1469_v8  ;;  %1423 = vmatmul.mubr.msk.bf16.gmra.mrb[12].mxu1 %vm201_vm1, %v1470_v9 }
  0x1f   :  { %1374 = vmatprep.mubr.msk.bf16.mxu0 %vm1489_vm0, %v1488_v0  ;;  %1426 = vmatprep.mubr.msk.bf16.mxu1 %vm1489_vm0, %v1488_v0 }
  0x26   :  { %1375 = vmatmul.mubr.msk.bf16.gmra.mrb[16].mxu0 %vm201_vm1, %v1471_v10  ;;  %1427 = vmatmul.mubr.msk.bf16.gmra.mrb[16].mxu1 %vm201_vm1, %v1472_v11 }
  0x27   :  { %1378 = vmatprep.mubr.msk.bf16.mxu0 %vm1489_vm0, %v1488_v0  ;;  %1430 = vmatprep.mubr.msk.bf16.mxu1 %vm1489_vm0, %v1488_v0 }
  0x2e   :  { %1379 = vmatmul.mubr.msk.bf16.gmra.mrb[20].mxu0 %vm201_vm1, %v1473_v12  ;;  %1431 = vmatmul.mubr.msk.bf16.gmra.mrb[20].mxu1 %vm201_vm1, %v1474_v13 }
  0x2f   :  { %1382 = vmatprep.mubr.msk.bf16.mxu0 %vm1489_vm0, %v1488_v0  ;;  %1434 = vmatprep.mubr.msk.bf16.mxu1 %vm1489_vm0, %v1488_v0 }
  0x36   :  { %1383 = vmatmul.mubr.msk.bf16.gmra.mrb[24].mxu0 %vm201_vm1, %v1475_v14  ;;  %1435 = vmatmul.mubr.msk.bf16.gmra.mrb[24].mxu1 %vm201_vm1, %v1476_v15 }
  0x37   :  { %1386 = vmatprep.mubr.msk.bf16.mxu0 %vm1489_vm0, %v1488_v0  ;;  %1438 = vmatprep.mubr.msk.bf16.mxu1 %vm1489_vm0, %v1488_v0 }
  0x3e   :  { %1387 = vmatmul.mubr.msk.bf16.gmra.mrb[28].mxu0 %vm201_vm1, %v1477_v16  ;;  %1439 = vmatmul.mubr.msk.bf16.gmra.mrb[28].mxu1 %vm201_vm1, %v1478_v17 }
  0x3f   :  { %1390 = vmatprep.mubr.msk.bf16.mxu0 %vm1489_vm0, %v1488_v0  ;;  %1442 = vmatprep.mubr.msk.bf16.mxu1 %vm1489_vm0, %v1488_v0 }
  0x46   :  { %1391 = vmatmul.mubr.msk.bf16.gmra.mrb[32].mxu0 %vm201_vm1, %v1479_v18  ;;  %1443 = vmatmul.mubr.msk.bf16.gmra.mrb[32].mxu1 %vm201_vm1, %v1480_v19 }
  0x47   :  { %1394 = vmatprep.mubr.msk.bf16.mxu0 %vm1489_vm0, %v1488_v0  ;;  %1446 = vmatprep.mubr.msk.bf16.mxu1 %vm1489_vm0, %v1488_v0 }
  0x4e   :  { %1395 = vmatmul.mubr.msk.bf16.gmra.mrb[36].mxu0 %vm201_vm1, %v1481_v20  ;;  %1447 = vmatmul.mubr.msk.bf16.gmra.mrb[36].mxu1 %vm201_vm1, %v1482_v21 }
  0x4f   :  { %1398 = vmatprep.mubr.msk.bf16.mxu0 %vm1489_vm0, %v1488_v0  ;;  %1450 = vmatprep.mubr.msk.bf16.mxu1 %vm1489_vm0, %v1488_v0 }
  0x56   :  { %1399 = vmatmul.mubr.msk.bf16.gmra.mrb[40].mxu0 %vm201_vm1, %v1483_v22  ;;  %1451 = vmatmul.mubr.msk.bf16.gmra.mrb[40].mxu1 %vm201_vm1, %v1484_v23 }
  0x57   :  { %1402 = vmatprep.mubr.msk.bf16.mxu0 %vm1489_vm0, %v1488_v0  ;;  %1454 = vmatprep.mubr.msk.bf16.mxu1 %vm1489_vm0, %v1488_v0 }
  0x5e   :  { %1403 = vmatmul.mubr.msk.bf16.gmra.mrb[44].mxu0 %vm201_vm1, %v1485_v24  ;;  %1455 = vmatmul.mubr.msk.bf16.gmra.mrb[44].mxu1 %vm201_vm1, %v1486_v25 }
  0x5f   :  { %1406 = vmatprep.mubr.msk.bf16.mxu0 %vm1489_vm0, %v1488_v0 }
  0x66   :  { %1407 = vmatmul.mubr.msk.bf16.gmra.mrb[48].mxu0 %vm201_vm1, %v1487_v26 }
  0xd9   :  { %v311_v28 = vpop.f32.mrb[0].mxu0  ;;  %v415_v30 = vpop.f32.mrb[0].mxu1 }
  0xda   :  { %v517_v31 = vmul.f32 %v1673_v27, %v311_v28  ;;  %v1360_v32 = vpop.f32.mrb[1].mxu0  ;;  %v543_v33 = vmul.f32 %v1673_v27, %v415_v30  ;;  %v1412_v34 = vpop.f32.mrb[1].mxu1 }
  0xdb   :  { %v314_v35 = vpop.f32.mrb[2].mxu0  ;;  %v418_v36 = vpop.f32.mrb[2].mxu1 }
  0xdc   :  { %v574_v37 = vadd.f32 %v1678_v29, %v517_v31  ;;  %v518_v38 = vmul.f32 %v1673_v27, %v314_v35  ;;  %v1361_v39 = vpop.f32.mrb[3].mxu0  ;;  %v600_v40 = vadd.f32 %v1678_v29, %v543_v33  ;;  %v544_v41 = vmul.f32 %v1673_v27, %v418_v36  ;;  %v1413_v42 = vpop.f32.mrb[3].mxu1 }
  0xde   :  { %v674_v43 = vmul.f32 0.1, %v574_v37  ;;  %v575_v44 = vadd.f32 %v1678_v29, %v518_v38  ;;  %vm650_vm2 = vcmp.ge.f32.partialorder %v600_v40, 0.0  ;;  %vm624_vm3 = vcmp.ge.f32.partialorder %v574_v37, 0.0 }
  0xdf   :  { %v700_v45 = vmul.f32 0.1, %v600_v40  ;;  %v601_v46 = vadd.f32 %v1678_v29, %v544_v41 }
  0xe0   :  { %vm625_vm4 = vcmp.ge.f32.partialorder %v575_v44, 0.0  ;;  %v675_v47 = vmul.f32 0.1, %v575_v44  ;;  %v724_v52 = vsel %vm624_vm3, %v574_v37, %v674_v43 }
  0xe1   :  { %v750_v48 = vsel %vm650_vm2, %v600_v40, %v700_v45  ;;  %vm651_vm5 = vcmp.ge.f32.partialorder %v601_v46, 0.0  ;;  %v701_v49 = vmul.f32 0.1, %v601_v46  ;;  %v319_v50 = vpop.f32.mrb[4].mxu0  ;;  %v423_v51 = vpop.f32.mrb[4].mxu1 }
  0xe2   :  { %v725_v53 = vsel %vm625_vm4, %v575_v44, %v675_v47  ;;  %v519_v54 = vmul.f32 %v1673_v27, %v319_v50  ;;  %v1364_v55 = vpop.f32.mrb[5].mxu0  ;;  %v545_v56 = vmul.f32 %v1673_v27, %v423_v51  ;;  %v1416_v57 = vpop.f32.mrb[5].mxu1 }
  0xe3   :  { %v1184_v58 = vpack.c.bf16 %v725_v53, %v724_v52  ;;  %v751_v59 = vsel %vm651_vm5, %v601_v46, %v701_v49  ;;  %v322_v60 = vpop.f32.mrb[6].mxu0  ;;  %v426_v61 = vpop.f32.mrb[6].mxu1 }
  0xe4   :  { %v1249_v62 = vpack.c.bf16 %v751_v59, %v750_v48  ;;  %v576_v63 = vadd.f32 %v1678_v29, %v519_v54  ;;  %v520_v0 = vmul.f32 %v1673_v27, %v322_v60  ;;  %v1365_v1 = vpop.f32.mrb[7].mxu0  ;;  %v602_v2 = vadd.f32 %v1678_v29, %v545_v56  ;;  %v1417_v3 = vpop.f32.mrb[7].mxu1 }
  0xe5   :  { %1185 = vst [vmem:[%s1859_s4] sm:$0xff] %v1184_v58   ;;  %v546_v4 = vmul.f32 %v1673_v27, %v426_v61 }
  0xe6   :  { %1318 = vst [vmem:[%s1859_s4 + $0x68] sm:$0xff] %v1249_v62   ;;  %v676_v5 = vmul.f32 0.1, %v576_v63  ;;  %v577_v6 = vadd.f32 %v1678_v29, %v520_v0  ;;  %vm652_vm6 = vcmp.ge.f32.partialorder %v602_v2, 0.0  ;;  %vm626_vm7 = vcmp.ge.f32.partialorder %v576_v63, 0.0 }
  0xe7   :  { %v702_v7 = vmul.f32 0.1, %v602_v2  ;;  %v603_v8 = vadd.f32 %v1678_v29, %v546_v4 }
  0xe8   :  { %vm627_vm8 = vcmp.ge.f32.partialorder %v577_v6, 0.0  ;;  %v677_v9 = vmul.f32 0.1, %v577_v6  ;;  %v726_v14 = vsel %vm626_vm7, %v576_v63, %v676_v5 }
  0xe9   :  { %v752_v10 = vsel %vm652_vm6, %v602_v2, %v702_v7  ;;  %vm653_vm9 = vcmp.ge.f32.partialorder %v603_v8, 0.0  ;;  %v703_v11 = vmul.f32 0.1, %v603_v8  ;;  %v327_v12 = vpop.f32.mrb[8].mxu0  ;;  %v431_v13 = vpop.f32.mrb[8].mxu1 }
  0xea   :  { %v727_v15 = vsel %vm627_vm8, %v577_v6, %v677_v9  ;;  %v521_v16 = vmul.f32 %v1673_v27, %v327_v12  ;;  %v1368_v17 = vpop.f32.mrb[9].mxu0  ;;  %v547_v18 = vmul.f32 %v1673_v27, %v431_v13  ;;  %v1420_v19 = vpop.f32.mrb[9].mxu1 }
  0xeb   :  { %v1189_v20 = vpack.c.bf16 %v727_v15, %v726_v14  ;;  %v753_v21 = vsel %vm653_vm9, %v603_v8, %v703_v11  ;;  %v330_v22 = vpop.f32.mrb[10].mxu0  ;;  %v434_v23 = vpop.f32.mrb[10].mxu1 }
  0xec   :  { %v1254_v24 = vpack.c.bf16 %v753_v21, %v752_v10  ;;  %v578_v25 = vadd.f32 %v1678_v29, %v521_v16  ;;  %v522_v26 = vmul.f32 %v1673_v27, %v330_v22  ;;  %v1369_v28 = vpop.f32.mrb[11].mxu0  ;;  %v604_v30 = vadd.f32 %v1678_v29, %v547_v18  ;;  %v1421_v31 = vpop.f32.mrb[11].mxu1 }
  0xed   :  { %1306 = vst [vmem:[%s1859_s4 + $0x8] sm:$0xff] %v1189_v20   ;;  %v548_v32 = vmul.f32 %v1673_v27, %v434_v23 }
  0xee   :  { %1319 = vst [vmem:[%s1859_s4 + $0x70] sm:$0xff] %v1254_v24   ;;  %v678_v33 = vmul.f32 0.1, %v578_v25  ;;  %v579_v34 = vadd.f32 %v1678_v29, %v522_v26  ;;  %vm654_vm10 = vcmp.ge.f32.partialorder %v604_v30, 0.0  ;;  %vm628_vm11 = vcmp.ge.f32.partialorder %v578_v25, 0.0 }
  0xef   :  { %v704_v35 = vmul.f32 0.1, %v604_v30  ;;  %v605_v36 = vadd.f32 %v1678_v29, %v548_v32 }
  0xf0   :  { %vm629_vm12 = vcmp.ge.f32.partialorder %v579_v34, 0.0  ;;  %v679_v37 = vmul.f32 0.1, %v579_v34  ;;  %v728_v42 = vsel %vm628_vm11, %v578_v25, %v678_v33 }
  0xf1   :  { %v754_v38 = vsel %vm654_vm10, %v604_v30, %v704_v35  ;;  %vm655_vm13 = vcmp.ge.f32.partialorder %v605_v36, 0.0  ;;  %v705_v39 = vmul.f32 0.1, %v605_v36  ;;  %v335_v40 = vpop.f32.mrb[12].mxu0  ;;  %v439_v41 = vpop.f32.mrb[12].mxu1 }
  0xf2   :  { %v729_v43 = vsel %vm629_vm12, %v579_v34, %v679_v37  ;;  %v523_v44 = vmul.f32 %v1673_v27, %v335_v40  ;;  %v1372_v45 = vpop.f32.mrb[13].mxu0  ;;  %v549_v46 = vmul.f32 %v1673_v27, %v439_v41  ;;  %v1424_v47 = vpop.f32.mrb[13].mxu1 }
  0xf3   :  { %v1194_v48 = vpack.c.bf16 %v729_v43, %v728_v42  ;;  %v755_v49 = vsel %vm655_vm13, %v605_v36, %v705_v39  ;;  %v338_v50 = vpop.f32.mrb[14].mxu0  ;;  %v442_v51 = vpop.f32.mrb[14].mxu1 }
  0xf4   :  { %v1259_v52 = vpack.c.bf16 %v755_v49, %v754_v38  ;;  %v580_v53 = vadd.f32 %v1678_v29, %v523_v44  ;;  %v524_v54 = vmul.f32 %v1673_v27, %v338_v50  ;;  %v1373_v55 = vpop.f32.mrb[15].mxu0  ;;  %v606_v56 = vadd.f32 %v1678_v29, %v549_v46  ;;  %v1425_v57 = vpop.f32.mrb[15].mxu1 }
  0xf5   :  { %1307 = vst [vmem:[%s1859_s4 + $0x10] sm:$0xff] %v1194_v48   ;;  %v550_v58 = vmul.f32 %v1673_v27, %v442_v51 }
  0xf6   :  { %1320 = vst [vmem:[%s1859_s4 + $0x78] sm:$0xff] %v1259_v52   ;;  %v680_v59 = vmul.f32 0.1, %v580_v53  ;;  %v581_v60 = vadd.f32 %v1678_v29, %v524_v54  ;;  %vm656_vm14 = vcmp.ge.f32.partialorder %v606_v56, 0.0  ;;  %vm630_vm15 = vcmp.ge.f32.partialorder %v580_v53, 0.0 }
  0xf7   :  { %v706_v61 = vmul.f32 0.1, %v606_v56  ;;  %v607_v62 = vadd.f32 %v1678_v29, %v550_v58 }
  0xf8   :  { %vm631_vm0 = vcmp.ge.f32.partialorder %v581_v60, 0.0  ;;  %v681_v63 = vmul.f32 0.1, %v581_v60  ;;  %v730_v4 = vsel %vm630_vm15, %v580_v53, %v680_v59 }
  0xf9   :  { %v756_v0 = vsel %vm656_vm14, %v606_v56, %v706_v61  ;;  %vm657_vm1 = vcmp.ge.f32.partialorder %v607_v62, 0.0  ;;  %v707_v1 = vmul.f32 0.1, %v607_v62  ;;  %v343_v2 = vpop.f32.mrb[16].mxu0  ;;  %v447_v3 = vpop.f32.mrb[16].mxu1 }
  0xfa   :  { %v731_v5 = vsel %vm631_vm0, %v581_v60, %v681_v63  ;;  %v525_v6 = vmul.f32 %v1673_v27, %v343_v2  ;;  %v1376_v7 = vpop.f32.mrb[17].mxu0  ;;  %v551_v8 = vmul.f32 %v1673_v27, %v447_v3  ;;  %v1428_v9 = vpop.f32.mrb[17].mxu1 }
  0xfb   :  { %v1199_v10 = vpack.c.bf16 %v731_v5, %v730_v4  ;;  %v757_v11 = vsel %vm657_vm1, %v607_v62, %v707_v1  ;;  %v346_v12 = vpop.f32.mrb[18].mxu0  ;;  %v450_v13 = vpop.f32.mrb[18].mxu1 }
  0xfc   :  { %v1264_v14 = vpack.c.bf16 %v757_v11, %v756_v0  ;;  %v582_v15 = vadd.f32 %v1678_v29, %v525_v6  ;;  %v526_v16 = vmul.f32 %v1673_v27, %v346_v12  ;;  %v1377_v17 = vpop.f32.mrb[19].mxu0  ;;  %v608_v18 = vadd.f32 %v1678_v29, %v551_v8  ;;  %v1429_v19 = vpop.f32.mrb[19].mxu1 }
  0xfd   :  { %1308 = vst [vmem:[%s1859_s4 + $0x18] sm:$0xff] %v1199_v10   ;;  %v552_v20 = vmul.f32 %v1673_v27, %v450_v13 }
  0xfe   :  { %1321 = vst [vmem:[%s1859_s4 + $0x80] sm:$0xff] %v1264_v14   ;;  %v682_v21 = vmul.f32 0.1, %v582_v15  ;;  %v583_v22 = vadd.f32 %v1678_v29, %v526_v16  ;;  %vm658_vm2 = vcmp.ge.f32.partialorder %v608_v18, 0.0  ;;  %vm632_vm3 = vcmp.ge.f32.partialorder %v582_v15, 0.0 }
  0xff   :  { %v708_v23 = vmul.f32 0.1, %v608_v18  ;;  %v609_v24 = vadd.f32 %v1678_v29, %v552_v20 }
 0x100   :  { %vm633_vm4 = vcmp.ge.f32.partialorder %v583_v22, 0.0  ;;  %v683_v25 = vmul.f32 0.1, %v583_v22  ;;  %v732_v32 = vsel %vm632_vm3, %v582_v15, %v682_v21 }
 0x101   :  { %v758_v26 = vsel %vm658_vm2, %v608_v18, %v708_v23  ;;  %vm659_vm5 = vcmp.ge.f32.partialorder %v609_v24, 0.0  ;;  %v709_v28 = vmul.f32 0.1, %v609_v24  ;;  %v351_v30 = vpop.f32.mrb[20].mxu0  ;;  %v455_v31 = vpop.f32.mrb[20].mxu1 }
 0x102   :  { %v733_v33 = vsel %vm633_vm4, %v583_v22, %v683_v25  ;;  %v527_v34 = vmul.f32 %v1673_v27, %v351_v30  ;;  %v1380_v35 = vpop.f32.mrb[21].mxu0  ;;  %v553_v36 = vmul.f32 %v1673_v27, %v455_v31  ;;  %v1432_v37 = vpop.f32.mrb[21].mxu1 }
 0x103   :  { %v1204_v38 = vpack.c.bf16 %v733_v33, %v732_v32  ;;  %v759_v39 = vsel %vm659_vm5, %v609_v24, %v709_v28  ;;  %v354_v40 = vpop.f32.mrb[22].mxu0  ;;  %v458_v41 = vpop.f32.mrb[22].mxu1 }
 0x104   :  { %v1269_v42 = vpack.c.bf16 %v759_v39, %v758_v26  ;;  %v584_v43 = vadd.f32 %v1678_v29, %v527_v34  ;;  %v528_v44 = vmul.f32 %v1673_v27, %v354_v40  ;;  %v1381_v45 = vpop.f32.mrb[23].mxu0  ;;  %v610_v46 = vadd.f32 %v1678_v29, %v553_v36  ;;  %v1433_v47 = vpop.f32.mrb[23].mxu1 }
 0x105   :  { %1309 = vst [vmem:[%s1859_s4 + $0x20] sm:$0xff] %v1204_v38   ;;  %v554_v48 = vmul.f32 %v1673_v27, %v458_v41 }
 0x106   :  { %1322 = vst [vmem:[%s1859_s4 + $0x88] sm:$0xff] %v1269_v42   ;;  %v684_v49 = vmul.f32 0.1, %v584_v43  ;;  %v585_v50 = vadd.f32 %v1678_v29, %v528_v44  ;;  %vm660_vm6 = vcmp.ge.f32.partialorder %v610_v46, 0.0  ;;  %vm634_vm7 = vcmp.ge.f32.partialorder %v584_v43, 0.0 }
 0x107   :  { %v710_v51 = vmul.f32 0.1, %v610_v46  ;;  %v611_v52 = vadd.f32 %v1678_v29, %v554_v48 }
 0x108   :  { %vm635_vm8 = vcmp.ge.f32.partialorder %v585_v50, 0.0  ;;  %v685_v53 = vmul.f32 0.1, %v585_v50  ;;  %v734_v58 = vsel %vm634_vm7, %v584_v43, %v684_v49 }
 0x109   :  { %v760_v54 = vsel %vm660_vm6, %v610_v46, %v710_v51  ;;  %vm661_vm9 = vcmp.ge.f32.partialorder %v611_v52, 0.0  ;;  %v711_v55 = vmul.f32 0.1, %v611_v52  ;;  %v359_v56 = vpop.f32.mrb[24].mxu0  ;;  %v463_v57 = vpop.f32.mrb[24].mxu1 }
 0x10a   :  { %v735_v59 = vsel %vm635_vm8, %v585_v50, %v685_v53  ;;  %v529_v60 = vmul.f32 %v1673_v27, %v359_v56  ;;  %v1384_v61 = vpop.f32.mrb[25].mxu0  ;;  %v555_v62 = vmul.f32 %v1673_v27, %v463_v57  ;;  %v1436_v63 = vpop.f32.mrb[25].mxu1 }
 0x10b   :  { %v1209_v0 = vpack.c.bf16 %v735_v59, %v734_v58  ;;  %v761_v1 = vsel %vm661_vm9, %v611_v52, %v711_v55  ;;  %v362_v2 = vpop.f32.mrb[26].mxu0  ;;  %v466_v3 = vpop.f32.mrb[26].mxu1 }
 0x10c   :  { %v1274_v4 = vpack.c.bf16 %v761_v1, %v760_v54  ;;  %v586_v5 = vadd.f32 %v1678_v29, %v529_v60  ;;  %v530_v6 = vmul.f32 %v1673_v27, %v362_v2  ;;  %v1385_v7 = vpop.f32.mrb[27].mxu0  ;;  %v612_v8 = vadd.f32 %v1678_v29, %v555_v62  ;;  %v1437_v9 = vpop.f32.mrb[27].mxu1 }
 0x10d   :  { %1310 = vst [vmem:[%s1859_s4 + $0x28] sm:$0xff] %v1209_v0   ;;  %v556_v10 = vmul.f32 %v1673_v27, %v466_v3 }
 0x10e   :  { %1323 = vst [vmem:[%s1859_s4 + $0x90] sm:$0xff] %v1274_v4   ;;  %v686_v11 = vmul.f32 0.1, %v586_v5  ;;  %v587_v12 = vadd.f32 %v1678_v29, %v530_v6  ;;  %vm662_vm10 = vcmp.ge.f32.partialorder %v612_v8, 0.0  ;;  %vm636_vm11 = vcmp.ge.f32.partialorder %v586_v5, 0.0 }
 0x10f   :  { %v712_v13 = vmul.f32 0.1, %v612_v8  ;;  %v613_v14 = vadd.f32 %v1678_v29, %v556_v10 }
 0x110   :  { %vm637_vm12 = vcmp.ge.f32.partialorder %v587_v12, 0.0  ;;  %v687_v15 = vmul.f32 0.1, %v587_v12  ;;  %v736_v20 = vsel %vm636_vm11, %v586_v5, %v686_v11 }
 0x111   :  { %v762_v16 = vsel %vm662_vm10, %v612_v8, %v712_v13  ;;  %vm663_vm13 = vcmp.ge.f32.partialorder %v613_v14, 0.0  ;;  %v713_v17 = vmul.f32 0.1, %v613_v14  ;;  %v367_v18 = vpop.f32.mrb[28].mxu0  ;;  %v471_v19 = vpop.f32.mrb[28].mxu1 }
 0x112   :  { %v737_v21 = vsel %vm637_vm12, %v587_v12, %v687_v15  ;;  %v531_v22 = vmul.f32 %v1673_v27, %v367_v18  ;;  %v1388_v23 = vpop.f32.mrb[29].mxu0  ;;  %v557_v24 = vmul.f32 %v1673_v27, %v471_v19  ;;  %v1440_v25 = vpop.f32.mrb[29].mxu1 }
 0x113   :  { %v1214_v26 = vpack.c.bf16 %v737_v21, %v736_v20  ;;  %v763_v28 = vsel %vm663_vm13, %v613_v14, %v713_v17  ;;  %v370_v30 = vpop.f32.mrb[30].mxu0  ;;  %v474_v31 = vpop.f32.mrb[30].mxu1 }
 0x114   :  { %v1279_v32 = vpack.c.bf16 %v763_v28, %v762_v16  ;;  %v588_v33 = vadd.f32 %v1678_v29, %v531_v22  ;;  %v532_v34 = vmul.f32 %v1673_v27, %v370_v30  ;;  %v1389_v35 = vpop.f32.mrb[31].mxu0  ;;  %v614_v36 = vadd.f32 %v1678_v29, %v557_v24  ;;  %v1441_v37 = vpop.f32.mrb[31].mxu1 }
 0x115   :  { %1311 = vst [vmem:[%s1859_s4 + $0x30] sm:$0xff] %v1214_v26   ;;  %v558_v38 = vmul.f32 %v1673_v27, %v474_v31 }
 0x116   :  { %1324 = vst [vmem:[%s1859_s4 + $0x98] sm:$0xff] %v1279_v32   ;;  %v688_v39 = vmul.f32 0.1, %v588_v33  ;;  %v589_v40 = vadd.f32 %v1678_v29, %v532_v34  ;;  %vm664_vm14 = vcmp.ge.f32.partialorder %v614_v36, 0.0  ;;  %vm638_vm15 = vcmp.ge.f32.partialorder %v588_v33, 0.0 }
 0x117   :  { %v714_v41 = vmul.f32 0.1, %v614_v36  ;;  %v615_v42 = vadd.f32 %v1678_v29, %v558_v38 }
 0x118   :  { %vm639_vm0 = vcmp.ge.f32.partialorder %v589_v40, 0.0  ;;  %v689_v43 = vmul.f32 0.1, %v589_v40  ;;  %v738_v48 = vsel %vm638_vm15, %v588_v33, %v688_v39 }
 0x119   :  { %v764_v44 = vsel %vm664_vm14, %v614_v36, %v714_v41  ;;  %vm665_vm1 = vcmp.ge.f32.partialorder %v615_v42, 0.0  ;;  %v715_v45 = vmul.f32 0.1, %v615_v42  ;;  %v375_v46 = vpop.f32.mrb[32].mxu0  ;;  %v479_v47 = vpop.f32.mrb[32].mxu1 }
 0x11a   :  { %v739_v49 = vsel %vm639_vm0, %v589_v40, %v689_v43  ;;  %v533_v50 = vmul.f32 %v1673_v27, %v375_v46  ;;  %v1392_v51 = vpop.f32.mrb[33].mxu0  ;;  %v559_v52 = vmul.f32 %v1673_v27, %v479_v47  ;;  %v1444_v53 = vpop.f32.mrb[33].mxu1 }
 0x11b   :  { %v1219_v54 = vpack.c.bf16 %v739_v49, %v738_v48  ;;  %v765_v55 = vsel %vm665_vm1, %v615_v42, %v715_v45  ;;  %v378_v56 = vpop.f32.mrb[34].mxu0  ;;  %v482_v57 = vpop.f32.mrb[34].mxu1 }
 0x11c   :  { %v1284_v58 = vpack.c.bf16 %v765_v55, %v764_v44  ;;  %v590_v59 = vadd.f32 %v1678_v29, %v533_v50  ;;  %v534_v60 = vmul.f32 %v1673_v27, %v378_v56  ;;  %v1393_v61 = vpop.f32.mrb[35].mxu0  ;;  %v616_v62 = vadd.f32 %v1678_v29, %v559_v52  ;;  %v1445_v63 = vpop.f32.mrb[35].mxu1 }
 0x11d   :  { %1312 = vst [vmem:[%s1859_s4 + $0x38] sm:$0xff] %v1219_v54   ;;  %v560_v0 = vmul.f32 %v1673_v27, %v482_v57 }
 0x11e   :  { %1325 = vst [vmem:[%s1859_s4 + $0xa0] sm:$0xff] %v1284_v58   ;;  %v690_v1 = vmul.f32 0.1, %v590_v59  ;;  %v591_v2 = vadd.f32 %v1678_v29, %v534_v60  ;;  %vm666_vm2 = vcmp.ge.f32.partialorder %v616_v62, 0.0  ;;  %vm640_vm3 = vcmp.ge.f32.partialorder %v590_v59, 0.0 }
 0x11f   :  { %v716_v3 = vmul.f32 0.1, %v616_v62  ;;  %v617_v4 = vadd.f32 %v1678_v29, %v560_v0 }
 0x120   :  { %vm641_vm4 = vcmp.ge.f32.partialorder %v591_v2, 0.0  ;;  %v691_v5 = vmul.f32 0.1, %v591_v2  ;;  %v740_v10 = vsel %vm640_vm3, %v590_v59, %v690_v1 }
 0x121   :  { %v766_v6 = vsel %vm666_vm2, %v616_v62, %v716_v3  ;;  %vm667_vm5 = vcmp.ge.f32.partialorder %v617_v4, 0.0  ;;  %v717_v7 = vmul.f32 0.1, %v617_v4  ;;  %v383_v8 = vpop.f32.mrb[36].mxu0  ;;  %v487_v9 = vpop.f32.mrb[36].mxu1 }
 0x122   :  { %v741_v11 = vsel %vm641_vm4, %v591_v2, %v691_v5  ;;  %v535_v12 = vmul.f32 %v1673_v27, %v383_v8  ;;  %v1396_v13 = vpop.f32.mrb[37].mxu0  ;;  %v561_v14 = vmul.f32 %v1673_v27, %v487_v9  ;;  %v1448_v15 = vpop.f32.mrb[37].mxu1 }
 0x123   :  { %v1224_v16 = vpack.c.bf16 %v741_v11, %v740_v10  ;;  %v767_v17 = vsel %vm667_vm5, %v617_v4, %v717_v7  ;;  %v386_v18 = vpop.f32.mrb[38].mxu0  ;;  %v490_v19 = vpop.f32.mrb[38].mxu1 }
 0x124   :  { %v1289_v20 = vpack.c.bf16 %v767_v17, %v766_v6  ;;  %v592_v21 = vadd.f32 %v1678_v29, %v535_v12  ;;  %v536_v22 = vmul.f32 %v1673_v27, %v386_v18  ;;  %v1397_v23 = vpop.f32.mrb[39].mxu0  ;;  %v618_v24 = vadd.f32 %v1678_v29, %v561_v14  ;;  %v1449_v25 = vpop.f32.mrb[39].mxu1 }
 0x125   :  { %1313 = vst [vmem:[%s1859_s4 + $0x40] sm:$0xff] %v1224_v16   ;;  %v562_v26 = vmul.f32 %v1673_v27, %v490_v19 }
 0x126   :  { %1326 = vst [vmem:[%s1859_s4 + $0xa8] sm:$0xff] %v1289_v20   ;;  %v692_v28 = vmul.f32 0.1, %v592_v21  ;;  %v593_v30 = vadd.f32 %v1678_v29, %v536_v22  ;;  %vm668_vm6 = vcmp.ge.f32.partialorder %v618_v24, 0.0  ;;  %vm642_vm7 = vcmp.ge.f32.partialorder %v592_v21, 0.0 }
 0x127   :  { %v718_v31 = vmul.f32 0.1, %v618_v24  ;;  %v619_v32 = vadd.f32 %v1678_v29, %v562_v26 }
 0x128   :  { %vm643_vm8 = vcmp.ge.f32.partialorder %v593_v30, 0.0  ;;  %v693_v33 = vmul.f32 0.1, %v593_v30  ;;  %v742_v38 = vsel %vm642_vm7, %v592_v21, %v692_v28 }
 0x129   :  { %v768_v34 = vsel %vm668_vm6, %v618_v24, %v718_v31  ;;  %vm669_vm9 = vcmp.ge.f32.partialorder %v619_v32, 0.0  ;;  %v719_v35 = vmul.f32 0.1, %v619_v32  ;;  %v391_v36 = vpop.f32.mrb[40].mxu0  ;;  %v495_v37 = vpop.f32.mrb[40].mxu1 }
 0x12a   :  { %v743_v39 = vsel %vm643_vm8, %v593_v30, %v693_v33  ;;  %v537_v40 = vmul.f32 %v1673_v27, %v391_v36  ;;  %v1400_v41 = vpop.f32.mrb[41].mxu0  ;;  %v563_v42 = vmul.f32 %v1673_v27, %v495_v37  ;;  %v1452_v43 = vpop.f32.mrb[41].mxu1 }
 0x12b   :  { %v1229_v44 = vpack.c.bf16 %v743_v39, %v742_v38  ;;  %v769_v45 = vsel %vm669_vm9, %v619_v32, %v719_v35  ;;  %v394_v46 = vpop.f32.mrb[42].mxu0  ;;  %v498_v47 = vpop.f32.mrb[42].mxu1 }
 0x12c   :  { %v1294_v48 = vpack.c.bf16 %v769_v45, %v768_v34  ;;  %v594_v49 = vadd.f32 %v1678_v29, %v537_v40  ;;  %v538_v50 = vmul.f32 %v1673_v27, %v394_v46  ;;  %v1401_v51 = vpop.f32.mrb[43].mxu0  ;;  %v620_v52 = vadd.f32 %v1678_v29, %v563_v42  ;;  %v1453_v53 = vpop.f32.mrb[43].mxu1 }
 0x12d   :  { %1314 = vst [vmem:[%s1859_s4 + $0x48] sm:$0xff] %v1229_v44   ;;  %v564_v54 = vmul.f32 %v1673_v27, %v498_v47 }
 0x12e   :  { %1327 = vst [vmem:[%s1859_s4 + $0xb0] sm:$0xff] %v1294_v48   ;;  %v694_v55 = vmul.f32 0.1, %v594_v49  ;;  %v595_v56 = vadd.f32 %v1678_v29, %v538_v50  ;;  %vm670_vm10 = vcmp.ge.f32.partialorder %v620_v52, 0.0  ;;  %vm644_vm11 = vcmp.ge.f32.partialorder %v594_v49, 0.0 }
 0x12f   :  { %v720_v57 = vmul.f32 0.1, %v620_v52  ;;  %v621_v58 = vadd.f32 %v1678_v29, %v564_v54 }
 0x130   :  { %vm645_vm12 = vcmp.ge.f32.partialorder %v595_v56, 0.0  ;;  %v695_v59 = vmul.f32 0.1, %v595_v56  ;;  %v744_v0 = vsel %vm644_vm11, %v594_v49, %v694_v55 }
 0x131   :  { %v770_v60 = vsel %vm670_vm10, %v620_v52, %v720_v57  ;;  %vm671_vm13 = vcmp.ge.f32.partialorder %v621_v58, 0.0  ;;  %v721_v61 = vmul.f32 0.1, %v621_v58  ;;  %v399_v62 = vpop.f32.mrb[44].mxu0  ;;  %v503_v63 = vpop.f32.mrb[44].mxu1 }
 0x132   :  { %v745_v1 = vsel %vm645_vm12, %v595_v56, %v695_v59  ;;  %v539_v2 = vmul.f32 %v1673_v27, %v399_v62  ;;  %v1404_v3 = vpop.f32.mrb[45].mxu0  ;;  %v565_v4 = vmul.f32 %v1673_v27, %v503_v63  ;;  %v1456_v5 = vpop.f32.mrb[45].mxu1 }
 0x133   :  { %v1234_v6 = vpack.c.bf16 %v745_v1, %v744_v0  ;;  %v771_v7 = vsel %vm671_vm13, %v621_v58, %v721_v61  ;;  %v402_v8 = vpop.f32.mrb[46].mxu0  ;;  %v506_v9 = vpop.f32.mrb[46].mxu1 }
 0x134   :  { %v1299_v10 = vpack.c.bf16 %v771_v7, %v770_v60  ;;  %v596_v11 = vadd.f32 %v1678_v29, %v539_v2  ;;  %v540_v12 = vmul.f32 %v1673_v27, %v402_v8  ;;  %v1405_v13 = vpop.f32.mrb[47].mxu0  ;;  %v622_v14 = vadd.f32 %v1678_v29, %v565_v4  ;;  %v1457_v15 = vpop.f32.mrb[47].mxu1 }
 0x135   :  { %1315 = vst [vmem:[%s1859_s4 + $0x50] sm:$0xff] %v1234_v6   ;;  %v566_v16 = vmul.f32 %v1673_v27, %v506_v9 }
 0x136   :  { %1328 = vst [vmem:[%s1859_s4 + $0xb8] sm:$0xff] %v1299_v10   ;;  %v696_v17 = vmul.f32 0.1, %v596_v11  ;;  %v597_v18 = vadd.f32 %v1678_v29, %v540_v12  ;;  %vm672_vm14 = vcmp.ge.f32.partialorder %v622_v14, 0.0  ;;  %vm646_vm15 = vcmp.ge.f32.partialorder %v596_v11, 0.0 }
 0x137   :  { %v722_v19 = vmul.f32 0.1, %v622_v14  ;;  %v623_v20 = vadd.f32 %v1678_v29, %v566_v16 }
 0x138   :  { %vm647_vm0 = vcmp.ge.f32.partialorder %v597_v18, 0.0  ;;  %v697_v21 = vmul.f32 0.1, %v597_v18  ;;  %v746_v25 = vsel %vm646_vm15, %v596_v11, %v696_v17 }
 0x139   :  { %v772_v22 = vsel %vm672_vm14, %v622_v14, %v722_v19  ;;  %vm673_vm1 = vcmp.ge.f32.partialorder %v623_v20, 0.0  ;;  %v723_v23 = vmul.f32 0.1, %v623_v20  ;;  %v407_v24 = vpop.f32.mrb[48].mxu0 }
 0x13a   :  { %v747_v26 = vsel %vm647_vm0, %v597_v18, %v697_v21  ;;  %v541_v28 = vmul.f32 %v1673_v27, %v407_v24  ;;  %v1408_v30 = vpop.f32.mrb[49].mxu0 }
 0x13b   :  { %v1239_v31 = vpack.c.bf16 %v747_v26, %v746_v25  ;;  %v773_v32 = vsel %vm673_vm1, %v623_v20, %v723_v23  ;;  %v410_v33 = vpop.f32.mrb[50].mxu0 }
 0x13c   :  { %v1304_v34 = vpack.c.bf16 %v773_v32, %v772_v22  ;;  %v598_v35 = vadd.f32 %v1678_v29, %v541_v28  ;;  %v542_v36 = vmul.f32 %v1673_v27, %v410_v33  ;;  %v1409_v37 = vpop.f32.mrb[51].mxu0 }
 0x13d   :  { %1316 = vst [vmem:[%s1859_s4 + $0x58] sm:$0xff] %v1239_v31  }
 0x13e   :  { %1329 = vst [vmem:[%s1859_s4 + $0xc0] sm:$0xff] %v1304_v34   ;;  %v698_v38 = vmul.f32 0.1, %v598_v35  ;;  %v599_v39 = vadd.f32 %v1678_v29, %v542_v36  ;;  %vm648_vm2 = vcmp.ge.f32.partialorder %v598_v35, 0.0 }
 0x140   :  { %vm649_vm3 = vcmp.ge.f32.partialorder %v599_v39, 0.0  ;;  %v699_v40 = vmul.f32 0.1, %v599_v39  ;;  %v748_v41 = vsel %vm648_vm2, %v598_v35, %v698_v38 }
 0x142   :  { %v749_v42 = vsel %vm649_vm3, %v599_v39, %v699_v40 }
 0x143   :  { %v1244_v43 = vpack.c.bf16 %v749_v42, %v748_v41 }
 0x145   :  { %1317 = vst [vmem:[%s1859_s4 + $0x60] sm:$0xff] %v1244_v43  }

// kernel: _lambda_.4
= control target key start
LH: loop header
LB: loop body
LE: loop exit
PB: predicated region body
PF: predicated region fallthrough
CT: control target
= control target key end

     0   :  { %s2353_s1 = inlined_call_operand.vmem [shape: bf16[1024,128], index: 1, kind: input, shape index: {}]   ;;  %s2354_s0 = inlined_call_operand.vmem [shape: bf16[112,1024], index: 0, kind: input, shape index: {}]   ;;  %s2355_s2 = inlined_call_operand.vmem [shape: f32[1,128], index: 2, kind: input, shape index: {}]   ;;  %s2356_s3 = inlined_call_operand.vmem [shape: f32[1,128], index: 3, kind: input, shape index: {}]   ;;  %s2357_s4 = inlined_call_operand.vmem [shape: bf16[112,128], index: 4, kind: output, shape index: {}]  }
   0x1   :  { %v1803_v0 = vld [vmem:[%s2353_s1 + $0x40] sm:$0xff]   ;;  %v1807_v4 = vld [vmem:[%s2353_s1 + $0x48] sm:$0xff]   ;;  %v1811_v8 = vld [vmem:[%s2353_s1 + $0x50] sm:$0xff]  }
   0x2   :  { %v1804_v1 = vld [vmem:[%s2353_s1 + $0xc0] sm:$0xff]   ;;  %1571 = vmatprep.subr.bf16.mxu0 %v1803_v0  ;;  %v1808_v5 = vld [vmem:[%s2353_s1 + $0xc8] sm:$0xff]   ;;  %v1812_v9 = vld [vmem:[%s2353_s1 + $0xd0] sm:$0xff]  }
   0x3   :  { %v1805_v2 = vld [vmem:[%s2353_s1] sm:$0xff]   ;;  %1629 = vmatprep.subr.bf16.mxu1 %v1804_v1  ;;  %v1809_v6 = vld [vmem:[%s2353_s1 + $0x8] sm:$0xff]   ;;  %v1813_v10 = vld [vmem:[%s2353_s1 + $0x10] sm:$0xff]  }
   0x4   :  { %v1806_v3 = vld [vmem:[%s2353_s1 + $0x80] sm:$0xff]   ;;  %1572 = vmatpush3.bf16.msra.mxu0 %v1805_v2  ;;  %v1810_v7 = vld [vmem:[%s2353_s1 + $0x88] sm:$0xff]   ;;  %v1814_v11 = vld [vmem:[%s2353_s1 + $0x90] sm:$0xff]  }
   0x5   :  { %1630 = vmatpush3.bf16.msra.mxu1 %v1806_v3  ;;  %1573 = vmatprep.subr.bf16.mxu0 %v1807_v4  ;;  %v1815_v12 = vld [vmem:[%s2353_s1 + $0x58] sm:$0xff]   ;;  %v1819_v16 = vld [vmem:[%s2353_s1 + $0x60] sm:$0xff]   ;;  %v1823_v20 = vld [vmem:[%s2353_s1 + $0x68] sm:$0xff]  }
   0x6   :  { %1631 = vmatprep.subr.bf16.mxu1 %v1808_v5  ;;  %v1816_v13 = vld [vmem:[%s2353_s1 + $0xd8] sm:$0xff]   ;;  %v1820_v17 = vld [vmem:[%s2353_s1 + $0xe0] sm:$0xff]   ;;  %v1824_v21 = vld [vmem:[%s2353_s1 + $0xe8] sm:$0xff]  }
   0x7   :  { %v1817_v14 = vld [vmem:[%s2353_s1 + $0x18] sm:$0xff]   ;;  %v1821_v18 = vld [vmem:[%s2353_s1 + $0x20] sm:$0xff]   ;;  %v1825_v22 = vld [vmem:[%s2353_s1 + $0x28] sm:$0xff]  }
   0x8   :  { %1574 = vmatpush3.bf16.msra.mxu0 %v1809_v6  ;;  %v1818_v15 = vld [vmem:[%s2353_s1 + $0x98] sm:$0xff]   ;;  %v1822_v19 = vld [vmem:[%s2353_s1 + $0xa0] sm:$0xff]   ;;  %v1826_v23 = vld [vmem:[%s2353_s1 + $0xa8] sm:$0xff]  }
   0x9   :  { %1632 = vmatpush3.bf16.msra.mxu1 %v1810_v7  ;;  %1575 = vmatprep.subr.bf16.mxu0 %v1811_v8  ;;  %v1827_v24 = vld [vmem:[%s2353_s1 + $0x70] sm:$0xff]   ;;  %v1831_v28 = vld [vmem:[%s2353_s1 + $0x78] sm:$0xff]   ;;  %v18_v32 = vld [vmem:[%s2354_s0] sm:$0xff] }
   0xa   :  { %1633 = vmatprep.subr.bf16.mxu1 %v1812_v9  ;;  %v1828_v25 = vld [vmem:[%s2353_s1 + $0xf0] sm:$0xff]   ;;  %v1832_v29 = vld [vmem:[%s2353_s1 + $0xf8] sm:$0xff]   ;;  %v22_v33 = vld [vmem:[%s2354_s0 + $0x20] sm:$0xff] }
   0xb   :  { %v1829_v26 = vld [vmem:[%s2353_s1 + $0x30] sm:$0xff]   ;;  %v1833_v30 = vld [vmem:[%s2353_s1 + $0x38] sm:$0xff]   ;;  %v19_v34 = vld [vmem:[%s2354_s0 + $0x8] sm:$0xff]  ;;  %v1380_v35 = vcombine.low %v18_v32, %v22_v33  ;;  %v1381_v36 = vcombine.high %v18_v32, %v22_v33 }
   0xc   :  { %1576 = vmatpush3.bf16.msra.mxu0 %v1813_v10  ;;  %v1830_v27 = vld [vmem:[%s2353_s1 + $0xb0] sm:$0xff]   ;;  %v1834_v31 = vld [vmem:[%s2353_s1 + $0xb8] sm:$0xff]   ;;  %v23_v37 = vld [vmem:[%s2354_s0 + $0x28] sm:$0xff] }
   0xd   :  { %1634 = vmatpush3.bf16.msra.mxu1 %v1814_v11  ;;  %1577 = vmatprep.subr.bf16.mxu0 %v1815_v12  ;;  %v1382_v38 = vcombine.low %v19_v34, %v23_v37  ;;  %v1383_v39 = vcombine.high %v19_v34, %v23_v37  ;;  %v1835_v40 = vld [vmem:[%s2353_s1 + $0x140] sm:$0xff]   ;;  %v27_v47 = vld [vmem:[%s2354_s0 + $0x48] sm:$0xff]  ;;  %v1843_v56 = vld [vmem:[%s2353_s1 + $0x150] sm:$0xff]  }
   0xe   :  { %1635 = vmatprep.subr.bf16.mxu1 %v1816_v13  ;;  %898 = vmatprep.mubr.bf16.mxu0 %v1381_v36  ;;  %v1836_v41 = vld [vmem:[%s2353_s1 + $0x100] sm:$0xff]   ;;  %v31_v48 = vld [vmem:[%s2354_s0 + $0x68] sm:$0xff]  ;;  %v1844_v63 = vld [vmem:[%s2353_s1 + $0x110] sm:$0xff]  }
   0xf   :  { %987 = vmatprep.mubr.bf16.mxu1 %v1383_v39  ;;  %v1837_v42 = vld [vmem:[%s2353_s1 + $0x1c0] sm:$0xff]   ;;  %v1391_v49 = vcombine.high %v27_v47, %v31_v48  ;;  %v1839_v50 = vld [vmem:[%s2353_s1 + $0x148] sm:$0xff]   ;;  %v1390_v53 = vcombine.low %v27_v47, %v31_v48  ;;  %v1845_v0 = vld [vmem:[%s2353_s1 + $0x1d0] sm:$0xff]  }
  0x10   :  { %1578 = vmatpush3.bf16.msra.mxu0 %v1817_v14  ;;  %v1838_v43 = vld [vmem:[%s2353_s1 + $0x180] sm:$0xff]   ;;  %v1840_v52 = vld [vmem:[%s2353_s1 + $0x108] sm:$0xff]   ;;  %v1846_v1 = vld [vmem:[%s2353_s1 + $0x190] sm:$0xff]  }
  0x11   :  { %1636 = vmatpush3.bf16.msra.mxu1 %v1818_v15  ;;  %1579 = vmatprep.subr.bf16.mxu0 %v1819_v16  ;;  %v26_v44 = vld [vmem:[%s2354_s0 + $0x40] sm:$0xff]  ;;  %v1841_v54 = vld [vmem:[%s2353_s1 + $0x1c8] sm:$0xff]   ;;  %v1847_v3 = vld [vmem:[%s2353_s1 + $0x158] sm:$0xff]  }
  0x12   :  { %1637 = vmatprep.subr.bf16.mxu1 %v1820_v17  ;;  %v30_v45 = vld [vmem:[%s2354_s0 + $0x60] sm:$0xff]  ;;  %v1842_v55 = vld [vmem:[%s2353_s1 + $0x188] sm:$0xff]   ;;  %v1848_v5 = vld [vmem:[%s2353_s1 + $0x118] sm:$0xff]  }
  0x13   :  { %v1389_v46 = vcombine.high %v26_v44, %v30_v45  ;;  %v1388_v51 = vcombine.low %v26_v44, %v30_v45  ;;  %v34_v57 = vld [vmem:[%s2354_s0 + $0x80] sm:$0xff]  ;;  %v35_v59 = vld [vmem:[%s2354_s0 + $0x88] sm:$0xff]  ;;  %v1849_v12 = vld [vmem:[%s2353_s1 + $0x1d8] sm:$0xff]  }
  0x14   :  { %1580 = vmatpush3.bf16.msra.mxu0 %v1821_v18  ;;  %v38_v58 = vld [vmem:[%s2354_s0 + $0xa0] sm:$0xff]  ;;  %v39_v60 = vld [vmem:[%s2354_s0 + $0xa8] sm:$0xff]  ;;  %v1850_v13 = vld [vmem:[%s2353_s1 + $0x198] sm:$0xff]  }
  0x15   :  { %1638 = vmatpush3.bf16.msra.mxu1 %v1822_v19  ;;  %1581 = vmatprep.subr.bf16.mxu0 %v1823_v20  ;;  %v1397_v61 = vcombine.high %v34_v57, %v38_v58  ;;  %v1399_v62 = vcombine.high %v35_v59, %v39_v60  ;;  %v1396_v2 = vcombine.low %v34_v57, %v38_v58  ;;  %v42_v6 = vld [vmem:[%s2354_s0 + $0xc0] sm:$0xff]  ;;  %v43_v8 = vld [vmem:[%s2354_s0 + $0xc8] sm:$0xff]  ;;  %v1864_v47 = vld [vmem:[%s2353_s1 + $0x138] sm:$0xff]  }
  0x16   :  { %1639 = vmatprep.subr.bf16.mxu1 %v1824_v21  ;;  %v1398_v4 = vcombine.low %v35_v59, %v39_v60  ;;  %v46_v7 = vld [vmem:[%s2354_s0 + $0xe0] sm:$0xff]  ;;  %v47_v10 = vld [vmem:[%s2354_s0 + $0xe8] sm:$0xff]  ;;  %v25_v57 = vld [vmem:[%s2354_s0 + $0x38] sm:$0xff] }
  0x17   :  { %v1405_v9 = vcombine.high %v42_v6, %v46_v7  ;;  %v1407_v11 = vcombine.high %v43_v8, %v47_v10  ;;  %v1851_v14 = vld [vmem:[%s2353_s1 + $0x160] sm:$0xff]   ;;  %v1404_v16 = vcombine.low %v42_v6, %v46_v7  ;;  %v1406_v20 = vcombine.low %v43_v8, %v47_v10  ;;  %v59_v32 = vld [vmem:[%s2354_s0 + $0x148] sm:$0xff]  ;;  %v36_v6 = vld [vmem:[%s2354_s0 + $0x90] sm:$0xff] }
  0x18   :  { %1582 = vmatpush3.bf16.msra.mxu0 %v1825_v22  ;;  %v1852_v15 = vld [vmem:[%s2353_s1 + $0x120] sm:$0xff]   ;;  %v51_v22 = vld [vmem:[%s2354_s0 + $0x108] sm:$0xff]  ;;  %v40_v7 = vld [vmem:[%s2354_s0 + $0xb0] sm:$0xff] }
  0x19   :  { %1640 = vmatpush3.bf16.msra.mxu1 %v1826_v23  ;;  %1583 = vmatprep.subr.bf16.mxu0 %v1827_v24  ;;  %v1853_v17 = vld [vmem:[%s2353_s1 + $0x1e0] sm:$0xff]   ;;  %v55_v23 = vld [vmem:[%s2354_s0 + $0x128] sm:$0xff]  ;;  %v37_v8 = vld [vmem:[%s2354_s0 + $0x98] sm:$0xff] }
  0x1a   :  { %1641 = vmatprep.subr.bf16.mxu1 %v1828_v25  ;;  %v50_v18 = vld [vmem:[%s2354_s0 + $0x100] sm:$0xff]  ;;  %v1415_v24 = vcombine.high %v51_v22, %v55_v23  ;;  %v63_v33 = vld [vmem:[%s2354_s0 + $0x168] sm:$0xff]  ;;  %v1414_v36 = vcombine.low %v51_v22, %v55_v23  ;;  %v52_v22 = vld [vmem:[%s2354_s0 + $0x110] sm:$0xff] }
  0x1b   :  { %v54_v19 = vld [vmem:[%s2354_s0 + $0x120] sm:$0xff]  ;;  %v1423_v39 = vcombine.high %v59_v32, %v63_v33  ;;  %v67_v44 = vld [vmem:[%s2354_s0 + $0x188] sm:$0xff]  ;;  %v56_v23 = vld [vmem:[%s2354_s0 + $0x130] sm:$0xff] }
  0x1c   :  { %1584 = vmatpush3.bf16.msra.mxu0 %v1829_v26  ;;  %v1413_v21 = vcombine.high %v50_v18, %v54_v19  ;;  %v1854_v25 = vld [vmem:[%s2353_s1 + $0x1a0] sm:$0xff]   ;;  %v1855_v26 = vld [vmem:[%s2353_s1 + $0x168] sm:$0xff]   ;;  %v1412_v34 = vcombine.low %v50_v18, %v54_v19  ;;  %v1400_v18 = vcombine.low %v36_v6, %v40_v7 }
  0x1d   :  { %1642 = vmatpush3.bf16.msra.mxu1 %v1830_v27  ;;  %1585 = vmatprep.subr.bf16.mxu0 %v1831_v28  ;;  %v1856_v27 = vld [vmem:[%s2353_s1 + $0x128] sm:$0xff]  }
  0x1e   :  { %1643 = vmatprep.subr.bf16.mxu1 %v1832_v29  ;;  %v1857_v28 = vld [vmem:[%s2353_s1 + $0x1e8] sm:$0xff]  }
  0x1f   :  { %v1858_v29 = vld [vmem:[%s2353_s1 + $0x1a8] sm:$0xff]  }
  0x20   :  { %1586 = vmatpush3.bf16.msra.mxu0 %v1833_v30  ;;  %v58_v30 = vld [vmem:[%s2354_s0 + $0x140] sm:$0xff]  ;;  %v71_v45 = vld [vmem:[%s2354_s0 + $0x1a8] sm:$0xff] }
  0x21   :  { %1644 = vmatpush3.bf16.msra.mxu1 %v1834_v31  ;;  %1687 = vmatprep.subr.bf16.mxu0 %v1835_v40  ;;  %v62_v31 = vld [vmem:[%s2354_s0 + $0x160] sm:$0xff]  ;;  %v1861_v40 = vld [vmem:[%s2353_s1 + $0x1f0] sm:$0xff]   ;;  %v1430_v59 = vcombine.low %v67_v44, %v71_v45 }
  0x22   :  { %1745 = vmatprep.subr.bf16.mxu1 %v1837_v42  ;;  %v1421_v37 = vcombine.high %v58_v30, %v62_v31  ;;  %v66_v42 = vld [vmem:[%s2354_s0 + $0x180] sm:$0xff]  ;;  %v1420_v48 = vcombine.low %v58_v30, %v62_v31  ;;  %v60_v30 = vld [vmem:[%s2354_s0 + $0x150] sm:$0xff] }
  0x23   :  { %899 = vmatmul.mubr.bf16.vlgmr.msra.gmra.mrb[0].mxu0 %v1380_v35  ;;  %v1859_v35 = vld [vmem:[%s2353_s1 + $0x170] sm:$0xff]  }
  0x24   :  { %988 = vmatmul.mubr.bf16.vlgmr.msra.gmra.mrb[0].mxu1 %v1382_v38  ;;  %1688 = vmatpush3.bf16.msra.mxu0 %v1836_v41  ;;  %v1860_v38 = vld [vmem:[%s2353_s1 + $0x130] sm:$0xff]  }
  0x25   :  { %1746 = vmatpush3.bf16.msra.mxu1 %v1838_v43  ;;  %906 = vmatprep.mubr.bf16.mxu0 %v1389_v46  ;;  %v1862_v41 = vld [vmem:[%s2353_s1 + $0x1b0] sm:$0xff]   ;;  %v70_v43 = vld [vmem:[%s2354_s0 + $0x1a0] sm:$0xff]  ;;  %v1863_v46 = vld [vmem:[%s2353_s1 + $0x178] sm:$0xff]  }
  0x26   :  { %995 = vmatprep.mubr.bf16.mxu1 %v1391_v49  ;;  %1689 = vmatprep.subr.bf16.mxu0 %v1839_v50  ;;  %v1865_v49 = vld [vmem:[%s2353_s1 + $0x1f8] sm:$0xff]   ;;  %v1422_v50 = vcombine.low %v59_v32, %v63_v33  ;;  %v1428_v58 = vcombine.low %v66_v42, %v70_v43  ;;  %v64_v31 = vld [vmem:[%s2354_s0 + $0x170] sm:$0xff] }
  0x27   :  { %1747 = vmatprep.subr.bf16.mxu1 %v1841_v54  ;;  %v20_v54 = vld [vmem:[%s2354_s0 + $0x10] sm:$0xff]  ;;  %v61_v32 = vld [vmem:[%s2354_s0 + $0x158] sm:$0xff] }
  0x28   :  { %1690 = vmatpush3.bf16.msra.mxu0 %v1840_v52  ;;  %v1866_v52 = vld [vmem:[%s2353_s1 + $0x1b8] sm:$0xff]  }
  0x29   :  { %1748 = vmatpush3.bf16.msra.mxu1 %v1842_v55  ;;  %1691 = vmatprep.subr.bf16.mxu0 %v1843_v56  ;;  %v24_v55 = vld [vmem:[%s2354_s0 + $0x30] sm:$0xff]  ;;  %v21_v56 = vld [vmem:[%s2354_s0 + $0x18] sm:$0xff] }
  0x2a   :  { %1749 = vmatprep.subr.bf16.mxu1 %v1845_v0  ;;  %v1385_v60 = vcombine.high %v20_v54, %v24_v55  ;;  %v29_v0 = vld [vmem:[%s2354_s0 + $0x58] sm:$0xff] }
  0x2b   :  { %907 = vmatmul.mubr.bf16.gmra.mrb[4].mxu0 %v1388_v51  ;;  %v1429_v51 = vcombine.high %v66_v42, %v70_v43  ;;  %v65_v33 = vld [vmem:[%s2354_s0 + $0x178] sm:$0xff]  ;;  %v1424_v42 = vcombine.low %v60_v30, %v64_v31 }
  0x2c   :  { %996 = vmatmul.mubr.bf16.gmra.mrb[4].mxu1 %v1390_v53  ;;  %914 = vmatprep.mubr.bf16.mxu0 %v1397_v61  ;;  %v1431_v53 = vcombine.high %v67_v44, %v71_v45  ;;  %v1387_v61 = vcombine.high %v21_v56, %v25_v57  ;;  %v1426_v43 = vcombine.low %v61_v32, %v65_v33 }
  0x2d   :  { %1003 = vmatprep.mubr.bf16.mxu1 %v1399_v62  ;;  %1692 = vmatpush3.bf16.msra.mxu0 %v1844_v63  ;;  %v28_v62 = vld [vmem:[%s2354_s0 + $0x50] sm:$0xff] }
  0x2e   :  { %1750 = vmatpush3.bf16.msra.mxu1 %v1846_v1  ;;  %1693 = vmatprep.subr.bf16.mxu0 %v1847_v3  ;;  %v32_v63 = vld [vmem:[%s2354_s0 + $0x70] sm:$0xff]  ;;  %v33_v1 = vld [vmem:[%s2354_s0 + $0x78] sm:$0xff]  ;;  %v1386_v3 = vcombine.low %v21_v56, %v25_v57 }
  0x2f   :  { %1751 = vmatprep.subr.bf16.mxu1 %v1849_v12  ;;  %v1392_v10 = vcombine.low %v28_v62, %v32_v63  ;;  %v1401_v12 = vcombine.high %v36_v6, %v40_v7 }
  0x31   :  { %1694 = vmatpush3.bf16.msra.mxu0 %v1848_v5  ;;  %v1395_v5 = vcombine.high %v29_v0, %v33_v1 }
  0x32   :  { %1752 = vmatpush3.bf16.msra.mxu1 %v1850_v13  ;;  %1695 = vmatprep.subr.bf16.mxu0 %v1851_v14  ;;  %v44_v14 = vld [vmem:[%s2354_s0 + $0xd0] sm:$0xff] }
  0x33   :  { %915 = vmatmul.mubr.bf16.gmra.mrb[8].mxu0 %v1396_v2  ;;  %1753 = vmatprep.subr.bf16.mxu1 %v1853_v17  ;;  %v1384_v2 = vcombine.low %v20_v54, %v24_v55  ;;  %v49_v17 = vld [vmem:[%s2354_s0 + $0xf8] sm:$0xff] }
  0x34   :  { %1004 = vmatmul.mubr.bf16.gmra.mrb[8].mxu1 %v1398_v4  ;;  %922 = vmatprep.mubr.bf16.mxu0 %v1405_v9  ;;  %v1393_v4 = vcombine.high %v28_v62, %v32_v63  ;;  %v41_v9 = vld [vmem:[%s2354_s0 + $0xb8] sm:$0xff] }
  0x35   :  { %1011 = vmatprep.mubr.bf16.mxu1 %v1407_v11  ;;  %1696 = vmatpush3.bf16.msra.mxu0 %v1852_v15  ;;  %v1394_v11 = vcombine.low %v29_v0, %v33_v1  ;;  %v1403_v13 = vcombine.high %v37_v8, %v41_v9  ;;  %v48_v15 = vld [vmem:[%s2354_s0 + $0xf0] sm:$0xff]  ;;  %v1402_v19 = vcombine.low %v37_v8, %v41_v9 }
  0x36   :  { %1754 = vmatpush3.bf16.msra.mxu1 %v1854_v25  ;;  %1697 = vmatprep.subr.bf16.mxu0 %v1855_v26  ;;  %v57_v25 = vld [vmem:[%s2354_s0 + $0x138] sm:$0xff]  ;;  %v1408_v26 = vcombine.low %v44_v14, %v48_v15 }
  0x37   :  { %1755 = vmatprep.subr.bf16.mxu1 %v1857_v28  ;;  %v1417_v28 = vcombine.high %v52_v22, %v56_v23 }
  0x39   :  { %1698 = vmatpush3.bf16.msra.mxu0 %v1856_v27 }
  0x3a   :  { %1756 = vmatpush3.bf16.msra.mxu1 %v1858_v29  ;;  %1699 = vmatprep.subr.bf16.mxu0 %v1859_v35 }
  0x3b   :  { %923 = vmatmul.mubr.bf16.gmra.mrb[12].mxu0 %v1404_v16  ;;  %1757 = vmatprep.subr.bf16.mxu1 %v1861_v40  ;;  %v45_v16 = vld [vmem:[%s2354_s0 + $0xd8] sm:$0xff] }
  0x3c   :  { %1012 = vmatmul.mubr.bf16.gmra.mrb[12].mxu1 %v1406_v20  ;;  %930 = vmatprep.mubr.bf16.mxu0 %v1413_v21  ;;  %v1409_v20 = vcombine.high %v44_v14, %v48_v15  ;;  %v1411_v21 = vcombine.high %v45_v16, %v49_v17  ;;  %v1410_v27 = vcombine.low %v45_v16, %v49_v17  ;;  %v69_v40 = vld [vmem:[%s2354_s0 + $0x198] sm:$0xff] }
  0x3d   :  { %1019 = vmatprep.mubr.bf16.mxu1 %v1415_v24  ;;  %1700 = vmatpush3.bf16.msra.mxu0 %v1860_v38  ;;  %v53_v24 = vld [vmem:[%s2354_s0 + $0x118] sm:$0xff]  ;;  %v68_v38 = vld [vmem:[%s2354_s0 + $0x190] sm:$0xff] }
  0x3e   :  { %1758 = vmatpush3.bf16.msra.mxu1 %v1862_v41  ;;  %1701 = vmatprep.subr.bf16.mxu0 %v1863_v46  ;;  %v1419_v29 = vcombine.high %v53_v24, %v57_v25  ;;  %v1418_v35 = vcombine.low %v53_v24, %v57_v25  ;;  %v73_v41 = vld [vmem:[%s2354_s0 + $0x1b8] sm:$0xff] }
  0x3f   :  { %1759 = vmatprep.subr.bf16.mxu1 %v1865_v49  ;;  %v1435_v45 = vcombine.high %v69_v40, %v73_v41 }
  0x41   :  { %1702 = vmatpush3.bf16.msra.mxu0 %v1864_v47  ;;  %v1434_v47 = vcombine.low %v69_v40, %v73_v41 }
  0x42   :  { %1760 = vmatpush3.bf16.msra.mxu1 %v1866_v52 }
  0x43   :  { %931 = vmatmul.mubr.bf16.gmra.mrb[16].mxu0 %v1412_v34  ;;  %v1416_v34 = vcombine.low %v52_v22, %v56_v23 }
  0x44   :  { %1020 = vmatmul.mubr.bf16.gmra.mrb[16].mxu1 %v1414_v36  ;;  %938 = vmatprep.mubr.bf16.mxu0 %v1421_v37  ;;  %v1425_v36 = vcombine.high %v60_v30, %v64_v31  ;;  %v1427_v37 = vcombine.high %v61_v32, %v65_v33 }
  0x45   :  { %1027 = vmatprep.mubr.bf16.mxu1 %v1423_v39  ;;  %v72_v39 = vld [vmem:[%s2354_s0 + $0x1b0] sm:$0xff] }
  0x46   :  { %v1433_v44 = vcombine.high %v68_v38, %v72_v39  ;;  %v1432_v46 = vcombine.low %v68_v38, %v72_v39 }
  0x4b   :  { %939 = vmatmul.mubr.bf16.gmra.mrb[20].mxu0 %v1420_v48 }
  0x4c   :  { %1028 = vmatmul.mubr.bf16.gmra.mrb[20].mxu1 %v1422_v50  ;;  %946 = vmatprep.mubr.bf16.mxu0 %v1429_v51 }
  0x4d   :  { %1035 = vmatprep.mubr.bf16.mxu1 %v1431_v53 }
  0x53   :  { %947 = vmatmul.mubr.bf16.gmra.mrb[24].mxu0 %v1428_v58 }
  0x54   :  { %1036 = vmatmul.mubr.bf16.gmra.mrb[24].mxu1 %v1430_v59  ;;  %1076 = vmatprep.mubr.bf16.mxu0 %v1385_v60 }
  0x55   :  { %1165 = vmatprep.mubr.bf16.mxu1 %v1387_v61 }
  0x5b   :  { %1077 = vmatmul.mubr.bf16.vlgmr.msra.gmra.mrb[28].mxu0 %v1384_v2 }
  0x5c   :  { %1166 = vmatmul.mubr.bf16.vlgmr.msra.gmra.mrb[28].mxu1 %v1386_v3  ;;  %1084 = vmatprep.mubr.bf16.mxu0 %v1393_v4 }
  0x5d   :  { %1173 = vmatprep.mubr.bf16.mxu1 %v1395_v5 }
  0x63   :  { %1085 = vmatmul.mubr.bf16.gmra.mrb[32].mxu0 %v1392_v10 }
  0x64   :  { %1174 = vmatmul.mubr.bf16.gmra.mrb[32].mxu1 %v1394_v11  ;;  %1092 = vmatprep.mubr.bf16.mxu0 %v1401_v12 }
  0x65   :  { %1181 = vmatprep.mubr.bf16.mxu1 %v1403_v13 }
  0x6b   :  { %1093 = vmatmul.mubr.bf16.gmra.mrb[36].mxu0 %v1400_v18 }
  0x6c   :  { %1182 = vmatmul.mubr.bf16.gmra.mrb[36].mxu1 %v1402_v19  ;;  %1100 = vmatprep.mubr.bf16.mxu0 %v1409_v20 }
  0x6d   :  { %1189 = vmatprep.mubr.bf16.mxu1 %v1411_v21 }
  0x73   :  { %1101 = vmatmul.mubr.bf16.gmra.mrb[40].mxu0 %v1408_v26 }
  0x74   :  { %1190 = vmatmul.mubr.bf16.gmra.mrb[40].mxu1 %v1410_v27  ;;  %1108 = vmatprep.mubr.bf16.mxu0 %v1417_v28 }
  0x75   :  { %1197 = vmatprep.mubr.bf16.mxu1 %v1419_v29 }
  0x7b   :  { %1109 = vmatmul.mubr.bf16.gmra.mrb[44].mxu0 %v1416_v34 }
  0x7c   :  { %1198 = vmatmul.mubr.bf16.gmra.mrb[44].mxu1 %v1418_v35  ;;  %1116 = vmatprep.mubr.bf16.mxu0 %v1425_v36 }
  0x7d   :  { %1205 = vmatprep.mubr.bf16.mxu1 %v1427_v37 }
  0x83   :  { %1117 = vmatmul.mubr.bf16.gmra.mrb[48].mxu0 %v1424_v42 }
  0x84   :  { %1206 = vmatmul.mubr.bf16.gmra.mrb[48].mxu1 %v1426_v43  ;;  %1124 = vmatprep.mubr.bf16.mxu0 %v1433_v44 }
  0x85   :  { %1213 = vmatprep.mubr.bf16.mxu1 %v1435_v45 }
  0x8b   :  { %1125 = vmatmul.mubr.bf16.gmra.mrb[52].mxu0 %v1432_v46 }
  0x8c   :  { %1214 = vmatmul.mubr.bf16.gmra.mrb[52].mxu1 %v1434_v47 }
  0xf6   :  { %v1587_v48 = vpop.f32.mrb[0].mxu0 }
  0xf7   :  { %v1645_v49 = vpop.f32.mrb[0].mxu1  ;;  %v1588_v50 = vpop.f32.mrb[1].mxu0 }
  0xf8   :  { %v1589_v51 = vadd.f32 %v1588_v50, %v1587_v48  ;;  %v1646_v52 = vpop.f32.mrb[1].mxu1  ;;  %v1590_v53 = vpop.f32.mrb[2].mxu0 }
  0xf9   :  { %v1647_v54 = vadd.f32 %v1646_v52, %v1645_v49  ;;  %v1648_v55 = vpop.f32.mrb[2].mxu1  ;;  %v1591_v56 = vpop.f32.mrb[3].mxu0 }
  0xfa   :  { %v1592_v57 = vadd.f32 %v1591_v56, %v1590_v53  ;;  %v1649_v58 = vpop.f32.mrb[3].mxu1 }
  0xfb   :  { %v2252_v59 = vadd.f32 %v1647_v54, %v1589_v51  ;;  %v1650_v60 = vadd.f32 %v1649_v58, %v1648_v55 }
  0xfd   :  { %v2254_v61 = vadd.f32 %v1650_v60, %v1592_v57 }
  0xfe   :  { %v1593_v62 = vpop.f32.mrb[4].mxu0 }
  0xff   :  { %v1651_v63 = vpop.f32.mrb[4].mxu1  ;;  %v1594_v0 = vpop.f32.mrb[5].mxu0 }
 0x100   :  { %v1595_v1 = vadd.f32 %v1594_v0, %v1593_v62  ;;  %v1652_v2 = vpop.f32.mrb[5].mxu1  ;;  %v1596_v3 = vpop.f32.mrb[6].mxu0 }
 0x101   :  { %v1653_v4 = vadd.f32 %v1652_v2, %v1651_v63  ;;  %v1654_v5 = vpop.f32.mrb[6].mxu1  ;;  %v1597_v6 = vpop.f32.mrb[7].mxu0 }
 0x102   :  { %v1598_v7 = vadd.f32 %v1597_v6, %v1596_v3  ;;  %v1655_v8 = vpop.f32.mrb[7].mxu1 }
 0x103   :  { %v2256_v9 = vadd.f32 %v1653_v4, %v1595_v1  ;;  %v1656_v10 = vadd.f32 %v1655_v8, %v1654_v5 }
 0x105   :  { %v2258_v11 = vadd.f32 %v1656_v10, %v1598_v7 }
 0x106   :  { %v1599_v12 = vpop.f32.mrb[8].mxu0 }
 0x107   :  { %v1657_v13 = vpop.f32.mrb[8].mxu1  ;;  %v1600_v14 = vpop.f32.mrb[9].mxu0 }
 0x108   :  { %v1601_v15 = vadd.f32 %v1600_v14, %v1599_v12  ;;  %v1658_v16 = vpop.f32.mrb[9].mxu1  ;;  %v1602_v17 = vpop.f32.mrb[10].mxu0 }
 0x109   :  { %v1659_v18 = vadd.f32 %v1658_v16, %v1657_v13  ;;  %v1660_v19 = vpop.f32.mrb[10].mxu1  ;;  %v1603_v20 = vpop.f32.mrb[11].mxu0 }
 0x10a   :  { %v1604_v21 = vadd.f32 %v1603_v20, %v1602_v17  ;;  %v1661_v22 = vpop.f32.mrb[11].mxu1 }
 0x10b   :  { %v2260_v23 = vadd.f32 %v1659_v18, %v1601_v15  ;;  %v1662_v24 = vadd.f32 %v1661_v22, %v1660_v19 }
 0x10d   :  { %v2262_v25 = vadd.f32 %v1662_v24, %v1604_v21 }
 0x10e   :  { %v1605_v26 = vpop.f32.mrb[12].mxu0 }
 0x10f   :  { %v1663_v27 = vpop.f32.mrb[12].mxu1  ;;  %v1606_v28 = vpop.f32.mrb[13].mxu0 }
 0x110   :  { %v1607_v29 = vadd.f32 %v1606_v28, %v1605_v26  ;;  %v1664_v30 = vpop.f32.mrb[13].mxu1  ;;  %v1608_v31 = vpop.f32.mrb[14].mxu0 }
 0x111   :  { %v1665_v32 = vadd.f32 %v1664_v30, %v1663_v27  ;;  %v1666_v33 = vpop.f32.mrb[14].mxu1  ;;  %v1609_v34 = vpop.f32.mrb[15].mxu0 }
 0x112   :  { %v1610_v35 = vadd.f32 %v1609_v34, %v1608_v31  ;;  %v1667_v36 = vpop.f32.mrb[15].mxu1 }
 0x113   :  { %v2264_v37 = vadd.f32 %v1665_v32, %v1607_v29  ;;  %v1668_v38 = vadd.f32 %v1667_v36, %v1666_v33  ;;  %v2284_v36 = vld [vmem:[%s2355_s2] ss:$0 sm:$0xff] }
 0x115   :  { %v2266_v39 = vadd.f32 %v1668_v38, %v1610_v35 }
 0x116   :  { %v1611_v40 = vpop.f32.mrb[16].mxu0 }
 0x117   :  { %v1669_v41 = vpop.f32.mrb[16].mxu1  ;;  %v1612_v42 = vpop.f32.mrb[17].mxu0 }
 0x118   :  { %v1613_v43 = vadd.f32 %v1612_v42, %v1611_v40  ;;  %v1670_v44 = vpop.f32.mrb[17].mxu1  ;;  %v1614_v45 = vpop.f32.mrb[18].mxu0  ;;  %v2290_v42 = vld [vmem:[%s2356_s3] ss:$0 sm:$0xff] }
 0x119   :  { %v1671_v46 = vadd.f32 %v1670_v44, %v1669_v41  ;;  %v1672_v47 = vpop.f32.mrb[18].mxu1  ;;  %v1615_v48 = vpop.f32.mrb[19].mxu0 }
 0x11a   :  { %v1616_v49 = vadd.f32 %v1615_v48, %v1614_v45  ;;  %v1673_v50 = vpop.f32.mrb[19].mxu1 }
 0x11b   :  { %v2268_v51 = vadd.f32 %v1671_v46, %v1613_v43  ;;  %v1674_v52 = vadd.f32 %v1673_v50, %v1672_v47 }
 0x11d   :  { %v2270_v53 = vadd.f32 %v1674_v52, %v1616_v49 }
 0x11e   :  { %v1617_v54 = vpop.f32.mrb[20].mxu0 }
 0x11f   :  { %v1675_v55 = vpop.f32.mrb[20].mxu1  ;;  %v1618_v56 = vpop.f32.mrb[21].mxu0 }
 0x120   :  { %v1619_v57 = vadd.f32 %v1618_v56, %v1617_v54  ;;  %v1676_v58 = vpop.f32.mrb[21].mxu1  ;;  %v1620_v60 = vpop.f32.mrb[22].mxu0 }
 0x121   :  { %v1677_v62 = vadd.f32 %v1676_v58, %v1675_v55  ;;  %v1678_v63 = vpop.f32.mrb[22].mxu1  ;;  %v1621_v0 = vpop.f32.mrb[23].mxu0 }
 0x122   :  { %v1622_v1 = vadd.f32 %v1621_v0, %v1620_v60  ;;  %v1679_v2 = vpop.f32.mrb[23].mxu1 }
 0x123   :  { %v2272_v3 = vadd.f32 %v1677_v62, %v1619_v57  ;;  %v1680_v4 = vadd.f32 %v1679_v2, %v1678_v63 }
 0x125   :  { %v2274_v5 = vadd.f32 %v1680_v4, %v1622_v1 }
 0x126   :  { %v1623_v6 = vpop.f32.mrb[24].mxu0 }
 0x127   :  { %v1681_v7 = vpop.f32.mrb[24].mxu1  ;;  %v1624_v8 = vpop.f32.mrb[25].mxu0 }
 0x128   :  { %v1625_v10 = vadd.f32 %v1624_v8, %v1623_v6  ;;  %v1682_v12 = vpop.f32.mrb[25].mxu1  ;;  %v1626_v13 = vpop.f32.mrb[26].mxu0 }
 0x129   :  { %v1683_v14 = vadd.f32 %v1682_v12, %v1681_v7  ;;  %v1684_v15 = vpop.f32.mrb[26].mxu1  ;;  %v1627_v16 = vpop.f32.mrb[27].mxu0 }
 0x12a   :  { %v1628_v17 = vadd.f32 %v1627_v16, %v1626_v13  ;;  %v1685_v18 = vpop.f32.mrb[27].mxu1 }
 0x12b   :  { %v2276_v19 = vadd.f32 %v1683_v14, %v1625_v10  ;;  %v1686_v20 = vadd.f32 %v1685_v18, %v1684_v15 }
 0x12d   :  { %v2278_v21 = vadd.f32 %v1686_v20, %v1628_v17 }
 0x12e   :  { %v1703_v22 = vpop.f32.mrb[28].mxu0 }
 0x12f   :  { %v1761_v24 = vpop.f32.mrb[28].mxu1  ;;  %v1704_v26 = vpop.f32.mrb[29].mxu0 }
 0x130   :  { %v1705_v27 = vadd.f32 %v1704_v26, %v1703_v22  ;;  %v1762_v28 = vpop.f32.mrb[29].mxu1  ;;  %v1706_v29 = vpop.f32.mrb[30].mxu0 }
 0x131   :  { %v1763_v30 = vadd.f32 %v1762_v28, %v1761_v24  ;;  %v1764_v31 = vpop.f32.mrb[30].mxu1  ;;  %v1707_v32 = vpop.f32.mrb[31].mxu0 }
 0x132   :  { %v1079_v33 = vadd.f32 %v1705_v27, %v2252_v59  ;;  %v1708_v34 = vadd.f32 %v1707_v32, %v1706_v29  ;;  %v1765_v35 = vpop.f32.mrb[31].mxu1 }
 0x133   :  { %v1766_v38 = vadd.f32 %v1765_v35, %v1764_v31 }
 0x134   :  { %v1168_v40 = vadd.f32 %v1763_v30, %v1079_v33  ;;  %v1082_v41 = vadd.f32 %v1708_v34, %v2254_v61 }
 0x136   :  { %v1229_v43 = vmul.f32 %v2284_v36, %v1168_v40  ;;  %v1171_v44 = vadd.f32 %v1766_v38, %v1082_v41  ;;  %v1709_v59 = vpop.f32.mrb[32].mxu0 }
 0x137   :  { %v1767_v45 = vpop.f32.mrb[32].mxu1  ;;  %v1710_v46 = vpop.f32.mrb[33].mxu0 }
 0x138   :  { %v1250_v47 = vadd.f32 %v2290_v42, %v1229_v43  ;;  %v1230_v48 = vmul.f32 %v2284_v36, %v1171_v44  ;;  %v1711_v49 = vadd.f32 %v1710_v46, %v1709_v59  ;;  %v1768_v50 = vpop.f32.mrb[33].mxu1  ;;  %v1712_v52 = vpop.f32.mrb[34].mxu0 }
 0x139   :  { %v1769_v54 = vadd.f32 %v1768_v50, %v1767_v45  ;;  %v1770_v61 = vpop.f32.mrb[34].mxu1  ;;  %v1713_v55 = vpop.f32.mrb[35].mxu0 }
 0x13a   :  { %v1278_v56 = vmul.f32 0.1, %v1250_v47  ;;  %v1251_v57 = vadd.f32 %v2290_v42, %v1230_v48  ;;  %v1087_v58 = vadd.f32 %v1711_v49, %v2256_v9  ;;  %v1771_v60 = vpop.f32.mrb[35].mxu1  ;;  %vm1264_vm0 = vcmp.ge.f32.partialorder %v1250_v47, 0.0 }
 0x13b   :  { %v1714_v62 = vadd.f32 %v1713_v55, %v1712_v52  ;;  %v1772_v63 = vadd.f32 %v1771_v60, %v1770_v61 }
 0x13c   :  { %vm1265_vm1 = vcmp.ge.f32.partialorder %v1251_v57, 0.0  ;;  %v1279_v0 = vmul.f32 0.1, %v1251_v57  ;;  %v1176_v1 = vadd.f32 %v1769_v54, %v1087_v58  ;;  %v1292_v4 = vsel %vm1264_vm0, %v1250_v47, %v1278_v56 }
 0x13d   :  { %v1090_v2 = vadd.f32 %v1714_v62, %v2258_v11 }
 0x13e   :  { %v1293_v6 = vsel %vm1265_vm1, %v1251_v57, %v1279_v0  ;;  %v1231_v7 = vmul.f32 %v2284_v36, %v1176_v1  ;;  %v1715_v8 = vpop.f32.mrb[36].mxu0 }
 0x13f   :  { %v1533_v10 = vpack.c.bf16 %v1293_v6, %v1292_v4  ;;  %v1179_v12 = vadd.f32 %v1772_v63, %v1090_v2  ;;  %v1773_v13 = vpop.f32.mrb[36].mxu1  ;;  %v1716_v14 = vpop.f32.mrb[37].mxu0 }
 0x140   :  { %v1252_v9 = vadd.f32 %v2290_v42, %v1231_v7  ;;  %v1717_v15 = vadd.f32 %v1716_v14, %v1715_v8  ;;  %v1774_v16 = vpop.f32.mrb[37].mxu1  ;;  %v1718_v17 = vpop.f32.mrb[38].mxu0 }
 0x141   :  { %1534 = vst [vmem:[%s2357_s4] sm:$0xff] %v1533_v10   ;;  %v1232_v11 = vmul.f32 %v2284_v36, %v1179_v12  ;;  %v1775_v18 = vadd.f32 %v1774_v16, %v1773_v13  ;;  %v1776_v20 = vpop.f32.mrb[38].mxu1  ;;  %v1719_v22 = vpop.f32.mrb[39].mxu0 }
 0x142   :  { %v1095_v24 = vadd.f32 %v1717_v15, %v2260_v23  ;;  %v1720_v26 = vadd.f32 %v1719_v22, %v1718_v17  ;;  %v1777_v27 = vpop.f32.mrb[39].mxu1  ;;  %v1280_v28 = vmul.f32 0.1, %v1252_v9  ;;  %vm1266_vm2 = vcmp.ge.f32.partialorder %v1252_v9, 0.0 }
 0x143   :  { %v1253_v29 = vadd.f32 %v2290_v42, %v1232_v11  ;;  %v1778_v30 = vadd.f32 %v1777_v27, %v1776_v20 }
 0x144   :  { %v1184_v31 = vadd.f32 %v1775_v18, %v1095_v24  ;;  %v1098_v32 = vadd.f32 %v1720_v26, %v2262_v25  ;;  %v1294_v40 = vsel %vm1266_vm2, %v1252_v9, %v1280_v28 }
 0x145   :  { %vm1267_vm3 = vcmp.ge.f32.partialorder %v1253_v29, 0.0  ;;  %v1281_v33 = vmul.f32 0.1, %v1253_v29 }
 0x146   :  { %v1233_v34 = vmul.f32 %v2284_v36, %v1184_v31  ;;  %v1187_v35 = vadd.f32 %v1778_v30, %v1098_v32  ;;  %v1721_v38 = vpop.f32.mrb[40].mxu0 }
 0x147   :  { %v1295_v41 = vsel %vm1267_vm3, %v1253_v29, %v1281_v33  ;;  %v1779_v43 = vpop.f32.mrb[40].mxu1  ;;  %v1722_v23 = vpop.f32.mrb[41].mxu0 }
 0x148   :  { %v1538_v44 = vpack.c.bf16 %v1295_v41, %v1294_v40  ;;  %v1254_v59 = vadd.f32 %v2290_v42, %v1233_v34  ;;  %v1234_v45 = vmul.f32 %v2284_v36, %v1187_v35  ;;  %v1723_v46 = vadd.f32 %v1722_v23, %v1721_v38  ;;  %v1780_v47 = vpop.f32.mrb[41].mxu1  ;;  %v1724_v48 = vpop.f32.mrb[42].mxu0 }
 0x149   :  { %v1781_v49 = vadd.f32 %v1780_v47, %v1779_v43  ;;  %v1782_v25 = vpop.f32.mrb[42].mxu1  ;;  %v1725_v50 = vpop.f32.mrb[43].mxu0 }
 0x14a   :  { %1565 = vst [vmem:[%s2357_s4 + $0x8] sm:$0xff] %v1538_v44   ;;  %v1282_v52 = vmul.f32 0.1, %v1254_v59  ;;  %v1255_v54 = vadd.f32 %v2290_v42, %v1234_v45  ;;  %v1103_v61 = vadd.f32 %v1723_v46, %v2264_v37  ;;  %v1783_v55 = vpop.f32.mrb[43].mxu1  ;;  %vm1268_vm4 = vcmp.ge.f32.partialorder %v1254_v59, 0.0 }
 0x14b   :  { %v1726_v56 = vadd.f32 %v1725_v50, %v1724_v48  ;;  %v1784_v57 = vadd.f32 %v1783_v55, %v1782_v25 }
 0x14c   :  { %vm1269_vm5 = vcmp.ge.f32.partialorder %v1255_v54, 0.0  ;;  %v1283_v58 = vmul.f32 0.1, %v1255_v54  ;;  %v1192_v60 = vadd.f32 %v1781_v49, %v1103_v61  ;;  %v1296_v63 = vsel %vm1268_vm4, %v1254_v59, %v1282_v52 }
 0x14d   :  { %v1106_v62 = vadd.f32 %v1726_v56, %v2266_v39 }
 0x14e   :  { %v1297_v0 = vsel %vm1269_vm5, %v1255_v54, %v1283_v58  ;;  %v1235_v1 = vmul.f32 %v2284_v36, %v1192_v60  ;;  %v1727_v2 = vpop.f32.mrb[44].mxu0 }
 0x14f   :  { %v1543_v4 = vpack.c.bf16 %v1297_v0, %v1296_v63  ;;  %v1195_v6 = vadd.f32 %v1784_v57, %v1106_v62  ;;  %v1785_v7 = vpop.f32.mrb[44].mxu1  ;;  %v1728_v8 = vpop.f32.mrb[45].mxu0 }
 0x150   :  { %v1256_v37 = vadd.f32 %v2290_v42, %v1235_v1  ;;  %v1729_v10 = vadd.f32 %v1728_v8, %v1727_v2  ;;  %v1786_v12 = vpop.f32.mrb[45].mxu1  ;;  %v1730_v13 = vpop.f32.mrb[46].mxu0 }
 0x151   :  { %1566 = vst [vmem:[%s2357_s4 + $0x10] sm:$0xff] %v1543_v4   ;;  %v1236_v39 = vmul.f32 %v2284_v36, %v1195_v6  ;;  %v1787_v14 = vadd.f32 %v1786_v12, %v1785_v7  ;;  %v1788_v9 = vpop.f32.mrb[46].mxu1  ;;  %v1731_v15 = vpop.f32.mrb[47].mxu0 }
 0x152   :  { %v1111_v16 = vadd.f32 %v1729_v10, %v2268_v51  ;;  %v1732_v17 = vadd.f32 %v1731_v15, %v1730_v13  ;;  %v1789_v11 = vpop.f32.mrb[47].mxu1  ;;  %v1284_v18 = vmul.f32 0.1, %v1256_v37  ;;  %vm1270_vm6 = vcmp.ge.f32.partialorder %v1256_v37, 0.0 }
 0x153   :  { %v1257_v20 = vadd.f32 %v2290_v42, %v1236_v39  ;;  %v1790_v22 = vadd.f32 %v1789_v11, %v1788_v9 }
 0x154   :  { %v1200_v24 = vadd.f32 %v1787_v14, %v1111_v16  ;;  %v1114_v26 = vadd.f32 %v1732_v17, %v2270_v53  ;;  %v1298_v31 = vsel %vm1270_vm6, %v1256_v37, %v1284_v18 }
 0x155   :  { %vm1271_vm7 = vcmp.ge.f32.partialorder %v1257_v20, 0.0  ;;  %v1285_v27 = vmul.f32 0.1, %v1257_v20 }
 0x156   :  { %v1237_v28 = vmul.f32 %v2284_v36, %v1200_v24  ;;  %v1203_v29 = vadd.f32 %v1790_v22, %v1114_v26  ;;  %v1733_v30 = vpop.f32.mrb[48].mxu0 }
 0x157   :  { %v1299_v32 = vsel %vm1271_vm7, %v1257_v20, %v1285_v27  ;;  %v1791_v33 = vpop.f32.mrb[48].mxu1  ;;  %v1734_v51 = vpop.f32.mrb[49].mxu0 }
 0x158   :  { %v1548_v34 = vpack.c.bf16 %v1299_v32, %v1298_v31  ;;  %v1258_v35 = vadd.f32 %v2290_v42, %v1237_v28  ;;  %v1238_v38 = vmul.f32 %v2284_v36, %v1203_v29  ;;  %v1735_v40 = vadd.f32 %v1734_v51, %v1733_v30  ;;  %v1792_v41 = vpop.f32.mrb[49].mxu1  ;;  %v1736_v43 = vpop.f32.mrb[50].mxu0 }
 0x159   :  { %v1793_v23 = vadd.f32 %v1792_v41, %v1791_v33  ;;  %v1794_v53 = vpop.f32.mrb[50].mxu1  ;;  %v1737_v44 = vpop.f32.mrb[51].mxu0 }
 0x15a   :  { %1567 = vst [vmem:[%s2357_s4 + $0x18] sm:$0xff] %v1548_v34   ;;  %v1286_v59 = vmul.f32 0.1, %v1258_v35  ;;  %v1259_v45 = vadd.f32 %v2290_v42, %v1238_v38  ;;  %v1119_v46 = vadd.f32 %v1735_v40, %v2272_v3  ;;  %v1795_v47 = vpop.f32.mrb[51].mxu1  ;;  %vm1272_vm8 = vcmp.ge.f32.partialorder %v1258_v35, 0.0 }
 0x15b   :  { %v1738_v48 = vadd.f32 %v1737_v44, %v1736_v43  ;;  %v1796_v49 = vadd.f32 %v1795_v47, %v1794_v53 }
 0x15c   :  { %vm1273_vm9 = vcmp.ge.f32.partialorder %v1259_v45, 0.0  ;;  %v1287_v25 = vmul.f32 0.1, %v1259_v45  ;;  %v1208_v50 = vadd.f32 %v1793_v23, %v1119_v46  ;;  %v1300_v54 = vsel %vm1272_vm8, %v1258_v35, %v1286_v59 }
 0x15d   :  { %v1122_v52 = vadd.f32 %v1738_v48, %v2274_v5 }
 0x15e   :  { %v1301_v61 = vsel %vm1273_vm9, %v1259_v45, %v1287_v25  ;;  %v1239_v55 = vmul.f32 %v2284_v36, %v1208_v50  ;;  %v1739_v56 = vpop.f32.mrb[52].mxu0 }
 0x15f   :  { %v1553_v57 = vpack.c.bf16 %v1301_v61, %v1300_v54  ;;  %v1211_v58 = vadd.f32 %v1796_v49, %v1122_v52  ;;  %v1797_v60 = vpop.f32.mrb[52].mxu1  ;;  %v1740_v62 = vpop.f32.mrb[53].mxu0 }
 0x160   :  { %v1260_v3 = vadd.f32 %v2290_v42, %v1239_v55  ;;  %v1741_v63 = vadd.f32 %v1740_v62, %v1739_v56  ;;  %v1798_v0 = vpop.f32.mrb[53].mxu1  ;;  %v1742_v1 = vpop.f32.mrb[54].mxu0 }
 0x161   :  { %1568 = vst [vmem:[%s2357_s4 + $0x20] sm:$0xff] %v1553_v57   ;;  %v1240_v5 = vmul.f32 %v2284_v36, %v1211_v58  ;;  %v1799_v2 = vadd.f32 %v1798_v0, %v1797_v60  ;;  %v1800_v4 = vpop.f32.mrb[54].mxu1  ;;  %v1743_v6 = vpop.f32.mrb[55].mxu0 }
 0x162   :  { %v1127_v7 = vadd.f32 %v1741_v63, %v2276_v19  ;;  %v1744_v8 = vadd.f32 %v1743_v6, %v1742_v1  ;;  %v1801_v37 = vpop.f32.mrb[55].mxu1  ;;  %v1288_v10 = vmul.f32 0.1, %v1260_v3  ;;  %vm1274_vm10 = vcmp.ge.f32.partialorder %v1260_v3, 0.0 }
 0x163   :  { %v1261_v12 = vadd.f32 %v2290_v42, %v1240_v5  ;;  %v1802_v13 = vadd.f32 %v1801_v37, %v1800_v4 }
 0x164   :  { %v1216_v39 = vadd.f32 %v1799_v2, %v1127_v7  ;;  %v1130_v14 = vadd.f32 %v1744_v8, %v2278_v21  ;;  %v1302_v17 = vsel %vm1274_vm10, %v1260_v3, %v1288_v10 }
 0x165   :  { %vm1275_vm11 = vcmp.ge.f32.partialorder %v1261_v12, 0.0  ;;  %v1289_v9 = vmul.f32 0.1, %v1261_v12 }
 0x166   :  { %v1241_v15 = vmul.f32 %v2284_v36, %v1216_v39  ;;  %v1219_v16 = vadd.f32 %v1802_v13, %v1130_v14 }
 0x167   :  { %v1303_v11 = vsel %vm1275_vm11, %v1261_v12, %v1289_v9 }
 0x168   :  { %v1558_v18 = vpack.c.bf16 %v1303_v11, %v1302_v17  ;;  %v1262_v19 = vadd.f32 %v2290_v42, %v1241_v15  ;;  %v1242_v20 = vmul.f32 %v2284_v36, %v1219_v16 }
 0x16a   :  { %1569 = vst [vmem:[%s2357_s4 + $0x28] sm:$0xff] %v1558_v18   ;;  %v1290_v22 = vmul.f32 0.1, %v1262_v19  ;;  %v1263_v24 = vadd.f32 %v2290_v42, %v1242_v20  ;;  %vm1276_vm12 = vcmp.ge.f32.partialorder %v1262_v19, 0.0 }
 0x16c   :  { %vm1277_vm13 = vcmp.ge.f32.partialorder %v1263_v24, 0.0  ;;  %v1291_v21 = vmul.f32 0.1, %v1263_v24  ;;  %v1304_v26 = vsel %vm1276_vm12, %v1262_v19, %v1290_v22 }
 0x16e   :  { %v1305_v27 = vsel %vm1277_vm13, %v1263_v24, %v1291_v21 }
 0x16f   :  { %v1563_v28 = vpack.c.bf16 %v1305_v27, %v1304_v26 }
 0x171   :  { %1570 = vst [vmem:[%s2357_s4 + $0x30] sm:$0xff] %v1563_v28  }

// kernel: _lambda_.5
= control target key start
LH: loop header
LB: loop body
LE: loop exit
PB: predicated region body
PF: predicated region fallthrough
CT: control target
= control target key end

     0   :  { %s12827_s15 = smov 0   ;;  %s12829_s16 = smov 0   ;;  %s15054_s0 = inlined_call_operand.vmem [shape: bf16[16,6272], index: 0, kind: input, shape index: {}]   ;;  %s15055_s1 = inlined_call_operand.vmem [shape: bf16[6272,256], index: 1, kind: input, shape index: {}]   ;;  %s15056_s2 = inlined_call_operand.vmem [shape: f32[1,256], index: 2, kind: input, shape index: {}]   ;;  %s15057_s3 = inlined_call_operand.vmem [shape: f32[1,256], index: 3, kind: input, shape index: {}]   ;;  %s15058_s4 = inlined_call_operand.vmem [shape: f32[16,256], index: 4, kind: output, shape index: {}]  }
   0x1   :  { %s12831_s17 = smov 0   ;;  %s12833_s18 = smov 0  }
   0x2   :  { %s12835_s19 = smov 0  }
   0x3 LB: > { %s23_s20 = sadd.s32 1, %s12794_s18  ;;  %s11239_s21 = sadd.s32 4294967295, %s12798_s19   ;;  %s12798_s19 = sphi %s12835_s19, %s14_s19   ;;  %s12794_s18 = sphi %s12833_s18, %s15063_s18   ;;  %s12790_s17 = sphi %s12831_s17, %s15062_s17   ;;  %s12786_s16 = sphi %s12829_s16, %s15061_s16   ;;  %s12782_s15 = sphi %s12827_s15, %s15060_s15  }
   0x4   : > { %p24_p0 = scmp.ge.s32.totalorder %s23_s20, 2  ;;  %p66_p1 = scmp.ne.s32.totalorder %s12786_s16, %s12782_s15 }
   0x5   : > { %p67_p2 = scmp.eq.s32.totalorder %s12798_s19, 0  ;;  %p150_p4 = scmp.eq.s32.totalorder %s11239_s21, 1 }
   0x6   : > { %s15065_s20 = smov (%p24_p0, %s23_s20), 0  ;;  %s59_s23 = sadd.s32 1, %s12786_s16 }
   0x7   : > { %p68_p3 = por %p67_p2, %p66_p1  ;;  %s56_s22 = ssub.s32 %s12794_s18, %s15065_s20 }
   0x8   : > { %p57_p5 = scmp.eq.s32.totalorder %s56_s22, 0  ;;  %p12862_p6 = por %p150_p4, %p66_p1 }
   0x9   : > { %p11243_p7 = scmp.ge.s32.totalorder %s12798_s19, 2 }
   0xa   : > { %s12867_s25 = scalar_select %p57_p5, %s12786_s16, %s59_s23  }
   0xb   : > { %182 = sbr.rel (%p11243_p7) target bundleno = 545 (0x221), region = 20 }
  0x12   : > { %185 = sbr.rel (!%p68_p3) target bundleno = 545 (0x221), region = 24  ;;  %s187_s26 = sand.u32 (%p68_p3), 1, %s12786_s16  }
  0x13   : > { %s11244_s27 = sshll.u32 (%p68_p3), %s12794_s18, 2  ;;  %s12251_s28 = smul.u32 (%p68_p3), 3136, %s187_s26 }
  0x14   : > { %s12875_s5 = scalar_lea.vmem (%p68_p3), %s15055_s1, %s11244_s27 }
  0x15   : > { %v207_v0 = vld [vmem:[%s12875_s5] sm:$0xf] (%p68_p3)  ;;  %v209_v1 = vld [vmem:[%s12875_s5 + $0x8] sm:$0xf] (%p68_p3)  ;;  %v211_v2 = vld [vmem:[%s12875_s5 + $0x10] sm:$0xf] (%p68_p3) }
  0x16   : > { %v213_v3 = vld [vmem:[%s12875_s5 + $0x18] sm:$0xf] (%p68_p3)  ;;  %v215_v4 = vld [vmem:[%s12875_s5 + $0x20] sm:$0xf] (%p68_p3)  ;;  %s12882_s6 = scalar_lea.vmem (%p68_p3), [#allocation2], %s12251_s28 }
  0x17   : > { %208 = vst [vmem:[%s12882_s6] sm:$0xf] (%p68_p3), %v207_v0  ;;  %210 = vst [vmem:[%s12882_s6 + $0x4] sm:$0xf] (%p68_p3), %v209_v1  ;;  %v217_v5 = vld [vmem:[%s12875_s5 + $0x28] sm:$0xf] (%p68_p3) }
  0x18   : > { %212 = vst [vmem:[%s12882_s6 + $0x8] sm:$0xf] (%p68_p3), %v211_v2  ;;  %214 = vst [vmem:[%s12882_s6 + $0xc] sm:$0xf] (%p68_p3), %v213_v3  ;;  %v219_v6 = vld [vmem:[%s12875_s5 + $0x30] sm:$0xf] (%p68_p3) }
  0x19   : > { %216 = vst [vmem:[%s12882_s6 + $0x10] sm:$0xf] %v215_v4  ;;  %v221_v7 = vld [vmem:[%s12875_s5 + $0x38] sm:$0xf]  ;;  %218 = vst [vmem:[%s12882_s6 + $0x14] sm:$0xf] %v217_v5 }
  0x1a   : > { %220 = vst [vmem:[%s12882_s6 + $0x18] sm:$0xf] %v219_v6  ;;  %222 = vst [vmem:[%s12882_s6 + $0x1c] sm:$0xf] %v221_v7  ;;  %v223_v8 = vld [vmem:[%s12875_s5 + $0x40] sm:$0xf] }
  0x1b   : > { %v225_v9 = vld [vmem:[%s12875_s5 + $0x48] sm:$0xf]  ;;  %v227_v10 = vld [vmem:[%s12875_s5 + $0x50] sm:$0xf]  ;;  %224 = vst [vmem:[%s12882_s6 + $0x20] sm:$0xf] %v223_v8 }
  0x1c   : > { %226 = vst [vmem:[%s12882_s6 + $0x24] sm:$0xf] %v225_v9  ;;  %228 = vst [vmem:[%s12882_s6 + $0x28] sm:$0xf] %v227_v10  ;;  %v229_v11 = vld [vmem:[%s12875_s5 + $0x58] sm:$0xf] }
  0x1d   : > { %v231_v12 = vld [vmem:[%s12875_s5 + $0x60] sm:$0xf]  ;;  %v233_v13 = vld [vmem:[%s12875_s5 + $0x68] sm:$0xf]  ;;  %230 = vst [vmem:[%s12882_s6 + $0x2c] sm:$0xf] %v229_v11 }
  0x1e   : > { %232 = vst [vmem:[%s12882_s6 + $0x30] sm:$0xf] %v231_v12  ;;  %234 = vst [vmem:[%s12882_s6 + $0x34] sm:$0xf] %v233_v13  ;;  %v235_v14 = vld [vmem:[%s12875_s5 + $0x70] sm:$0xf] }
  0x1f   : > { %v237_v15 = vld [vmem:[%s12875_s5 + $0x78] sm:$0xf]  ;;  %v239_v16 = vld [vmem:[%s12875_s5 + $0x80] sm:$0xf]  ;;  %236 = vst [vmem:[%s12882_s6 + $0x38] sm:$0xf] %v235_v14 }
  0x20   : > { %238 = vst [vmem:[%s12882_s6 + $0x3c] sm:$0xf] %v237_v15  ;;  %240 = vst [vmem:[%s12882_s6 + $0x40] sm:$0xf] %v239_v16  ;;  %v241_v17 = vld [vmem:[%s12875_s5 + $0x88] sm:$0xf] }
  0x21   : > { %v243_v18 = vld [vmem:[%s12875_s5 + $0x90] sm:$0xf]  ;;  %v245_v19 = vld [vmem:[%s12875_s5 + $0x98] sm:$0xf]  ;;  %242 = vst [vmem:[%s12882_s6 + $0x44] sm:$0xf] %v241_v17 }
  0x22   : > { %244 = vst [vmem:[%s12882_s6 + $0x48] sm:$0xf] %v243_v18  ;;  %246 = vst [vmem:[%s12882_s6 + $0x4c] sm:$0xf] %v245_v19  ;;  %v247_v20 = vld [vmem:[%s12875_s5 + $0xa0] sm:$0xf] }
  0x23   : > { %v249_v21 = vld [vmem:[%s12875_s5 + $0xa8] sm:$0xf]  ;;  %v251_v22 = vld [vmem:[%s12875_s5 + $0xb0] sm:$0xf]  ;;  %248 = vst [vmem:[%s12882_s6 + $0x50] sm:$0xf] %v247_v20 }
  0x24   : > { %250 = vst [vmem:[%s12882_s6 + $0x54] sm:$0xf] %v249_v21  ;;  %252 = vst [vmem:[%s12882_s6 + $0x58] sm:$0xf] %v251_v22  ;;  %v253_v23 = vld [vmem:[%s12875_s5 + $0xb8] sm:$0xf] }
  0x25   : > { %v255_v24 = vld [vmem:[%s12875_s5 + $0xc0] sm:$0xf]  ;;  %v257_v25 = vld [vmem:[%s12875_s5 + $0xc8] sm:$0xf]  ;;  %254 = vst [vmem:[%s12882_s6 + $0x5c] sm:$0xf] %v253_v23 }
  0x26   : > { %256 = vst [vmem:[%s12882_s6 + $0x60] sm:$0xf] %v255_v24  ;;  %258 = vst [vmem:[%s12882_s6 + $0x64] sm:$0xf] %v257_v25  ;;  %v259_v26 = vld [vmem:[%s12875_s5 + $0xd0] sm:$0xf] }
  0x27   : > { %v261_v27 = vld [vmem:[%s12875_s5 + $0xd8] sm:$0xf]  ;;  %v263_v28 = vld [vmem:[%s12875_s5 + $0xe0] sm:$0xf]  ;;  %260 = vst [vmem:[%s12882_s6 + $0x68] sm:$0xf] %v259_v26 }
  0x28   : > { %262 = vst [vmem:[%s12882_s6 + $0x6c] sm:$0xf] %v261_v27  ;;  %264 = vst [vmem:[%s12882_s6 + $0x70] sm:$0xf] %v263_v28  ;;  %v265_v29 = vld [vmem:[%s12875_s5 + $0xe8] sm:$0xf] }
  0x29   : > { %v267_v30 = vld [vmem:[%s12875_s5 + $0xf0] sm:$0xf]  ;;  %v269_v31 = vld [vmem:[%s12875_s5 + $0xf8] sm:$0xf]  ;;  %266 = vst [vmem:[%s12882_s6 + $0x74] sm:$0xf] %v265_v29 }
  0x2a   : > { %268 = vst [vmem:[%s12882_s6 + $0x78] sm:$0xf] %v267_v30  ;;  %270 = vst [vmem:[%s12882_s6 + $0x7c] sm:$0xf] %v269_v31  ;;  %v271_v32 = vld [vmem:[%s12875_s5 + $0x100] sm:$0xf] }
  0x2b   : > { %v273_v33 = vld [vmem:[%s12875_s5 + $0x108] sm:$0xf]  ;;  %v275_v34 = vld [vmem:[%s12875_s5 + $0x110] sm:$0xf]  ;;  %272 = vst [vmem:[%s12882_s6 + $0x80] sm:$0xf] %v271_v32 }
  0x2c   : > { %274 = vst [vmem:[%s12882_s6 + $0x84] sm:$0xf] %v273_v33  ;;  %276 = vst [vmem:[%s12882_s6 + $0x88] sm:$0xf] %v275_v34  ;;  %v277_v35 = vld [vmem:[%s12875_s5 + $0x118] sm:$0xf] }
  0x2d   : > { %v279_v36 = vld [vmem:[%s12875_s5 + $0x120] sm:$0xf]  ;;  %v281_v37 = vld [vmem:[%s12875_s5 + $0x128] sm:$0xf]  ;;  %278 = vst [vmem:[%s12882_s6 + $0x8c] sm:$0xf] %v277_v35 }
  0x2e   : > { %280 = vst [vmem:[%s12882_s6 + $0x90] sm:$0xf] %v279_v36  ;;  %282 = vst [vmem:[%s12882_s6 + $0x94] sm:$0xf] %v281_v37  ;;  %v283_v38 = vld [vmem:[%s12875_s5 + $0x130] sm:$0xf] }
  0x2f   : > { %v285_v39 = vld [vmem:[%s12875_s5 + $0x138] sm:$0xf]  ;;  %v287_v40 = vld [vmem:[%s12875_s5 + $0x140] sm:$0xf]  ;;  %284 = vst [vmem:[%s12882_s6 + $0x98] sm:$0xf] %v283_v38 }
  0x30   : > { %286 = vst [vmem:[%s12882_s6 + $0x9c] sm:$0xf] %v285_v39  ;;  %288 = vst [vmem:[%s12882_s6 + $0xa0] sm:$0xf] %v287_v40  ;;  %v289_v41 = vld [vmem:[%s12875_s5 + $0x148] sm:$0xf] }
  0x31   : > { %v291_v42 = vld [vmem:[%s12875_s5 + $0x150] sm:$0xf]  ;;  %v293_v43 = vld [vmem:[%s12875_s5 + $0x158] sm:$0xf]  ;;  %290 = vst [vmem:[%s12882_s6 + $0xa4] sm:$0xf] %v289_v41 }
  0x32   : > { %292 = vst [vmem:[%s12882_s6 + $0xa8] sm:$0xf] %v291_v42  ;;  %294 = vst [vmem:[%s12882_s6 + $0xac] sm:$0xf] %v293_v43  ;;  %v295_v44 = vld [vmem:[%s12875_s5 + $0x160] sm:$0xf] }
  0x33   : > { %v297_v45 = vld [vmem:[%s12875_s5 + $0x168] sm:$0xf]  ;;  %v299_v46 = vld [vmem:[%s12875_s5 + $0x170] sm:$0xf]  ;;  %296 = vst [vmem:[%s12882_s6 + $0xb0] sm:$0xf] %v295_v44 }
  0x34   : > { %298 = vst [vmem:[%s12882_s6 + $0xb4] sm:$0xf] %v297_v45  ;;  %300 = vst [vmem:[%s12882_s6 + $0xb8] sm:$0xf] %v299_v46  ;;  %v301_v47 = vld [vmem:[%s12875_s5 + $0x178] sm:$0xf] }
  0x35   : > { %v303_v48 = vld [vmem:[%s12875_s5 + $0x180] sm:$0xf]  ;;  %v305_v49 = vld [vmem:[%s12875_s5 + $0x188] sm:$0xf]  ;;  %302 = vst [vmem:[%s12882_s6 + $0xbc] sm:$0xf] %v301_v47 }
  0x36   : > { %304 = vst [vmem:[%s12882_s6 + $0xc0] sm:$0xf] %v303_v48  ;;  %306 = vst [vmem:[%s12882_s6 + $0xc4] sm:$0xf] %v305_v49  ;;  %v307_v50 = vld [vmem:[%s12875_s5 + $0x190] sm:$0xf] }
  0x37   : > { %v309_v51 = vld [vmem:[%s12875_s5 + $0x198] sm:$0xf]  ;;  %v311_v52 = vld [vmem:[%s12875_s5 + $0x1a0] sm:$0xf]  ;;  %308 = vst [vmem:[%s12882_s6 + $0xc8] sm:$0xf] %v307_v50 }
  0x38   : > { %310 = vst [vmem:[%s12882_s6 + $0xcc] sm:$0xf] %v309_v51  ;;  %312 = vst [vmem:[%s12882_s6 + $0xd0] sm:$0xf] %v311_v52  ;;  %v313_v53 = vld [vmem:[%s12875_s5 + $0x1a8] sm:$0xf] }
  0x39   : > { %v315_v54 = vld [vmem:[%s12875_s5 + $0x1b0] sm:$0xf]  ;;  %v317_v55 = vld [vmem:[%s12875_s5 + $0x1b8] sm:$0xf]  ;;  %314 = vst [vmem:[%s12882_s6 + $0xd4] sm:$0xf] %v313_v53 }
  0x3a   : > { %316 = vst [vmem:[%s12882_s6 + $0xd8] sm:$0xf] %v315_v54  ;;  %318 = vst [vmem:[%s12882_s6 + $0xdc] sm:$0xf] %v317_v55  ;;  %v319_v56 = vld [vmem:[%s12875_s5 + $0x1c0] sm:$0xf] }
  0x3b   : > { %v321_v57 = vld [vmem:[%s12875_s5 + $0x1c8] sm:$0xf]  ;;  %v323_v58 = vld [vmem:[%s12875_s5 + $0x1d0] sm:$0xf]  ;;  %320 = vst [vmem:[%s12882_s6 + $0xe0] sm:$0xf] %v319_v56 }
  0x3c   : > { %322 = vst [vmem:[%s12882_s6 + $0xe4] sm:$0xf] %v321_v57  ;;  %324 = vst [vmem:[%s12882_s6 + $0xe8] sm:$0xf] %v323_v58  ;;  %v325_v59 = vld [vmem:[%s12875_s5 + $0x1d8] sm:$0xf] }
  0x3d   : > { %v327_v60 = vld [vmem:[%s12875_s5 + $0x1e0] sm:$0xf]  ;;  %v329_v61 = vld [vmem:[%s12875_s5 + $0x1e8] sm:$0xf]  ;;  %326 = vst [vmem:[%s12882_s6 + $0xec] sm:$0xf] %v325_v59 }
  0x3e   : > { %328 = vst [vmem:[%s12882_s6 + $0xf0] sm:$0xf] %v327_v60  ;;  %330 = vst [vmem:[%s12882_s6 + $0xf4] sm:$0xf] %v329_v61  ;;  %v331_v62 = vld [vmem:[%s12875_s5 + $0x1f0] sm:$0xf] }
  0x3f   : > { %v333_v63 = vld [vmem:[%s12875_s5 + $0x1f8] sm:$0xf]  ;;  %v335_v0 = vld [vmem:[%s12875_s5 + $0x200] sm:$0xf]  ;;  %332 = vst [vmem:[%s12882_s6 + $0xf8] sm:$0xf] %v331_v62 }
  0x40   : > { %334 = vst [vmem:[%s12882_s6 + $0xfc] sm:$0xf] %v333_v63  ;;  %336 = vst [vmem:[%s12882_s6 + $0x100] sm:$0xf] %v335_v0  ;;  %v337_v1 = vld [vmem:[%s12875_s5 + $0x208] sm:$0xf] }
  0x41   : > { %v339_v2 = vld [vmem:[%s12875_s5 + $0x210] sm:$0xf]  ;;  %v341_v3 = vld [vmem:[%s12875_s5 + $0x218] sm:$0xf]  ;;  %338 = vst [vmem:[%s12882_s6 + $0x104] sm:$0xf] %v337_v1 }
  0x42   : > { %340 = vst [vmem:[%s12882_s6 + $0x108] sm:$0xf] %v339_v2  ;;  %342 = vst [vmem:[%s12882_s6 + $0x10c] sm:$0xf] %v341_v3  ;;  %v343_v4 = vld [vmem:[%s12875_s5 + $0x220] sm:$0xf] }
  0x43   : > { %v345_v5 = vld [vmem:[%s12875_s5 + $0x228] sm:$0xf]  ;;  %v347_v6 = vld [vmem:[%s12875_s5 + $0x230] sm:$0xf]  ;;  %344 = vst [vmem:[%s12882_s6 + $0x110] sm:$0xf] %v343_v4 }
  0x44   : > { %346 = vst [vmem:[%s12882_s6 + $0x114] sm:$0xf] %v345_v5  ;;  %348 = vst [vmem:[%s12882_s6 + $0x118] sm:$0xf] %v347_v6  ;;  %v349_v7 = vld [vmem:[%s12875_s5 + $0x238] sm:$0xf] }
  0x45   : > { %v351_v8 = vld [vmem:[%s12875_s5 + $0x240] sm:$0xf]  ;;  %v353_v9 = vld [vmem:[%s12875_s5 + $0x248] sm:$0xf]  ;;  %350 = vst [vmem:[%s12882_s6 + $0x11c] sm:$0xf] %v349_v7 }
  0x46   : > { %352 = vst [vmem:[%s12882_s6 + $0x120] sm:$0xf] %v351_v8  ;;  %354 = vst [vmem:[%s12882_s6 + $0x124] sm:$0xf] %v353_v9  ;;  %v355_v10 = vld [vmem:[%s12875_s5 + $0x250] sm:$0xf] }
  0x47   : > { %v357_v11 = vld [vmem:[%s12875_s5 + $0x258] sm:$0xf]  ;;  %v359_v12 = vld [vmem:[%s12875_s5 + $0x260] sm:$0xf]  ;;  %356 = vst [vmem:[%s12882_s6 + $0x128] sm:$0xf] %v355_v10 }
  0x48   : > { %358 = vst [vmem:[%s12882_s6 + $0x12c] sm:$0xf] %v357_v11  ;;  %360 = vst [vmem:[%s12882_s6 + $0x130] sm:$0xf] %v359_v12  ;;  %v361_v13 = vld [vmem:[%s12875_s5 + $0x268] sm:$0xf] }
  0x49   : > { %v363_v14 = vld [vmem:[%s12875_s5 + $0x270] sm:$0xf]  ;;  %v365_v15 = vld [vmem:[%s12875_s5 + $0x278] sm:$0xf]  ;;  %362 = vst [vmem:[%s12882_s6 + $0x134] sm:$0xf] %v361_v13 }
  0x4a   : > { %364 = vst [vmem:[%s12882_s6 + $0x138] sm:$0xf] %v363_v14  ;;  %366 = vst [vmem:[%s12882_s6 + $0x13c] sm:$0xf] %v365_v15  ;;  %v367_v16 = vld [vmem:[%s12875_s5 + $0x280] sm:$0xf] }
  0x4b   : > { %v369_v17 = vld [vmem:[%s12875_s5 + $0x288] sm:$0xf]  ;;  %v371_v18 = vld [vmem:[%s12875_s5 + $0x290] sm:$0xf]  ;;  %368 = vst [vmem:[%s12882_s6 + $0x140] sm:$0xf] %v367_v16 }
  0x4c   : > { %370 = vst [vmem:[%s12882_s6 + $0x144] sm:$0xf] %v369_v17  ;;  %372 = vst [vmem:[%s12882_s6 + $0x148] sm:$0xf] %v371_v18  ;;  %v373_v19 = vld [vmem:[%s12875_s5 + $0x298] sm:$0xf] }
  0x4d   : > { %v375_v20 = vld [vmem:[%s12875_s5 + $0x2a0] sm:$0xf]  ;;  %v377_v21 = vld [vmem:[%s12875_s5 + $0x2a8] sm:$0xf]  ;;  %374 = vst [vmem:[%s12882_s6 + $0x14c] sm:$0xf] %v373_v19 }
  0x4e   : > { %376 = vst [vmem:[%s12882_s6 + $0x150] sm:$0xf] %v375_v20  ;;  %378 = vst [vmem:[%s12882_s6 + $0x154] sm:$0xf] %v377_v21  ;;  %v379_v22 = vld [vmem:[%s12875_s5 + $0x2b0] sm:$0xf] }
  0x4f   : > { %v381_v23 = vld [vmem:[%s12875_s5 + $0x2b8] sm:$0xf]  ;;  %v383_v24 = vld [vmem:[%s12875_s5 + $0x2c0] sm:$0xf]  ;;  %380 = vst [vmem:[%s12882_s6 + $0x158] sm:$0xf] %v379_v22 }
  0x50   : > { %382 = vst [vmem:[%s12882_s6 + $0x15c] sm:$0xf] %v381_v23  ;;  %384 = vst [vmem:[%s12882_s6 + $0x160] sm:$0xf] %v383_v24  ;;  %v385_v25 = vld [vmem:[%s12875_s5 + $0x2c8] sm:$0xf] }
  0x51   : > { %v387_v26 = vld [vmem:[%s12875_s5 + $0x2d0] sm:$0xf]  ;;  %v389_v27 = vld [vmem:[%s12875_s5 + $0x2d8] sm:$0xf]  ;;  %386 = vst [vmem:[%s12882_s6 + $0x164] sm:$0xf] %v385_v25 }
  0x52   : > { %388 = vst [vmem:[%s12882_s6 + $0x168] sm:$0xf] %v387_v26  ;;  %390 = vst [vmem:[%s12882_s6 + $0x16c] sm:$0xf] %v389_v27  ;;  %v391_v28 = vld [vmem:[%s12875_s5 + $0x2e0] sm:$0xf] }
  0x53   : > { %v393_v29 = vld [vmem:[%s12875_s5 + $0x2e8] sm:$0xf]  ;;  %v395_v30 = vld [vmem:[%s12875_s5 + $0x2f0] sm:$0xf]  ;;  %392 = vst [vmem:[%s12882_s6 + $0x170] sm:$0xf] %v391_v28 }
  0x54   : > { %394 = vst [vmem:[%s12882_s6 + $0x174] sm:$0xf] %v393_v29  ;;  %396 = vst [vmem:[%s12882_s6 + $0x178] sm:$0xf] %v395_v30  ;;  %v397_v31 = vld [vmem:[%s12875_s5 + $0x2f8] sm:$0xf] }
  0x55   : > { %v399_v32 = vld [vmem:[%s12875_s5 + $0x300] sm:$0xf]  ;;  %v401_v33 = vld [vmem:[%s12875_s5 + $0x308] sm:$0xf]  ;;  %398 = vst [vmem:[%s12882_s6 + $0x17c] sm:$0xf] %v397_v31 }
  0x56   : > { %400 = vst [vmem:[%s12882_s6 + $0x180] sm:$0xf] %v399_v32  ;;  %402 = vst [vmem:[%s12882_s6 + $0x184] sm:$0xf] %v401_v33  ;;  %v403_v34 = vld [vmem:[%s12875_s5 + $0x310] sm:$0xf] }
  0x57   : > { %v405_v35 = vld [vmem:[%s12875_s5 + $0x318] sm:$0xf]  ;;  %v407_v36 = vld [vmem:[%s12875_s5 + $0x320] sm:$0xf]  ;;  %404 = vst [vmem:[%s12882_s6 + $0x188] sm:$0xf] %v403_v34 }
  0x58   : > { %406 = vst [vmem:[%s12882_s6 + $0x18c] sm:$0xf] %v405_v35  ;;  %408 = vst [vmem:[%s12882_s6 + $0x190] sm:$0xf] %v407_v36  ;;  %v409_v37 = vld [vmem:[%s12875_s5 + $0x328] sm:$0xf] }
  0x59   : > { %v411_v38 = vld [vmem:[%s12875_s5 + $0x330] sm:$0xf]  ;;  %v413_v39 = vld [vmem:[%s12875_s5 + $0x338] sm:$0xf]  ;;  %410 = vst [vmem:[%s12882_s6 + $0x194] sm:$0xf] %v409_v37 }
  0x5a   : > { %412 = vst [vmem:[%s12882_s6 + $0x198] sm:$0xf] %v411_v38  ;;  %414 = vst [vmem:[%s12882_s6 + $0x19c] sm:$0xf] %v413_v39  ;;  %v415_v40 = vld [vmem:[%s12875_s5 + $0x340] sm:$0xf] }
  0x5b   : > { %v417_v41 = vld [vmem:[%s12875_s5 + $0x348] sm:$0xf]  ;;  %v419_v42 = vld [vmem:[%s12875_s5 + $0x350] sm:$0xf]  ;;  %416 = vst [vmem:[%s12882_s6 + $0x1a0] sm:$0xf] %v415_v40 }
  0x5c   : > { %418 = vst [vmem:[%s12882_s6 + $0x1a4] sm:$0xf] %v417_v41  ;;  %420 = vst [vmem:[%s12882_s6 + $0x1a8] sm:$0xf] %v419_v42  ;;  %v421_v43 = vld [vmem:[%s12875_s5 + $0x358] sm:$0xf] }
  0x5d   : > { %v423_v44 = vld [vmem:[%s12875_s5 + $0x360] sm:$0xf]  ;;  %v425_v45 = vld [vmem:[%s12875_s5 + $0x368] sm:$0xf]  ;;  %422 = vst [vmem:[%s12882_s6 + $0x1ac] sm:$0xf] %v421_v43 }
  0x5e   : > { %424 = vst [vmem:[%s12882_s6 + $0x1b0] sm:$0xf] %v423_v44  ;;  %426 = vst [vmem:[%s12882_s6 + $0x1b4] sm:$0xf] %v425_v45  ;;  %v427_v46 = vld [vmem:[%s12875_s5 + $0x370] sm:$0xf] }
  0x5f   : > { %v429_v47 = vld [vmem:[%s12875_s5 + $0x378] sm:$0xf]  ;;  %v431_v48 = vld [vmem:[%s12875_s5 + $0x380] sm:$0xf]  ;;  %428 = vst [vmem:[%s12882_s6 + $0x1b8] sm:$0xf] %v427_v46 }
  0x60   : > { %430 = vst [vmem:[%s12882_s6 + $0x1bc] sm:$0xf] %v429_v47  ;;  %432 = vst [vmem:[%s12882_s6 + $0x1c0] sm:$0xf] %v431_v48  ;;  %v433_v49 = vld [vmem:[%s12875_s5 + $0x388] sm:$0xf] }
  0x61   : > { %v435_v50 = vld [vmem:[%s12875_s5 + $0x390] sm:$0xf]  ;;  %v437_v51 = vld [vmem:[%s12875_s5 + $0x398] sm:$0xf]  ;;  %434 = vst [vmem:[%s12882_s6 + $0x1c4] sm:$0xf] %v433_v49 }
  0x62   : > { %436 = vst [vmem:[%s12882_s6 + $0x1c8] sm:$0xf] %v435_v50  ;;  %438 = vst [vmem:[%s12882_s6 + $0x1cc] sm:$0xf] %v437_v51  ;;  %v439_v52 = vld [vmem:[%s12875_s5 + $0x3a0] sm:$0xf] }
  0x63   : > { %v441_v53 = vld [vmem:[%s12875_s5 + $0x3a8] sm:$0xf]  ;;  %v443_v54 = vld [vmem:[%s12875_s5 + $0x3b0] sm:$0xf]  ;;  %440 = vst [vmem:[%s12882_s6 + $0x1d0] sm:$0xf] %v439_v52 }
  0x64   : > { %442 = vst [vmem:[%s12882_s6 + $0x1d4] sm:$0xf] %v441_v53  ;;  %444 = vst [vmem:[%s12882_s6 + $0x1d8] sm:$0xf] %v443_v54  ;;  %v445_v55 = vld [vmem:[%s12875_s5 + $0x3b8] sm:$0xf] }
  0x65   : > { %v447_v56 = vld [vmem:[%s12875_s5 + $0x3c0] sm:$0xf]  ;;  %v449_v57 = vld [vmem:[%s12875_s5 + $0x3c8] sm:$0xf]  ;;  %446 = vst [vmem:[%s12882_s6 + $0x1dc] sm:$0xf] %v445_v55 }
  0x66   : > { %448 = vst [vmem:[%s12882_s6 + $0x1e0] sm:$0xf] %v447_v56  ;;  %450 = vst [vmem:[%s12882_s6 + $0x1e4] sm:$0xf] %v449_v57  ;;  %v451_v58 = vld [vmem:[%s12875_s5 + $0x3d0] sm:$0xf] }
  0x67   : > { %v453_v59 = vld [vmem:[%s12875_s5 + $0x3d8] sm:$0xf]  ;;  %v455_v60 = vld [vmem:[%s12875_s5 + $0x3e0] sm:$0xf]  ;;  %452 = vst [vmem:[%s12882_s6 + $0x1e8] sm:$0xf] %v451_v58 }
  0x68   : > { %454 = vst [vmem:[%s12882_s6 + $0x1ec] sm:$0xf] %v453_v59  ;;  %456 = vst [vmem:[%s12882_s6 + $0x1f0] sm:$0xf] %v455_v60  ;;  %v457_v61 = vld [vmem:[%s12875_s5 + $0x3e8] sm:$0xf] }
  0x69   : > { %v459_v62 = vld [vmem:[%s12875_s5 + $0x3f0] sm:$0xf]  ;;  %v461_v63 = vld [vmem:[%s12875_s5 + $0x3f8] sm:$0xf]  ;;  %458 = vst [vmem:[%s12882_s6 + $0x1f4] sm:$0xf] %v457_v61 }
  0x6a   : > { %460 = vst [vmem:[%s12882_s6 + $0x1f8] sm:$0xf] %v459_v62  ;;  %462 = vst [vmem:[%s12882_s6 + $0x1fc] sm:$0xf] %v461_v63  ;;  %v463_v0 = vld [vmem:[%s12875_s5 + $0x400] sm:$0xf] }
  0x6b   : > { %v465_v1 = vld [vmem:[%s12875_s5 + $0x408] sm:$0xf]  ;;  %v467_v2 = vld [vmem:[%s12875_s5 + $0x410] sm:$0xf]  ;;  %464 = vst [vmem:[%s12882_s6 + $0x200] sm:$0xf] %v463_v0 }
  0x6c   : > { %466 = vst [vmem:[%s12882_s6 + $0x204] sm:$0xf] %v465_v1  ;;  %468 = vst [vmem:[%s12882_s6 + $0x208] sm:$0xf] %v467_v2  ;;  %v469_v3 = vld [vmem:[%s12875_s5 + $0x418] sm:$0xf] }
  0x6d   : > { %v471_v4 = vld [vmem:[%s12875_s5 + $0x420] sm:$0xf]  ;;  %v473_v5 = vld [vmem:[%s12875_s5 + $0x428] sm:$0xf]  ;;  %470 = vst [vmem:[%s12882_s6 + $0x20c] sm:$0xf] %v469_v3 }
  0x6e   : > { %472 = vst [vmem:[%s12882_s6 + $0x210] sm:$0xf] %v471_v4  ;;  %474 = vst [vmem:[%s12882_s6 + $0x214] sm:$0xf] %v473_v5  ;;  %v475_v6 = vld [vmem:[%s12875_s5 + $0x430] sm:$0xf] }
  0x6f   : > { %v477_v7 = vld [vmem:[%s12875_s5 + $0x438] sm:$0xf]  ;;  %v479_v8 = vld [vmem:[%s12875_s5 + $0x440] sm:$0xf]  ;;  %476 = vst [vmem:[%s12882_s6 + $0x218] sm:$0xf] %v475_v6 }
  0x70   : > { %478 = vst [vmem:[%s12882_s6 + $0x21c] sm:$0xf] %v477_v7  ;;  %480 = vst [vmem:[%s12882_s6 + $0x220] sm:$0xf] %v479_v8  ;;  %v481_v9 = vld [vmem:[%s12875_s5 + $0x448] sm:$0xf] }
  0x71   : > { %v483_v10 = vld [vmem:[%s12875_s5 + $0x450] sm:$0xf]  ;;  %v485_v11 = vld [vmem:[%s12875_s5 + $0x458] sm:$0xf]  ;;  %482 = vst [vmem:[%s12882_s6 + $0x224] sm:$0xf] %v481_v9 }
  0x72   : > { %484 = vst [vmem:[%s12882_s6 + $0x228] sm:$0xf] %v483_v10  ;;  %486 = vst [vmem:[%s12882_s6 + $0x22c] sm:$0xf] %v485_v11  ;;  %v487_v12 = vld [vmem:[%s12875_s5 + $0x460] sm:$0xf] }
  0x73   : > { %v489_v13 = vld [vmem:[%s12875_s5 + $0x468] sm:$0xf]  ;;  %v491_v14 = vld [vmem:[%s12875_s5 + $0x470] sm:$0xf]  ;;  %488 = vst [vmem:[%s12882_s6 + $0x230] sm:$0xf] %v487_v12 }
  0x74   : > { %490 = vst [vmem:[%s12882_s6 + $0x234] sm:$0xf] %v489_v13  ;;  %492 = vst [vmem:[%s12882_s6 + $0x238] sm:$0xf] %v491_v14  ;;  %v493_v15 = vld [vmem:[%s12875_s5 + $0x478] sm:$0xf] }
  0x75   : > { %v495_v16 = vld [vmem:[%s12875_s5 + $0x480] sm:$0xf]  ;;  %v497_v17 = vld [vmem:[%s12875_s5 + $0x488] sm:$0xf]  ;;  %494 = vst [vmem:[%s12882_s6 + $0x23c] sm:$0xf] %v493_v15 }
  0x76   : > { %496 = vst [vmem:[%s12882_s6 + $0x240] sm:$0xf] %v495_v16  ;;  %498 = vst [vmem:[%s12882_s6 + $0x244] sm:$0xf] %v497_v17  ;;  %v499_v18 = vld [vmem:[%s12875_s5 + $0x490] sm:$0xf] }
  0x77   : > { %v501_v19 = vld [vmem:[%s12875_s5 + $0x498] sm:$0xf]  ;;  %v503_v20 = vld [vmem:[%s12875_s5 + $0x4a0] sm:$0xf]  ;;  %500 = vst [vmem:[%s12882_s6 + $0x248] sm:$0xf] %v499_v18 }
  0x78   : > { %502 = vst [vmem:[%s12882_s6 + $0x24c] sm:$0xf] %v501_v19  ;;  %504 = vst [vmem:[%s12882_s6 + $0x250] sm:$0xf] %v503_v20  ;;  %v505_v21 = vld [vmem:[%s12875_s5 + $0x4a8] sm:$0xf] }
  0x79   : > { %v507_v22 = vld [vmem:[%s12875_s5 + $0x4b0] sm:$0xf]  ;;  %v509_v23 = vld [vmem:[%s12875_s5 + $0x4b8] sm:$0xf]  ;;  %506 = vst [vmem:[%s12882_s6 + $0x254] sm:$0xf] %v505_v21 }
  0x7a   : > { %508 = vst [vmem:[%s12882_s6 + $0x258] sm:$0xf] %v507_v22  ;;  %510 = vst [vmem:[%s12882_s6 + $0x25c] sm:$0xf] %v509_v23  ;;  %v511_v24 = vld [vmem:[%s12875_s5 + $0x4c0] sm:$0xf] }
  0x7b   : > { %v513_v25 = vld [vmem:[%s12875_s5 + $0x4c8] sm:$0xf]  ;;  %v515_v26 = vld [vmem:[%s12875_s5 + $0x4d0] sm:$0xf]  ;;  %512 = vst [vmem:[%s12882_s6 + $0x260] sm:$0xf] %v511_v24 }
  0x7c   : > { %514 = vst [vmem:[%s12882_s6 + $0x264] sm:$0xf] %v513_v25  ;;  %516 = vst [vmem:[%s12882_s6 + $0x268] sm:$0xf] %v515_v26  ;;  %v517_v27 = vld [vmem:[%s12875_s5 + $0x4d8] sm:$0xf] }
  0x7d   : > { %v519_v28 = vld [vmem:[%s12875_s5 + $0x4e0] sm:$0xf]  ;;  %v521_v29 = vld [vmem:[%s12875_s5 + $0x4e8] sm:$0xf]  ;;  %518 = vst [vmem:[%s12882_s6 + $0x26c] sm:$0xf] %v517_v27 }
  0x7e   : > { %520 = vst [vmem:[%s12882_s6 + $0x270] sm:$0xf] %v519_v28  ;;  %522 = vst [vmem:[%s12882_s6 + $0x274] sm:$0xf] %v521_v29  ;;  %v523_v30 = vld [vmem:[%s12875_s5 + $0x4f0] sm:$0xf] }
  0x7f   : > { %v525_v31 = vld [vmem:[%s12875_s5 + $0x4f8] sm:$0xf]  ;;  %v527_v32 = vld [vmem:[%s12875_s5 + $0x500] sm:$0xf]  ;;  %524 = vst [vmem:[%s12882_s6 + $0x278] sm:$0xf] %v523_v30 }
  0x80   : > { %526 = vst [vmem:[%s12882_s6 + $0x27c] sm:$0xf] %v525_v31  ;;  %528 = vst [vmem:[%s12882_s6 + $0x280] sm:$0xf] %v527_v32  ;;  %v529_v33 = vld [vmem:[%s12875_s5 + $0x508] sm:$0xf] }
  0x81   : > { %v531_v34 = vld [vmem:[%s12875_s5 + $0x510] sm:$0xf]  ;;  %v533_v35 = vld [vmem:[%s12875_s5 + $0x518] sm:$0xf]  ;;  %530 = vst [vmem:[%s12882_s6 + $0x284] sm:$0xf] %v529_v33 }
  0x82   : > { %532 = vst [vmem:[%s12882_s6 + $0x288] sm:$0xf] %v531_v34  ;;  %534 = vst [vmem:[%s12882_s6 + $0x28c] sm:$0xf] %v533_v35  ;;  %v535_v36 = vld [vmem:[%s12875_s5 + $0x520] sm:$0xf] }
  0x83   : > { %v537_v37 = vld [vmem:[%s12875_s5 + $0x528] sm:$0xf]  ;;  %v539_v38 = vld [vmem:[%s12875_s5 + $0x530] sm:$0xf]  ;;  %536 = vst [vmem:[%s12882_s6 + $0x290] sm:$0xf] %v535_v36 }
  0x84   : > { %538 = vst [vmem:[%s12882_s6 + $0x294] sm:$0xf] %v537_v37  ;;  %540 = vst [vmem:[%s12882_s6 + $0x298] sm:$0xf] %v539_v38  ;;  %v541_v39 = vld [vmem:[%s12875_s5 + $0x538] sm:$0xf] }
  0x85   : > { %v543_v40 = vld [vmem:[%s12875_s5 + $0x540] sm:$0xf]  ;;  %v545_v41 = vld [vmem:[%s12875_s5 + $0x548] sm:$0xf]  ;;  %542 = vst [vmem:[%s12882_s6 + $0x29c] sm:$0xf] %v541_v39 }
  0x86   : > { %544 = vst [vmem:[%s12882_s6 + $0x2a0] sm:$0xf] %v543_v40  ;;  %546 = vst [vmem:[%s12882_s6 + $0x2a4] sm:$0xf] %v545_v41  ;;  %v547_v42 = vld [vmem:[%s12875_s5 + $0x550] sm:$0xf] }
  0x87   : > { %v549_v43 = vld [vmem:[%s12875_s5 + $0x558] sm:$0xf]  ;;  %v551_v44 = vld [vmem:[%s12875_s5 + $0x560] sm:$0xf]  ;;  %548 = vst [vmem:[%s12882_s6 + $0x2a8] sm:$0xf] %v547_v42 }
  0x88   : > { %550 = vst [vmem:[%s12882_s6 + $0x2ac] sm:$0xf] %v549_v43  ;;  %552 = vst [vmem:[%s12882_s6 + $0x2b0] sm:$0xf] %v551_v44  ;;  %v553_v45 = vld [vmem:[%s12875_s5 + $0x568] sm:$0xf] }
  0x89   : > { %v555_v46 = vld [vmem:[%s12875_s5 + $0x570] sm:$0xf]  ;;  %v557_v47 = vld [vmem:[%s12875_s5 + $0x578] sm:$0xf]  ;;  %554 = vst [vmem:[%s12882_s6 + $0x2b4] sm:$0xf] %v553_v45 }
  0x8a   : > { %556 = vst [vmem:[%s12882_s6 + $0x2b8] sm:$0xf] %v555_v46  ;;  %558 = vst [vmem:[%s12882_s6 + $0x2bc] sm:$0xf] %v557_v47  ;;  %v559_v48 = vld [vmem:[%s12875_s5 + $0x580] sm:$0xf] }
  0x8b   : > { %v561_v49 = vld [vmem:[%s12875_s5 + $0x588] sm:$0xf]  ;;  %v563_v50 = vld [vmem:[%s12875_s5 + $0x590] sm:$0xf]  ;;  %560 = vst [vmem:[%s12882_s6 + $0x2c0] sm:$0xf] %v559_v48 }
  0x8c   : > { %562 = vst [vmem:[%s12882_s6 + $0x2c4] sm:$0xf] %v561_v49  ;;  %564 = vst [vmem:[%s12882_s6 + $0x2c8] sm:$0xf] %v563_v50  ;;  %v565_v51 = vld [vmem:[%s12875_s5 + $0x598] sm:$0xf] }
  0x8d   : > { %v567_v52 = vld [vmem:[%s12875_s5 + $0x5a0] sm:$0xf]  ;;  %v569_v53 = vld [vmem:[%s12875_s5 + $0x5a8] sm:$0xf]  ;;  %566 = vst [vmem:[%s12882_s6 + $0x2cc] sm:$0xf] %v565_v51 }
  0x8e   : > { %568 = vst [vmem:[%s12882_s6 + $0x2d0] sm:$0xf] %v567_v52  ;;  %570 = vst [vmem:[%s12882_s6 + $0x2d4] sm:$0xf] %v569_v53  ;;  %v571_v54 = vld [vmem:[%s12875_s5 + $0x5b0] sm:$0xf] }
  0x8f   : > { %v573_v55 = vld [vmem:[%s12875_s5 + $0x5b8] sm:$0xf]  ;;  %v575_v56 = vld [vmem:[%s12875_s5 + $0x5c0] sm:$0xf]  ;;  %572 = vst [vmem:[%s12882_s6 + $0x2d8] sm:$0xf] %v571_v54 }
  0x90   : > { %574 = vst [vmem:[%s12882_s6 + $0x2dc] sm:$0xf] %v573_v55  ;;  %576 = vst [vmem:[%s12882_s6 + $0x2e0] sm:$0xf] %v575_v56  ;;  %v577_v57 = vld [vmem:[%s12875_s5 + $0x5c8] sm:$0xf] }
  0x91   : > { %v579_v58 = vld [vmem:[%s12875_s5 + $0x5d0] sm:$0xf]  ;;  %v581_v59 = vld [vmem:[%s12875_s5 + $0x5d8] sm:$0xf]  ;;  %578 = vst [vmem:[%s12882_s6 + $0x2e4] sm:$0xf] %v577_v57 }
  0x92   : > { %580 = vst [vmem:[%s12882_s6 + $0x2e8] sm:$0xf] %v579_v58  ;;  %582 = vst [vmem:[%s12882_s6 + $0x2ec] sm:$0xf] %v581_v59  ;;  %v583_v60 = vld [vmem:[%s12875_s5 + $0x5e0] sm:$0xf] }
  0x93   : > { %v585_v61 = vld [vmem:[%s12875_s5 + $0x5e8] sm:$0xf]  ;;  %v587_v62 = vld [vmem:[%s12875_s5 + $0x5f0] sm:$0xf]  ;;  %584 = vst [vmem:[%s12882_s6 + $0x2f0] sm:$0xf] %v583_v60 }
  0x94   : > { %586 = vst [vmem:[%s12882_s6 + $0x2f4] sm:$0xf] %v585_v61  ;;  %588 = vst [vmem:[%s12882_s6 + $0x2f8] sm:$0xf] %v587_v62  ;;  %v589_v63 = vld [vmem:[%s12875_s5 + $0x5f8] sm:$0xf] }
  0x95   : > { %v591_v0 = vld [vmem:[%s12875_s5 + $0x600] sm:$0xf]  ;;  %v593_v1 = vld [vmem:[%s12875_s5 + $0x608] sm:$0xf]  ;;  %590 = vst [vmem:[%s12882_s6 + $0x2fc] sm:$0xf] %v589_v63 }
  0x96   : > { %592 = vst [vmem:[%s12882_s6 + $0x300] sm:$0xf] %v591_v0  ;;  %594 = vst [vmem:[%s12882_s6 + $0x304] sm:$0xf] %v593_v1  ;;  %v595_v2 = vld [vmem:[%s12875_s5 + $0x610] sm:$0xf] }
  0x97   : > { %v597_v3 = vld [vmem:[%s12875_s5 + $0x618] sm:$0xf]  ;;  %v599_v4 = vld [vmem:[%s12875_s5 + $0x620] sm:$0xf]  ;;  %596 = vst [vmem:[%s12882_s6 + $0x308] sm:$0xf] %v595_v2 }
  0x98   : > { %598 = vst [vmem:[%s12882_s6 + $0x30c] sm:$0xf] %v597_v3  ;;  %600 = vst [vmem:[%s12882_s6 + $0x310] sm:$0xf] %v599_v4  ;;  %v601_v5 = vld [vmem:[%s12875_s5 + $0x628] sm:$0xf] }
  0x99   : > { %v603_v6 = vld [vmem:[%s12875_s5 + $0x630] sm:$0xf]  ;;  %v605_v7 = vld [vmem:[%s12875_s5 + $0x638] sm:$0xf]  ;;  %602 = vst [vmem:[%s12882_s6 + $0x314] sm:$0xf] %v601_v5 }
  0x9a   : > { %604 = vst [vmem:[%s12882_s6 + $0x318] sm:$0xf] %v603_v6  ;;  %606 = vst [vmem:[%s12882_s6 + $0x31c] sm:$0xf] %v605_v7  ;;  %v607_v8 = vld [vmem:[%s12875_s5 + $0x640] sm:$0xf] }
  0x9b   : > { %v609_v9 = vld [vmem:[%s12875_s5 + $0x648] sm:$0xf]  ;;  %v611_v10 = vld [vmem:[%s12875_s5 + $0x650] sm:$0xf]  ;;  %608 = vst [vmem:[%s12882_s6 + $0x320] sm:$0xf] %v607_v8 }
  0x9c   : > { %610 = vst [vmem:[%s12882_s6 + $0x324] sm:$0xf] %v609_v9  ;;  %612 = vst [vmem:[%s12882_s6 + $0x328] sm:$0xf] %v611_v10  ;;  %v613_v11 = vld [vmem:[%s12875_s5 + $0x658] sm:$0xf] }
  0x9d   : > { %v615_v12 = vld [vmem:[%s12875_s5 + $0x660] sm:$0xf]  ;;  %v617_v13 = vld [vmem:[%s12875_s5 + $0x668] sm:$0xf]  ;;  %614 = vst [vmem:[%s12882_s6 + $0x32c] sm:$0xf] %v613_v11 }
  0x9e   : > { %616 = vst [vmem:[%s12882_s6 + $0x330] sm:$0xf] %v615_v12  ;;  %618 = vst [vmem:[%s12882_s6 + $0x334] sm:$0xf] %v617_v13  ;;  %v619_v14 = vld [vmem:[%s12875_s5 + $0x670] sm:$0xf] }
  0x9f   : > { %v621_v15 = vld [vmem:[%s12875_s5 + $0x678] sm:$0xf]  ;;  %v623_v16 = vld [vmem:[%s12875_s5 + $0x680] sm:$0xf]  ;;  %620 = vst [vmem:[%s12882_s6 + $0x338] sm:$0xf] %v619_v14 }
  0xa0   : > { %622 = vst [vmem:[%s12882_s6 + $0x33c] sm:$0xf] %v621_v15  ;;  %624 = vst [vmem:[%s12882_s6 + $0x340] sm:$0xf] %v623_v16  ;;  %v625_v17 = vld [vmem:[%s12875_s5 + $0x688] sm:$0xf] }
  0xa1   : > { %v627_v18 = vld [vmem:[%s12875_s5 + $0x690] sm:$0xf]  ;;  %v629_v19 = vld [vmem:[%s12875_s5 + $0x698] sm:$0xf]  ;;  %626 = vst [vmem:[%s12882_s6 + $0x344] sm:$0xf] %v625_v17 }
  0xa2   : > { %628 = vst [vmem:[%s12882_s6 + $0x348] sm:$0xf] %v627_v18  ;;  %630 = vst [vmem:[%s12882_s6 + $0x34c] sm:$0xf] %v629_v19  ;;  %v631_v20 = vld [vmem:[%s12875_s5 + $0x6a0] sm:$0xf] }
  0xa3   : > { %v633_v21 = vld [vmem:[%s12875_s5 + $0x6a8] sm:$0xf]  ;;  %v635_v22 = vld [vmem:[%s12875_s5 + $0x6b0] sm:$0xf]  ;;  %632 = vst [vmem:[%s12882_s6 + $0x350] sm:$0xf] %v631_v20 }
  0xa4   : > { %634 = vst [vmem:[%s12882_s6 + $0x354] sm:$0xf] %v633_v21  ;;  %636 = vst [vmem:[%s12882_s6 + $0x358] sm:$0xf] %v635_v22  ;;  %v637_v23 = vld [vmem:[%s12875_s5 + $0x6b8] sm:$0xf] }
  0xa5   : > { %v639_v24 = vld [vmem:[%s12875_s5 + $0x6c0] sm:$0xf]  ;;  %v641_v25 = vld [vmem:[%s12875_s5 + $0x6c8] sm:$0xf]  ;;  %638 = vst [vmem:[%s12882_s6 + $0x35c] sm:$0xf] %v637_v23 }
  0xa6   : > { %640 = vst [vmem:[%s12882_s6 + $0x360] sm:$0xf] %v639_v24  ;;  %642 = vst [vmem:[%s12882_s6 + $0x364] sm:$0xf] %v641_v25  ;;  %v643_v26 = vld [vmem:[%s12875_s5 + $0x6d0] sm:$0xf] }
  0xa7   : > { %v645_v27 = vld [vmem:[%s12875_s5 + $0x6d8] sm:$0xf]  ;;  %v647_v28 = vld [vmem:[%s12875_s5 + $0x6e0] sm:$0xf]  ;;  %644 = vst [vmem:[%s12882_s6 + $0x368] sm:$0xf] %v643_v26 }
  0xa8   : > { %646 = vst [vmem:[%s12882_s6 + $0x36c] sm:$0xf] %v645_v27  ;;  %648 = vst [vmem:[%s12882_s6 + $0x370] sm:$0xf] %v647_v28  ;;  %v649_v29 = vld [vmem:[%s12875_s5 + $0x6e8] sm:$0xf] }
  0xa9   : > { %v651_v30 = vld [vmem:[%s12875_s5 + $0x6f0] sm:$0xf]  ;;  %v653_v31 = vld [vmem:[%s12875_s5 + $0x6f8] sm:$0xf]  ;;  %650 = vst [vmem:[%s12882_s6 + $0x374] sm:$0xf] %v649_v29 }
  0xaa   : > { %652 = vst [vmem:[%s12882_s6 + $0x378] sm:$0xf] %v651_v30  ;;  %654 = vst [vmem:[%s12882_s6 + $0x37c] sm:$0xf] %v653_v31  ;;  %v655_v32 = vld [vmem:[%s12875_s5 + $0x700] sm:$0xf] }
  0xab   : > { %v657_v33 = vld [vmem:[%s12875_s5 + $0x708] sm:$0xf]  ;;  %v659_v34 = vld [vmem:[%s12875_s5 + $0x710] sm:$0xf]  ;;  %656 = vst [vmem:[%s12882_s6 + $0x380] sm:$0xf] %v655_v32 }
  0xac   : > { %658 = vst [vmem:[%s12882_s6 + $0x384] sm:$0xf] %v657_v33  ;;  %660 = vst [vmem:[%s12882_s6 + $0x388] sm:$0xf] %v659_v34  ;;  %v661_v35 = vld [vmem:[%s12875_s5 + $0x718] sm:$0xf] }
  0xad   : > { %v663_v36 = vld [vmem:[%s12875_s5 + $0x720] sm:$0xf]  ;;  %v665_v37 = vld [vmem:[%s12875_s5 + $0x728] sm:$0xf]  ;;  %662 = vst [vmem:[%s12882_s6 + $0x38c] sm:$0xf] %v661_v35 }
  0xae   : > { %664 = vst [vmem:[%s12882_s6 + $0x390] sm:$0xf] %v663_v36  ;;  %666 = vst [vmem:[%s12882_s6 + $0x394] sm:$0xf] %v665_v37  ;;  %v667_v38 = vld [vmem:[%s12875_s5 + $0x730] sm:$0xf] }
  0xaf   : > { %v669_v39 = vld [vmem:[%s12875_s5 + $0x738] sm:$0xf]  ;;  %v671_v40 = vld [vmem:[%s12875_s5 + $0x740] sm:$0xf]  ;;  %668 = vst [vmem:[%s12882_s6 + $0x398] sm:$0xf] %v667_v38 }
  0xb0   : > { %670 = vst [vmem:[%s12882_s6 + $0x39c] sm:$0xf] %v669_v39  ;;  %672 = vst [vmem:[%s12882_s6 + $0x3a0] sm:$0xf] %v671_v40  ;;  %v673_v41 = vld [vmem:[%s12875_s5 + $0x748] sm:$0xf] }
  0xb1   : > { %v675_v42 = vld [vmem:[%s12875_s5 + $0x750] sm:$0xf]  ;;  %v677_v43 = vld [vmem:[%s12875_s5 + $0x758] sm:$0xf]  ;;  %674 = vst [vmem:[%s12882_s6 + $0x3a4] sm:$0xf] %v673_v41 }
  0xb2   : > { %676 = vst [vmem:[%s12882_s6 + $0x3a8] sm:$0xf] %v675_v42  ;;  %678 = vst [vmem:[%s12882_s6 + $0x3ac] sm:$0xf] %v677_v43  ;;  %v679_v44 = vld [vmem:[%s12875_s5 + $0x760] sm:$0xf] }
  0xb3   : > { %v681_v45 = vld [vmem:[%s12875_s5 + $0x768] sm:$0xf]  ;;  %v683_v46 = vld [vmem:[%s12875_s5 + $0x770] sm:$0xf]  ;;  %680 = vst [vmem:[%s12882_s6 + $0x3b0] sm:$0xf] %v679_v44 }
  0xb4   : > { %682 = vst [vmem:[%s12882_s6 + $0x3b4] sm:$0xf] %v681_v45  ;;  %684 = vst [vmem:[%s12882_s6 + $0x3b8] sm:$0xf] %v683_v46  ;;  %v685_v47 = vld [vmem:[%s12875_s5 + $0x778] sm:$0xf] }
  0xb5   : > { %v687_v48 = vld [vmem:[%s12875_s5 + $0x780] sm:$0xf]  ;;  %v689_v49 = vld [vmem:[%s12875_s5 + $0x788] sm:$0xf]  ;;  %686 = vst [vmem:[%s12882_s6 + $0x3bc] sm:$0xf] %v685_v47 }
  0xb6   : > { %688 = vst [vmem:[%s12882_s6 + $0x3c0] sm:$0xf] %v687_v48  ;;  %690 = vst [vmem:[%s12882_s6 + $0x3c4] sm:$0xf] %v689_v49  ;;  %v691_v50 = vld [vmem:[%s12875_s5 + $0x790] sm:$0xf] }
  0xb7   : > { %v693_v51 = vld [vmem:[%s12875_s5 + $0x798] sm:$0xf]  ;;  %v695_v52 = vld [vmem:[%s12875_s5 + $0x7a0] sm:$0xf]  ;;  %692 = vst [vmem:[%s12882_s6 + $0x3c8] sm:$0xf] %v691_v50 }
  0xb8   : > { %694 = vst [vmem:[%s12882_s6 + $0x3cc] sm:$0xf] %v693_v51  ;;  %696 = vst [vmem:[%s12882_s6 + $0x3d0] sm:$0xf] %v695_v52  ;;  %v697_v53 = vld [vmem:[%s12875_s5 + $0x7a8] sm:$0xf] }
  0xb9   : > { %v699_v54 = vld [vmem:[%s12875_s5 + $0x7b0] sm:$0xf]  ;;  %v701_v55 = vld [vmem:[%s12875_s5 + $0x7b8] sm:$0xf]  ;;  %698 = vst [vmem:[%s12882_s6 + $0x3d4] sm:$0xf] %v697_v53 }
  0xba   : > { %700 = vst [vmem:[%s12882_s6 + $0x3d8] sm:$0xf] %v699_v54  ;;  %702 = vst [vmem:[%s12882_s6 + $0x3dc] sm:$0xf] %v701_v55  ;;  %v703_v56 = vld [vmem:[%s12875_s5 + $0x7c0] sm:$0xf] }
  0xbb   : > { %v705_v57 = vld [vmem:[%s12875_s5 + $0x7c8] sm:$0xf]  ;;  %v707_v58 = vld [vmem:[%s12875_s5 + $0x7d0] sm:$0xf]  ;;  %704 = vst [vmem:[%s12882_s6 + $0x3e0] sm:$0xf] %v703_v56 }
  0xbc   : > { %706 = vst [vmem:[%s12882_s6 + $0x3e4] sm:$0xf] %v705_v57  ;;  %708 = vst [vmem:[%s12882_s6 + $0x3e8] sm:$0xf] %v707_v58  ;;  %v709_v59 = vld [vmem:[%s12875_s5 + $0x7d8] sm:$0xf] }
  0xbd   : > { %v711_v60 = vld [vmem:[%s12875_s5 + $0x7e0] sm:$0xf]  ;;  %v713_v61 = vld [vmem:[%s12875_s5 + $0x7e8] sm:$0xf]  ;;  %710 = vst [vmem:[%s12882_s6 + $0x3ec] sm:$0xf] %v709_v59 }
  0xbe   : > { %712 = vst [vmem:[%s12882_s6 + $0x3f0] sm:$0xf] %v711_v60  ;;  %714 = vst [vmem:[%s12882_s6 + $0x3f4] sm:$0xf] %v713_v61  ;;  %v715_v62 = vld [vmem:[%s12875_s5 + $0x7f0] sm:$0xf] }
  0xbf   : > { %v717_v63 = vld [vmem:[%s12875_s5 + $0x7f8] sm:$0xf]  ;;  %v719_v0 = vld [vmem:[%s12875_s5 + $0x800] sm:$0xf]  ;;  %716 = vst [vmem:[%s12882_s6 + $0x3f8] sm:$0xf] %v715_v62 }
  0xc0   : > { %718 = vst [vmem:[%s12882_s6 + $0x3fc] sm:$0xf] %v717_v63  ;;  %720 = vst [vmem:[%s12882_s6 + $0x400] sm:$0xf] %v719_v0  ;;  %v721_v1 = vld [vmem:[%s12875_s5 + $0x808] sm:$0xf] }
  0xc1   : > { %v723_v2 = vld [vmem:[%s12875_s5 + $0x810] sm:$0xf]  ;;  %v725_v3 = vld [vmem:[%s12875_s5 + $0x818] sm:$0xf]  ;;  %722 = vst [vmem:[%s12882_s6 + $0x404] sm:$0xf] %v721_v1 }
  0xc2   : > { %724 = vst [vmem:[%s12882_s6 + $0x408] sm:$0xf] %v723_v2  ;;  %726 = vst [vmem:[%s12882_s6 + $0x40c] sm:$0xf] %v725_v3  ;;  %v727_v4 = vld [vmem:[%s12875_s5 + $0x820] sm:$0xf] }
  0xc3   : > { %v729_v5 = vld [vmem:[%s12875_s5 + $0x828] sm:$0xf]  ;;  %v731_v6 = vld [vmem:[%s12875_s5 + $0x830] sm:$0xf]  ;;  %728 = vst [vmem:[%s12882_s6 + $0x410] sm:$0xf] %v727_v4 }
  0xc4   : > { %730 = vst [vmem:[%s12882_s6 + $0x414] sm:$0xf] %v729_v5  ;;  %732 = vst [vmem:[%s12882_s6 + $0x418] sm:$0xf] %v731_v6  ;;  %v733_v7 = vld [vmem:[%s12875_s5 + $0x838] sm:$0xf] }
  0xc5   : > { %v735_v8 = vld [vmem:[%s12875_s5 + $0x840] sm:$0xf]  ;;  %v737_v9 = vld [vmem:[%s12875_s5 + $0x848] sm:$0xf]  ;;  %734 = vst [vmem:[%s12882_s6 + $0x41c] sm:$0xf] %v733_v7 }
  0xc6   : > { %736 = vst [vmem:[%s12882_s6 + $0x420] sm:$0xf] %v735_v8  ;;  %738 = vst [vmem:[%s12882_s6 + $0x424] sm:$0xf] %v737_v9  ;;  %v739_v10 = vld [vmem:[%s12875_s5 + $0x850] sm:$0xf] }
  0xc7   : > { %v741_v11 = vld [vmem:[%s12875_s5 + $0x858] sm:$0xf]  ;;  %v743_v12 = vld [vmem:[%s12875_s5 + $0x860] sm:$0xf]  ;;  %740 = vst [vmem:[%s12882_s6 + $0x428] sm:$0xf] %v739_v10 }
  0xc8   : > { %742 = vst [vmem:[%s12882_s6 + $0x42c] sm:$0xf] %v741_v11  ;;  %744 = vst [vmem:[%s12882_s6 + $0x430] sm:$0xf] %v743_v12  ;;  %v745_v13 = vld [vmem:[%s12875_s5 + $0x868] sm:$0xf] }
  0xc9   : > { %v747_v14 = vld [vmem:[%s12875_s5 + $0x870] sm:$0xf]  ;;  %v749_v15 = vld [vmem:[%s12875_s5 + $0x878] sm:$0xf]  ;;  %746 = vst [vmem:[%s12882_s6 + $0x434] sm:$0xf] %v745_v13 }
  0xca   : > { %748 = vst [vmem:[%s12882_s6 + $0x438] sm:$0xf] %v747_v14  ;;  %750 = vst [vmem:[%s12882_s6 + $0x43c] sm:$0xf] %v749_v15  ;;  %v751_v16 = vld [vmem:[%s12875_s5 + $0x880] sm:$0xf] }
  0xcb   : > { %v753_v17 = vld [vmem:[%s12875_s5 + $0x888] sm:$0xf]  ;;  %v755_v18 = vld [vmem:[%s12875_s5 + $0x890] sm:$0xf]  ;;  %752 = vst [vmem:[%s12882_s6 + $0x440] sm:$0xf] %v751_v16 }
  0xcc   : > { %754 = vst [vmem:[%s12882_s6 + $0x444] sm:$0xf] %v753_v17  ;;  %756 = vst [vmem:[%s12882_s6 + $0x448] sm:$0xf] %v755_v18  ;;  %v757_v19 = vld [vmem:[%s12875_s5 + $0x898] sm:$0xf] }
  0xcd   : > { %v759_v20 = vld [vmem:[%s12875_s5 + $0x8a0] sm:$0xf]  ;;  %v761_v21 = vld [vmem:[%s12875_s5 + $0x8a8] sm:$0xf]  ;;  %758 = vst [vmem:[%s12882_s6 + $0x44c] sm:$0xf] %v757_v19 }
  0xce   : > { %760 = vst [vmem:[%s12882_s6 + $0x450] sm:$0xf] %v759_v20  ;;  %762 = vst [vmem:[%s12882_s6 + $0x454] sm:$0xf] %v761_v21  ;;  %v763_v22 = vld [vmem:[%s12875_s5 + $0x8b0] sm:$0xf] }
  0xcf   : > { %v765_v23 = vld [vmem:[%s12875_s5 + $0x8b8] sm:$0xf]  ;;  %v767_v24 = vld [vmem:[%s12875_s5 + $0x8c0] sm:$0xf]  ;;  %764 = vst [vmem:[%s12882_s6 + $0x458] sm:$0xf] %v763_v22 }
  0xd0   : > { %766 = vst [vmem:[%s12882_s6 + $0x45c] sm:$0xf] %v765_v23  ;;  %768 = vst [vmem:[%s12882_s6 + $0x460] sm:$0xf] %v767_v24  ;;  %v769_v25 = vld [vmem:[%s12875_s5 + $0x8c8] sm:$0xf] }
  0xd1   : > { %v771_v26 = vld [vmem:[%s12875_s5 + $0x8d0] sm:$0xf]  ;;  %v773_v27 = vld [vmem:[%s12875_s5 + $0x8d8] sm:$0xf]  ;;  %770 = vst [vmem:[%s12882_s6 + $0x464] sm:$0xf] %v769_v25 }
  0xd2   : > { %772 = vst [vmem:[%s12882_s6 + $0x468] sm:$0xf] %v771_v26  ;;  %774 = vst [vmem:[%s12882_s6 + $0x46c] sm:$0xf] %v773_v27  ;;  %v775_v28 = vld [vmem:[%s12875_s5 + $0x8e0] sm:$0xf] }
  0xd3   : > { %v777_v29 = vld [vmem:[%s12875_s5 + $0x8e8] sm:$0xf]  ;;  %v779_v30 = vld [vmem:[%s12875_s5 + $0x8f0] sm:$0xf]  ;;  %776 = vst [vmem:[%s12882_s6 + $0x470] sm:$0xf] %v775_v28 }
  0xd4   : > { %778 = vst [vmem:[%s12882_s6 + $0x474] sm:$0xf] %v777_v29  ;;  %780 = vst [vmem:[%s12882_s6 + $0x478] sm:$0xf] %v779_v30  ;;  %v781_v31 = vld [vmem:[%s12875_s5 + $0x8f8] sm:$0xf] }
  0xd5   : > { %v783_v32 = vld [vmem:[%s12875_s5 + $0x900] sm:$0xf]  ;;  %v785_v33 = vld [vmem:[%s12875_s5 + $0x908] sm:$0xf]  ;;  %782 = vst [vmem:[%s12882_s6 + $0x47c] sm:$0xf] %v781_v31 }
  0xd6   : > { %784 = vst [vmem:[%s12882_s6 + $0x480] sm:$0xf] %v783_v32  ;;  %786 = vst [vmem:[%s12882_s6 + $0x484] sm:$0xf] %v785_v33  ;;  %v787_v34 = vld [vmem:[%s12875_s5 + $0x910] sm:$0xf] }
  0xd7   : > { %v789_v35 = vld [vmem:[%s12875_s5 + $0x918] sm:$0xf]  ;;  %v791_v36 = vld [vmem:[%s12875_s5 + $0x920] sm:$0xf]  ;;  %788 = vst [vmem:[%s12882_s6 + $0x488] sm:$0xf] %v787_v34 }
  0xd8   : > { %790 = vst [vmem:[%s12882_s6 + $0x48c] sm:$0xf] %v789_v35  ;;  %792 = vst [vmem:[%s12882_s6 + $0x490] sm:$0xf] %v791_v36  ;;  %v793_v37 = vld [vmem:[%s12875_s5 + $0x928] sm:$0xf] }
  0xd9   : > { %v795_v38 = vld [vmem:[%s12875_s5 + $0x930] sm:$0xf]  ;;  %v797_v39 = vld [vmem:[%s12875_s5 + $0x938] sm:$0xf]  ;;  %794 = vst [vmem:[%s12882_s6 + $0x494] sm:$0xf] %v793_v37 }
  0xda   : > { %796 = vst [vmem:[%s12882_s6 + $0x498] sm:$0xf] %v795_v38  ;;  %798 = vst [vmem:[%s12882_s6 + $0x49c] sm:$0xf] %v797_v39  ;;  %v799_v40 = vld [vmem:[%s12875_s5 + $0x940] sm:$0xf] }
  0xdb   : > { %v801_v41 = vld [vmem:[%s12875_s5 + $0x948] sm:$0xf]  ;;  %v803_v42 = vld [vmem:[%s12875_s5 + $0x950] sm:$0xf]  ;;  %800 = vst [vmem:[%s12882_s6 + $0x4a0] sm:$0xf] %v799_v40 }
  0xdc   : > { %802 = vst [vmem:[%s12882_s6 + $0x4a4] sm:$0xf] %v801_v41  ;;  %804 = vst [vmem:[%s12882_s6 + $0x4a8] sm:$0xf] %v803_v42  ;;  %v805_v43 = vld [vmem:[%s12875_s5 + $0x958] sm:$0xf] }
  0xdd   : > { %v807_v44 = vld [vmem:[%s12875_s5 + $0x960] sm:$0xf]  ;;  %v809_v45 = vld [vmem:[%s12875_s5 + $0x968] sm:$0xf]  ;;  %806 = vst [vmem:[%s12882_s6 + $0x4ac] sm:$0xf] %v805_v43 }
  0xde   : > { %808 = vst [vmem:[%s12882_s6 + $0x4b0] sm:$0xf] %v807_v44  ;;  %810 = vst [vmem:[%s12882_s6 + $0x4b4] sm:$0xf] %v809_v45  ;;  %v811_v46 = vld [vmem:[%s12875_s5 + $0x970] sm:$0xf] }
  0xdf   : > { %v813_v47 = vld [vmem:[%s12875_s5 + $0x978] sm:$0xf]  ;;  %v815_v48 = vld [vmem:[%s12875_s5 + $0x980] sm:$0xf]  ;;  %812 = vst [vmem:[%s12882_s6 + $0x4b8] sm:$0xf] %v811_v46 }
  0xe0   : > { %814 = vst [vmem:[%s12882_s6 + $0x4bc] sm:$0xf] %v813_v47  ;;  %816 = vst [vmem:[%s12882_s6 + $0x4c0] sm:$0xf] %v815_v48  ;;  %v817_v49 = vld [vmem:[%s12875_s5 + $0x988] sm:$0xf] }
  0xe1   : > { %v819_v50 = vld [vmem:[%s12875_s5 + $0x990] sm:$0xf]  ;;  %v821_v51 = vld [vmem:[%s12875_s5 + $0x998] sm:$0xf]  ;;  %818 = vst [vmem:[%s12882_s6 + $0x4c4] sm:$0xf] %v817_v49 }
  0xe2   : > { %820 = vst [vmem:[%s12882_s6 + $0x4c8] sm:$0xf] %v819_v50  ;;  %822 = vst [vmem:[%s12882_s6 + $0x4cc] sm:$0xf] %v821_v51  ;;  %v823_v52 = vld [vmem:[%s12875_s5 + $0x9a0] sm:$0xf] }
  0xe3   : > { %v825_v53 = vld [vmem:[%s12875_s5 + $0x9a8] sm:$0xf]  ;;  %v827_v54 = vld [vmem:[%s12875_s5 + $0x9b0] sm:$0xf]  ;;  %824 = vst [vmem:[%s12882_s6 + $0x4d0] sm:$0xf] %v823_v52 }
  0xe4   : > { %826 = vst [vmem:[%s12882_s6 + $0x4d4] sm:$0xf] %v825_v53  ;;  %828 = vst [vmem:[%s12882_s6 + $0x4d8] sm:$0xf] %v827_v54  ;;  %v829_v55 = vld [vmem:[%s12875_s5 + $0x9b8] sm:$0xf] }
  0xe5   : > { %v831_v56 = vld [vmem:[%s12875_s5 + $0x9c0] sm:$0xf]  ;;  %v833_v57 = vld [vmem:[%s12875_s5 + $0x9c8] sm:$0xf]  ;;  %830 = vst [vmem:[%s12882_s6 + $0x4dc] sm:$0xf] %v829_v55 }
  0xe6   : > { %832 = vst [vmem:[%s12882_s6 + $0x4e0] sm:$0xf] %v831_v56  ;;  %834 = vst [vmem:[%s12882_s6 + $0x4e4] sm:$0xf] %v833_v57  ;;  %v835_v58 = vld [vmem:[%s12875_s5 + $0x9d0] sm:$0xf] }
  0xe7   : > { %v837_v59 = vld [vmem:[%s12875_s5 + $0x9d8] sm:$0xf]  ;;  %v839_v60 = vld [vmem:[%s12875_s5 + $0x9e0] sm:$0xf]  ;;  %836 = vst [vmem:[%s12882_s6 + $0x4e8] sm:$0xf] %v835_v58 }
  0xe8   : > { %838 = vst [vmem:[%s12882_s6 + $0x4ec] sm:$0xf] %v837_v59  ;;  %840 = vst [vmem:[%s12882_s6 + $0x4f0] sm:$0xf] %v839_v60  ;;  %v841_v61 = vld [vmem:[%s12875_s5 + $0x9e8] sm:$0xf] }
  0xe9   : > { %v843_v62 = vld [vmem:[%s12875_s5 + $0x9f0] sm:$0xf]  ;;  %v845_v63 = vld [vmem:[%s12875_s5 + $0x9f8] sm:$0xf]  ;;  %842 = vst [vmem:[%s12882_s6 + $0x4f4] sm:$0xf] %v841_v61 }
  0xea   : > { %844 = vst [vmem:[%s12882_s6 + $0x4f8] sm:$0xf] %v843_v62  ;;  %846 = vst [vmem:[%s12882_s6 + $0x4fc] sm:$0xf] %v845_v63  ;;  %v847_v0 = vld [vmem:[%s12875_s5 + $0xa00] sm:$0xf] }
  0xeb   : > { %v849_v1 = vld [vmem:[%s12875_s5 + $0xa08] sm:$0xf]  ;;  %v851_v2 = vld [vmem:[%s12875_s5 + $0xa10] sm:$0xf]  ;;  %848 = vst [vmem:[%s12882_s6 + $0x500] sm:$0xf] %v847_v0 }
  0xec   : > { %850 = vst [vmem:[%s12882_s6 + $0x504] sm:$0xf] %v849_v1  ;;  %852 = vst [vmem:[%s12882_s6 + $0x508] sm:$0xf] %v851_v2  ;;  %v853_v3 = vld [vmem:[%s12875_s5 + $0xa18] sm:$0xf] }
  0xed   : > { %v855_v4 = vld [vmem:[%s12875_s5 + $0xa20] sm:$0xf]  ;;  %v857_v5 = vld [vmem:[%s12875_s5 + $0xa28] sm:$0xf]  ;;  %854 = vst [vmem:[%s12882_s6 + $0x50c] sm:$0xf] %v853_v3 }
  0xee   : > { %856 = vst [vmem:[%s12882_s6 + $0x510] sm:$0xf] %v855_v4  ;;  %858 = vst [vmem:[%s12882_s6 + $0x514] sm:$0xf] %v857_v5  ;;  %v859_v6 = vld [vmem:[%s12875_s5 + $0xa30] sm:$0xf] }
  0xef   : > { %v861_v7 = vld [vmem:[%s12875_s5 + $0xa38] sm:$0xf]  ;;  %v863_v8 = vld [vmem:[%s12875_s5 + $0xa40] sm:$0xf]  ;;  %860 = vst [vmem:[%s12882_s6 + $0x518] sm:$0xf] %v859_v6 }
  0xf0   : > { %862 = vst [vmem:[%s12882_s6 + $0x51c] sm:$0xf] %v861_v7  ;;  %864 = vst [vmem:[%s12882_s6 + $0x520] sm:$0xf] %v863_v8  ;;  %v865_v9 = vld [vmem:[%s12875_s5 + $0xa48] sm:$0xf] }
  0xf1   : > { %v867_v10 = vld [vmem:[%s12875_s5 + $0xa50] sm:$0xf]  ;;  %v869_v11 = vld [vmem:[%s12875_s5 + $0xa58] sm:$0xf]  ;;  %866 = vst [vmem:[%s12882_s6 + $0x524] sm:$0xf] %v865_v9 }
  0xf2   : > { %868 = vst [vmem:[%s12882_s6 + $0x528] sm:$0xf] %v867_v10  ;;  %870 = vst [vmem:[%s12882_s6 + $0x52c] sm:$0xf] %v869_v11  ;;  %v871_v12 = vld [vmem:[%s12875_s5 + $0xa60] sm:$0xf] }
  0xf3   : > { %v873_v13 = vld [vmem:[%s12875_s5 + $0xa68] sm:$0xf]  ;;  %v875_v14 = vld [vmem:[%s12875_s5 + $0xa70] sm:$0xf]  ;;  %872 = vst [vmem:[%s12882_s6 + $0x530] sm:$0xf] %v871_v12 }
  0xf4   : > { %874 = vst [vmem:[%s12882_s6 + $0x534] sm:$0xf] %v873_v13  ;;  %876 = vst [vmem:[%s12882_s6 + $0x538] sm:$0xf] %v875_v14  ;;  %v877_v15 = vld [vmem:[%s12875_s5 + $0xa78] sm:$0xf] }
  0xf5   : > { %v879_v16 = vld [vmem:[%s12875_s5 + $0xa80] sm:$0xf]  ;;  %v881_v17 = vld [vmem:[%s12875_s5 + $0xa88] sm:$0xf]  ;;  %878 = vst [vmem:[%s12882_s6 + $0x53c] sm:$0xf] %v877_v15 }
  0xf6   : > { %880 = vst [vmem:[%s12882_s6 + $0x540] sm:$0xf] %v879_v16  ;;  %882 = vst [vmem:[%s12882_s6 + $0x544] sm:$0xf] %v881_v17  ;;  %v883_v18 = vld [vmem:[%s12875_s5 + $0xa90] sm:$0xf] }
  0xf7   : > { %v885_v19 = vld [vmem:[%s12875_s5 + $0xa98] sm:$0xf]  ;;  %v887_v20 = vld [vmem:[%s12875_s5 + $0xaa0] sm:$0xf]  ;;  %884 = vst [vmem:[%s12882_s6 + $0x548] sm:$0xf] %v883_v18 }
  0xf8   : > { %886 = vst [vmem:[%s12882_s6 + $0x54c] sm:$0xf] %v885_v19  ;;  %888 = vst [vmem:[%s12882_s6 + $0x550] sm:$0xf] %v887_v20  ;;  %v889_v21 = vld [vmem:[%s12875_s5 + $0xaa8] sm:$0xf] }
  0xf9   : > { %v891_v22 = vld [vmem:[%s12875_s5 + $0xab0] sm:$0xf]  ;;  %v893_v23 = vld [vmem:[%s12875_s5 + $0xab8] sm:$0xf]  ;;  %890 = vst [vmem:[%s12882_s6 + $0x554] sm:$0xf] %v889_v21 }
  0xfa   : > { %892 = vst [vmem:[%s12882_s6 + $0x558] sm:$0xf] %v891_v22  ;;  %894 = vst [vmem:[%s12882_s6 + $0x55c] sm:$0xf] %v893_v23  ;;  %v895_v24 = vld [vmem:[%s12875_s5 + $0xac0] sm:$0xf] }
  0xfb   : > { %v897_v25 = vld [vmem:[%s12875_s5 + $0xac8] sm:$0xf]  ;;  %v899_v26 = vld [vmem:[%s12875_s5 + $0xad0] sm:$0xf]  ;;  %896 = vst [vmem:[%s12882_s6 + $0x560] sm:$0xf] %v895_v24 }
  0xfc   : > { %898 = vst [vmem:[%s12882_s6 + $0x564] sm:$0xf] %v897_v25  ;;  %900 = vst [vmem:[%s12882_s6 + $0x568] sm:$0xf] %v899_v26  ;;  %v901_v27 = vld [vmem:[%s12875_s5 + $0xad8] sm:$0xf] }
  0xfd   : > { %v903_v28 = vld [vmem:[%s12875_s5 + $0xae0] sm:$0xf]  ;;  %v905_v29 = vld [vmem:[%s12875_s5 + $0xae8] sm:$0xf]  ;;  %902 = vst [vmem:[%s12882_s6 + $0x56c] sm:$0xf] %v901_v27 }
  0xfe   : > { %904 = vst [vmem:[%s12882_s6 + $0x570] sm:$0xf] %v903_v28  ;;  %906 = vst [vmem:[%s12882_s6 + $0x574] sm:$0xf] %v905_v29  ;;  %v907_v30 = vld [vmem:[%s12875_s5 + $0xaf0] sm:$0xf] }
  0xff   : > { %v909_v31 = vld [vmem:[%s12875_s5 + $0xaf8] sm:$0xf]  ;;  %v911_v32 = vld [vmem:[%s12875_s5 + $0xb00] sm:$0xf]  ;;  %908 = vst [vmem:[%s12882_s6 + $0x578] sm:$0xf] %v907_v30 }
 0x100   : > { %910 = vst [vmem:[%s12882_s6 + $0x57c] sm:$0xf] %v909_v31  ;;  %912 = vst [vmem:[%s12882_s6 + $0x580] sm:$0xf] %v911_v32  ;;  %v913_v33 = vld [vmem:[%s12875_s5 + $0xb08] sm:$0xf] }
 0x101   : > { %v915_v34 = vld [vmem:[%s12875_s5 + $0xb10] sm:$0xf]  ;;  %v917_v35 = vld [vmem:[%s12875_s5 + $0xb18] sm:$0xf]  ;;  %914 = vst [vmem:[%s12882_s6 + $0x584] sm:$0xf] %v913_v33 }
 0x102   : > { %916 = vst [vmem:[%s12882_s6 + $0x588] sm:$0xf] %v915_v34  ;;  %918 = vst [vmem:[%s12882_s6 + $0x58c] sm:$0xf] %v917_v35  ;;  %v919_v36 = vld [vmem:[%s12875_s5 + $0xb20] sm:$0xf] }
 0x103   : > { %v921_v37 = vld [vmem:[%s12875_s5 + $0xb28] sm:$0xf]  ;;  %v923_v38 = vld [vmem:[%s12875_s5 + $0xb30] sm:$0xf]  ;;  %920 = vst [vmem:[%s12882_s6 + $0x590] sm:$0xf] %v919_v36 }
 0x104   : > { %922 = vst [vmem:[%s12882_s6 + $0x594] sm:$0xf] %v921_v37  ;;  %924 = vst [vmem:[%s12882_s6 + $0x598] sm:$0xf] %v923_v38  ;;  %v925_v39 = vld [vmem:[%s12875_s5 + $0xb38] sm:$0xf] }
 0x105   : > { %v927_v40 = vld [vmem:[%s12875_s5 + $0xb40] sm:$0xf]  ;;  %v929_v41 = vld [vmem:[%s12875_s5 + $0xb48] sm:$0xf]  ;;  %926 = vst [vmem:[%s12882_s6 + $0x59c] sm:$0xf] %v925_v39 }
 0x106   : > { %928 = vst [vmem:[%s12882_s6 + $0x5a0] sm:$0xf] %v927_v40  ;;  %930 = vst [vmem:[%s12882_s6 + $0x5a4] sm:$0xf] %v929_v41  ;;  %v931_v42 = vld [vmem:[%s12875_s5 + $0xb50] sm:$0xf] }
 0x107   : > { %v933_v43 = vld [vmem:[%s12875_s5 + $0xb58] sm:$0xf]  ;;  %v935_v44 = vld [vmem:[%s12875_s5 + $0xb60] sm:$0xf]  ;;  %932 = vst [vmem:[%s12882_s6 + $0x5a8] sm:$0xf] %v931_v42 }
 0x108   : > { %934 = vst [vmem:[%s12882_s6 + $0x5ac] sm:$0xf] %v933_v43  ;;  %936 = vst [vmem:[%s12882_s6 + $0x5b0] sm:$0xf] %v935_v44  ;;  %v937_v45 = vld [vmem:[%s12875_s5 + $0xb68] sm:$0xf] }
 0x109   : > { %v939_v46 = vld [vmem:[%s12875_s5 + $0xb70] sm:$0xf]  ;;  %v941_v47 = vld [vmem:[%s12875_s5 + $0xb78] sm:$0xf]  ;;  %938 = vst [vmem:[%s12882_s6 + $0x5b4] sm:$0xf] %v937_v45 }
 0x10a   : > { %940 = vst [vmem:[%s12882_s6 + $0x5b8] sm:$0xf] %v939_v46  ;;  %942 = vst [vmem:[%s12882_s6 + $0x5bc] sm:$0xf] %v941_v47  ;;  %v943_v48 = vld [vmem:[%s12875_s5 + $0xb80] sm:$0xf] }
 0x10b   : > { %v945_v49 = vld [vmem:[%s12875_s5 + $0xb88] sm:$0xf]  ;;  %v947_v50 = vld [vmem:[%s12875_s5 + $0xb90] sm:$0xf]  ;;  %944 = vst [vmem:[%s12882_s6 + $0x5c0] sm:$0xf] %v943_v48 }
 0x10c   : > { %946 = vst [vmem:[%s12882_s6 + $0x5c4] sm:$0xf] %v945_v49  ;;  %948 = vst [vmem:[%s12882_s6 + $0x5c8] sm:$0xf] %v947_v50  ;;  %v949_v51 = vld [vmem:[%s12875_s5 + $0xb98] sm:$0xf] }
 0x10d   : > { %v951_v52 = vld [vmem:[%s12875_s5 + $0xba0] sm:$0xf]  ;;  %v953_v53 = vld [vmem:[%s12875_s5 + $0xba8] sm:$0xf]  ;;  %950 = vst [vmem:[%s12882_s6 + $0x5cc] sm:$0xf] %v949_v51 }
 0x10e   : > { %952 = vst [vmem:[%s12882_s6 + $0x5d0] sm:$0xf] %v951_v52  ;;  %954 = vst [vmem:[%s12882_s6 + $0x5d4] sm:$0xf] %v953_v53  ;;  %v955_v54 = vld [vmem:[%s12875_s5 + $0xbb0] sm:$0xf] }
 0x10f   : > { %v957_v55 = vld [vmem:[%s12875_s5 + $0xbb8] sm:$0xf]  ;;  %v959_v56 = vld [vmem:[%s12875_s5 + $0xbc0] sm:$0xf]  ;;  %956 = vst [vmem:[%s12882_s6 + $0x5d8] sm:$0xf] %v955_v54 }
 0x110   : > { %958 = vst [vmem:[%s12882_s6 + $0x5dc] sm:$0xf] %v957_v55  ;;  %960 = vst [vmem:[%s12882_s6 + $0x5e0] sm:$0xf] %v959_v56  ;;  %v961_v57 = vld [vmem:[%s12875_s5 + $0xbc8] sm:$0xf] }
 0x111   : > { %v963_v58 = vld [vmem:[%s12875_s5 + $0xbd0] sm:$0xf]  ;;  %v965_v59 = vld [vmem:[%s12875_s5 + $0xbd8] sm:$0xf]  ;;  %962 = vst [vmem:[%s12882_s6 + $0x5e4] sm:$0xf] %v961_v57 }
 0x112   : > { %964 = vst [vmem:[%s12882_s6 + $0x5e8] sm:$0xf] %v963_v58  ;;  %966 = vst [vmem:[%s12882_s6 + $0x5ec] sm:$0xf] %v965_v59  ;;  %v967_v60 = vld [vmem:[%s12875_s5 + $0xbe0] sm:$0xf] }
 0x113   : > { %v969_v61 = vld [vmem:[%s12875_s5 + $0xbe8] sm:$0xf]  ;;  %v971_v62 = vld [vmem:[%s12875_s5 + $0xbf0] sm:$0xf]  ;;  %968 = vst [vmem:[%s12882_s6 + $0x5f0] sm:$0xf] %v967_v60 }
 0x114   : > { %970 = vst [vmem:[%s12882_s6 + $0x5f4] sm:$0xf] %v969_v61  ;;  %972 = vst [vmem:[%s12882_s6 + $0x5f8] sm:$0xf] %v971_v62  ;;  %v973_v63 = vld [vmem:[%s12875_s5 + $0xbf8] sm:$0xf] }
 0x115   : > { %v975_v0 = vld [vmem:[%s12875_s5 + $0xc00] sm:$0xf]  ;;  %v977_v1 = vld [vmem:[%s12875_s5 + $0xc08] sm:$0xf]  ;;  %974 = vst [vmem:[%s12882_s6 + $0x5fc] sm:$0xf] %v973_v63 }
 0x116   : > { %976 = vst [vmem:[%s12882_s6 + $0x600] sm:$0xf] %v975_v0  ;;  %978 = vst [vmem:[%s12882_s6 + $0x604] sm:$0xf] %v977_v1  ;;  %v979_v2 = vld [vmem:[%s12875_s5 + $0xc10] sm:$0xf] }
 0x117   : > { %v981_v3 = vld [vmem:[%s12875_s5 + $0xc18] sm:$0xf]  ;;  %v983_v4 = vld [vmem:[%s12875_s5 + $0xc20] sm:$0xf]  ;;  %980 = vst [vmem:[%s12882_s6 + $0x608] sm:$0xf] %v979_v2 }
 0x118   : > { %982 = vst [vmem:[%s12882_s6 + $0x60c] sm:$0xf] %v981_v3  ;;  %984 = vst [vmem:[%s12882_s6 + $0x610] sm:$0xf] %v983_v4  ;;  %v985_v5 = vld [vmem:[%s12875_s5 + $0xc28] sm:$0xf] }
 0x119   : > { %v987_v6 = vld [vmem:[%s12875_s5 + $0xc30] sm:$0xf]  ;;  %v989_v7 = vld [vmem:[%s12875_s5 + $0xc38] sm:$0xf]  ;;  %986 = vst [vmem:[%s12882_s6 + $0x614] sm:$0xf] %v985_v5 }
 0x11a   : > { %988 = vst [vmem:[%s12882_s6 + $0x618] sm:$0xf] %v987_v6  ;;  %990 = vst [vmem:[%s12882_s6 + $0x61c] sm:$0xf] %v989_v7  ;;  %v991_v8 = vld [vmem:[%s12875_s5 + $0xc40] sm:$0xf] }
 0x11b   : > { %v993_v9 = vld [vmem:[%s12875_s5 + $0xc48] sm:$0xf]  ;;  %v995_v10 = vld [vmem:[%s12875_s5 + $0xc50] sm:$0xf]  ;;  %992 = vst [vmem:[%s12882_s6 + $0x620] sm:$0xf] %v991_v8 }
 0x11c   : > { %994 = vst [vmem:[%s12882_s6 + $0x624] sm:$0xf] %v993_v9  ;;  %996 = vst [vmem:[%s12882_s6 + $0x628] sm:$0xf] %v995_v10  ;;  %v997_v11 = vld [vmem:[%s12875_s5 + $0xc58] sm:$0xf] }
 0x11d   : > { %v999_v12 = vld [vmem:[%s12875_s5 + $0xc60] sm:$0xf]  ;;  %v1001_v13 = vld [vmem:[%s12875_s5 + $0xc68] sm:$0xf]  ;;  %998 = vst [vmem:[%s12882_s6 + $0x62c] sm:$0xf] %v997_v11 }
 0x11e   : > { %1000 = vst [vmem:[%s12882_s6 + $0x630] sm:$0xf] %v999_v12  ;;  %1002 = vst [vmem:[%s12882_s6 + $0x634] sm:$0xf] %v1001_v13  ;;  %v1003_v14 = vld [vmem:[%s12875_s5 + $0xc70] sm:$0xf] }
 0x11f   : > { %v1005_v15 = vld [vmem:[%s12875_s5 + $0xc78] sm:$0xf]  ;;  %v1007_v16 = vld [vmem:[%s12875_s5 + $0xc80] sm:$0xf]  ;;  %1004 = vst [vmem:[%s12882_s6 + $0x638] sm:$0xf] %v1003_v14 }
 0x120   : > { %1006 = vst [vmem:[%s12882_s6 + $0x63c] sm:$0xf] %v1005_v15  ;;  %1008 = vst [vmem:[%s12882_s6 + $0x640] sm:$0xf] %v1007_v16  ;;  %v1009_v17 = vld [vmem:[%s12875_s5 + $0xc88] sm:$0xf] }
 0x121   : > { %v1011_v18 = vld [vmem:[%s12875_s5 + $0xc90] sm:$0xf]  ;;  %v1013_v19 = vld [vmem:[%s12875_s5 + $0xc98] sm:$0xf]  ;;  %1010 = vst [vmem:[%s12882_s6 + $0x644] sm:$0xf] %v1009_v17 }
 0x122   : > { %1012 = vst [vmem:[%s12882_s6 + $0x648] sm:$0xf] %v1011_v18  ;;  %1014 = vst [vmem:[%s12882_s6 + $0x64c] sm:$0xf] %v1013_v19  ;;  %v1015_v20 = vld [vmem:[%s12875_s5 + $0xca0] sm:$0xf] }
 0x123   : > { %v1017_v21 = vld [vmem:[%s12875_s5 + $0xca8] sm:$0xf]  ;;  %v1019_v22 = vld [vmem:[%s12875_s5 + $0xcb0] sm:$0xf]  ;;  %1016 = vst [vmem:[%s12882_s6 + $0x650] sm:$0xf] %v1015_v20 }
 0x124   : > { %1018 = vst [vmem:[%s12882_s6 + $0x654] sm:$0xf] %v1017_v21  ;;  %1020 = vst [vmem:[%s12882_s6 + $0x658] sm:$0xf] %v1019_v22  ;;  %v1021_v23 = vld [vmem:[%s12875_s5 + $0xcb8] sm:$0xf] }
 0x125   : > { %v1023_v24 = vld [vmem:[%s12875_s5 + $0xcc0] sm:$0xf]  ;;  %v1025_v25 = vld [vmem:[%s12875_s5 + $0xcc8] sm:$0xf]  ;;  %1022 = vst [vmem:[%s12882_s6 + $0x65c] sm:$0xf] %v1021_v23 }
 0x126   : > { %1024 = vst [vmem:[%s12882_s6 + $0x660] sm:$0xf] %v1023_v24  ;;  %1026 = vst [vmem:[%s12882_s6 + $0x664] sm:$0xf] %v1025_v25  ;;  %v1027_v26 = vld [vmem:[%s12875_s5 + $0xcd0] sm:$0xf] }
 0x127   : > { %v1029_v27 = vld [vmem:[%s12875_s5 + $0xcd8] sm:$0xf]  ;;  %v1031_v28 = vld [vmem:[%s12875_s5 + $0xce0] sm:$0xf]  ;;  %1028 = vst [vmem:[%s12882_s6 + $0x668] sm:$0xf] %v1027_v26 }
 0x128   : > { %1030 = vst [vmem:[%s12882_s6 + $0x66c] sm:$0xf] %v1029_v27  ;;  %1032 = vst [vmem:[%s12882_s6 + $0x670] sm:$0xf] %v1031_v28  ;;  %v1033_v29 = vld [vmem:[%s12875_s5 + $0xce8] sm:$0xf] }
 0x129   : > { %v1035_v30 = vld [vmem:[%s12875_s5 + $0xcf0] sm:$0xf]  ;;  %v1037_v31 = vld [vmem:[%s12875_s5 + $0xcf8] sm:$0xf]  ;;  %1034 = vst [vmem:[%s12882_s6 + $0x674] sm:$0xf] %v1033_v29 }
 0x12a   : > { %1036 = vst [vmem:[%s12882_s6 + $0x678] sm:$0xf] %v1035_v30  ;;  %1038 = vst [vmem:[%s12882_s6 + $0x67c] sm:$0xf] %v1037_v31  ;;  %v1039_v32 = vld [vmem:[%s12875_s5 + $0xd00] sm:$0xf] }
 0x12b   : > { %v1041_v33 = vld [vmem:[%s12875_s5 + $0xd08] sm:$0xf]  ;;  %v1043_v34 = vld [vmem:[%s12875_s5 + $0xd10] sm:$0xf]  ;;  %1040 = vst [vmem:[%s12882_s6 + $0x680] sm:$0xf] %v1039_v32 }
 0x12c   : > { %1042 = vst [vmem:[%s12882_s6 + $0x684] sm:$0xf] %v1041_v33  ;;  %1044 = vst [vmem:[%s12882_s6 + $0x688] sm:$0xf] %v1043_v34  ;;  %v1045_v35 = vld [vmem:[%s12875_s5 + $0xd18] sm:$0xf] }
 0x12d   : > { %v1047_v36 = vld [vmem:[%s12875_s5 + $0xd20] sm:$0xf]  ;;  %v1049_v37 = vld [vmem:[%s12875_s5 + $0xd28] sm:$0xf]  ;;  %1046 = vst [vmem:[%s12882_s6 + $0x68c] sm:$0xf] %v1045_v35 }
 0x12e   : > { %1048 = vst [vmem:[%s12882_s6 + $0x690] sm:$0xf] %v1047_v36  ;;  %1050 = vst [vmem:[%s12882_s6 + $0x694] sm:$0xf] %v1049_v37  ;;  %v1051_v38 = vld [vmem:[%s12875_s5 + $0xd30] sm:$0xf] }
 0x12f   : > { %v1053_v39 = vld [vmem:[%s12875_s5 + $0xd38] sm:$0xf]  ;;  %v1055_v40 = vld [vmem:[%s12875_s5 + $0xd40] sm:$0xf]  ;;  %1052 = vst [vmem:[%s12882_s6 + $0x698] sm:$0xf] %v1051_v38 }
 0x130   : > { %1054 = vst [vmem:[%s12882_s6 + $0x69c] sm:$0xf] %v1053_v39  ;;  %1056 = vst [vmem:[%s12882_s6 + $0x6a0] sm:$0xf] %v1055_v40  ;;  %v1057_v41 = vld [vmem:[%s12875_s5 + $0xd48] sm:$0xf] }
 0x131   : > { %v1059_v42 = vld [vmem:[%s12875_s5 + $0xd50] sm:$0xf]  ;;  %v1061_v43 = vld [vmem:[%s12875_s5 + $0xd58] sm:$0xf]  ;;  %1058 = vst [vmem:[%s12882_s6 + $0x6a4] sm:$0xf] %v1057_v41 }
 0x132   : > { %1060 = vst [vmem:[%s12882_s6 + $0x6a8] sm:$0xf] %v1059_v42  ;;  %1062 = vst [vmem:[%s12882_s6 + $0x6ac] sm:$0xf] %v1061_v43  ;;  %v1063_v44 = vld [vmem:[%s12875_s5 + $0xd60] sm:$0xf] }
 0x133   : > { %v1065_v45 = vld [vmem:[%s12875_s5 + $0xd68] sm:$0xf]  ;;  %v1067_v46 = vld [vmem:[%s12875_s5 + $0xd70] sm:$0xf]  ;;  %1064 = vst [vmem:[%s12882_s6 + $0x6b0] sm:$0xf] %v1063_v44 }
 0x134   : > { %1066 = vst [vmem:[%s12882_s6 + $0x6b4] sm:$0xf] %v1065_v45  ;;  %1068 = vst [vmem:[%s12882_s6 + $0x6b8] sm:$0xf] %v1067_v46  ;;  %v1069_v47 = vld [vmem:[%s12875_s5 + $0xd78] sm:$0xf] }
 0x135   : > { %v1071_v48 = vld [vmem:[%s12875_s5 + $0xd80] sm:$0xf]  ;;  %v1073_v49 = vld [vmem:[%s12875_s5 + $0xd88] sm:$0xf]  ;;  %1070 = vst [vmem:[%s12882_s6 + $0x6bc] sm:$0xf] %v1069_v47 }
 0x136   : > { %1072 = vst [vmem:[%s12882_s6 + $0x6c0] sm:$0xf] %v1071_v48  ;;  %1074 = vst [vmem:[%s12882_s6 + $0x6c4] sm:$0xf] %v1073_v49  ;;  %v1075_v50 = vld [vmem:[%s12875_s5 + $0xd90] sm:$0xf] }
 0x137   : > { %v1077_v51 = vld [vmem:[%s12875_s5 + $0xd98] sm:$0xf]  ;;  %v1079_v52 = vld [vmem:[%s12875_s5 + $0xda0] sm:$0xf]  ;;  %1076 = vst [vmem:[%s12882_s6 + $0x6c8] sm:$0xf] %v1075_v50 }
 0x138   : > { %1078 = vst [vmem:[%s12882_s6 + $0x6cc] sm:$0xf] %v1077_v51  ;;  %1080 = vst [vmem:[%s12882_s6 + $0x6d0] sm:$0xf] %v1079_v52  ;;  %v1081_v53 = vld [vmem:[%s12875_s5 + $0xda8] sm:$0xf] }
 0x139   : > { %v1083_v54 = vld [vmem:[%s12875_s5 + $0xdb0] sm:$0xf]  ;;  %v1085_v55 = vld [vmem:[%s12875_s5 + $0xdb8] sm:$0xf]  ;;  %1082 = vst [vmem:[%s12882_s6 + $0x6d4] sm:$0xf] %v1081_v53 }
 0x13a   : > { %1084 = vst [vmem:[%s12882_s6 + $0x6d8] sm:$0xf] %v1083_v54  ;;  %1086 = vst [vmem:[%s12882_s6 + $0x6dc] sm:$0xf] %v1085_v55  ;;  %v1087_v56 = vld [vmem:[%s12875_s5 + $0xdc0] sm:$0xf] }
 0x13b   : > { %v1089_v57 = vld [vmem:[%s12875_s5 + $0xdc8] sm:$0xf]  ;;  %v1091_v58 = vld [vmem:[%s12875_s5 + $0xdd0] sm:$0xf]  ;;  %1088 = vst [vmem:[%s12882_s6 + $0x6e0] sm:$0xf] %v1087_v56 }
 0x13c   : > { %1090 = vst [vmem:[%s12882_s6 + $0x6e4] sm:$0xf] %v1089_v57  ;;  %1092 = vst [vmem:[%s12882_s6 + $0x6e8] sm:$0xf] %v1091_v58  ;;  %v1093_v59 = vld [vmem:[%s12875_s5 + $0xdd8] sm:$0xf] }
 0x13d   : > { %v1095_v60 = vld [vmem:[%s12875_s5 + $0xde0] sm:$0xf]  ;;  %v1097_v61 = vld [vmem:[%s12875_s5 + $0xde8] sm:$0xf]  ;;  %1094 = vst [vmem:[%s12882_s6 + $0x6ec] sm:$0xf] %v1093_v59 }
 0x13e   : > { %1096 = vst [vmem:[%s12882_s6 + $0x6f0] sm:$0xf] %v1095_v60  ;;  %1098 = vst [vmem:[%s12882_s6 + $0x6f4] sm:$0xf] %v1097_v61  ;;  %v1099_v62 = vld [vmem:[%s12875_s5 + $0xdf0] sm:$0xf] }
 0x13f   : > { %v1101_v63 = vld [vmem:[%s12875_s5 + $0xdf8] sm:$0xf]  ;;  %v1103_v0 = vld [vmem:[%s12875_s5 + $0xe00] sm:$0xf]  ;;  %1100 = vst [vmem:[%s12882_s6 + $0x6f8] sm:$0xf] %v1099_v62 }
 0x140   : > { %1102 = vst [vmem:[%s12882_s6 + $0x6fc] sm:$0xf] %v1101_v63  ;;  %1104 = vst [vmem:[%s12882_s6 + $0x700] sm:$0xf] %v1103_v0  ;;  %v1105_v1 = vld [vmem:[%s12875_s5 + $0xe08] sm:$0xf] }
 0x141   : > { %v1107_v2 = vld [vmem:[%s12875_s5 + $0xe10] sm:$0xf]  ;;  %v1109_v3 = vld [vmem:[%s12875_s5 + $0xe18] sm:$0xf]  ;;  %1106 = vst [vmem:[%s12882_s6 + $0x704] sm:$0xf] %v1105_v1 }
 0x142   : > { %1108 = vst [vmem:[%s12882_s6 + $0x708] sm:$0xf] %v1107_v2  ;;  %1110 = vst [vmem:[%s12882_s6 + $0x70c] sm:$0xf] %v1109_v3  ;;  %v1111_v4 = vld [vmem:[%s12875_s5 + $0xe20] sm:$0xf] }
 0x143   : > { %v1113_v5 = vld [vmem:[%s12875_s5 + $0xe28] sm:$0xf]  ;;  %v1115_v6 = vld [vmem:[%s12875_s5 + $0xe30] sm:$0xf]  ;;  %1112 = vst [vmem:[%s12882_s6 + $0x710] sm:$0xf] %v1111_v4 }
 0x144   : > { %1114 = vst [vmem:[%s12882_s6 + $0x714] sm:$0xf] %v1113_v5  ;;  %1116 = vst [vmem:[%s12882_s6 + $0x718] sm:$0xf] %v1115_v6  ;;  %v1117_v7 = vld [vmem:[%s12875_s5 + $0xe38] sm:$0xf] }
 0x145   : > { %v1119_v8 = vld [vmem:[%s12875_s5 + $0xe40] sm:$0xf]  ;;  %v1121_v9 = vld [vmem:[%s12875_s5 + $0xe48] sm:$0xf]  ;;  %1118 = vst [vmem:[%s12882_s6 + $0x71c] sm:$0xf] %v1117_v7 }
 0x146   : > { %1120 = vst [vmem:[%s12882_s6 + $0x720] sm:$0xf] %v1119_v8  ;;  %1122 = vst [vmem:[%s12882_s6 + $0x724] sm:$0xf] %v1121_v9  ;;  %v1123_v10 = vld [vmem:[%s12875_s5 + $0xe50] sm:$0xf] }
 0x147   : > { %v1125_v11 = vld [vmem:[%s12875_s5 + $0xe58] sm:$0xf]  ;;  %v1127_v12 = vld [vmem:[%s12875_s5 + $0xe60] sm:$0xf]  ;;  %1124 = vst [vmem:[%s12882_s6 + $0x728] sm:$0xf] %v1123_v10 }
 0x148   : > { %1126 = vst [vmem:[%s12882_s6 + $0x72c] sm:$0xf] %v1125_v11  ;;  %1128 = vst [vmem:[%s12882_s6 + $0x730] sm:$0xf] %v1127_v12  ;;  %v1129_v13 = vld [vmem:[%s12875_s5 + $0xe68] sm:$0xf] }
 0x149   : > { %v1131_v14 = vld [vmem:[%s12875_s5 + $0xe70] sm:$0xf]  ;;  %v1133_v15 = vld [vmem:[%s12875_s5 + $0xe78] sm:$0xf]  ;;  %1130 = vst [vmem:[%s12882_s6 + $0x734] sm:$0xf] %v1129_v13 }
 0x14a   : > { %1132 = vst [vmem:[%s12882_s6 + $0x738] sm:$0xf] %v1131_v14  ;;  %1134 = vst [vmem:[%s12882_s6 + $0x73c] sm:$0xf] %v1133_v15  ;;  %v1135_v16 = vld [vmem:[%s12875_s5 + $0xe80] sm:$0xf] }
 0x14b   : > { %v1137_v17 = vld [vmem:[%s12875_s5 + $0xe88] sm:$0xf]  ;;  %v1139_v18 = vld [vmem:[%s12875_s5 + $0xe90] sm:$0xf]  ;;  %1136 = vst [vmem:[%s12882_s6 + $0x740] sm:$0xf] %v1135_v16 }
 0x14c   : > { %1138 = vst [vmem:[%s12882_s6 + $0x744] sm:$0xf] %v1137_v17  ;;  %1140 = vst [vmem:[%s12882_s6 + $0x748] sm:$0xf] %v1139_v18  ;;  %v1141_v19 = vld [vmem:[%s12875_s5 + $0xe98] sm:$0xf] }
 0x14d   : > { %v1143_v20 = vld [vmem:[%s12875_s5 + $0xea0] sm:$0xf]  ;;  %v1145_v21 = vld [vmem:[%s12875_s5 + $0xea8] sm:$0xf]  ;;  %1142 = vst [vmem:[%s12882_s6 + $0x74c] sm:$0xf] %v1141_v19 }
 0x14e   : > { %1144 = vst [vmem:[%s12882_s6 + $0x750] sm:$0xf] %v1143_v20  ;;  %1146 = vst [vmem:[%s12882_s6 + $0x754] sm:$0xf] %v1145_v21  ;;  %v1147_v22 = vld [vmem:[%s12875_s5 + $0xeb0] sm:$0xf] }
 0x14f   : > { %v1149_v23 = vld [vmem:[%s12875_s5 + $0xeb8] sm:$0xf]  ;;  %v1151_v24 = vld [vmem:[%s12875_s5 + $0xec0] sm:$0xf]  ;;  %1148 = vst [vmem:[%s12882_s6 + $0x758] sm:$0xf] %v1147_v22 }
 0x150   : > { %1150 = vst [vmem:[%s12882_s6 + $0x75c] sm:$0xf] %v1149_v23  ;;  %1152 = vst [vmem:[%s12882_s6 + $0x760] sm:$0xf] %v1151_v24  ;;  %v1153_v25 = vld [vmem:[%s12875_s5 + $0xec8] sm:$0xf] }
 0x151   : > { %v1155_v26 = vld [vmem:[%s12875_s5 + $0xed0] sm:$0xf]  ;;  %v1157_v27 = vld [vmem:[%s12875_s5 + $0xed8] sm:$0xf]  ;;  %1154 = vst [vmem:[%s12882_s6 + $0x764] sm:$0xf] %v1153_v25 }
 0x152   : > { %1156 = vst [vmem:[%s12882_s6 + $0x768] sm:$0xf] %v1155_v26  ;;  %1158 = vst [vmem:[%s12882_s6 + $0x76c] sm:$0xf] %v1157_v27  ;;  %v1159_v28 = vld [vmem:[%s12875_s5 + $0xee0] sm:$0xf] }
 0x153   : > { %v1161_v29 = vld [vmem:[%s12875_s5 + $0xee8] sm:$0xf]  ;;  %v1163_v30 = vld [vmem:[%s12875_s5 + $0xef0] sm:$0xf]  ;;  %1160 = vst [vmem:[%s12882_s6 + $0x770] sm:$0xf] %v1159_v28 }
 0x154   : > { %1162 = vst [vmem:[%s12882_s6 + $0x774] sm:$0xf] %v1161_v29  ;;  %1164 = vst [vmem:[%s12882_s6 + $0x778] sm:$0xf] %v1163_v30  ;;  %v1165_v31 = vld [vmem:[%s12875_s5 + $0xef8] sm:$0xf] }
 0x155   : > { %v1167_v32 = vld [vmem:[%s12875_s5 + $0xf00] sm:$0xf]  ;;  %v1169_v33 = vld [vmem:[%s12875_s5 + $0xf08] sm:$0xf]  ;;  %1166 = vst [vmem:[%s12882_s6 + $0x77c] sm:$0xf] %v1165_v31 }
 0x156   : > { %1168 = vst [vmem:[%s12882_s6 + $0x780] sm:$0xf] %v1167_v32  ;;  %1170 = vst [vmem:[%s12882_s6 + $0x784] sm:$0xf] %v1169_v33  ;;  %v1171_v34 = vld [vmem:[%s12875_s5 + $0xf10] sm:$0xf] }
 0x157   : > { %v1173_v35 = vld [vmem:[%s12875_s5 + $0xf18] sm:$0xf]  ;;  %v1175_v36 = vld [vmem:[%s12875_s5 + $0xf20] sm:$0xf]  ;;  %1172 = vst [vmem:[%s12882_s6 + $0x788] sm:$0xf] %v1171_v34 }
 0x158   : > { %1174 = vst [vmem:[%s12882_s6 + $0x78c] sm:$0xf] %v1173_v35  ;;  %1176 = vst [vmem:[%s12882_s6 + $0x790] sm:$0xf] %v1175_v36  ;;  %v1177_v37 = vld [vmem:[%s12875_s5 + $0xf28] sm:$0xf] }
 0x159   : > { %v1179_v38 = vld [vmem:[%s12875_s5 + $0xf30] sm:$0xf]  ;;  %v1181_v39 = vld [vmem:[%s12875_s5 + $0xf38] sm:$0xf]  ;;  %1178 = vst [vmem:[%s12882_s6 + $0x794] sm:$0xf] %v1177_v37 }
 0x15a   : > { %1180 = vst [vmem:[%s12882_s6 + $0x798] sm:$0xf] %v1179_v38  ;;  %1182 = vst [vmem:[%s12882_s6 + $0x79c] sm:$0xf] %v1181_v39  ;;  %v1183_v40 = vld [vmem:[%s12875_s5 + $0xf40] sm:$0xf] }
 0x15b   : > { %v1185_v41 = vld [vmem:[%s12875_s5 + $0xf48] sm:$0xf]  ;;  %v1187_v42 = vld [vmem:[%s12875_s5 + $0xf50] sm:$0xf]  ;;  %1184 = vst [vmem:[%s12882_s6 + $0x7a0] sm:$0xf] %v1183_v40 }
 0x15c   : > { %1186 = vst [vmem:[%s12882_s6 + $0x7a4] sm:$0xf] %v1185_v41  ;;  %1188 = vst [vmem:[%s12882_s6 + $0x7a8] sm:$0xf] %v1187_v42  ;;  %v1189_v43 = vld [vmem:[%s12875_s5 + $0xf58] sm:$0xf] }
 0x15d   : > { %v1191_v44 = vld [vmem:[%s12875_s5 + $0xf60] sm:$0xf]  ;;  %v1193_v45 = vld [vmem:[%s12875_s5 + $0xf68] sm:$0xf]  ;;  %1190 = vst [vmem:[%s12882_s6 + $0x7ac] sm:$0xf] %v1189_v43 }
 0x15e   : > { %1192 = vst [vmem:[%s12882_s6 + $0x7b0] sm:$0xf] %v1191_v44  ;;  %1194 = vst [vmem:[%s12882_s6 + $0x7b4] sm:$0xf] %v1193_v45  ;;  %v1195_v46 = vld [vmem:[%s12875_s5 + $0xf70] sm:$0xf] }
 0x15f   : > { %v1197_v47 = vld [vmem:[%s12875_s5 + $0xf78] sm:$0xf]  ;;  %v1199_v48 = vld [vmem:[%s12875_s5 + $0xf80] sm:$0xf]  ;;  %1196 = vst [vmem:[%s12882_s6 + $0x7b8] sm:$0xf] %v1195_v46 }
 0x160   : > { %1198 = vst [vmem:[%s12882_s6 + $0x7bc] sm:$0xf] %v1197_v47  ;;  %1200 = vst [vmem:[%s12882_s6 + $0x7c0] sm:$0xf] %v1199_v48  ;;  %v1201_v49 = vld [vmem:[%s12875_s5 + $0xf88] sm:$0xf] }
 0x161   : > { %v1203_v50 = vld [vmem:[%s12875_s5 + $0xf90] sm:$0xf]  ;;  %v1205_v51 = vld [vmem:[%s12875_s5 + $0xf98] sm:$0xf]  ;;  %1202 = vst [vmem:[%s12882_s6 + $0x7c4] sm:$0xf] %v1201_v49 }
 0x162   : > { %1204 = vst [vmem:[%s12882_s6 + $0x7c8] sm:$0xf] %v1203_v50  ;;  %1206 = vst [vmem:[%s12882_s6 + $0x7cc] sm:$0xf] %v1205_v51  ;;  %v1207_v52 = vld [vmem:[%s12875_s5 + $0xfa0] sm:$0xf] }
 0x163   : > { %v1209_v53 = vld [vmem:[%s12875_s5 + $0xfa8] sm:$0xf]  ;;  %v1211_v54 = vld [vmem:[%s12875_s5 + $0xfb0] sm:$0xf]  ;;  %1208 = vst [vmem:[%s12882_s6 + $0x7d0] sm:$0xf] %v1207_v52 }
 0x164   : > { %1210 = vst [vmem:[%s12882_s6 + $0x7d4] sm:$0xf] %v1209_v53  ;;  %1212 = vst [vmem:[%s12882_s6 + $0x7d8] sm:$0xf] %v1211_v54  ;;  %v1213_v55 = vld [vmem:[%s12875_s5 + $0xfb8] sm:$0xf] }
 0x165   : > { %v1215_v56 = vld [vmem:[%s12875_s5 + $0xfc0] sm:$0xf]  ;;  %v1217_v57 = vld [vmem:[%s12875_s5 + $0xfc8] sm:$0xf]  ;;  %1214 = vst [vmem:[%s12882_s6 + $0x7dc] sm:$0xf] %v1213_v55 }
 0x166   : > { %1216 = vst [vmem:[%s12882_s6 + $0x7e0] sm:$0xf] %v1215_v56  ;;  %1218 = vst [vmem:[%s12882_s6 + $0x7e4] sm:$0xf] %v1217_v57  ;;  %v1219_v58 = vld [vmem:[%s12875_s5 + $0xfd0] sm:$0xf] }
 0x167   : > { %v1221_v59 = vld [vmem:[%s12875_s5 + $0xfd8] sm:$0xf]  ;;  %v1223_v60 = vld [vmem:[%s12875_s5 + $0xfe0] sm:$0xf]  ;;  %1220 = vst [vmem:[%s12882_s6 + $0x7e8] sm:$0xf] %v1219_v58 }
 0x168   : > { %1222 = vst [vmem:[%s12882_s6 + $0x7ec] sm:$0xf] %v1221_v59  ;;  %1224 = vst [vmem:[%s12882_s6 + $0x7f0] sm:$0xf] %v1223_v60  ;;  %v1225_v61 = vld [vmem:[%s12875_s5 + $0xfe8] sm:$0xf] }
 0x169   : > { %v1227_v62 = vld [vmem:[%s12875_s5 + $0xff0] sm:$0xf]  ;;  %v1229_v63 = vld [vmem:[%s12875_s5 + $0xff8] sm:$0xf]  ;;  %1226 = vst [vmem:[%s12882_s6 + $0x7f4] sm:$0xf] %v1225_v61 }
 0x16a   : > { %1228 = vst [vmem:[%s12882_s6 + $0x7f8] sm:$0xf] %v1227_v62  ;;  %1230 = vst [vmem:[%s12882_s6 + $0x7fc] sm:$0xf] %v1229_v63  ;;  %v1231_v0 = vld [vmem:[%s12875_s5 + $0x1000] sm:$0xf] }
 0x16b   : > { %v1233_v1 = vld [vmem:[%s12875_s5 + $0x1008] sm:$0xf]  ;;  %v1235_v2 = vld [vmem:[%s12875_s5 + $0x1010] sm:$0xf]  ;;  %1232 = vst [vmem:[%s12882_s6 + $0x800] sm:$0xf] %v1231_v0 }
 0x16c   : > { %1234 = vst [vmem:[%s12882_s6 + $0x804] sm:$0xf] %v1233_v1  ;;  %1236 = vst [vmem:[%s12882_s6 + $0x808] sm:$0xf] %v1235_v2  ;;  %v1237_v3 = vld [vmem:[%s12875_s5 + $0x1018] sm:$0xf] }
 0x16d   : > { %v1239_v4 = vld [vmem:[%s12875_s5 + $0x1020] sm:$0xf]  ;;  %v1241_v5 = vld [vmem:[%s12875_s5 + $0x1028] sm:$0xf]  ;;  %1238 = vst [vmem:[%s12882_s6 + $0x80c] sm:$0xf] %v1237_v3 }
 0x16e   : > { %1240 = vst [vmem:[%s12882_s6 + $0x810] sm:$0xf] %v1239_v4  ;;  %1242 = vst [vmem:[%s12882_s6 + $0x814] sm:$0xf] %v1241_v5  ;;  %v1243_v6 = vld [vmem:[%s12875_s5 + $0x1030] sm:$0xf] }
 0x16f   : > { %v1245_v7 = vld [vmem:[%s12875_s5 + $0x1038] sm:$0xf]  ;;  %v1247_v8 = vld [vmem:[%s12875_s5 + $0x1040] sm:$0xf]  ;;  %1244 = vst [vmem:[%s12882_s6 + $0x818] sm:$0xf] %v1243_v6 }
 0x170   : > { %1246 = vst [vmem:[%s12882_s6 + $0x81c] sm:$0xf] %v1245_v7  ;;  %1248 = vst [vmem:[%s12882_s6 + $0x820] sm:$0xf] %v1247_v8  ;;  %v1249_v9 = vld [vmem:[%s12875_s5 + $0x1048] sm:$0xf] }
 0x171   : > { %v1251_v10 = vld [vmem:[%s12875_s5 + $0x1050] sm:$0xf]  ;;  %v1253_v11 = vld [vmem:[%s12875_s5 + $0x1058] sm:$0xf]  ;;  %1250 = vst [vmem:[%s12882_s6 + $0x824] sm:$0xf] %v1249_v9 }
 0x172   : > { %1252 = vst [vmem:[%s12882_s6 + $0x828] sm:$0xf] %v1251_v10  ;;  %1254 = vst [vmem:[%s12882_s6 + $0x82c] sm:$0xf] %v1253_v11  ;;  %v1255_v12 = vld [vmem:[%s12875_s5 + $0x1060] sm:$0xf] }
 0x173   : > { %v1257_v13 = vld [vmem:[%s12875_s5 + $0x1068] sm:$0xf]  ;;  %v1259_v14 = vld [vmem:[%s12875_s5 + $0x1070] sm:$0xf]  ;;  %1256 = vst [vmem:[%s12882_s6 + $0x830] sm:$0xf] %v1255_v12 }
 0x174   : > { %1258 = vst [vmem:[%s12882_s6 + $0x834] sm:$0xf] %v1257_v13  ;;  %1260 = vst [vmem:[%s12882_s6 + $0x838] sm:$0xf] %v1259_v14  ;;  %v1261_v15 = vld [vmem:[%s12875_s5 + $0x1078] sm:$0xf] }
 0x175   : > { %v1263_v16 = vld [vmem:[%s12875_s5 + $0x1080] sm:$0xf]  ;;  %v1265_v17 = vld [vmem:[%s12875_s5 + $0x1088] sm:$0xf]  ;;  %1262 = vst [vmem:[%s12882_s6 + $0x83c] sm:$0xf] %v1261_v15 }
 0x176   : > { %1264 = vst [vmem:[%s12882_s6 + $0x840] sm:$0xf] %v1263_v16  ;;  %1266 = vst [vmem:[%s12882_s6 + $0x844] sm:$0xf] %v1265_v17  ;;  %v1267_v18 = vld [vmem:[%s12875_s5 + $0x1090] sm:$0xf] }
 0x177   : > { %v1269_v19 = vld [vmem:[%s12875_s5 + $0x1098] sm:$0xf]  ;;  %v1271_v20 = vld [vmem:[%s12875_s5 + $0x10a0] sm:$0xf]  ;;  %1268 = vst [vmem:[%s12882_s6 + $0x848] sm:$0xf] %v1267_v18 }
 0x178   : > { %1270 = vst [vmem:[%s12882_s6 + $0x84c] sm:$0xf] %v1269_v19  ;;  %1272 = vst [vmem:[%s12882_s6 + $0x850] sm:$0xf] %v1271_v20  ;;  %v1273_v21 = vld [vmem:[%s12875_s5 + $0x10a8] sm:$0xf] }
 0x179   : > { %v1275_v22 = vld [vmem:[%s12875_s5 + $0x10b0] sm:$0xf]  ;;  %v1277_v23 = vld [vmem:[%s12875_s5 + $0x10b8] sm:$0xf]  ;;  %1274 = vst [vmem:[%s12882_s6 + $0x854] sm:$0xf] %v1273_v21 }
 0x17a   : > { %1276 = vst [vmem:[%s12882_s6 + $0x858] sm:$0xf] %v1275_v22  ;;  %1278 = vst [vmem:[%s12882_s6 + $0x85c] sm:$0xf] %v1277_v23  ;;  %v1279_v24 = vld [vmem:[%s12875_s5 + $0x10c0] sm:$0xf] }
 0x17b   : > { %v1281_v25 = vld [vmem:[%s12875_s5 + $0x10c8] sm:$0xf]  ;;  %v1283_v26 = vld [vmem:[%s12875_s5 + $0x10d0] sm:$0xf]  ;;  %1280 = vst [vmem:[%s12882_s6 + $0x860] sm:$0xf] %v1279_v24 }
 0x17c   : > { %1282 = vst [vmem:[%s12882_s6 + $0x864] sm:$0xf] %v1281_v25  ;;  %1284 = vst [vmem:[%s12882_s6 + $0x868] sm:$0xf] %v1283_v26  ;;  %v1285_v27 = vld [vmem:[%s12875_s5 + $0x10d8] sm:$0xf] }
 0x17d   : > { %v1287_v28 = vld [vmem:[%s12875_s5 + $0x10e0] sm:$0xf]  ;;  %v1289_v29 = vld [vmem:[%s12875_s5 + $0x10e8] sm:$0xf]  ;;  %1286 = vst [vmem:[%s12882_s6 + $0x86c] sm:$0xf] %v1285_v27 }
 0x17e   : > { %1288 = vst [vmem:[%s12882_s6 + $0x870] sm:$0xf] %v1287_v28  ;;  %1290 = vst [vmem:[%s12882_s6 + $0x874] sm:$0xf] %v1289_v29  ;;  %v1291_v30 = vld [vmem:[%s12875_s5 + $0x10f0] sm:$0xf] }
 0x17f   : > { %v1293_v31 = vld [vmem:[%s12875_s5 + $0x10f8] sm:$0xf]  ;;  %v1295_v32 = vld [vmem:[%s12875_s5 + $0x1100] sm:$0xf]  ;;  %1292 = vst [vmem:[%s12882_s6 + $0x878] sm:$0xf] %v1291_v30 }
 0x180   : > { %1294 = vst [vmem:[%s12882_s6 + $0x87c] sm:$0xf] %v1293_v31  ;;  %1296 = vst [vmem:[%s12882_s6 + $0x880] sm:$0xf] %v1295_v32  ;;  %v1297_v33 = vld [vmem:[%s12875_s5 + $0x1108] sm:$0xf] }
 0x181   : > { %v1299_v34 = vld [vmem:[%s12875_s5 + $0x1110] sm:$0xf]  ;;  %v1301_v35 = vld [vmem:[%s12875_s5 + $0x1118] sm:$0xf]  ;;  %1298 = vst [vmem:[%s12882_s6 + $0x884] sm:$0xf] %v1297_v33 }
 0x182   : > { %1300 = vst [vmem:[%s12882_s6 + $0x888] sm:$0xf] %v1299_v34  ;;  %1302 = vst [vmem:[%s12882_s6 + $0x88c] sm:$0xf] %v1301_v35  ;;  %v1303_v36 = vld [vmem:[%s12875_s5 + $0x1120] sm:$0xf] }
 0x183   : > { %v1305_v37 = vld [vmem:[%s12875_s5 + $0x1128] sm:$0xf]  ;;  %v1307_v38 = vld [vmem:[%s12875_s5 + $0x1130] sm:$0xf]  ;;  %1304 = vst [vmem:[%s12882_s6 + $0x890] sm:$0xf] %v1303_v36 }
 0x184   : > { %1306 = vst [vmem:[%s12882_s6 + $0x894] sm:$0xf] %v1305_v37  ;;  %1308 = vst [vmem:[%s12882_s6 + $0x898] sm:$0xf] %v1307_v38  ;;  %v1309_v39 = vld [vmem:[%s12875_s5 + $0x1138] sm:$0xf] }
 0x185   : > { %v1311_v40 = vld [vmem:[%s12875_s5 + $0x1140] sm:$0xf]  ;;  %v1313_v41 = vld [vmem:[%s12875_s5 + $0x1148] sm:$0xf]  ;;  %1310 = vst [vmem:[%s12882_s6 + $0x89c] sm:$0xf] %v1309_v39 }
 0x186   : > { %1312 = vst [vmem:[%s12882_s6 + $0x8a0] sm:$0xf] %v1311_v40  ;;  %1314 = vst [vmem:[%s12882_s6 + $0x8a4] sm:$0xf] %v1313_v41  ;;  %v1315_v42 = vld [vmem:[%s12875_s5 + $0x1150] sm:$0xf] }
 0x187   : > { %v1317_v43 = vld [vmem:[%s12875_s5 + $0x1158] sm:$0xf]  ;;  %v1319_v44 = vld [vmem:[%s12875_s5 + $0x1160] sm:$0xf]  ;;  %1316 = vst [vmem:[%s12882_s6 + $0x8a8] sm:$0xf] %v1315_v42 }
 0x188   : > { %1318 = vst [vmem:[%s12882_s6 + $0x8ac] sm:$0xf] %v1317_v43  ;;  %1320 = vst [vmem:[%s12882_s6 + $0x8b0] sm:$0xf] %v1319_v44  ;;  %v1321_v45 = vld [vmem:[%s12875_s5 + $0x1168] sm:$0xf] }
 0x189   : > { %v1323_v46 = vld [vmem:[%s12875_s5 + $0x1170] sm:$0xf]  ;;  %v1325_v47 = vld [vmem:[%s12875_s5 + $0x1178] sm:$0xf]  ;;  %1322 = vst [vmem:[%s12882_s6 + $0x8b4] sm:$0xf] %v1321_v45 }
 0x18a   : > { %1324 = vst [vmem:[%s12882_s6 + $0x8b8] sm:$0xf] %v1323_v46  ;;  %1326 = vst [vmem:[%s12882_s6 + $0x8bc] sm:$0xf] %v1325_v47  ;;  %v1327_v48 = vld [vmem:[%s12875_s5 + $0x1180] sm:$0xf] }
 0x18b   : > { %v1329_v49 = vld [vmem:[%s12875_s5 + $0x1188] sm:$0xf]  ;;  %v1331_v50 = vld [vmem:[%s12875_s5 + $0x1190] sm:$0xf]  ;;  %1328 = vst [vmem:[%s12882_s6 + $0x8c0] sm:$0xf] %v1327_v48 }
 0x18c   : > { %1330 = vst [vmem:[%s12882_s6 + $0x8c4] sm:$0xf] %v1329_v49  ;;  %1332 = vst [vmem:[%s12882_s6 + $0x8c8] sm:$0xf] %v1331_v50  ;;  %v1333_v51 = vld [vmem:[%s12875_s5 + $0x1198] sm:$0xf] }
 0x18d   : > { %v1335_v52 = vld [vmem:[%s12875_s5 + $0x11a0] sm:$0xf]  ;;  %v1337_v53 = vld [vmem:[%s12875_s5 + $0x11a8] sm:$0xf]  ;;  %1334 = vst [vmem:[%s12882_s6 + $0x8cc] sm:$0xf] %v1333_v51 }
 0x18e   : > { %1336 = vst [vmem:[%s12882_s6 + $0x8d0] sm:$0xf] %v1335_v52  ;;  %1338 = vst [vmem:[%s12882_s6 + $0x8d4] sm:$0xf] %v1337_v53  ;;  %v1339_v54 = vld [vmem:[%s12875_s5 + $0x11b0] sm:$0xf] }
 0x18f   : > { %v1341_v55 = vld [vmem:[%s12875_s5 + $0x11b8] sm:$0xf]  ;;  %v1343_v56 = vld [vmem:[%s12875_s5 + $0x11c0] sm:$0xf]  ;;  %1340 = vst [vmem:[%s12882_s6 + $0x8d8] sm:$0xf] %v1339_v54 }
 0x190   : > { %1342 = vst [vmem:[%s12882_s6 + $0x8dc] sm:$0xf] %v1341_v55  ;;  %1344 = vst [vmem:[%s12882_s6 + $0x8e0] sm:$0xf] %v1343_v56  ;;  %v1345_v57 = vld [vmem:[%s12875_s5 + $0x11c8] sm:$0xf] }
 0x191   : > { %v1347_v58 = vld [vmem:[%s12875_s5 + $0x11d0] sm:$0xf]  ;;  %v1349_v59 = vld [vmem:[%s12875_s5 + $0x11d8] sm:$0xf]  ;;  %1346 = vst [vmem:[%s12882_s6 + $0x8e4] sm:$0xf] %v1345_v57 }
 0x192   : > { %1348 = vst [vmem:[%s12882_s6 + $0x8e8] sm:$0xf] %v1347_v58  ;;  %1350 = vst [vmem:[%s12882_s6 + $0x8ec] sm:$0xf] %v1349_v59  ;;  %v1351_v60 = vld [vmem:[%s12875_s5 + $0x11e0] sm:$0xf] }
 0x193   : > { %v1353_v61 = vld [vmem:[%s12875_s5 + $0x11e8] sm:$0xf]  ;;  %v1355_v62 = vld [vmem:[%s12875_s5 + $0x11f0] sm:$0xf]  ;;  %1352 = vst [vmem:[%s12882_s6 + $0x8f0] sm:$0xf] %v1351_v60 }
 0x194   : > { %1354 = vst [vmem:[%s12882_s6 + $0x8f4] sm:$0xf] %v1353_v61  ;;  %1356 = vst [vmem:[%s12882_s6 + $0x8f8] sm:$0xf] %v1355_v62  ;;  %v1357_v63 = vld [vmem:[%s12875_s5 + $0x11f8] sm:$0xf] }
 0x195   : > { %v1359_v0 = vld [vmem:[%s12875_s5 + $0x1200] sm:$0xf]  ;;  %v1361_v1 = vld [vmem:[%s12875_s5 + $0x1208] sm:$0xf]  ;;  %1358 = vst [vmem:[%s12882_s6 + $0x8fc] sm:$0xf] %v1357_v63 }
 0x196   : > { %1360 = vst [vmem:[%s12882_s6 + $0x900] sm:$0xf] %v1359_v0  ;;  %1362 = vst [vmem:[%s12882_s6 + $0x904] sm:$0xf] %v1361_v1  ;;  %v1363_v2 = vld [vmem:[%s12875_s5 + $0x1210] sm:$0xf] }
 0x197   : > { %v1365_v3 = vld [vmem:[%s12875_s5 + $0x1218] sm:$0xf]  ;;  %v1367_v4 = vld [vmem:[%s12875_s5 + $0x1220] sm:$0xf]  ;;  %1364 = vst [vmem:[%s12882_s6 + $0x908] sm:$0xf] %v1363_v2 }
 0x198   : > { %1366 = vst [vmem:[%s12882_s6 + $0x90c] sm:$0xf] %v1365_v3  ;;  %1368 = vst [vmem:[%s12882_s6 + $0x910] sm:$0xf] %v1367_v4  ;;  %v1369_v5 = vld [vmem:[%s12875_s5 + $0x1228] sm:$0xf] }
 0x199   : > { %v1371_v6 = vld [vmem:[%s12875_s5 + $0x1230] sm:$0xf]  ;;  %v1373_v7 = vld [vmem:[%s12875_s5 + $0x1238] sm:$0xf]  ;;  %1370 = vst [vmem:[%s12882_s6 + $0x914] sm:$0xf] %v1369_v5 }
 0x19a   : > { %1372 = vst [vmem:[%s12882_s6 + $0x918] sm:$0xf] %v1371_v6  ;;  %1374 = vst [vmem:[%s12882_s6 + $0x91c] sm:$0xf] %v1373_v7  ;;  %v1375_v8 = vld [vmem:[%s12875_s5 + $0x1240] sm:$0xf] }
 0x19b   : > { %v1377_v9 = vld [vmem:[%s12875_s5 + $0x1248] sm:$0xf]  ;;  %v1379_v10 = vld [vmem:[%s12875_s5 + $0x1250] sm:$0xf]  ;;  %1376 = vst [vmem:[%s12882_s6 + $0x920] sm:$0xf] %v1375_v8 }
 0x19c   : > { %1378 = vst [vmem:[%s12882_s6 + $0x924] sm:$0xf] %v1377_v9  ;;  %1380 = vst [vmem:[%s12882_s6 + $0x928] sm:$0xf] %v1379_v10  ;;  %v1381_v11 = vld [vmem:[%s12875_s5 + $0x1258] sm:$0xf] }
 0x19d   : > { %v1383_v12 = vld [vmem:[%s12875_s5 + $0x1260] sm:$0xf]  ;;  %v1385_v13 = vld [vmem:[%s12875_s5 + $0x1268] sm:$0xf]  ;;  %1382 = vst [vmem:[%s12882_s6 + $0x92c] sm:$0xf] %v1381_v11 }
 0x19e   : > { %1384 = vst [vmem:[%s12882_s6 + $0x930] sm:$0xf] %v1383_v12  ;;  %1386 = vst [vmem:[%s12882_s6 + $0x934] sm:$0xf] %v1385_v13  ;;  %v1387_v14 = vld [vmem:[%s12875_s5 + $0x1270] sm:$0xf] }
 0x19f   : > { %v1389_v15 = vld [vmem:[%s12875_s5 + $0x1278] sm:$0xf]  ;;  %v1391_v16 = vld [vmem:[%s12875_s5 + $0x1280] sm:$0xf]  ;;  %1388 = vst [vmem:[%s12882_s6 + $0x938] sm:$0xf] %v1387_v14 }
 0x1a0   : > { %1390 = vst [vmem:[%s12882_s6 + $0x93c] sm:$0xf] %v1389_v15  ;;  %1392 = vst [vmem:[%s12882_s6 + $0x940] sm:$0xf] %v1391_v16  ;;  %v1393_v17 = vld [vmem:[%s12875_s5 + $0x1288] sm:$0xf] }
 0x1a1   : > { %v1395_v18 = vld [vmem:[%s12875_s5 + $0x1290] sm:$0xf]  ;;  %v1397_v19 = vld [vmem:[%s12875_s5 + $0x1298] sm:$0xf]  ;;  %1394 = vst [vmem:[%s12882_s6 + $0x944] sm:$0xf] %v1393_v17 }
 0x1a2   : > { %1396 = vst [vmem:[%s12882_s6 + $0x948] sm:$0xf] %v1395_v18  ;;  %1398 = vst [vmem:[%s12882_s6 + $0x94c] sm:$0xf] %v1397_v19  ;;  %v1399_v20 = vld [vmem:[%s12875_s5 + $0x12a0] sm:$0xf] }
 0x1a3   : > { %v1401_v21 = vld [vmem:[%s12875_s5 + $0x12a8] sm:$0xf]  ;;  %v1403_v22 = vld [vmem:[%s12875_s5 + $0x12b0] sm:$0xf]  ;;  %1400 = vst [vmem:[%s12882_s6 + $0x950] sm:$0xf] %v1399_v20 }
 0x1a4   : > { %1402 = vst [vmem:[%s12882_s6 + $0x954] sm:$0xf] %v1401_v21  ;;  %1404 = vst [vmem:[%s12882_s6 + $0x958] sm:$0xf] %v1403_v22  ;;  %v1405_v23 = vld [vmem:[%s12875_s5 + $0x12b8] sm:$0xf] }
 0x1a5   : > { %v1407_v24 = vld [vmem:[%s12875_s5 + $0x12c0] sm:$0xf]  ;;  %v1409_v25 = vld [vmem:[%s12875_s5 + $0x12c8] sm:$0xf]  ;;  %1406 = vst [vmem:[%s12882_s6 + $0x95c] sm:$0xf] %v1405_v23 }
 0x1a6   : > { %1408 = vst [vmem:[%s12882_s6 + $0x960] sm:$0xf] %v1407_v24  ;;  %1410 = vst [vmem:[%s12882_s6 + $0x964] sm:$0xf] %v1409_v25  ;;  %v1411_v26 = vld [vmem:[%s12875_s5 + $0x12d0] sm:$0xf] }
 0x1a7   : > { %v1413_v27 = vld [vmem:[%s12875_s5 + $0x12d8] sm:$0xf]  ;;  %v1415_v28 = vld [vmem:[%s12875_s5 + $0x12e0] sm:$0xf]  ;;  %1412 = vst [vmem:[%s12882_s6 + $0x968] sm:$0xf] %v1411_v26 }
 0x1a8   : > { %1414 = vst [vmem:[%s12882_s6 + $0x96c] sm:$0xf] %v1413_v27  ;;  %1416 = vst [vmem:[%s12882_s6 + $0x970] sm:$0xf] %v1415_v28  ;;  %v1417_v29 = vld [vmem:[%s12875_s5 + $0x12e8] sm:$0xf] }
 0x1a9   : > { %v1419_v30 = vld [vmem:[%s12875_s5 + $0x12f0] sm:$0xf]  ;;  %v1421_v31 = vld [vmem:[%s12875_s5 + $0x12f8] sm:$0xf]  ;;  %1418 = vst [vmem:[%s12882_s6 + $0x974] sm:$0xf] %v1417_v29 }
 0x1aa   : > { %1420 = vst [vmem:[%s12882_s6 + $0x978] sm:$0xf] %v1419_v30  ;;  %1422 = vst [vmem:[%s12882_s6 + $0x97c] sm:$0xf] %v1421_v31  ;;  %v1423_v32 = vld [vmem:[%s12875_s5 + $0x1300] sm:$0xf] }
 0x1ab   : > { %v1425_v33 = vld [vmem:[%s12875_s5 + $0x1308] sm:$0xf]  ;;  %v1427_v34 = vld [vmem:[%s12875_s5 + $0x1310] sm:$0xf]  ;;  %1424 = vst [vmem:[%s12882_s6 + $0x980] sm:$0xf] %v1423_v32 }
 0x1ac   : > { %1426 = vst [vmem:[%s12882_s6 + $0x984] sm:$0xf] %v1425_v33  ;;  %1428 = vst [vmem:[%s12882_s6 + $0x988] sm:$0xf] %v1427_v34  ;;  %v1429_v35 = vld [vmem:[%s12875_s5 + $0x1318] sm:$0xf] }
 0x1ad   : > { %v1431_v36 = vld [vmem:[%s12875_s5 + $0x1320] sm:$0xf]  ;;  %v1433_v37 = vld [vmem:[%s12875_s5 + $0x1328] sm:$0xf]  ;;  %1430 = vst [vmem:[%s12882_s6 + $0x98c] sm:$0xf] %v1429_v35 }
 0x1ae   : > { %1432 = vst [vmem:[%s12882_s6 + $0x990] sm:$0xf] %v1431_v36  ;;  %1434 = vst [vmem:[%s12882_s6 + $0x994] sm:$0xf] %v1433_v37  ;;  %v1435_v38 = vld [vmem:[%s12875_s5 + $0x1330] sm:$0xf] }
 0x1af   : > { %v1437_v39 = vld [vmem:[%s12875_s5 + $0x1338] sm:$0xf]  ;;  %v1439_v40 = vld [vmem:[%s12875_s5 + $0x1340] sm:$0xf]  ;;  %1436 = vst [vmem:[%s12882_s6 + $0x998] sm:$0xf] %v1435_v38 }
 0x1b0   : > { %1438 = vst [vmem:[%s12882_s6 + $0x99c] sm:$0xf] %v1437_v39  ;;  %1440 = vst [vmem:[%s12882_s6 + $0x9a0] sm:$0xf] %v1439_v40  ;;  %v1441_v41 = vld [vmem:[%s12875_s5 + $0x1348] sm:$0xf] }
 0x1b1   : > { %v1443_v42 = vld [vmem:[%s12875_s5 + $0x1350] sm:$0xf]  ;;  %v1445_v43 = vld [vmem:[%s12875_s5 + $0x1358] sm:$0xf]  ;;  %1442 = vst [vmem:[%s12882_s6 + $0x9a4] sm:$0xf] %v1441_v41 }
 0x1b2   : > { %1444 = vst [vmem:[%s12882_s6 + $0x9a8] sm:$0xf] %v1443_v42  ;;  %1446 = vst [vmem:[%s12882_s6 + $0x9ac] sm:$0xf] %v1445_v43  ;;  %v1447_v44 = vld [vmem:[%s12875_s5 + $0x1360] sm:$0xf] }
 0x1b3   : > { %v1449_v45 = vld [vmem:[%s12875_s5 + $0x1368] sm:$0xf]  ;;  %v1451_v46 = vld [vmem:[%s12875_s5 + $0x1370] sm:$0xf]  ;;  %1448 = vst [vmem:[%s12882_s6 + $0x9b0] sm:$0xf] %v1447_v44 }
 0x1b4   : > { %1450 = vst [vmem:[%s12882_s6 + $0x9b4] sm:$0xf] %v1449_v45  ;;  %1452 = vst [vmem:[%s12882_s6 + $0x9b8] sm:$0xf] %v1451_v46  ;;  %v1453_v47 = vld [vmem:[%s12875_s5 + $0x1378] sm:$0xf] }
 0x1b5   : > { %v1455_v48 = vld [vmem:[%s12875_s5 + $0x1380] sm:$0xf]  ;;  %v1457_v49 = vld [vmem:[%s12875_s5 + $0x1388] sm:$0xf]  ;;  %1454 = vst [vmem:[%s12882_s6 + $0x9bc] sm:$0xf] %v1453_v47 }
 0x1b6   : > { %1456 = vst [vmem:[%s12882_s6 + $0x9c0] sm:$0xf] %v1455_v48  ;;  %1458 = vst [vmem:[%s12882_s6 + $0x9c4] sm:$0xf] %v1457_v49  ;;  %v1459_v50 = vld [vmem:[%s12875_s5 + $0x1390] sm:$0xf] }
 0x1b7   : > { %v1461_v51 = vld [vmem:[%s12875_s5 + $0x1398] sm:$0xf]  ;;  %v1463_v52 = vld [vmem:[%s12875_s5 + $0x13a0] sm:$0xf]  ;;  %1460 = vst [vmem:[%s12882_s6 + $0x9c8] sm:$0xf] %v1459_v50 }
 0x1b8   : > { %1462 = vst [vmem:[%s12882_s6 + $0x9cc] sm:$0xf] %v1461_v51  ;;  %1464 = vst [vmem:[%s12882_s6 + $0x9d0] sm:$0xf] %v1463_v52  ;;  %v1465_v53 = vld [vmem:[%s12875_s5 + $0x13a8] sm:$0xf] }
 0x1b9   : > { %v1467_v54 = vld [vmem:[%s12875_s5 + $0x13b0] sm:$0xf]  ;;  %v1469_v55 = vld [vmem:[%s12875_s5 + $0x13b8] sm:$0xf]  ;;  %1466 = vst [vmem:[%s12882_s6 + $0x9d4] sm:$0xf] %v1465_v53 }
 0x1ba   : > { %1468 = vst [vmem:[%s12882_s6 + $0x9d8] sm:$0xf] %v1467_v54  ;;  %1470 = vst [vmem:[%s12882_s6 + $0x9dc] sm:$0xf] %v1469_v55  ;;  %v1471_v56 = vld [vmem:[%s12875_s5 + $0x13c0] sm:$0xf] }
 0x1bb   : > { %v1473_v57 = vld [vmem:[%s12875_s5 + $0x13c8] sm:$0xf]  ;;  %v1475_v58 = vld [vmem:[%s12875_s5 + $0x13d0] sm:$0xf]  ;;  %1472 = vst [vmem:[%s12882_s6 + $0x9e0] sm:$0xf] %v1471_v56 }
 0x1bc   : > { %1474 = vst [vmem:[%s12882_s6 + $0x9e4] sm:$0xf] %v1473_v57  ;;  %1476 = vst [vmem:[%s12882_s6 + $0x9e8] sm:$0xf] %v1475_v58  ;;  %v1477_v59 = vld [vmem:[%s12875_s5 + $0x13d8] sm:$0xf] }
 0x1bd   : > { %v1479_v60 = vld [vmem:[%s12875_s5 + $0x13e0] sm:$0xf]  ;;  %v1481_v61 = vld [vmem:[%s12875_s5 + $0x13e8] sm:$0xf]  ;;  %1478 = vst [vmem:[%s12882_s6 + $0x9ec] sm:$0xf] %v1477_v59 }
 0x1be   : > { %1480 = vst [vmem:[%s12882_s6 + $0x9f0] sm:$0xf] %v1479_v60  ;;  %1482 = vst [vmem:[%s12882_s6 + $0x9f4] sm:$0xf] %v1481_v61  ;;  %v1483_v62 = vld [vmem:[%s12875_s5 + $0x13f0] sm:$0xf] }
 0x1bf   : > { %v1485_v63 = vld [vmem:[%s12875_s5 + $0x13f8] sm:$0xf]  ;;  %v1487_v0 = vld [vmem:[%s12875_s5 + $0x1400] sm:$0xf]  ;;  %1484 = vst [vmem:[%s12882_s6 + $0x9f8] sm:$0xf] %v1483_v62 }
 0x1c0   : > { %1486 = vst [vmem:[%s12882_s6 + $0x9fc] sm:$0xf] %v1485_v63  ;;  %1488 = vst [vmem:[%s12882_s6 + $0xa00] sm:$0xf] %v1487_v0  ;;  %v1489_v1 = vld [vmem:[%s12875_s5 + $0x1408] sm:$0xf] }
 0x1c1   : > { %v1491_v2 = vld [vmem:[%s12875_s5 + $0x1410] sm:$0xf]  ;;  %v1493_v3 = vld [vmem:[%s12875_s5 + $0x1418] sm:$0xf]  ;;  %1490 = vst [vmem:[%s12882_s6 + $0xa04] sm:$0xf] %v1489_v1 }
 0x1c2   : > { %1492 = vst [vmem:[%s12882_s6 + $0xa08] sm:$0xf] %v1491_v2  ;;  %1494 = vst [vmem:[%s12882_s6 + $0xa0c] sm:$0xf] %v1493_v3  ;;  %v1495_v4 = vld [vmem:[%s12875_s5 + $0x1420] sm:$0xf] }
 0x1c3   : > { %v1497_v5 = vld [vmem:[%s12875_s5 + $0x1428] sm:$0xf]  ;;  %v1499_v6 = vld [vmem:[%s12875_s5 + $0x1430] sm:$0xf]  ;;  %1496 = vst [vmem:[%s12882_s6 + $0xa10] sm:$0xf] %v1495_v4 }
 0x1c4   : > { %1498 = vst [vmem:[%s12882_s6 + $0xa14] sm:$0xf] %v1497_v5  ;;  %1500 = vst [vmem:[%s12882_s6 + $0xa18] sm:$0xf] %v1499_v6  ;;  %v1501_v7 = vld [vmem:[%s12875_s5 + $0x1438] sm:$0xf] }
 0x1c5   : > { %v1503_v8 = vld [vmem:[%s12875_s5 + $0x1440] sm:$0xf]  ;;  %v1505_v9 = vld [vmem:[%s12875_s5 + $0x1448] sm:$0xf]  ;;  %1502 = vst [vmem:[%s12882_s6 + $0xa1c] sm:$0xf] %v1501_v7 }
 0x1c6   : > { %1504 = vst [vmem:[%s12882_s6 + $0xa20] sm:$0xf] %v1503_v8  ;;  %1506 = vst [vmem:[%s12882_s6 + $0xa24] sm:$0xf] %v1505_v9  ;;  %v1507_v10 = vld [vmem:[%s12875_s5 + $0x1450] sm:$0xf] }
 0x1c7   : > { %v1509_v11 = vld [vmem:[%s12875_s5 + $0x1458] sm:$0xf]  ;;  %v1511_v12 = vld [vmem:[%s12875_s5 + $0x1460] sm:$0xf]  ;;  %1508 = vst [vmem:[%s12882_s6 + $0xa28] sm:$0xf] %v1507_v10 }
 0x1c8   : > { %1510 = vst [vmem:[%s12882_s6 + $0xa2c] sm:$0xf] %v1509_v11  ;;  %1512 = vst [vmem:[%s12882_s6 + $0xa30] sm:$0xf] %v1511_v12  ;;  %v1513_v13 = vld [vmem:[%s12875_s5 + $0x1468] sm:$0xf] }
 0x1c9   : > { %v1515_v14 = vld [vmem:[%s12875_s5 + $0x1470] sm:$0xf]  ;;  %v1517_v15 = vld [vmem:[%s12875_s5 + $0x1478] sm:$0xf]  ;;  %1514 = vst [vmem:[%s12882_s6 + $0xa34] sm:$0xf] %v1513_v13 }
 0x1ca   : > { %1516 = vst [vmem:[%s12882_s6 + $0xa38] sm:$0xf] %v1515_v14  ;;  %1518 = vst [vmem:[%s12882_s6 + $0xa3c] sm:$0xf] %v1517_v15  ;;  %v1519_v16 = vld [vmem:[%s12875_s5 + $0x1480] sm:$0xf] }
 0x1cb   : > { %v1521_v17 = vld [vmem:[%s12875_s5 + $0x1488] sm:$0xf]  ;;  %v1523_v18 = vld [vmem:[%s12875_s5 + $0x1490] sm:$0xf]  ;;  %1520 = vst [vmem:[%s12882_s6 + $0xa40] sm:$0xf] %v1519_v16 }
 0x1cc   : > { %1522 = vst [vmem:[%s12882_s6 + $0xa44] sm:$0xf] %v1521_v17  ;;  %1524 = vst [vmem:[%s12882_s6 + $0xa48] sm:$0xf] %v1523_v18  ;;  %v1525_v19 = vld [vmem:[%s12875_s5 + $0x1498] sm:$0xf] }
 0x1cd   : > { %v1527_v20 = vld [vmem:[%s12875_s5 + $0x14a0] sm:$0xf]  ;;  %v1529_v21 = vld [vmem:[%s12875_s5 + $0x14a8] sm:$0xf]  ;;  %1526 = vst [vmem:[%s12882_s6 + $0xa4c] sm:$0xf] %v1525_v19 }
 0x1ce   : > { %1528 = vst [vmem:[%s12882_s6 + $0xa50] sm:$0xf] %v1527_v20  ;;  %1530 = vst [vmem:[%s12882_s6 + $0xa54] sm:$0xf] %v1529_v21  ;;  %v1531_v22 = vld [vmem:[%s12875_s5 + $0x14b0] sm:$0xf] }
 0x1cf   : > { %v1533_v23 = vld [vmem:[%s12875_s5 + $0x14b8] sm:$0xf]  ;;  %v1535_v24 = vld [vmem:[%s12875_s5 + $0x14c0] sm:$0xf]  ;;  %1532 = vst [vmem:[%s12882_s6 + $0xa58] sm:$0xf] %v1531_v22 }
 0x1d0   : > { %1534 = vst [vmem:[%s12882_s6 + $0xa5c] sm:$0xf] %v1533_v23  ;;  %1536 = vst [vmem:[%s12882_s6 + $0xa60] sm:$0xf] %v1535_v24  ;;  %v1537_v25 = vld [vmem:[%s12875_s5 + $0x14c8] sm:$0xf] }
 0x1d1   : > { %v1539_v26 = vld [vmem:[%s12875_s5 + $0x14d0] sm:$0xf]  ;;  %v1541_v27 = vld [vmem:[%s12875_s5 + $0x14d8] sm:$0xf]  ;;  %1538 = vst [vmem:[%s12882_s6 + $0xa64] sm:$0xf] %v1537_v25 }
 0x1d2   : > { %1540 = vst [vmem:[%s12882_s6 + $0xa68] sm:$0xf] %v1539_v26  ;;  %1542 = vst [vmem:[%s12882_s6 + $0xa6c] sm:$0xf] %v1541_v27  ;;  %v1543_v28 = vld [vmem:[%s12875_s5 + $0x14e0] sm:$0xf] }
 0x1d3   : > { %v1545_v29 = vld [vmem:[%s12875_s5 + $0x14e8] sm:$0xf]  ;;  %v1547_v30 = vld [vmem:[%s12875_s5 + $0x14f0] sm:$0xf]  ;;  %1544 = vst [vmem:[%s12882_s6 + $0xa70] sm:$0xf] %v1543_v28 }
 0x1d4   : > { %1546 = vst [vmem:[%s12882_s6 + $0xa74] sm:$0xf] %v1545_v29  ;;  %1548 = vst [vmem:[%s12882_s6 + $0xa78] sm:$0xf] %v1547_v30  ;;  %v1549_v31 = vld [vmem:[%s12875_s5 + $0x14f8] sm:$0xf] }
 0x1d5   : > { %v1551_v32 = vld [vmem:[%s12875_s5 + $0x1500] sm:$0xf]  ;;  %v1553_v33 = vld [vmem:[%s12875_s5 + $0x1508] sm:$0xf]  ;;  %1550 = vst [vmem:[%s12882_s6 + $0xa7c] sm:$0xf] %v1549_v31 }
 0x1d6   : > { %1552 = vst [vmem:[%s12882_s6 + $0xa80] sm:$0xf] %v1551_v32  ;;  %1554 = vst [vmem:[%s12882_s6 + $0xa84] sm:$0xf] %v1553_v33  ;;  %v1555_v34 = vld [vmem:[%s12875_s5 + $0x1510] sm:$0xf] }
 0x1d7   : > { %v1557_v35 = vld [vmem:[%s12875_s5 + $0x1518] sm:$0xf]  ;;  %v1559_v36 = vld [vmem:[%s12875_s5 + $0x1520] sm:$0xf]  ;;  %1556 = vst [vmem:[%s12882_s6 + $0xa88] sm:$0xf] %v1555_v34 }
 0x1d8   : > { %1558 = vst [vmem:[%s12882_s6 + $0xa8c] sm:$0xf] %v1557_v35  ;;  %1560 = vst [vmem:[%s12882_s6 + $0xa90] sm:$0xf] %v1559_v36  ;;  %v1561_v37 = vld [vmem:[%s12875_s5 + $0x1528] sm:$0xf] }
 0x1d9   : > { %v1563_v38 = vld [vmem:[%s12875_s5 + $0x1530] sm:$0xf]  ;;  %v1565_v39 = vld [vmem:[%s12875_s5 + $0x1538] sm:$0xf]  ;;  %1562 = vst [vmem:[%s12882_s6 + $0xa94] sm:$0xf] %v1561_v37 }
 0x1da   : > { %1564 = vst [vmem:[%s12882_s6 + $0xa98] sm:$0xf] %v1563_v38  ;;  %1566 = vst [vmem:[%s12882_s6 + $0xa9c] sm:$0xf] %v1565_v39  ;;  %v1567_v40 = vld [vmem:[%s12875_s5 + $0x1540] sm:$0xf] }
 0x1db   : > { %v1569_v41 = vld [vmem:[%s12875_s5 + $0x1548] sm:$0xf]  ;;  %v1571_v42 = vld [vmem:[%s12875_s5 + $0x1550] sm:$0xf]  ;;  %1568 = vst [vmem:[%s12882_s6 + $0xaa0] sm:$0xf] %v1567_v40 }
 0x1dc   : > { %1570 = vst [vmem:[%s12882_s6 + $0xaa4] sm:$0xf] %v1569_v41  ;;  %1572 = vst [vmem:[%s12882_s6 + $0xaa8] sm:$0xf] %v1571_v42  ;;  %v1573_v43 = vld [vmem:[%s12875_s5 + $0x1558] sm:$0xf] }
 0x1dd   : > { %v1575_v44 = vld [vmem:[%s12875_s5 + $0x1560] sm:$0xf]  ;;  %v1577_v45 = vld [vmem:[%s12875_s5 + $0x1568] sm:$0xf]  ;;  %1574 = vst [vmem:[%s12882_s6 + $0xaac] sm:$0xf] %v1573_v43 }
 0x1de   : > { %1576 = vst [vmem:[%s12882_s6 + $0xab0] sm:$0xf] %v1575_v44  ;;  %1578 = vst [vmem:[%s12882_s6 + $0xab4] sm:$0xf] %v1577_v45  ;;  %v1579_v46 = vld [vmem:[%s12875_s5 + $0x1570] sm:$0xf] }
 0x1df   : > { %v1581_v47 = vld [vmem:[%s12875_s5 + $0x1578] sm:$0xf]  ;;  %v1583_v48 = vld [vmem:[%s12875_s5 + $0x1580] sm:$0xf]  ;;  %1580 = vst [vmem:[%s12882_s6 + $0xab8] sm:$0xf] %v1579_v46 }
 0x1e0   : > { %1582 = vst [vmem:[%s12882_s6 + $0xabc] sm:$0xf] %v1581_v47  ;;  %1584 = vst [vmem:[%s12882_s6 + $0xac0] sm:$0xf] %v1583_v48  ;;  %v1585_v49 = vld [vmem:[%s12875_s5 + $0x1588] sm:$0xf] }
 0x1e1   : > { %v1587_v50 = vld [vmem:[%s12875_s5 + $0x1590] sm:$0xf]  ;;  %v1589_v51 = vld [vmem:[%s12875_s5 + $0x1598] sm:$0xf]  ;;  %1586 = vst [vmem:[%s12882_s6 + $0xac4] sm:$0xf] %v1585_v49 }
 0x1e2   : > { %1588 = vst [vmem:[%s12882_s6 + $0xac8] sm:$0xf] %v1587_v50  ;;  %1590 = vst [vmem:[%s12882_s6 + $0xacc] sm:$0xf] %v1589_v51  ;;  %v1591_v52 = vld [vmem:[%s12875_s5 + $0x15a0] sm:$0xf] }
 0x1e3   : > { %v1593_v53 = vld [vmem:[%s12875_s5 + $0x15a8] sm:$0xf]  ;;  %v1595_v54 = vld [vmem:[%s12875_s5 + $0x15b0] sm:$0xf]  ;;  %1592 = vst [vmem:[%s12882_s6 + $0xad0] sm:$0xf] %v1591_v52 }
 0x1e4   : > { %1594 = vst [vmem:[%s12882_s6 + $0xad4] sm:$0xf] %v1593_v53  ;;  %1596 = vst [vmem:[%s12882_s6 + $0xad8] sm:$0xf] %v1595_v54  ;;  %v1597_v55 = vld [vmem:[%s12875_s5 + $0x15b8] sm:$0xf] }
 0x1e5   : > { %v1599_v56 = vld [vmem:[%s12875_s5 + $0x15c0] sm:$0xf]  ;;  %v1601_v57 = vld [vmem:[%s12875_s5 + $0x15c8] sm:$0xf]  ;;  %1598 = vst [vmem:[%s12882_s6 + $0xadc] sm:$0xf] %v1597_v55 }
 0x1e6   : > { %1600 = vst [vmem:[%s12882_s6 + $0xae0] sm:$0xf] %v1599_v56  ;;  %1602 = vst [vmem:[%s12882_s6 + $0xae4] sm:$0xf] %v1601_v57  ;;  %v1603_v58 = vld [vmem:[%s12875_s5 + $0x15d0] sm:$0xf] }
 0x1e7   : > { %v1605_v59 = vld [vmem:[%s12875_s5 + $0x15d8] sm:$0xf]  ;;  %v1607_v60 = vld [vmem:[%s12875_s5 + $0x15e0] sm:$0xf]  ;;  %1604 = vst [vmem:[%s12882_s6 + $0xae8] sm:$0xf] %v1603_v58 }
 0x1e8   : > { %1606 = vst [vmem:[%s12882_s6 + $0xaec] sm:$0xf] %v1605_v59  ;;  %1608 = vst [vmem:[%s12882_s6 + $0xaf0] sm:$0xf] %v1607_v60  ;;  %v1609_v61 = vld [vmem:[%s12875_s5 + $0x15e8] sm:$0xf] }
 0x1e9   : > { %v1611_v62 = vld [vmem:[%s12875_s5 + $0x15f0] sm:$0xf]  ;;  %v1613_v63 = vld [vmem:[%s12875_s5 + $0x15f8] sm:$0xf]  ;;  %1610 = vst [vmem:[%s12882_s6 + $0xaf4] sm:$0xf] %v1609_v61 }
 0x1ea   : > { %1612 = vst [vmem:[%s12882_s6 + $0xaf8] sm:$0xf] %v1611_v62  ;;  %1614 = vst [vmem:[%s12882_s6 + $0xafc] sm:$0xf] %v1613_v63  ;;  %v1615_v0 = vld [vmem:[%s12875_s5 + $0x1600] sm:$0xf] }
 0x1eb   : > { %v1617_v1 = vld [vmem:[%s12875_s5 + $0x1608] sm:$0xf]  ;;  %v1619_v2 = vld [vmem:[%s12875_s5 + $0x1610] sm:$0xf]  ;;  %1616 = vst [vmem:[%s12882_s6 + $0xb00] sm:$0xf] %v1615_v0 }
 0x1ec   : > { %1618 = vst [vmem:[%s12882_s6 + $0xb04] sm:$0xf] %v1617_v1  ;;  %1620 = vst [vmem:[%s12882_s6 + $0xb08] sm:$0xf] %v1619_v2  ;;  %v1621_v3 = vld [vmem:[%s12875_s5 + $0x1618] sm:$0xf] }
 0x1ed   : > { %v1623_v4 = vld [vmem:[%s12875_s5 + $0x1620] sm:$0xf]  ;;  %v1625_v5 = vld [vmem:[%s12875_s5 + $0x1628] sm:$0xf]  ;;  %1622 = vst [vmem:[%s12882_s6 + $0xb0c] sm:$0xf] %v1621_v3 }
 0x1ee   : > { %1624 = vst [vmem:[%s12882_s6 + $0xb10] sm:$0xf] %v1623_v4  ;;  %1626 = vst [vmem:[%s12882_s6 + $0xb14] sm:$0xf] %v1625_v5  ;;  %v1627_v6 = vld [vmem:[%s12875_s5 + $0x1630] sm:$0xf] }
 0x1ef   : > { %v1629_v7 = vld [vmem:[%s12875_s5 + $0x1638] sm:$0xf]  ;;  %v1631_v8 = vld [vmem:[%s12875_s5 + $0x1640] sm:$0xf]  ;;  %1628 = vst [vmem:[%s12882_s6 + $0xb18] sm:$0xf] %v1627_v6 }
 0x1f0   : > { %1630 = vst [vmem:[%s12882_s6 + $0xb1c] sm:$0xf] %v1629_v7  ;;  %1632 = vst [vmem:[%s12882_s6 + $0xb20] sm:$0xf] %v1631_v8  ;;  %v1633_v9 = vld [vmem:[%s12875_s5 + $0x1648] sm:$0xf] }
 0x1f1   : > { %v1635_v10 = vld [vmem:[%s12875_s5 + $0x1650] sm:$0xf]  ;;  %v1637_v11 = vld [vmem:[%s12875_s5 + $0x1658] sm:$0xf]  ;;  %1634 = vst [vmem:[%s12882_s6 + $0xb24] sm:$0xf] %v1633_v9 }
 0x1f2   : > { %1636 = vst [vmem:[%s12882_s6 + $0xb28] sm:$0xf] %v1635_v10  ;;  %1638 = vst [vmem:[%s12882_s6 + $0xb2c] sm:$0xf] %v1637_v11  ;;  %v1639_v12 = vld [vmem:[%s12875_s5 + $0x1660] sm:$0xf] }
 0x1f3   : > { %v1641_v13 = vld [vmem:[%s12875_s5 + $0x1668] sm:$0xf]  ;;  %v1643_v14 = vld [vmem:[%s12875_s5 + $0x1670] sm:$0xf]  ;;  %1640 = vst [vmem:[%s12882_s6 + $0xb30] sm:$0xf] %v1639_v12 }
 0x1f4   : > { %1642 = vst [vmem:[%s12882_s6 + $0xb34] sm:$0xf] %v1641_v13  ;;  %1644 = vst [vmem:[%s12882_s6 + $0xb38] sm:$0xf] %v1643_v14  ;;  %v1645_v15 = vld [vmem:[%s12875_s5 + $0x1678] sm:$0xf] }
 0x1f5   : > { %v1647_v16 = vld [vmem:[%s12875_s5 + $0x1680] sm:$0xf]  ;;  %v1649_v17 = vld [vmem:[%s12875_s5 + $0x1688] sm:$0xf]  ;;  %1646 = vst [vmem:[%s12882_s6 + $0xb3c] sm:$0xf] %v1645_v15 }
 0x1f6   : > { %1648 = vst [vmem:[%s12882_s6 + $0xb40] sm:$0xf] %v1647_v16  ;;  %1650 = vst [vmem:[%s12882_s6 + $0xb44] sm:$0xf] %v1649_v17  ;;  %v1651_v18 = vld [vmem:[%s12875_s5 + $0x1690] sm:$0xf] }
 0x1f7   : > { %v1653_v19 = vld [vmem:[%s12875_s5 + $0x1698] sm:$0xf]  ;;  %v1655_v20 = vld [vmem:[%s12875_s5 + $0x16a0] sm:$0xf]  ;;  %1652 = vst [vmem:[%s12882_s6 + $0xb48] sm:$0xf] %v1651_v18 }
 0x1f8   : > { %1654 = vst [vmem:[%s12882_s6 + $0xb4c] sm:$0xf] %v1653_v19  ;;  %1656 = vst [vmem:[%s12882_s6 + $0xb50] sm:$0xf] %v1655_v20  ;;  %v1657_v21 = vld [vmem:[%s12875_s5 + $0x16a8] sm:$0xf] }
 0x1f9   : > { %v1659_v22 = vld [vmem:[%s12875_s5 + $0x16b0] sm:$0xf]  ;;  %v1661_v23 = vld [vmem:[%s12875_s5 + $0x16b8] sm:$0xf]  ;;  %1658 = vst [vmem:[%s12882_s6 + $0xb54] sm:$0xf] %v1657_v21 }
 0x1fa   : > { %1660 = vst [vmem:[%s12882_s6 + $0xb58] sm:$0xf] %v1659_v22  ;;  %1662 = vst [vmem:[%s12882_s6 + $0xb5c] sm:$0xf] %v1661_v23  ;;  %v1663_v24 = vld [vmem:[%s12875_s5 + $0x16c0] sm:$0xf] }
 0x1fb   : > { %v1665_v25 = vld [vmem:[%s12875_s5 + $0x16c8] sm:$0xf]  ;;  %v1667_v26 = vld [vmem:[%s12875_s5 + $0x16d0] sm:$0xf]  ;;  %1664 = vst [vmem:[%s12882_s6 + $0xb60] sm:$0xf] %v1663_v24 }
 0x1fc   : > { %1666 = vst [vmem:[%s12882_s6 + $0xb64] sm:$0xf] %v1665_v25  ;;  %1668 = vst [vmem:[%s12882_s6 + $0xb68] sm:$0xf] %v1667_v26  ;;  %v1669_v27 = vld [vmem:[%s12875_s5 + $0x16d8] sm:$0xf] }
 0x1fd   : > { %v1671_v28 = vld [vmem:[%s12875_s5 + $0x16e0] sm:$0xf]  ;;  %v1673_v29 = vld [vmem:[%s12875_s5 + $0x16e8] sm:$0xf]  ;;  %1670 = vst [vmem:[%s12882_s6 + $0xb6c] sm:$0xf] %v1669_v27 }
 0x1fe   : > { %1672 = vst [vmem:[%s12882_s6 + $0xb70] sm:$0xf] %v1671_v28  ;;  %1674 = vst [vmem:[%s12882_s6 + $0xb74] sm:$0xf] %v1673_v29  ;;  %v1675_v30 = vld [vmem:[%s12875_s5 + $0x16f0] sm:$0xf] }
 0x1ff   : > { %v1677_v31 = vld [vmem:[%s12875_s5 + $0x16f8] sm:$0xf]  ;;  %v1679_v32 = vld [vmem:[%s12875_s5 + $0x1700] sm:$0xf]  ;;  %1676 = vst [vmem:[%s12882_s6 + $0xb78] sm:$0xf] %v1675_v30 }
 0x200   : > { %1678 = vst [vmem:[%s12882_s6 + $0xb7c] sm:$0xf] %v1677_v31  ;;  %1680 = vst [vmem:[%s12882_s6 + $0xb80] sm:$0xf] %v1679_v32  ;;  %v1681_v33 = vld [vmem:[%s12875_s5 + $0x1708] sm:$0xf] }
 0x201   : > { %v1683_v34 = vld [vmem:[%s12875_s5 + $0x1710] sm:$0xf]  ;;  %v1685_v35 = vld [vmem:[%s12875_s5 + $0x1718] sm:$0xf]  ;;  %1682 = vst [vmem:[%s12882_s6 + $0xb84] sm:$0xf] %v1681_v33 }
 0x202   : > { %1684 = vst [vmem:[%s12882_s6 + $0xb88] sm:$0xf] %v1683_v34  ;;  %1686 = vst [vmem:[%s12882_s6 + $0xb8c] sm:$0xf] %v1685_v35  ;;  %v1687_v36 = vld [vmem:[%s12875_s5 + $0x1720] sm:$0xf] }
 0x203   : > { %v1689_v37 = vld [vmem:[%s12875_s5 + $0x1728] sm:$0xf]  ;;  %v1691_v38 = vld [vmem:[%s12875_s5 + $0x1730] sm:$0xf]  ;;  %1688 = vst [vmem:[%s12882_s6 + $0xb90] sm:$0xf] %v1687_v36 }
 0x204   : > { %1690 = vst [vmem:[%s12882_s6 + $0xb94] sm:$0xf] %v1689_v37  ;;  %1692 = vst [vmem:[%s12882_s6 + $0xb98] sm:$0xf] %v1691_v38  ;;  %v1693_v39 = vld [vmem:[%s12875_s5 + $0x1738] sm:$0xf] }
 0x205   : > { %v1695_v40 = vld [vmem:[%s12875_s5 + $0x1740] sm:$0xf]  ;;  %v1697_v41 = vld [vmem:[%s12875_s5 + $0x1748] sm:$0xf]  ;;  %1694 = vst [vmem:[%s12882_s6 + $0xb9c] sm:$0xf] %v1693_v39 }
 0x206   : > { %1696 = vst [vmem:[%s12882_s6 + $0xba0] sm:$0xf] %v1695_v40  ;;  %1698 = vst [vmem:[%s12882_s6 + $0xba4] sm:$0xf] %v1697_v41  ;;  %v1699_v42 = vld [vmem:[%s12875_s5 + $0x1750] sm:$0xf] }
 0x207   : > { %v1701_v43 = vld [vmem:[%s12875_s5 + $0x1758] sm:$0xf]  ;;  %v1703_v44 = vld [vmem:[%s12875_s5 + $0x1760] sm:$0xf]  ;;  %1700 = vst [vmem:[%s12882_s6 + $0xba8] sm:$0xf] %v1699_v42 }
 0x208   : > { %1702 = vst [vmem:[%s12882_s6 + $0xbac] sm:$0xf] %v1701_v43  ;;  %1704 = vst [vmem:[%s12882_s6 + $0xbb0] sm:$0xf] %v1703_v44  ;;  %v1705_v45 = vld [vmem:[%s12875_s5 + $0x1768] sm:$0xf] }
 0x209   : > { %v1707_v46 = vld [vmem:[%s12875_s5 + $0x1770] sm:$0xf]  ;;  %v1709_v47 = vld [vmem:[%s12875_s5 + $0x1778] sm:$0xf]  ;;  %1706 = vst [vmem:[%s12882_s6 + $0xbb4] sm:$0xf] %v1705_v45 }
 0x20a   : > { %1708 = vst [vmem:[%s12882_s6 + $0xbb8] sm:$0xf] %v1707_v46  ;;  %1710 = vst [vmem:[%s12882_s6 + $0xbbc] sm:$0xf] %v1709_v47  ;;  %v1711_v48 = vld [vmem:[%s12875_s5 + $0x1780] sm:$0xf] }
 0x20b   : > { %v1713_v49 = vld [vmem:[%s12875_s5 + $0x1788] sm:$0xf]  ;;  %v1715_v50 = vld [vmem:[%s12875_s5 + $0x1790] sm:$0xf]  ;;  %1712 = vst [vmem:[%s12882_s6 + $0xbc0] sm:$0xf] %v1711_v48 }
 0x20c   : > { %1714 = vst [vmem:[%s12882_s6 + $0xbc4] sm:$0xf] %v1713_v49  ;;  %1716 = vst [vmem:[%s12882_s6 + $0xbc8] sm:$0xf] %v1715_v50  ;;  %v1717_v51 = vld [vmem:[%s12875_s5 + $0x1798] sm:$0xf] }
 0x20d   : > { %v1719_v52 = vld [vmem:[%s12875_s5 + $0x17a0] sm:$0xf]  ;;  %v1721_v53 = vld [vmem:[%s12875_s5 + $0x17a8] sm:$0xf]  ;;  %1718 = vst [vmem:[%s12882_s6 + $0xbcc] sm:$0xf] %v1717_v51 }
 0x20e   : > { %1720 = vst [vmem:[%s12882_s6 + $0xbd0] sm:$0xf] %v1719_v52  ;;  %1722 = vst [vmem:[%s12882_s6 + $0xbd4] sm:$0xf] %v1721_v53  ;;  %v1723_v54 = vld [vmem:[%s12875_s5 + $0x17b0] sm:$0xf] }
 0x20f   : > { %v1725_v55 = vld [vmem:[%s12875_s5 + $0x17b8] sm:$0xf]  ;;  %v1727_v56 = vld [vmem:[%s12875_s5 + $0x17c0] sm:$0xf]  ;;  %1724 = vst [vmem:[%s12882_s6 + $0xbd8] sm:$0xf] %v1723_v54 }
 0x210   : > { %1726 = vst [vmem:[%s12882_s6 + $0xbdc] sm:$0xf] %v1725_v55  ;;  %1728 = vst [vmem:[%s12882_s6 + $0xbe0] sm:$0xf] %v1727_v56  ;;  %v1729_v57 = vld [vmem:[%s12875_s5 + $0x17c8] sm:$0xf] }
 0x211   : > { %v1731_v58 = vld [vmem:[%s12875_s5 + $0x17d0] sm:$0xf]  ;;  %v1733_v59 = vld [vmem:[%s12875_s5 + $0x17d8] sm:$0xf]  ;;  %1730 = vst [vmem:[%s12882_s6 + $0xbe4] sm:$0xf] %v1729_v57 }
 0x212   : > { %1732 = vst [vmem:[%s12882_s6 + $0xbe8] sm:$0xf] %v1731_v58  ;;  %1734 = vst [vmem:[%s12882_s6 + $0xbec] sm:$0xf] %v1733_v59  ;;  %v1735_v60 = vld [vmem:[%s12875_s5 + $0x17e0] sm:$0xf] }
 0x213   : > { %v1737_v61 = vld [vmem:[%s12875_s5 + $0x17e8] sm:$0xf]  ;;  %v1739_v62 = vld [vmem:[%s12875_s5 + $0x17f0] sm:$0xf]  ;;  %1736 = vst [vmem:[%s12882_s6 + $0xbf0] sm:$0xf] %v1735_v60 }
 0x214   : > { %1738 = vst [vmem:[%s12882_s6 + $0xbf4] sm:$0xf] %v1737_v61  ;;  %1740 = vst [vmem:[%s12882_s6 + $0xbf8] sm:$0xf] %v1739_v62  ;;  %v1741_v63 = vld [vmem:[%s12875_s5 + $0x17f8] sm:$0xf] }
 0x215   : > { %v1743_v0 = vld [vmem:[%s12875_s5 + $0x1800] sm:$0xf]  ;;  %v1745_v1 = vld [vmem:[%s12875_s5 + $0x1808] sm:$0xf]  ;;  %1742 = vst [vmem:[%s12882_s6 + $0xbfc] sm:$0xf] %v1741_v63 }
 0x216   : > { %1744 = vst [vmem:[%s12882_s6 + $0xc00] sm:$0xf] %v1743_v0  ;;  %1746 = vst [vmem:[%s12882_s6 + $0xc04] sm:$0xf] %v1745_v1  ;;  %v1747_v2 = vld [vmem:[%s12875_s5 + $0x1810] sm:$0xf] }
 0x217   : > { %v1749_v3 = vld [vmem:[%s12875_s5 + $0x1818] sm:$0xf]  ;;  %v1751_v4 = vld [vmem:[%s12875_s5 + $0x1820] sm:$0xf]  ;;  %1748 = vst [vmem:[%s12882_s6 + $0xc08] sm:$0xf] %v1747_v2 }
 0x218   : > { %1750 = vst [vmem:[%s12882_s6 + $0xc0c] sm:$0xf] %v1749_v3  ;;  %1752 = vst [vmem:[%s12882_s6 + $0xc10] sm:$0xf] %v1751_v4  ;;  %v1753_v5 = vld [vmem:[%s12875_s5 + $0x1828] sm:$0xf] }
 0x219   : > { %v1755_v6 = vld [vmem:[%s12875_s5 + $0x1830] sm:$0xf]  ;;  %v1757_v7 = vld [vmem:[%s12875_s5 + $0x1838] sm:$0xf]  ;;  %1754 = vst [vmem:[%s12882_s6 + $0xc14] sm:$0xf] %v1753_v5 }
 0x21a   : > { %1756 = vst [vmem:[%s12882_s6 + $0xc18] sm:$0xf] %v1755_v6  ;;  %1758 = vst [vmem:[%s12882_s6 + $0xc1c] sm:$0xf] %v1757_v7  ;;  %v1759_v8 = vld [vmem:[%s12875_s5 + $0x1840] sm:$0xf] }
 0x21b   : > { %v1761_v9 = vld [vmem:[%s12875_s5 + $0x1848] sm:$0xf]  ;;  %v1763_v10 = vld [vmem:[%s12875_s5 + $0x1850] sm:$0xf]  ;;  %1760 = vst [vmem:[%s12882_s6 + $0xc20] sm:$0xf] %v1759_v8 }
 0x21c   : > { %1762 = vst [vmem:[%s12882_s6 + $0xc24] sm:$0xf] %v1761_v9  ;;  %1764 = vst [vmem:[%s12882_s6 + $0xc28] sm:$0xf] %v1763_v10  ;;  %v1765_v11 = vld [vmem:[%s12875_s5 + $0x1858] sm:$0xf] }
 0x21d   : > { %v1767_v12 = vld [vmem:[%s12875_s5 + $0x1860] sm:$0xf]  ;;  %v1769_v13 = vld [vmem:[%s12875_s5 + $0x1868] sm:$0xf]  ;;  %1766 = vst [vmem:[%s12882_s6 + $0xc2c] sm:$0xf] %v1765_v11 }
 0x21e   : > { %1768 = vst [vmem:[%s12882_s6 + $0xc30] sm:$0xf] %v1767_v12  ;;  %1770 = vst [vmem:[%s12882_s6 + $0xc34] sm:$0xf] %v1769_v13  ;;  %v1771_v14 = vld [vmem:[%s12875_s5 + $0x1870] sm:$0xf] }
 0x21f   : > { %v1773_v15 = vld [vmem:[%s12875_s5 + $0x1878] sm:$0xf]  ;;  %1772 = vst [vmem:[%s12882_s6 + $0xc38] sm:$0xf] %v1771_v14 }
 0x220   : > { %1774 = vst [vmem:[%s12882_s6 + $0xc3c] sm:$0xf] %v1773_v15 }
 0x221 PF: > { %p11245_p8 = scmp.ge.s32.totalorder %s12798_s19, 1  ;;  %p6542_p9 = scmp.lt.s32.totalorder %s12798_s19, 3 }
 0x223   : > { %p6543_p10 = pnand %p11245_p8, %p6542_p9 }
 0x224   : > { %s6549_s7 = sand.u32 (!%p6543_p10), 1, %s12782_s15   ;;  %v12329_v16 = vld [vmem:[%s15054_s0 + $0x4] ss:$196 sps:$4 sm:$0xff] (!%p6543_p10)   ;;  %v12332_v17 = vld [vmem:[%s15054_s0 + $0xc] ss:$196 sps:$4 sm:$0xff] (!%p6543_p10)   ;;  %vm12801_vm0 = vmmov (!%p6543_p10), 0  }
 0x225   : > { %6546 = sbr.rel (%p6543_p10) target bundleno = 1207 (0x4b7), region = 84  ;;  %10064 = vmatprep.mubr.bf16.mxu0 (!%p6543_p10), %v12329_v16  ;;  %10105 = vmatprep.mubr.bf16.mxu1 (!%p6543_p10), %v12332_v17  ;;  %v12327_v48 = vld [vmem:[%s15054_s0] ss:$196 sps:$4 sm:$0xff] (!%p6543_p10)   ;;  %v12330_v50 = vld [vmem:[%s15054_s0 + $0x8] ss:$196 sps:$4 sm:$0xff] (!%p6543_p10)   ;;  %p6592_p11 = scmp.lt.s32.totalorder (!%p6543_p10), %s12790_s17, 1 }
 0x226   : > { %s12252_s8 = smul.u32 (!%p6543_p10), 3136, %s6549_s7  ;;  %v12366_v52 = vld [vmem:[%s15054_s0 + $0x14] ss:$196 sps:$4 sm:$0xff] (!%p6543_p10)   ;;  %s11246_s26 = sshll.u32 (!%p6543_p10), %s6549_s7, 4 }
 0x227   : > { %s6584_s27 = scalar_lea.vmem (!%p6543_p10), [#allocation3], %s11246_s26 }
 0x228   : > { %s14458_s13 = scalar_lea.vmem (!%p6543_p10), [#allocation2], %s12252_s8 }
 0x229   : > { %v12295_v18 = vld [vmem:[%s14458_s13 + $0x40] sm:$0xff] (!%p6543_p10)   ;;  %v12299_v22 = vld [vmem:[%s14458_s13 + $0x48] sm:$0xff] (!%p6543_p10)   ;;  %v12303_v26 = vld [vmem:[%s14458_s13 + $0x50] sm:$0xff] (!%p6543_p10)  }
 0x22a   : > { %v12296_v19 = vld [vmem:[%s14458_s13 + $0xc0] sm:$0xff] (!%p6543_p10)   ;;  %11694 = vmatprep.subr.bf16.mxu0 (!%p6543_p10), %v12295_v18  ;;  %v12300_v23 = vld [vmem:[%s14458_s13 + $0xc8] sm:$0xff] (!%p6543_p10)   ;;  %v12304_v27 = vld [vmem:[%s14458_s13 + $0xd0] sm:$0xff] (!%p6543_p10)  }
 0x22b   : > { %v12297_v20 = vld [vmem:[%s14458_s13] sm:$0xff] (!%p6543_p10)   ;;  %11716 = vmatprep.subr.bf16.mxu1 (!%p6543_p10), %v12296_v19  ;;  %v12301_v24 = vld [vmem:[%s14458_s13 + $0x8] sm:$0xff] (!%p6543_p10)   ;;  %v12305_v28 = vld [vmem:[%s14458_s13 + $0x10] sm:$0xff] (!%p6543_p10)  }
 0x22c   : > { %v12298_v21 = vld [vmem:[%s14458_s13 + $0x80] sm:$0xff]   ;;  %11695 = vmatpush3.bf16.msra.mxu0 %v12297_v20  ;;  %v12302_v25 = vld [vmem:[%s14458_s13 + $0x88] sm:$0xff]   ;;  %v12306_v29 = vld [vmem:[%s14458_s13 + $0x90] sm:$0xff]   ;;  %s11691_s28 = sshll.u32 (%p12862_p6), %s12790_s17, 3 }
 0x22d   : > { %11717 = vmatpush3.bf16.msra.mxu1 %v12298_v21  ;;  %11696 = vmatprep.subr.bf16.mxu0 %v12299_v22  ;;  %v12307_v30 = vld [vmem:[%s14458_s13 + $0x58] sm:$0xff]   ;;  %v12311_v34 = vld [vmem:[%s14458_s13 + $0x60] sm:$0xff]   ;;  %v12315_v38 = vld [vmem:[%s14458_s13 + $0x68] sm:$0xff]   ;;  %s11094_s29 = scalar_lea.vmem (%p12862_p6), %s15058_s4, %s11691_s28 }
 0x22e   : > { %11718 = vmatprep.subr.bf16.mxu1 %v12300_v23  ;;  %v12308_v31 = vld [vmem:[%s14458_s13 + $0xd8] sm:$0xff]   ;;  %v12312_v35 = vld [vmem:[%s14458_s13 + $0xe0] sm:$0xff]   ;;  %v12316_v39 = vld [vmem:[%s14458_s13 + $0xe8] sm:$0xff]  }
 0x22f   : > { %v12309_v32 = vld [vmem:[%s14458_s13 + $0x18] sm:$0xff]   ;;  %v12313_v36 = vld [vmem:[%s14458_s13 + $0x20] sm:$0xff]   ;;  %v12317_v40 = vld [vmem:[%s14458_s13 + $0x28] sm:$0xff]  }
 0x230   : > { %11697 = vmatpush3.bf16.msra.mxu0 %v12301_v24  ;;  %v12310_v33 = vld [vmem:[%s14458_s13 + $0x98] sm:$0xff]   ;;  %v12314_v37 = vld [vmem:[%s14458_s13 + $0xa0] sm:$0xff]   ;;  %v12318_v41 = vld [vmem:[%s14458_s13 + $0xa8] sm:$0xff]  }
 0x231   : > { %11719 = vmatpush3.bf16.msra.mxu1 %v12302_v25  ;;  %11698 = vmatprep.subr.bf16.mxu0 %v12303_v26  ;;  %v12319_v42 = vld [vmem:[%s14458_s13 + $0x70] sm:$0xff]   ;;  %v12323_v46 = vld [vmem:[%s14458_s13 + $0x78] sm:$0xff]   ;;  %v12333_v53 = vld [vmem:[%s14458_s13 + $0x140] sm:$0xff]  }
 0x232   : > { %11720 = vmatprep.subr.bf16.mxu1 %v12304_v27  ;;  %v12320_v43 = vld [vmem:[%s14458_s13 + $0xf0] sm:$0xff]   ;;  %v12324_v47 = vld [vmem:[%s14458_s13 + $0xf8] sm:$0xff]   ;;  %v12334_v54 = vld [vmem:[%s14458_s13 + $0x100] sm:$0xff]  }
 0x233   : > { %v12321_v44 = vld [vmem:[%s14458_s13 + $0x30] sm:$0xff]   ;;  %v12325_v49 = vld [vmem:[%s14458_s13 + $0x38] sm:$0xff]   ;;  %v12335_v55 = vld [vmem:[%s14458_s13 + $0x1c0] sm:$0xff]  }
 0x234   : > { %11699 = vmatpush3.bf16.msra.mxu0 %v12305_v28  ;;  %v12322_v45 = vld [vmem:[%s14458_s13 + $0xb0] sm:$0xff]   ;;  %v12326_v51 = vld [vmem:[%s14458_s13 + $0xb8] sm:$0xff]   ;;  %v12336_v56 = vld [vmem:[%s14458_s13 + $0x180] sm:$0xff]  }
 0x235   : > { %11721 = vmatpush3.bf16.msra.mxu1 %v12306_v29  ;;  %11700 = vmatprep.subr.bf16.mxu0 %v12307_v30  ;;  %v12337_v57 = vld [vmem:[%s14458_s13 + $0x148] sm:$0xff]   ;;  %v12341_v61 = vld [vmem:[%s14458_s13 + $0x150] sm:$0xff]   ;;  %v12345_v1 = vld [vmem:[%s14458_s13 + $0x158] sm:$0xff]  }
 0x236   : > { %11722 = vmatprep.subr.bf16.mxu1 %v12308_v31  ;;  %v12338_v58 = vld [vmem:[%s14458_s13 + $0x108] sm:$0xff]   ;;  %v12342_v62 = vld [vmem:[%s14458_s13 + $0x110] sm:$0xff]   ;;  %v12346_v2 = vld [vmem:[%s14458_s13 + $0x118] sm:$0xff]  }
 0x237   : > { %v12339_v59 = vld [vmem:[%s14458_s13 + $0x1c8] sm:$0xff]   ;;  %v12343_v63 = vld [vmem:[%s14458_s13 + $0x1d0] sm:$0xff]   ;;  %v12347_v3 = vld [vmem:[%s14458_s13 + $0x1d8] sm:$0xff]  }
 0x238   : > { %11701 = vmatpush3.bf16.msra.mxu0 %v12309_v32  ;;  %v12340_v60 = vld [vmem:[%s14458_s13 + $0x188] sm:$0xff]   ;;  %v12344_v0 = vld [vmem:[%s14458_s13 + $0x190] sm:$0xff]   ;;  %v12348_v4 = vld [vmem:[%s14458_s13 + $0x198] sm:$0xff]  }
 0x239   : > { %11723 = vmatpush3.bf16.msra.mxu1 %v12310_v33  ;;  %11702 = vmatprep.subr.bf16.mxu0 %v12311_v34  ;;  %v12349_v5 = vld [vmem:[%s14458_s13 + $0x160] sm:$0xff]   ;;  %v12353_v9 = vld [vmem:[%s14458_s13 + $0x168] sm:$0xff]   ;;  %v12357_v13 = vld [vmem:[%s14458_s13 + $0x170] sm:$0xff]  }
 0x23a   : > { %11724 = vmatprep.subr.bf16.mxu1 %v12312_v35  ;;  %v12350_v6 = vld [vmem:[%s14458_s13 + $0x120] sm:$0xff]   ;;  %v12354_v10 = vld [vmem:[%s14458_s13 + $0x128] sm:$0xff]   ;;  %v12358_v14 = vld [vmem:[%s14458_s13 + $0x130] sm:$0xff]  }
 0x23b   : > { %v12351_v7 = vld [vmem:[%s14458_s13 + $0x1e0] sm:$0xff]   ;;  %v12355_v11 = vld [vmem:[%s14458_s13 + $0x1e8] sm:$0xff]   ;;  %v12359_v15 = vld [vmem:[%s14458_s13 + $0x1f0] sm:$0xff]  }
 0x23c   : > { %11703 = vmatpush3.bf16.msra.mxu0 %v12313_v36  ;;  %v12352_v8 = vld [vmem:[%s14458_s13 + $0x1a0] sm:$0xff]   ;;  %v12356_v12 = vld [vmem:[%s14458_s13 + $0x1a8] sm:$0xff]   ;;  %v12360_v16 = vld [vmem:[%s14458_s13 + $0x1b0] sm:$0xff]  }
 0x23d   : > { %11725 = vmatpush3.bf16.msra.mxu1 %v12314_v37  ;;  %11704 = vmatprep.subr.bf16.mxu0 %v12315_v38  ;;  %v12361_v17 = vld [vmem:[%s14458_s13 + $0x178] sm:$0xff]   ;;  %v12364_v19 = vld [vmem:[%s15054_s0 + $0x10] ss:$196 sps:$4 sm:$0xff]   ;;  %v12368_v22 = vld [vmem:[%s14458_s13 + $0x240] sm:$0xff]  }
 0x23e   : > { %11726 = vmatprep.subr.bf16.mxu1 %v12316_v39  ;;  %v12362_v18 = vld [vmem:[%s14458_s13 + $0x138] sm:$0xff]   ;;  %v12372_v25 = vld [vmem:[%s14458_s13 + $0x200] sm:$0xff]   ;;  %v12375_v28 = vld [vmem:[%s14458_s13 + $0x248] sm:$0xff]  }
 0x23f   : > { %v12363_v20 = vld [vmem:[%s14458_s13 + $0x1f8] sm:$0xff]   ;;  %v12373_v26 = vld [vmem:[%s14458_s13 + $0x2c0] sm:$0xff]   ;;  %v12376_v29 = vld [vmem:[%s14458_s13 + $0x208] sm:$0xff]  }
 0x240   : > { %11705 = vmatpush3.bf16.msra.mxu0 %v12317_v40  ;;  %v12367_v21 = vld [vmem:[%s14458_s13 + $0x1b8] sm:$0xff]   ;;  %v12374_v27 = vld [vmem:[%s14458_s13 + $0x280] sm:$0xff]   ;;  %v12377_v30 = vld [vmem:[%s14458_s13 + $0x2c8] sm:$0xff]  }
 0x241   : > { %11727 = vmatpush3.bf16.msra.mxu1 %v12318_v41  ;;  %11706 = vmatprep.subr.bf16.mxu0 %v12319_v42  ;;  %v12369_v23 = vld [vmem:[%s15054_s0 + $0x18] ss:$196 sps:$4 sm:$0xff]   ;;  %v12378_v31 = vld [vmem:[%s14458_s13 + $0x288] sm:$0xff]   ;;  %v12379_v32 = vld [vmem:[%s14458_s13 + $0x250] sm:$0xff]  }
 0x242   : > { %11728 = vmatprep.subr.bf16.mxu1 %v12320_v43  ;;  %v12371_v24 = vld [vmem:[%s15054_s0 + $0x1c] ss:$196 sps:$4 sm:$0xff]   ;;  %v12380_v33 = vld [vmem:[%s14458_s13 + $0x210] sm:$0xff]  }
 0x243   : > { %v12381_v34 = vld [vmem:[%s14458_s13 + $0x2d0] sm:$0xff]   ;;  %v12383_v36 = vld [vmem:[%s14458_s13 + $0x258] sm:$0xff]   ;;  %v12387_v40 = vld [vmem:[%s14458_s13 + $0x260] sm:$0xff]  }
 0x244   : > { %11707 = vmatpush3.bf16.msra.mxu0 %v12321_v44  ;;  %v12382_v35 = vld [vmem:[%s14458_s13 + $0x290] sm:$0xff]   ;;  %v12384_v37 = vld [vmem:[%s14458_s13 + $0x218] sm:$0xff]   ;;  %v12388_v41 = vld [vmem:[%s14458_s13 + $0x220] sm:$0xff]  }
 0x245   : > { %11729 = vmatpush3.bf16.msra.mxu1 %v12322_v45  ;;  %11708 = vmatprep.subr.bf16.mxu0 %v12323_v46  ;;  %v12385_v38 = vld [vmem:[%s14458_s13 + $0x2d8] sm:$0xff]   ;;  %v12389_v42 = vld [vmem:[%s14458_s13 + $0x2e0] sm:$0xff]   ;;  %v12391_v44 = vld [vmem:[%s14458_s13 + $0x268] sm:$0xff]  }
 0x246   : > { %11730 = vmatprep.subr.bf16.mxu1 %v12324_v47  ;;  %v12386_v39 = vld [vmem:[%s14458_s13 + $0x298] sm:$0xff]   ;;  %v12390_v43 = vld [vmem:[%s14458_s13 + $0x2a0] sm:$0xff]   ;;  %v12392_v45 = vld [vmem:[%s14458_s13 + $0x228] sm:$0xff]  }
 0x247   : > { %v12393_v46 = vld [vmem:[%s14458_s13 + $0x2e8] sm:$0xff]  }
 0x248   : > { %11709 = vmatpush3.bf16.msra.mxu0 %v12325_v49  ;;  %v12394_v47 = vld [vmem:[%s14458_s13 + $0x2a8] sm:$0xff]   ;;  %v12396_v49 = vld [vmem:[%s14458_s13 + $0x230] sm:$0xff]  }
 0x249   : > { %11731 = vmatpush3.bf16.msra.mxu1 %v12326_v51  ;;  %11738 = vmatprep.subr.bf16.mxu0 %v12333_v53  ;;  %v12398_v51 = vld [vmem:[%s14458_s13 + $0x2b0] sm:$0xff]   ;;  %v12400_v53 = vld [vmem:[%s14458_s13 + $0x238] sm:$0xff]  }
 0x24a   : > { %11760 = vmatprep.subr.bf16.mxu1 %v12335_v55  ;;  %v12402_v55 = vld [vmem:[%s15054_s0 + $0x20] ss:$196 sps:$4 sm:$0xff]  }
 0x24b   : > { %10065 = vmatmul.mubr.bf16.vlgmr.msra.gmra.mrb[0].mxu0 %v12327_v48  ;;  %v12395_v48 = vld [vmem:[%s14458_s13 + $0x270] sm:$0xff]  }
 0x24c   : > { %10106 = vmatmul.mubr.bf16.vlgmr.msra.gmra.mrb[0].mxu1 %v12330_v50  ;;  %11739 = vmatpush3.bf16.msra.mxu0 %v12334_v54  ;;  %v12397_v50 = vld [vmem:[%s14458_s13 + $0x2f0] sm:$0xff]   ;;  %v12401_v54 = vld [vmem:[%s14458_s13 + $0x2f8] sm:$0xff]  }
 0x24d   : > { %10146 = vmatprep.mubr.bf16.mxu0 %v12366_v52  ;;  %11761 = vmatpush3.bf16.msra.mxu1 %v12336_v56  ;;  %v12399_v52 = vld [vmem:[%s14458_s13 + $0x278] sm:$0xff]   ;;  %v12404_v56 = vld [vmem:[%s15054_s0 + $0x24] ss:$196 sps:$4 sm:$0xff]  }
 0x24e   : > { %11740 = vmatprep.subr.bf16.mxu0 %v12337_v57  ;;  %11762 = vmatprep.subr.bf16.mxu1 %v12339_v59  ;;  %v12405_v57 = vld [vmem:[%s14458_s13 + $0x2b8] sm:$0xff]   ;;  %v12407_v59 = vld [vmem:[%s15054_s0 + $0x28] ss:$196 sps:$4 sm:$0xff]  }
 0x24f   : > { %10187 = vmatprep.mubr.bf16.mxu1 %v12371_v24  ;;  %v12437_v24 = vld [vmem:[%s14458_s13 + $0x378] sm:$0xff]  }
 0x250   : > { %11741 = vmatpush3.bf16.msra.mxu0 %v12338_v58  ;;  %v12406_v58 = vld [vmem:[%s14458_s13 + $0x340] sm:$0xff]  }
 0x251   : > { %11763 = vmatpush3.bf16.msra.mxu1 %v12340_v60  ;;  %11742 = vmatprep.subr.bf16.mxu0 %v12341_v61  ;;  %v12409_v60 = vld [vmem:[%s15054_s0 + $0x2c] ss:$196 sps:$4 sm:$0xff]   ;;  %v12410_v61 = vld [vmem:[%s14458_s13 + $0x300] sm:$0xff]  }
 0x252   : > { %11764 = vmatprep.subr.bf16.mxu1 %v12343_v63  ;;  %v12412_v63 = vld [vmem:[%s14458_s13 + $0x380] sm:$0xff]  }
 0x254   : > { %11743 = vmatpush3.bf16.msra.mxu0 %v12342_v62  ;;  %v12411_v62 = vld [vmem:[%s14458_s13 + $0x3c0] sm:$0xff]  }
 0x255   : > { %11765 = vmatpush3.bf16.msra.mxu1 %v12344_v0  ;;  %11744 = vmatprep.subr.bf16.mxu0 %v12345_v1  ;;  %v12413_v0 = vld [vmem:[%s14458_s13 + $0x348] sm:$0xff]  }
 0x256   : > { %11766 = vmatprep.subr.bf16.mxu1 %v12347_v3  ;;  %v12414_v1 = vld [vmem:[%s14458_s13 + $0x308] sm:$0xff]  }
 0x257   : > { %v12416_v3 = vld [vmem:[%s14458_s13 + $0x388] sm:$0xff]  }
 0x258   : > { %11745 = vmatpush3.bf16.msra.mxu0 %v12346_v2  ;;  %v12415_v2 = vld [vmem:[%s14458_s13 + $0x3c8] sm:$0xff]  }
 0x259   : > { %11767 = vmatpush3.bf16.msra.mxu1 %v12348_v4  ;;  %11746 = vmatprep.subr.bf16.mxu0 %v12349_v5  ;;  %v12417_v4 = vld [vmem:[%s14458_s13 + $0x350] sm:$0xff]  }
 0x25a   : > { %11768 = vmatprep.subr.bf16.mxu1 %v12351_v7  ;;  %v12418_v5 = vld [vmem:[%s14458_s13 + $0x310] sm:$0xff]  }
 0x25b   : > { %v12420_v7 = vld [vmem:[%s14458_s13 + $0x390] sm:$0xff]  }
 0x25c   : > { %11747 = vmatpush3.bf16.msra.mxu0 %v12350_v6  ;;  %v12419_v6 = vld [vmem:[%s14458_s13 + $0x3d0] sm:$0xff]  }
 0x25d   : > { %11769 = vmatpush3.bf16.msra.mxu1 %v12352_v8  ;;  %11748 = vmatprep.subr.bf16.mxu0 %v12353_v9  ;;  %v12421_v8 = vld [vmem:[%s14458_s13 + $0x358] sm:$0xff]  }
 0x25e   : > { %11770 = vmatprep.subr.bf16.mxu1 %v12355_v11  ;;  %v12422_v9 = vld [vmem:[%s14458_s13 + $0x318] sm:$0xff]  }
 0x25f   : > { %v12424_v11 = vld [vmem:[%s14458_s13 + $0x398] sm:$0xff]  }
 0x260   : > { %11749 = vmatpush3.bf16.msra.mxu0 %v12354_v10  ;;  %v12423_v10 = vld [vmem:[%s14458_s13 + $0x3d8] sm:$0xff]  }
 0x261   : > { %11771 = vmatpush3.bf16.msra.mxu1 %v12356_v12  ;;  %11750 = vmatprep.subr.bf16.mxu0 %v12357_v13  ;;  %v12425_v12 = vld [vmem:[%s14458_s13 + $0x360] sm:$0xff]  }
 0x262   : > { %11772 = vmatprep.subr.bf16.mxu1 %v12359_v15  ;;  %v12426_v13 = vld [vmem:[%s14458_s13 + $0x320] sm:$0xff]  }
 0x263   : > { %v12428_v15 = vld [vmem:[%s14458_s13 + $0x3a0] sm:$0xff]  }
 0x264   : > { %11751 = vmatpush3.bf16.msra.mxu0 %v12358_v14  ;;  %v12427_v14 = vld [vmem:[%s14458_s13 + $0x3e0] sm:$0xff]  }
 0x265   : > { %11773 = vmatpush3.bf16.msra.mxu1 %v12360_v16  ;;  %11752 = vmatprep.subr.bf16.mxu0 %v12361_v17  ;;  %v12429_v16 = vld [vmem:[%s14458_s13 + $0x368] sm:$0xff]  }
 0x266   : > { %11774 = vmatprep.subr.bf16.mxu1 %v12363_v20  ;;  %v12430_v17 = vld [vmem:[%s14458_s13 + $0x328] sm:$0xff]   ;;  %v12433_v20 = vld [vmem:[%s14458_s13 + $0x370] sm:$0xff]  }
 0x268   : > { %11753 = vmatpush3.bf16.msra.mxu0 %v12362_v18  ;;  %v12431_v18 = vld [vmem:[%s14458_s13 + $0x3e8] sm:$0xff]  }
 0x269   : > { %11775 = vmatpush3.bf16.msra.mxu1 %v12367_v21  ;;  %11782 = vmatprep.subr.bf16.mxu0 %v12368_v22  ;;  %v12434_v21 = vld [vmem:[%s14458_s13 + $0x330] sm:$0xff]  }
 0x26a   : > { %11804 = vmatprep.subr.bf16.mxu1 %v12373_v26  ;;  %v12435_v22 = vld [vmem:[%s14458_s13 + $0x3f0] sm:$0xff]   ;;  %v12439_v26 = vld [vmem:[%s14458_s13 + $0x3f8] sm:$0xff]  }
 0x26b   : > { %10147 = vmatmul.mubr.bf16.vlgmr.msra.gmra.mrb[4].mxu0 %v12364_v19  ;;  %v12432_v19 = vld [vmem:[%s14458_s13 + $0x3a8] sm:$0xff]  }
 0x26c   : > { %11783 = vmatpush3.bf16.msra.mxu0 %v12372_v25  ;;  %10188 = vmatmul.mubr.bf16.vlgmr.msra.gmra.mrb[4].mxu1 %v12369_v23  ;;  %v12436_v23 = vld [vmem:[%s14458_s13 + $0x3b0] sm:$0xff]   ;;  %v12438_v25 = vld [vmem:[%s14458_s13 + $0x338] sm:$0xff]  }
 0x26d   : > { %11805 = vmatpush3.bf16.msra.mxu1 %v12374_v27  ;;  %11784 = vmatprep.subr.bf16.mxu0 %v12375_v28  ;;  %v12440_v27 = vld [vmem:[%s15054_s0 + $0x30] ss:$196 sps:$4 sm:$0xff]  }
 0x26e   : > { %11806 = vmatprep.subr.bf16.mxu1 %v12377_v30  ;;  %10228 = vmatprep.mubr.bf16.mxu0 %v12404_v56  ;;  %v12442_v28 = vld [vmem:[%s15054_s0 + $0x34] ss:$196 sps:$4 sm:$0xff]   ;;  %v12444_v30 = vld [vmem:[%s14458_s13 + $0x440] sm:$0xff]  }
 0x26f   : > { %10269 = vmatprep.mubr.bf16.mxu1 %v12409_v60  ;;  %v12471_v56 = vld [vmem:[%s14458_s13 + $0x470] sm:$0xff]   ;;  %v12475_v60 = vld [vmem:[%s14458_s13 + $0x478] sm:$0xff]  }
 0x270   : > { %11785 = vmatpush3.bf16.msra.mxu0 %v12376_v29  ;;  %v12443_v29 = vld [vmem:[%s14458_s13 + $0x3b8] sm:$0xff]  }
 0x271   : > { %11807 = vmatpush3.bf16.msra.mxu1 %v12378_v31  ;;  %11786 = vmatprep.subr.bf16.mxu0 %v12379_v32  ;;  %v12445_v31 = vld [vmem:[%s15054_s0 + $0x38] ss:$196 sps:$4 sm:$0xff]  }
 0x272   : > { %11808 = vmatprep.subr.bf16.mxu1 %v12381_v34  ;;  %v12447_v32 = vld [vmem:[%s15054_s0 + $0x3c] ss:$196 sps:$4 sm:$0xff]  }
 0x273   : > { %v12449_v34 = vld [vmem:[%s14458_s13 + $0x4c0] sm:$0xff]  }
 0x274   : > { %11787 = vmatpush3.bf16.msra.mxu0 %v12380_v33  ;;  %v12448_v33 = vld [vmem:[%s14458_s13 + $0x400] sm:$0xff]  }
 0x275   : > { %11809 = vmatpush3.bf16.msra.mxu1 %v12382_v35  ;;  %11788 = vmatprep.subr.bf16.mxu0 %v12383_v36  ;;  %v12450_v35 = vld [vmem:[%s14458_s13 + $0x480] sm:$0xff]   ;;  %v12451_v36 = vld [vmem:[%s14458_s13 + $0x448] sm:$0xff]  }
 0x276   : > { %11810 = vmatprep.subr.bf16.mxu1 %v12385_v38  ;;  %v12453_v38 = vld [vmem:[%s14458_s13 + $0x4c8] sm:$0xff]  }
 0x278   : > { %11789 = vmatpush3.bf16.msra.mxu0 %v12384_v37  ;;  %v12452_v37 = vld [vmem:[%s14458_s13 + $0x408] sm:$0xff]  }
 0x279   : > { %11811 = vmatpush3.bf16.msra.mxu1 %v12386_v39  ;;  %11790 = vmatprep.subr.bf16.mxu0 %v12387_v40  ;;  %v12454_v39 = vld [vmem:[%s14458_s13 + $0x488] sm:$0xff]   ;;  %v12455_v40 = vld [vmem:[%s14458_s13 + $0x450] sm:$0xff]  }
 0x27a   : > { %11812 = vmatprep.subr.bf16.mxu1 %v12389_v42  ;;  %v12457_v42 = vld [vmem:[%s14458_s13 + $0x4d0] sm:$0xff]  }
 0x27c   : > { %11791 = vmatpush3.bf16.msra.mxu0 %v12388_v41  ;;  %v12456_v41 = vld [vmem:[%s14458_s13 + $0x410] sm:$0xff]  }
 0x27d   : > { %11813 = vmatpush3.bf16.msra.mxu1 %v12390_v43  ;;  %11792 = vmatprep.subr.bf16.mxu0 %v12391_v44  ;;  %v12458_v43 = vld [vmem:[%s14458_s13 + $0x490] sm:$0xff]   ;;  %v12459_v44 = vld [vmem:[%s14458_s13 + $0x458] sm:$0xff]  }
 0x27e   : > { %11814 = vmatprep.subr.bf16.mxu1 %v12393_v46  ;;  %v12461_v46 = vld [vmem:[%s14458_s13 + $0x4d8] sm:$0xff]  }
 0x280   : > { %11793 = vmatpush3.bf16.msra.mxu0 %v12392_v45  ;;  %v12460_v45 = vld [vmem:[%s14458_s13 + $0x418] sm:$0xff]  }
 0x281   : > { %11815 = vmatpush3.bf16.msra.mxu1 %v12394_v47  ;;  %11794 = vmatprep.subr.bf16.mxu0 %v12395_v48  ;;  %v12462_v47 = vld [vmem:[%s14458_s13 + $0x498] sm:$0xff]   ;;  %v12463_v48 = vld [vmem:[%s14458_s13 + $0x460] sm:$0xff]  }
 0x282   : > { %11816 = vmatprep.subr.bf16.mxu1 %v12397_v50  ;;  %v12465_v50 = vld [vmem:[%s14458_s13 + $0x4e0] sm:$0xff]  }
 0x284   : > { %11795 = vmatpush3.bf16.msra.mxu0 %v12396_v49  ;;  %v12464_v49 = vld [vmem:[%s14458_s13 + $0x420] sm:$0xff]  }
 0x285   : > { %11817 = vmatpush3.bf16.msra.mxu1 %v12398_v51  ;;  %11796 = vmatprep.subr.bf16.mxu0 %v12399_v52  ;;  %v12466_v51 = vld [vmem:[%s14458_s13 + $0x4a0] sm:$0xff]   ;;  %v12467_v52 = vld [vmem:[%s14458_s13 + $0x468] sm:$0xff]  }
 0x286   : > { %11818 = vmatprep.subr.bf16.mxu1 %v12401_v54  ;;  %v12469_v54 = vld [vmem:[%s14458_s13 + $0x4e8] sm:$0xff]  }
 0x288   : > { %11797 = vmatpush3.bf16.msra.mxu0 %v12400_v53  ;;  %v12468_v53 = vld [vmem:[%s14458_s13 + $0x428] sm:$0xff]  }
 0x289   : > { %11819 = vmatpush3.bf16.msra.mxu1 %v12405_v57  ;;  %11826 = vmatprep.subr.bf16.mxu0 %v12406_v58  ;;  %v12472_v57 = vld [vmem:[%s14458_s13 + $0x430] sm:$0xff]  }
 0x28a   : > { %11848 = vmatprep.subr.bf16.mxu1 %v12411_v62  ;;  %v12473_v58 = vld [vmem:[%s14458_s13 + $0x4f0] sm:$0xff]   ;;  %v12477_v62 = vld [vmem:[%s14458_s13 + $0x4f8] sm:$0xff]  }
 0x28b   : > { %10229 = vmatmul.mubr.bf16.vlgmr.msra.gmra.mrb[8].mxu0 %v12402_v55  ;;  %v12470_v55 = vld [vmem:[%s14458_s13 + $0x4a8] sm:$0xff]  }
 0x28c   : > { %11827 = vmatpush3.bf16.msra.mxu0 %v12410_v61  ;;  %10270 = vmatmul.mubr.bf16.vlgmr.msra.gmra.mrb[8].mxu1 %v12407_v59  ;;  %v12474_v59 = vld [vmem:[%s14458_s13 + $0x4b0] sm:$0xff]   ;;  %v12476_v61 = vld [vmem:[%s14458_s13 + $0x438] sm:$0xff]  }
 0x28d   : > { %11849 = vmatpush3.bf16.msra.mxu1 %v12412_v63  ;;  %11828 = vmatprep.subr.bf16.mxu0 %v12413_v0  ;;  %v12478_v63 = vld [vmem:[%s15054_s0 + $0x40] ss:$196 sps:$4 sm:$0xff]  }
 0x28e   : > { %11850 = vmatprep.subr.bf16.mxu1 %v12415_v2  ;;  %10310 = vmatprep.mubr.bf16.mxu0 %v12442_v28  ;;  %v12480_v0 = vld [vmem:[%s15054_s0 + $0x44] ss:$196 sps:$4 sm:$0xff]   ;;  %v12509_v28 = vld [vmem:[%s14458_s13 + $0x570] sm:$0xff]  }
 0x28f   : > { %10351 = vmatprep.mubr.bf16.mxu1 %v12447_v32  ;;  %v12482_v2 = vld [vmem:[%s14458_s13 + $0x540] sm:$0xff]   ;;  %v12513_v32 = vld [vmem:[%s14458_s13 + $0x578] sm:$0xff]  }
 0x290   : > { %11829 = vmatpush3.bf16.msra.mxu0 %v12414_v1  ;;  %v12481_v1 = vld [vmem:[%s14458_s13 + $0x4b8] sm:$0xff]  }
 0x291   : > { %11851 = vmatpush3.bf16.msra.mxu1 %v12416_v3  ;;  %11830 = vmatprep.subr.bf16.mxu0 %v12417_v4  ;;  %v12483_v3 = vld [vmem:[%s15054_s0 + $0x48] ss:$196 sps:$4 sm:$0xff]  }
 0x292   : > { %11852 = vmatprep.subr.bf16.mxu1 %v12419_v6  ;;  %v12485_v4 = vld [vmem:[%s15054_s0 + $0x4c] ss:$196 sps:$4 sm:$0xff]   ;;  %v12487_v6 = vld [vmem:[%s14458_s13 + $0x5c0] sm:$0xff]  }
 0x294   : > { %11831 = vmatpush3.bf16.msra.mxu0 %v12418_v5  ;;  %v12486_v5 = vld [vmem:[%s14458_s13 + $0x500] sm:$0xff]  }
 0x295   : > { %11853 = vmatpush3.bf16.msra.mxu1 %v12420_v7  ;;  %11832 = vmatprep.subr.bf16.mxu0 %v12421_v8  ;;  %v12488_v7 = vld [vmem:[%s14458_s13 + $0x580] sm:$0xff]   ;;  %v12489_v8 = vld [vmem:[%s14458_s13 + $0x548] sm:$0xff]  }
 0x296   : > { %11854 = vmatprep.subr.bf16.mxu1 %v12423_v10  ;;  %v12491_v10 = vld [vmem:[%s14458_s13 + $0x5c8] sm:$0xff]  }
 0x298   : > { %11833 = vmatpush3.bf16.msra.mxu0 %v12422_v9  ;;  %v12490_v9 = vld [vmem:[%s14458_s13 + $0x508] sm:$0xff]  }
 0x299   : > { %11855 = vmatpush3.bf16.msra.mxu1 %v12424_v11  ;;  %11834 = vmatprep.subr.bf16.mxu0 %v12425_v12  ;;  %v12492_v11 = vld [vmem:[%s14458_s13 + $0x588] sm:$0xff]   ;;  %v12493_v12 = vld [vmem:[%s14458_s13 + $0x550] sm:$0xff]  }
 0x29a   : > { %11856 = vmatprep.subr.bf16.mxu1 %v12427_v14  ;;  %v12495_v14 = vld [vmem:[%s14458_s13 + $0x5d0] sm:$0xff]  }
 0x29c   : > { %11835 = vmatpush3.bf16.msra.mxu0 %v12426_v13  ;;  %v12494_v13 = vld [vmem:[%s14458_s13 + $0x510] sm:$0xff]  }
 0x29d   : > { %11857 = vmatpush3.bf16.msra.mxu1 %v12428_v15  ;;  %11836 = vmatprep.subr.bf16.mxu0 %v12429_v16  ;;  %v12496_v15 = vld [vmem:[%s14458_s13 + $0x590] sm:$0xff]   ;;  %v12497_v16 = vld [vmem:[%s14458_s13 + $0x558] sm:$0xff]  }
 0x29e   : > { %11858 = vmatprep.subr.bf16.mxu1 %v12431_v18  ;;  %v12499_v18 = vld [vmem:[%s14458_s13 + $0x5d8] sm:$0xff]  }
 0x2a0   : > { %11837 = vmatpush3.bf16.msra.mxu0 %v12430_v17  ;;  %v12498_v17 = vld [vmem:[%s14458_s13 + $0x518] sm:$0xff]  }
 0x2a1   : > { %11859 = vmatpush3.bf16.msra.mxu1 %v12432_v19  ;;  %11838 = vmatprep.subr.bf16.mxu0 %v12433_v20  ;;  %v12500_v19 = vld [vmem:[%s14458_s13 + $0x598] sm:$0xff]   ;;  %v12501_v20 = vld [vmem:[%s14458_s13 + $0x560] sm:$0xff]  }
 0x2a2   : > { %11860 = vmatprep.subr.bf16.mxu1 %v12435_v22  ;;  %v12503_v22 = vld [vmem:[%s14458_s13 + $0x5e0] sm:$0xff]  }
 0x2a4   : > { %11839 = vmatpush3.bf16.msra.mxu0 %v12434_v21  ;;  %v12502_v21 = vld [vmem:[%s14458_s13 + $0x520] sm:$0xff]  }
 0x2a5   : > { %11861 = vmatpush3.bf16.msra.mxu1 %v12436_v23  ;;  %11840 = vmatprep.subr.bf16.mxu0 %v12437_v24  ;;  %v12504_v23 = vld [vmem:[%s14458_s13 + $0x5a0] sm:$0xff]   ;;  %v12505_v24 = vld [vmem:[%s14458_s13 + $0x568] sm:$0xff]  }
 0x2a6   : > { %11862 = vmatprep.subr.bf16.mxu1 %v12439_v26  ;;  %v12507_v26 = vld [vmem:[%s14458_s13 + $0x5e8] sm:$0xff]  }
 0x2a8   : > { %11841 = vmatpush3.bf16.msra.mxu0 %v12438_v25  ;;  %v12506_v25 = vld [vmem:[%s14458_s13 + $0x528] sm:$0xff]  }
 0x2a9   : > { %11863 = vmatpush3.bf16.msra.mxu1 %v12443_v29  ;;  %11870 = vmatprep.subr.bf16.mxu0 %v12444_v30  ;;  %v12510_v29 = vld [vmem:[%s14458_s13 + $0x530] sm:$0xff]  }
 0x2aa   : > { %11892 = vmatprep.subr.bf16.mxu1 %v12449_v34  ;;  %v12511_v30 = vld [vmem:[%s14458_s13 + $0x5f0] sm:$0xff]   ;;  %v12515_v34 = vld [vmem:[%s14458_s13 + $0x5f8] sm:$0xff]  }
 0x2ab   : > { %10311 = vmatmul.mubr.bf16.vlgmr.msra.gmra.mrb[12].mxu0 %v12440_v27  ;;  %v12508_v27 = vld [vmem:[%s14458_s13 + $0x5a8] sm:$0xff]  }
 0x2ac   : > { %11871 = vmatpush3.bf16.msra.mxu0 %v12448_v33  ;;  %10352 = vmatmul.mubr.bf16.vlgmr.msra.gmra.mrb[12].mxu1 %v12445_v31  ;;  %v12512_v31 = vld [vmem:[%s14458_s13 + $0x5b0] sm:$0xff]   ;;  %v12514_v33 = vld [vmem:[%s14458_s13 + $0x538] sm:$0xff]  }
 0x2ad   : > { %11893 = vmatpush3.bf16.msra.mxu1 %v12450_v35  ;;  %11872 = vmatprep.subr.bf16.mxu0 %v12451_v36  ;;  %v12516_v35 = vld [vmem:[%s15054_s0 + $0x50] ss:$196 sps:$4 sm:$0xff]  }
 0x2ae   : > { %11894 = vmatprep.subr.bf16.mxu1 %v12453_v38  ;;  %10392 = vmatprep.mubr.bf16.mxu0 %v12480_v0  ;;  %v12518_v36 = vld [vmem:[%s15054_s0 + $0x54] ss:$196 sps:$4 sm:$0xff]   ;;  %v12520_v38 = vld [vmem:[%s14458_s13 + $0x640] sm:$0xff]  }
 0x2af   : > { %10433 = vmatprep.mubr.bf16.mxu1 %v12485_v4  ;;  %v12547_v0 = vld [vmem:[%s14458_s13 + $0x670] sm:$0xff]   ;;  %v12551_v4 = vld [vmem:[%s14458_s13 + $0x678] sm:$0xff]  }
 0x2b0   : > { %11873 = vmatpush3.bf16.msra.mxu0 %v12452_v37  ;;  %v12519_v37 = vld [vmem:[%s14458_s13 + $0x5b8] sm:$0xff]  }
 0x2b1   : > { %11895 = vmatpush3.bf16.msra.mxu1 %v12454_v39  ;;  %11874 = vmatprep.subr.bf16.mxu0 %v12455_v40  ;;  %v12521_v39 = vld [vmem:[%s15054_s0 + $0x58] ss:$196 sps:$4 sm:$0xff]  }
 0x2b2   : > { %11896 = vmatprep.subr.bf16.mxu1 %v12457_v42  ;;  %v12523_v40 = vld [vmem:[%s15054_s0 + $0x5c] ss:$196 sps:$4 sm:$0xff]  }
 0x2b3   : > { %v12525_v42 = vld [vmem:[%s14458_s13 + $0x6c0] sm:$0xff]  }
 0x2b4   : > { %11875 = vmatpush3.bf16.msra.mxu0 %v12456_v41  ;;  %v12524_v41 = vld [vmem:[%s14458_s13 + $0x600] sm:$0xff]  }
 0x2b5   : > { %11897 = vmatpush3.bf16.msra.mxu1 %v12458_v43  ;;  %11876 = vmatprep.subr.bf16.mxu0 %v12459_v44  ;;  %v12526_v43 = vld [vmem:[%s14458_s13 + $0x680] sm:$0xff]   ;;  %v12527_v44 = vld [vmem:[%s14458_s13 + $0x648] sm:$0xff]  }
 0x2b6   : > { %11898 = vmatprep.subr.bf16.mxu1 %v12461_v46  ;;  %v12529_v46 = vld [vmem:[%s14458_s13 + $0x6c8] sm:$0xff]  }
 0x2b8   : > { %11877 = vmatpush3.bf16.msra.mxu0 %v12460_v45  ;;  %v12528_v45 = vld [vmem:[%s14458_s13 + $0x608] sm:$0xff]  }
 0x2b9   : > { %11899 = vmatpush3.bf16.msra.mxu1 %v12462_v47  ;;  %11878 = vmatprep.subr.bf16.mxu0 %v12463_v48  ;;  %v12530_v47 = vld [vmem:[%s14458_s13 + $0x688] sm:$0xff]   ;;  %v12531_v48 = vld [vmem:[%s14458_s13 + $0x650] sm:$0xff]  }
 0x2ba   : > { %11900 = vmatprep.subr.bf16.mxu1 %v12465_v50  ;;  %v12533_v50 = vld [vmem:[%s14458_s13 + $0x6d0] sm:$0xff]  }
 0x2bc   : > { %11879 = vmatpush3.bf16.msra.mxu0 %v12464_v49  ;;  %v12532_v49 = vld [vmem:[%s14458_s13 + $0x610] sm:$0xff]  }
 0x2bd   : > { %11901 = vmatpush3.bf16.msra.mxu1 %v12466_v51  ;;  %11880 = vmatprep.subr.bf16.mxu0 %v12467_v52  ;;  %v12534_v51 = vld [vmem:[%s14458_s13 + $0x690] sm:$0xff]   ;;  %v12535_v52 = vld [vmem:[%s14458_s13 + $0x658] sm:$0xff]  }
 0x2be   : > { %11902 = vmatprep.subr.bf16.mxu1 %v12469_v54  ;;  %v12537_v54 = vld [vmem:[%s14458_s13 + $0x6d8] sm:$0xff]  }
 0x2c0   : > { %11881 = vmatpush3.bf16.msra.mxu0 %v12468_v53  ;;  %v12536_v53 = vld [vmem:[%s14458_s13 + $0x618] sm:$0xff]  }
 0x2c1   : > { %11903 = vmatpush3.bf16.msra.mxu1 %v12470_v55  ;;  %11882 = vmatprep.subr.bf16.mxu0 %v12471_v56  ;;  %v12538_v55 = vld [vmem:[%s14458_s13 + $0x698] sm:$0xff]   ;;  %v12539_v56 = vld [vmem:[%s14458_s13 + $0x660] sm:$0xff]  }
 0x2c2   : > { %11904 = vmatprep.subr.bf16.mxu1 %v12473_v58  ;;  %v12541_v58 = vld [vmem:[%s14458_s13 + $0x6e0] sm:$0xff]  }
 0x2c4   : > { %11883 = vmatpush3.bf16.msra.mxu0 %v12472_v57  ;;  %v12540_v57 = vld [vmem:[%s14458_s13 + $0x620] sm:$0xff]  }
 0x2c5   : > { %11905 = vmatpush3.bf16.msra.mxu1 %v12474_v59  ;;  %11884 = vmatprep.subr.bf16.mxu0 %v12475_v60  ;;  %v12542_v59 = vld [vmem:[%s14458_s13 + $0x6a0] sm:$0xff]   ;;  %v12543_v60 = vld [vmem:[%s14458_s13 + $0x668] sm:$0xff]  }
 0x2c6   : > { %11906 = vmatprep.subr.bf16.mxu1 %v12477_v62  ;;  %v12545_v62 = vld [vmem:[%s14458_s13 + $0x6e8] sm:$0xff]  }
 0x2c8   : > { %11885 = vmatpush3.bf16.msra.mxu0 %v12476_v61  ;;  %v12544_v61 = vld [vmem:[%s14458_s13 + $0x628] sm:$0xff]  }
 0x2c9   : > { %11907 = vmatpush3.bf16.msra.mxu1 %v12481_v1  ;;  %11914 = vmatprep.subr.bf16.mxu0 %v12482_v2  ;;  %v12548_v1 = vld [vmem:[%s14458_s13 + $0x630] sm:$0xff]  }
 0x2ca   : > { %11936 = vmatprep.subr.bf16.mxu1 %v12487_v6  ;;  %v12549_v2 = vld [vmem:[%s14458_s13 + $0x6f0] sm:$0xff]   ;;  %v12553_v6 = vld [vmem:[%s14458_s13 + $0x6f8] sm:$0xff]  }
 0x2cb   : > { %10393 = vmatmul.mubr.bf16.vlgmr.msra.gmra.mrb[16].mxu0 %v12478_v63  ;;  %v12546_v63 = vld [vmem:[%s14458_s13 + $0x6a8] sm:$0xff]  }
 0x2cc   : > { %11915 = vmatpush3.bf16.msra.mxu0 %v12486_v5  ;;  %10434 = vmatmul.mubr.bf16.vlgmr.msra.gmra.mrb[16].mxu1 %v12483_v3  ;;  %v12550_v3 = vld [vmem:[%s14458_s13 + $0x6b0] sm:$0xff]   ;;  %v12552_v5 = vld [vmem:[%s14458_s13 + $0x638] sm:$0xff]  }
 0x2cd   : > { %11937 = vmatpush3.bf16.msra.mxu1 %v12488_v7  ;;  %11916 = vmatprep.subr.bf16.mxu0 %v12489_v8  ;;  %v12554_v7 = vld [vmem:[%s15054_s0 + $0x60] ss:$196 sps:$4 sm:$0xff]  }
 0x2ce   : > { %11938 = vmatprep.subr.bf16.mxu1 %v12491_v10  ;;  %10474 = vmatprep.mubr.bf16.mxu0 %v12518_v36  ;;  %v12556_v8 = vld [vmem:[%s15054_s0 + $0x64] ss:$196 sps:$4 sm:$0xff]   ;;  %v12575_v36 = vld [vmem:[%s14458_s13 + $0x7d8] sm:$0xff]  }
 0x2cf   : > { %10515 = vmatprep.mubr.bf16.mxu1 %v12523_v40  ;;  %v12558_v10 = vld [vmem:[%s14458_s13 + $0x740] sm:$0xff]  }
 0x2d0   : > { %11917 = vmatpush3.bf16.msra.mxu0 %v12490_v9  ;;  %v12557_v9 = vld [vmem:[%s14458_s13 + $0x6b8] sm:$0xff]  }
 0x2d1   : > { %11939 = vmatpush3.bf16.msra.mxu1 %v12492_v11  ;;  %11918 = vmatprep.subr.bf16.mxu0 %v12493_v12  ;;  %v12559_v11 = vld [vmem:[%s15054_s0 + $0x68] ss:$196 sps:$4 sm:$0xff]  }
 0x2d2   : > { %11940 = vmatprep.subr.bf16.mxu1 %v12495_v14  ;;  %v12561_v12 = vld [vmem:[%s15054_s0 + $0x6c] ss:$196 sps:$4 sm:$0xff]   ;;  %v12563_v14 = vld [vmem:[%s14458_s13 + $0x7c0] sm:$0xff]  }
 0x2d4   : > { %11919 = vmatpush3.bf16.msra.mxu0 %v12494_v13  ;;  %v12562_v13 = vld [vmem:[%s14458_s13 + $0x700] sm:$0xff]  }
 0x2d5   : > { %11941 = vmatpush3.bf16.msra.mxu1 %v12496_v15  ;;  %11920 = vmatprep.subr.bf16.mxu0 %v12497_v16  ;;  %v12564_v15 = vld [vmem:[%s14458_s13 + $0x780] sm:$0xff]   ;;  %v12565_v16 = vld [vmem:[%s14458_s13 + $0x748] sm:$0xff]  }
 0x2d6   : > { %11942 = vmatprep.subr.bf16.mxu1 %v12499_v18  ;;  %v12567_v18 = vld [vmem:[%s14458_s13 + $0x7c8] sm:$0xff]  }
 0x2d8   : > { %11921 = vmatpush3.bf16.msra.mxu0 %v12498_v17  ;;  %v12566_v17 = vld [vmem:[%s14458_s13 + $0x708] sm:$0xff]  }
 0x2d9   : > { %11943 = vmatpush3.bf16.msra.mxu1 %v12500_v19  ;;  %11922 = vmatprep.subr.bf16.mxu0 %v12501_v20  ;;  %v12568_v19 = vld [vmem:[%s14458_s13 + $0x788] sm:$0xff]  }
 0x2da   : > { %11944 = vmatprep.subr.bf16.mxu1 %v12503_v22 }
 0x2dc   : > { %11923 = vmatpush3.bf16.msra.mxu0 %v12502_v21  ;;  %v12569_v21 = vld [vmem:[%s14458_s13 + $0x750] sm:$0xff]  }
 0x2dd   : > { %11945 = vmatpush3.bf16.msra.mxu1 %v12504_v23  ;;  %11924 = vmatprep.subr.bf16.mxu0 %v12505_v24  ;;  %v12570_v23 = vld [vmem:[%s14458_s13 + $0x710] sm:$0xff]  }
 0x2de   : > { %11946 = vmatprep.subr.bf16.mxu1 %v12507_v26 }
 0x2e0   : > { %11925 = vmatpush3.bf16.msra.mxu0 %v12506_v25  ;;  %v12571_v25 = vld [vmem:[%s14458_s13 + $0x7d0] sm:$0xff]  }
 0x2e1   : > { %11947 = vmatpush3.bf16.msra.mxu1 %v12508_v27  ;;  %11926 = vmatprep.subr.bf16.mxu0 %v12509_v28  ;;  %v12572_v28 = vld [vmem:[%s14458_s13 + $0x790] sm:$0xff]  }
 0x2e2   : > { %11948 = vmatprep.subr.bf16.mxu1 %v12511_v30 }
 0x2e4   : > { %11927 = vmatpush3.bf16.msra.mxu0 %v12510_v29 }
 0x2e5   : > { %11949 = vmatpush3.bf16.msra.mxu1 %v12512_v31  ;;  %11928 = vmatprep.subr.bf16.mxu0 %v12513_v32  ;;  %v12573_v31 = vld [vmem:[%s14458_s13 + $0x758] sm:$0xff]  }
 0x2e6   : > { %11950 = vmatprep.subr.bf16.mxu1 %v12515_v34 }
 0x2e8   : > { %11929 = vmatpush3.bf16.msra.mxu0 %v12514_v33  ;;  %v12574_v33 = vld [vmem:[%s14458_s13 + $0x718] sm:$0xff]  }
 0x2e9   : > { %11951 = vmatpush3.bf16.msra.mxu1 %v12519_v37  ;;  %11958 = vmatprep.subr.bf16.mxu0 %v12520_v38 }
 0x2ea   : > { %11980 = vmatprep.subr.bf16.mxu1 %v12525_v42  ;;  %v12578_v42 = vld [vmem:[%s14458_s13 + $0x720] sm:$0xff]  }
 0x2eb   : > { %10475 = vmatmul.mubr.bf16.vlgmr.msra.gmra.mrb[20].mxu0 %v12516_v35 }
 0x2ec   : > { %11959 = vmatpush3.bf16.msra.mxu0 %v12524_v41  ;;  %10516 = vmatmul.mubr.bf16.vlgmr.msra.gmra.mrb[20].mxu1 %v12521_v39  ;;  %v12576_v39 = vld [vmem:[%s14458_s13 + $0x798] sm:$0xff]   ;;  %v12577_v41 = vld [vmem:[%s14458_s13 + $0x760] sm:$0xff]  }
 0x2ed   : > { %11981 = vmatpush3.bf16.msra.mxu1 %v12526_v43  ;;  %11960 = vmatprep.subr.bf16.mxu0 %v12527_v44  ;;  %v12579_v44 = vld [vmem:[%s14458_s13 + $0x7e0] sm:$0xff]  }
 0x2ee   : > { %11982 = vmatprep.subr.bf16.mxu1 %v12529_v46  ;;  %10556 = vmatprep.mubr.bf16.mxu0 %v12556_v8  ;;  %v12581_v46 = vld [vmem:[%s14458_s13 + $0x768] sm:$0xff]  }
 0x2ef   : > { %10597 = vmatprep.mubr.bf16.mxu1 %v12561_v12 }
 0x2f0   : > { %11961 = vmatpush3.bf16.msra.mxu0 %v12528_v45  ;;  %v12580_v45 = vld [vmem:[%s14458_s13 + $0x7a0] sm:$0xff]  }
 0x2f1   : > { %11983 = vmatpush3.bf16.msra.mxu1 %v12530_v47  ;;  %11962 = vmatprep.subr.bf16.mxu0 %v12531_v48  ;;  %v12582_v47 = vld [vmem:[%s14458_s13 + $0x728] sm:$0xff]  }
 0x2f2   : > { %11984 = vmatprep.subr.bf16.mxu1 %v12533_v50  ;;  %v12583_v48 = vld [vmem:[%s14458_s13 + $0x7e8] sm:$0xff]   ;;  %v12585_v50 = vld [vmem:[%s14458_s13 + $0x770] sm:$0xff]  }
 0x2f4   : > { %11963 = vmatpush3.bf16.msra.mxu0 %v12532_v49  ;;  %v12584_v49 = vld [vmem:[%s14458_s13 + $0x7a8] sm:$0xff]  }
 0x2f5   : > { %11985 = vmatpush3.bf16.msra.mxu1 %v12534_v51  ;;  %11964 = vmatprep.subr.bf16.mxu0 %v12535_v52  ;;  %v12586_v51 = vld [vmem:[%s14458_s13 + $0x730] sm:$0xff]  }
 0x2f6   : > { %11986 = vmatprep.subr.bf16.mxu1 %v12537_v54  ;;  %v12587_v52 = vld [vmem:[%s14458_s13 + $0x7f0] sm:$0xff]   ;;  %v12589_v54 = vld [vmem:[%s14458_s13 + $0x778] sm:$0xff]  }
 0x2f8   : > { %11965 = vmatpush3.bf16.msra.mxu0 %v12536_v53  ;;  %v12588_v53 = vld [vmem:[%s14458_s13 + $0x7b0] sm:$0xff]  }
 0x2f9   : > { %11987 = vmatpush3.bf16.msra.mxu1 %v12538_v55  ;;  %11966 = vmatprep.subr.bf16.mxu0 %v12539_v56  ;;  %v12590_v55 = vld [vmem:[%s14458_s13 + $0x738] sm:$0xff]  }
 0x2fa   : > { %11988 = vmatprep.subr.bf16.mxu1 %v12541_v58  ;;  %v12591_v56 = vld [vmem:[%s14458_s13 + $0x7f8] sm:$0xff]  }
 0x2fb   : > { %v12594_v58 = vld [vmem:[%s15054_s0 + $0x74] ss:$196 sps:$4 sm:$0xff]  }
 0x2fc   : > { %11967 = vmatpush3.bf16.msra.mxu0 %v12540_v57  ;;  %v12592_v57 = vld [vmem:[%s15054_s0 + $0x70] ss:$196 sps:$4 sm:$0xff]  }
 0x2fd   : > { %11989 = vmatpush3.bf16.msra.mxu1 %v12542_v59  ;;  %11968 = vmatprep.subr.bf16.mxu0 %v12543_v60  ;;  %v12595_v59 = vld [vmem:[%s14458_s13 + $0x7b8] sm:$0xff]   ;;  %v12596_v60 = vld [vmem:[%s14458_s13 + $0x840] sm:$0xff]  }
 0x2fe   : > { %11990 = vmatprep.subr.bf16.mxu1 %v12545_v62  ;;  %v12599_v62 = vld [vmem:[%s15054_s0 + $0x7c] ss:$196 sps:$4 sm:$0xff]  }
 0x300   : > { %11969 = vmatpush3.bf16.msra.mxu0 %v12544_v61  ;;  %v12597_v61 = vld [vmem:[%s15054_s0 + $0x78] ss:$196 sps:$4 sm:$0xff]  }
 0x301   : > { %11991 = vmatpush3.bf16.msra.mxu1 %v12546_v63  ;;  %11970 = vmatprep.subr.bf16.mxu0 %v12547_v0  ;;  %v12600_v63 = vld [vmem:[%s14458_s13 + $0x800] sm:$0xff]  }
 0x302   : > { %11992 = vmatprep.subr.bf16.mxu1 %v12549_v2  ;;  %v12601_v0 = vld [vmem:[%s14458_s13 + $0x8c0] sm:$0xff]   ;;  %v12603_v2 = vld [vmem:[%s14458_s13 + $0x848] sm:$0xff]  }
 0x304   : > { %11971 = vmatpush3.bf16.msra.mxu0 %v12548_v1  ;;  %v12602_v1 = vld [vmem:[%s14458_s13 + $0x880] sm:$0xff]  }
 0x305   : > { %11993 = vmatpush3.bf16.msra.mxu1 %v12550_v3  ;;  %11972 = vmatprep.subr.bf16.mxu0 %v12551_v4  ;;  %v12604_v4 = vld [vmem:[%s14458_s13 + $0x808] sm:$0xff]  }
 0x306   : > { %11994 = vmatprep.subr.bf16.mxu1 %v12553_v6  ;;  %v12605_v6 = vld [vmem:[%s14458_s13 + $0x8c8] sm:$0xff]  }
 0x308   : > { %11973 = vmatpush3.bf16.msra.mxu0 %v12552_v5 }
 0x309   : > { %11995 = vmatpush3.bf16.msra.mxu1 %v12557_v9  ;;  %12002 = vmatprep.subr.bf16.mxu0 %v12558_v10  ;;  %v12606_v9 = vld [vmem:[%s14458_s13 + $0x888] sm:$0xff]  }
 0x30a   : > { %12024 = vmatprep.subr.bf16.mxu1 %v12563_v14  ;;  %v12608_v14 = vld [vmem:[%s14458_s13 + $0x810] sm:$0xff]  }
 0x30b   : > { %10557 = vmatmul.mubr.bf16.vlgmr.msra.gmra.mrb[24].mxu0 %v12554_v7 }
 0x30c   : > { %12003 = vmatpush3.bf16.msra.mxu0 %v12562_v13  ;;  %10598 = vmatmul.mubr.bf16.vlgmr.msra.gmra.mrb[24].mxu1 %v12559_v11  ;;  %v12607_v11 = vld [vmem:[%s14458_s13 + $0x850] sm:$0xff]  }
 0x30d   : > { %12025 = vmatpush3.bf16.msra.mxu1 %v12564_v15  ;;  %12004 = vmatprep.subr.bf16.mxu0 %v12565_v16 }
 0x30e   : > { %12026 = vmatprep.subr.bf16.mxu1 %v12567_v18  ;;  %10638 = vmatprep.mubr.bf16.mxu0 %v12594_v58 }
 0x30f   : > { %10679 = vmatprep.mubr.bf16.mxu1 %v12599_v62  ;;  %v12644_v62 = vld [vmem:[%s14458_s13 + $0x988] sm:$0xff]  }
 0x310   : > { %12005 = vmatpush3.bf16.msra.mxu0 %v12566_v17  ;;  %v12609_v17 = vld [vmem:[%s14458_s13 + $0x8d0] sm:$0xff]  }
 0x311   : > { %12027 = vmatpush3.bf16.msra.mxu1 %v12568_v19  ;;  %12006 = vmatprep.subr.bf16.mxu0 %v12569_v21 }
 0x312   : > { %12028 = vmatprep.subr.bf16.mxu1 %v12571_v25 }
 0x314   : > { %12007 = vmatpush3.bf16.msra.mxu0 %v12570_v23  ;;  %v12611_v23 = vld [vmem:[%s14458_s13 + $0x858] sm:$0xff]  }
 0x315   : > { %12029 = vmatpush3.bf16.msra.mxu1 %v12572_v28  ;;  %12008 = vmatprep.subr.bf16.mxu0 %v12573_v31  ;;  %v12616_v31 = vld [vmem:[%s14458_s13 + $0x820] sm:$0xff]  }
 0x316   : > { %12030 = vmatprep.subr.bf16.mxu1 %v12575_v36  ;;  %v12621_v36 = vld [vmem:[%s14458_s13 + $0x8e8] sm:$0xff]  }
 0x318   : > { %12009 = vmatpush3.bf16.msra.mxu0 %v12574_v33  ;;  %v12618_v33 = vld [vmem:[%s14458_s13 + $0x8a0] sm:$0xff]  }
 0x319   : > { %12031 = vmatpush3.bf16.msra.mxu1 %v12576_v39  ;;  %12010 = vmatprep.subr.bf16.mxu0 %v12577_v41  ;;  %v12624_v39 = vld [vmem:[%s14458_s13 + $0x830] sm:$0xff]  }
 0x31a   : > { %12032 = vmatprep.subr.bf16.mxu1 %v12579_v44  ;;  %v12626_v41 = vld [vmem:[%s14458_s13 + $0x8b0] sm:$0xff]   ;;  %v12629_v44 = vld [vmem:[%s14458_s13 + $0x8f8] sm:$0xff]  }
 0x31c   : > { %12011 = vmatpush3.bf16.msra.mxu0 %v12578_v42  ;;  %v12627_v42 = vld [vmem:[%s14458_s13 + $0x878] sm:$0xff]  }
 0x31d   : > { %12033 = vmatpush3.bf16.msra.mxu1 %v12580_v45  ;;  %12012 = vmatprep.subr.bf16.mxu0 %v12581_v46  ;;  %v12630_v45 = vld [vmem:[%s15054_s0 + $0x80] ss:$196 sps:$4 sm:$0xff]  }
 0x31e   : > { %v11710_v20 = vpop.f32.mrb[0].mxu0  ;;  %12034 = vmatprep.subr.bf16.mxu1 %v12583_v48  ;;  %v12632_v46 = vld [vmem:[%s15054_s0 + $0x84] ss:$196 sps:$4 sm:$0xff]  }
 0x31f   : > { %v11732_v22 = vpop.f32.mrb[0].mxu1  ;;  %v11711_v24 = vpop.f32.mrb[1].mxu0  ;;  %v12634_v48 = vld [vmem:[%s14458_s13 + $0x940] sm:$0xff]  }
 0x320   : > { %v11712_v26 = vadd.f32 %v11711_v24, %v11710_v20  ;;  %v11733_v27 = vpop.f32.mrb[1].mxu1  ;;  %v11713_v30 = vpop.f32.mrb[2].mxu0  ;;  %12013 = vmatpush3.bf16.msra.mxu0 %v12582_v47  ;;  %v12610_v20 = vld [vmem:[%s14458_s13 + $0x890] sm:$0xff]   ;;  %v12633_v47 = vld [vmem:[%s14458_s13 + $0x8b8] sm:$0xff]  }
 0x321   : > { %v11734_v29 = vadd.f32 %v11733_v27, %v11732_v22  ;;  %v11735_v32 = vpop.f32.mrb[2].mxu1  ;;  %v11714_v35 = vpop.f32.mrb[3].mxu0  ;;  %12035 = vmatpush3.bf16.msra.mxu1 %v12584_v49  ;;  %12014 = vmatprep.subr.bf16.mxu0 %v12585_v50  ;;  %v12613_v27 = vld [vmem:[%s14458_s13 + $0x8d8] sm:$0xff]   ;;  %v12635_v49 = vld [vmem:[%s15054_s0 + $0x88] ss:$196 sps:$4 sm:$0xff]  }
 0x322   : > { %v11715_v37 = vadd.f32 %v11714_v35, %v11713_v30  ;;  %v11736_v38 = vpop.f32.mrb[3].mxu1  ;;  %12036 = vmatprep.subr.bf16.mxu1 %v12587_v52  ;;  %v12615_v30 = vld [vmem:[%s14458_s13 + $0x860] sm:$0xff]   ;;  %v12620_v35 = vld [vmem:[%s14458_s13 + $0x828] sm:$0xff]  }
 0x323   : > { %v14776_v34 = vadd.f32 %v11734_v29, %v11712_v26  ;;  %v11737_v40 = vadd.f32 %v11736_v38, %v11735_v32  ;;  %v12612_v26 = vld [vmem:[%s14458_s13 + $0x818] sm:$0xff]   ;;  %v12617_v32 = vld [vmem:[%s14458_s13 + $0x8e0] sm:$0xff]   ;;  %v12623_v38 = vld [vmem:[%s14458_s13 + $0x870] sm:$0xff]  }
 0x324   : > { %12015 = vmatpush3.bf16.msra.mxu0 %v12586_v51  ;;  %v12614_v29 = vld [vmem:[%s14458_s13 + $0x898] sm:$0xff]   ;;  %v12637_v50 = vld [vmem:[%s15054_s0 + $0x8c] ss:$196 sps:$4 sm:$0xff]   ;;  %v12638_v51 = vld [vmem:[%s14458_s13 + $0x900] sm:$0xff]  }
 0x325   : > { %v14782_v43 = vadd.f32 %v11737_v40, %v11715_v37  ;;  %12037 = vmatpush3.bf16.msra.mxu1 %v12588_v53  ;;  %12016 = vmatprep.subr.bf16.mxu0 %v12589_v54  ;;  %v12622_v37 = vld [vmem:[%s14458_s13 + $0x8a8] sm:$0xff]   ;;  %v12625_v40 = vld [vmem:[%s14458_s13 + $0x8f0] sm:$0xff]   ;;  %v12639_v52 = vld [vmem:[%s14458_s13 + $0x9c0] sm:$0xff]  }
 0x326   : > { %12038 = vmatprep.subr.bf16.mxu1 %v12591_v56  ;;  %v12640_v53 = vld [vmem:[%s14458_s13 + $0x980] sm:$0xff]  }
 0x328   : > { %12017 = vmatpush3.bf16.msra.mxu0 %v12590_v55  ;;  %v12641_v55 = vld [vmem:[%s14458_s13 + $0x948] sm:$0xff]  }
 0x329   : > { %12039 = vmatpush3.bf16.msra.mxu1 %v12595_v59  ;;  %12046 = vmatprep.subr.bf16.mxu0 %v12596_v60  ;;  %v12643_v60 = vld [vmem:[%s14458_s13 + $0x9c8] sm:$0xff]  }
 0x32a   : > { %12068 = vmatprep.subr.bf16.mxu1 %v12601_v0 }
 0x32b   : > { %10639 = vmatmul.mubr.bf16.vlgmr.msra.gmra.mrb[28].mxu0 %v12592_v57  ;;  %v12642_v57 = vld [vmem:[%s14458_s13 + $0x908] sm:$0xff]  }
 0x32c   : > { %12047 = vmatpush3.bf16.msra.mxu0 %v12600_v63  ;;  %10680 = vmatmul.mubr.bf16.vlgmr.msra.gmra.mrb[28].mxu1 %v12597_v61 }
 0x32d   : > { %12069 = vmatpush3.bf16.msra.mxu1 %v12602_v1  ;;  %12048 = vmatprep.subr.bf16.mxu0 %v12603_v2  ;;  %v12645_v1 = vld [vmem:[%s14458_s13 + $0x950] sm:$0xff]  }
 0x32e   : > { %12070 = vmatprep.subr.bf16.mxu1 %v12605_v6  ;;  %10720 = vmatprep.mubr.bf16.mxu0 %v12632_v46 }
 0x32f   : > { %10761 = vmatprep.mubr.bf16.mxu1 %v12637_v50  ;;  %v12682_v50 = vld [vmem:[%s14458_s13 + $0xa88] sm:$0xff]  }
 0x330   : > { %12049 = vmatpush3.bf16.msra.mxu0 %v12604_v4  ;;  %v12646_v4 = vld [vmem:[%s14458_s13 + $0x910] sm:$0xff]  }
 0x331   : > { %12071 = vmatpush3.bf16.msra.mxu1 %v12606_v9  ;;  %12050 = vmatprep.subr.bf16.mxu0 %v12607_v11 }
 0x332   : > { %12072 = vmatprep.subr.bf16.mxu1 %v12609_v17  ;;  %v12652_v17 = vld [vmem:[%s14458_s13 + $0x998] sm:$0xff]  }
 0x334   : > { %12051 = vmatpush3.bf16.msra.mxu0 %v12608_v14  ;;  %v12650_v14 = vld [vmem:[%s14458_s13 + $0x918] sm:$0xff]  }
 0x335   : > { %12073 = vmatpush3.bf16.msra.mxu1 %v12610_v20  ;;  %12052 = vmatprep.subr.bf16.mxu0 %v12611_v23  ;;  %v12655_v20 = vld [vmem:[%s14458_s13 + $0x9e0] sm:$0xff]   ;;  %v12658_v23 = vld [vmem:[%s14458_s13 + $0x928] sm:$0xff]  }
 0x336   : > { %12074 = vmatprep.subr.bf16.mxu1 %v12613_v27  ;;  %v12662_v27 = vld [vmem:[%s14458_s13 + $0x930] sm:$0xff]  }
 0x338   : > { %12053 = vmatpush3.bf16.msra.mxu0 %v12612_v26  ;;  %v12661_v26 = vld [vmem:[%s14458_s13 + $0x970] sm:$0xff]  }
 0x339   : > { %12075 = vmatpush3.bf16.msra.mxu1 %v12614_v29  ;;  %12054 = vmatprep.subr.bf16.mxu0 %v12615_v30  ;;  %v12664_v29 = vld [vmem:[%s14458_s13 + $0x9b0] sm:$0xff]   ;;  %v12665_v30 = vld [vmem:[%s14458_s13 + $0x978] sm:$0xff]  }
 0x33a   : > { %12076 = vmatprep.subr.bf16.mxu1 %v12617_v32  ;;  %v12667_v32 = vld [vmem:[%s14458_s13 + $0x9f8] sm:$0xff]  }
 0x33c   : > { %12055 = vmatpush3.bf16.msra.mxu0 %v12616_v31  ;;  %v12666_v31 = vld [vmem:[%s14458_s13 + $0x938] sm:$0xff]  }
 0x33d   : > { %12077 = vmatpush3.bf16.msra.mxu1 %v12618_v33  ;;  %v12668_v33 = vld [vmem:[%s15054_s0 + $0x90] ss:$196 sps:$4 sm:$0xff]  }
 0x33e   : > { %v11754_v3 = vpop.f32.mrb[4].mxu0  ;;  %12078 = vmatprep.subr.bf16.mxu1 %v12621_v36  ;;  %v12672_v36 = vld [vmem:[%s14458_s13 + $0xa40] sm:$0xff]  }
 0x33f   : > { %v11755_v5 = vpop.f32.mrb[5].mxu0  ;;  %v11776_v10 = vpop.f32.mrb[4].mxu1 }
 0x340   : > { %v11756_v7 = vadd.f32 %v11755_v5, %v11754_v3  ;;  %v11757_v8 = vpop.f32.mrb[6].mxu0  ;;  %v11777_v16 = vpop.f32.mrb[5].mxu1 }
 0x341   : > { %v11758_v13 = vpop.f32.mrb[7].mxu0  ;;  %v11778_v18 = vadd.f32 %v11777_v16, %v11776_v10  ;;  %v11779_v19 = vpop.f32.mrb[6].mxu1  ;;  %12079 = vmatpush3.bf16.msra.mxu1 %v12622_v37  ;;  %v12648_v10 = vld [vmem:[%s14458_s13 + $0x990] sm:$0xff]   ;;  %v12651_v16 = vld [vmem:[%s14458_s13 + $0x9d8] sm:$0xff]  }
 0x342   : > { %v10149_v12 = vadd.f32 %v11756_v7, %v14776_v34  ;;  %v11759_v15 = vadd.f32 %v11758_v13, %v11757_v8  ;;  %v11780_v22 = vpop.f32.mrb[7].mxu1  ;;  %v12619_v34 = vld [vmem:[%s14458_s13 + $0x868] sm:$0xff]   ;;  %12080 = vmatprep.subr.bf16.mxu1 %v12625_v40  ;;  %v12647_v7 = vld [vmem:[%s14458_s13 + $0x9d0] sm:$0xff]   ;;  %v12649_v13 = vld [vmem:[%s14458_s13 + $0x958] sm:$0xff]  }
 0x343   : > { %v11781_v25 = vadd.f32 %v11780_v22, %v11779_v19  ;;  %12056 = vmatprep.subr.bf16.mxu0 %v12619_v34  ;;  %v12654_v19 = vld [vmem:[%s14458_s13 + $0x920] sm:$0xff]   ;;  %v12657_v22 = vld [vmem:[%s14458_s13 + $0x968] sm:$0xff]   ;;  %v12670_v34 = vld [vmem:[%s15054_s0 + $0x94] ss:$196 sps:$4 sm:$0xff]  }
 0x344   : > { %v10152_v21 = vadd.f32 %v11759_v15, %v14782_v43  ;;  %v14825_v24 = vadd.f32 %v11778_v18, %v10149_v12  ;;  %12057 = vmatpush3.bf16.msra.mxu0 %v12620_v35  ;;  %v12628_v43 = vld [vmem:[%s14458_s13 + $0x838] sm:$0xff]   ;;  %v12653_v18 = vld [vmem:[%s14458_s13 + $0x960] sm:$0xff]  }
 0x345   : > { %12058 = vmatprep.subr.bf16.mxu0 %v12623_v38  ;;  %12081 = vmatpush3.bf16.msra.mxu1 %v12626_v41  ;;  %v12671_v35 = vld [vmem:[%s14458_s13 + $0x9b8] sm:$0xff]   ;;  %v12677_v40 = vld [vmem:[%s14458_s13 + $0xac0] sm:$0xff]  }
 0x346   : > { %v14829_v28 = vadd.f32 %v11781_v25, %v10152_v21  ;;  %12082 = vmatprep.subr.bf16.mxu1 %v12629_v44  ;;  %v12656_v21 = vld [vmem:[%s14458_s13 + $0x9a0] sm:$0xff]   ;;  %v12660_v25 = vld [vmem:[%s14458_s13 + $0x9a8] sm:$0xff]   ;;  %v12673_v37 = vld [vmem:[%s15054_s0 + $0x98] ss:$196 sps:$4 sm:$0xff]  }
 0x347   : > { %v12675_v38 = vld [vmem:[%s15054_s0 + $0x9c] ss:$196 sps:$4 sm:$0xff]  }
 0x348   : > { %12059 = vmatpush3.bf16.msra.mxu0 %v12624_v39  ;;  %v12676_v39 = vld [vmem:[%s14458_s13 + $0xa00] sm:$0xff]  }
 0x349   : > { %12060 = vmatprep.subr.bf16.mxu0 %v12627_v42  ;;  %12083 = vmatpush3.bf16.msra.mxu1 %v12633_v47  ;;  %v12678_v41 = vld [vmem:[%s14458_s13 + $0xa80] sm:$0xff]  }
 0x34a   : > { %12112 = vmatprep.subr.bf16.mxu1 %v12639_v52 }
 0x34c   : > { %12061 = vmatpush3.bf16.msra.mxu0 %v12628_v43  ;;  %10762 = vmatmul.mubr.bf16.vlgmr.msra.gmra.mrb[32].mxu1 %v12635_v49  ;;  %v12679_v43 = vld [vmem:[%s14458_s13 + $0xa48] sm:$0xff]  }
 0x34d   : > { %12090 = vmatprep.subr.bf16.mxu0 %v12634_v48  ;;  %12113 = vmatpush3.bf16.msra.mxu1 %v12640_v53  ;;  %v12681_v48 = vld [vmem:[%s14458_s13 + $0xac8] sm:$0xff]   ;;  %v12683_v53 = vld [vmem:[%s14458_s13 + $0xa50] sm:$0xff]  }
 0x34e   : > { %12114 = vmatprep.subr.bf16.mxu1 %v12643_v60  ;;  %10843 = vmatprep.mubr.bf16.mxu1 %v12675_v38 }
 0x34f   : > { %10721 = vmatmul.mubr.bf16.vlgmr.msra.gmra.mrb[32].mxu0 %v12630_v45  ;;  %v12680_v45 = vld [vmem:[%s14458_s13 + $0xa08] sm:$0xff]  }
 0x350   : > { %12091 = vmatpush3.bf16.msra.mxu0 %v12638_v51  ;;  %10802 = vmatprep.mubr.bf16.mxu0 %v12670_v34 }
 0x351   : > { %12092 = vmatprep.subr.bf16.mxu0 %v12641_v55  ;;  %12115 = vmatpush3.bf16.msra.mxu1 %v12644_v62  ;;  %v12686_v62 = vld [vmem:[%s14458_s13 + $0xa90] sm:$0xff]  }
 0x352   : > { %12116 = vmatprep.subr.bf16.mxu1 %v12647_v7  ;;  %v12692_v7 = vld [vmem:[%s14458_s13 + $0xa20] sm:$0xff]  }
 0x354   : > { %12093 = vmatpush3.bf16.msra.mxu0 %v12642_v57 }
 0x355   : > { %12094 = vmatprep.subr.bf16.mxu0 %v12645_v1  ;;  %12117 = vmatpush3.bf16.msra.mxu1 %v12648_v10  ;;  %v12687_v1 = vld [vmem:[%s14458_s13 + $0xa58] sm:$0xff]   ;;  %v12695_v10 = vld [vmem:[%s14458_s13 + $0xa68] sm:$0xff]  }
 0x356   : > { %12118 = vmatprep.subr.bf16.mxu1 %v12651_v16  ;;  %v12701_v16 = vld [vmem:[%s14458_s13 + $0xaf0] sm:$0xff]  }
 0x358   : > { %12095 = vmatpush3.bf16.msra.mxu0 %v12646_v4  ;;  %v12689_v4 = vld [vmem:[%s14458_s13 + $0xad8] sm:$0xff]  }
 0x359   : > { %12096 = vmatprep.subr.bf16.mxu0 %v12649_v13  ;;  %12119 = vmatpush3.bf16.msra.mxu1 %v12652_v17  ;;  %v12698_v13 = vld [vmem:[%s14458_s13 + $0xaa8] sm:$0xff]   ;;  %v12702_v17 = vld [vmem:[%s14458_s13 + $0xab0] sm:$0xff]  }
 0x35a   : > { %12120 = vmatprep.subr.bf16.mxu1 %v12655_v20  ;;  %v12705_v20 = vld [vmem:[%s14458_s13 + $0xaf8] sm:$0xff]  }
 0x35c   : > { %12097 = vmatpush3.bf16.msra.mxu0 %v12650_v14  ;;  %v12699_v14 = vld [vmem:[%s14458_s13 + $0xa70] sm:$0xff]  }
 0x35d   : > { %12098 = vmatprep.subr.bf16.mxu0 %v12653_v18  ;;  %12121 = vmatpush3.bf16.msra.mxu1 %v12656_v21  ;;  %v12703_v18 = vld [vmem:[%s14458_s13 + $0xa78] sm:$0xff]   ;;  %v12706_v21 = vld [vmem:[%s15054_s0 + $0xa0] ss:$196 sps:$4 sm:$0xff]  }
 0x35e   : > { %v11798_v54 = vpop.f32.mrb[8].mxu0 }
 0x35f   : > { %v11799_v56 = vpop.f32.mrb[9].mxu0  ;;  %v11820_v61 = vpop.f32.mrb[8].mxu1 }
 0x360   : > { %v11800_v58 = vadd.f32 %v11799_v56, %v11798_v54  ;;  %v11801_v59 = vpop.f32.mrb[10].mxu0  ;;  %v11821_v3 = vpop.f32.mrb[9].mxu1  ;;  %12099 = vmatpush3.bf16.msra.mxu0 %v12654_v19  ;;  %v12684_v56 = vld [vmem:[%s14458_s13 + $0xa10] sm:$0xff]   ;;  %v12704_v19 = vld [vmem:[%s14458_s13 + $0xa38] sm:$0xff]  }
 0x361   : > { %v11802_v0 = vpop.f32.mrb[11].mxu0  ;;  %v11822_v5 = vadd.f32 %v11821_v3, %v11820_v61  ;;  %v11823_v6 = vpop.f32.mrb[10].mxu1  ;;  %12100 = vmatprep.subr.bf16.mxu0 %v12657_v22  ;;  %v12708_v22 = vld [vmem:[%s15054_s0 + $0xa4] ss:$196 sps:$4 sm:$0xff]  }
 0x362   : > { %v10231_v63 = vadd.f32 %v11800_v58, %v14825_v24  ;;  %v11803_v2 = vadd.f32 %v11802_v0, %v11801_v59  ;;  %v11824_v9 = vpop.f32.mrb[11].mxu1  ;;  %v12659_v24 = vld [vmem:[%s14458_s13 + $0x9e8] sm:$0xff]   ;;  %v12685_v59 = vld [vmem:[%s14458_s13 + $0xad0] sm:$0xff]  }
 0x363   : > { %v11825_v12 = vadd.f32 %v11824_v9, %v11823_v6  ;;  %12122 = vmatprep.subr.bf16.mxu1 %v12659_v24  ;;  %v12691_v6 = vld [vmem:[%s14458_s13 + $0xa60] sm:$0xff]  }
 0x364   : > { %v10234_v8 = vadd.f32 %v11803_v2, %v14829_v28  ;;  %v14874_v11 = vadd.f32 %v11822_v5, %v10231_v63  ;;  %12101 = vmatpush3.bf16.msra.mxu0 %v12658_v23  ;;  %12123 = vmatpush3.bf16.msra.mxu1 %v12660_v25  ;;  %v12663_v28 = vld [vmem:[%s14458_s13 + $0x9f0] sm:$0xff]   ;;  %v12688_v2 = vld [vmem:[%s14458_s13 + $0xa18] sm:$0xff]   ;;  %v12694_v9 = vld [vmem:[%s14458_s13 + $0xaa0] sm:$0xff]  }
 0x365   : > { %12102 = vmatprep.subr.bf16.mxu0 %v12661_v26  ;;  %12124 = vmatprep.subr.bf16.mxu1 %v12663_v28  ;;  %v12690_v5 = vld [vmem:[%s14458_s13 + $0xa98] sm:$0xff]   ;;  %v12710_v24 = vld [vmem:[%s14458_s13 + $0xb40] sm:$0xff]   ;;  %v12711_v25 = vld [vmem:[%s15054_s0 + $0xa8] ss:$196 sps:$4 sm:$0xff]  }
 0x366   : > { %v14878_v15 = vadd.f32 %v11825_v12, %v10234_v8  ;;  %v12693_v8 = vld [vmem:[%s14458_s13 + $0xae0] sm:$0xff]   ;;  %v12697_v12 = vld [vmem:[%s14458_s13 + $0xae8] sm:$0xff]   ;;  %v12709_v23 = vld [vmem:[%s14458_s13 + $0xab8] sm:$0xff]  }
 0x367   : > { %v12713_v26 = vld [vmem:[%s15054_s0 + $0xac] ss:$196 sps:$4 sm:$0xff]   ;;  %v12715_v28 = vld [vmem:[%s14458_s13 + $0xbc0] sm:$0xff]  }
 0x368   : > { %12103 = vmatpush3.bf16.msra.mxu0 %v12662_v27  ;;  %12125 = vmatpush3.bf16.msra.mxu1 %v12664_v29  ;;  %v12714_v27 = vld [vmem:[%s14458_s13 + $0xb00] sm:$0xff]  }
 0x369   : > { %12104 = vmatprep.subr.bf16.mxu0 %v12665_v30  ;;  %12126 = vmatprep.subr.bf16.mxu1 %v12667_v32  ;;  %v12716_v30 = vld [vmem:[%s14458_s13 + $0xb80] sm:$0xff]   ;;  %v12717_v32 = vld [vmem:[%s14458_s13 + $0xb48] sm:$0xff]  }
 0x36c   : > { %12105 = vmatpush3.bf16.msra.mxu0 %v12666_v31  ;;  %12127 = vmatpush3.bf16.msra.mxu1 %v12671_v35  ;;  %v12718_v35 = vld [vmem:[%s14458_s13 + $0xb08] sm:$0xff]  }
 0x36d   : > { %12134 = vmatprep.subr.bf16.mxu0 %v12672_v36  ;;  %12156 = vmatprep.subr.bf16.mxu1 %v12677_v40 }
 0x36f   : > { %10803 = vmatmul.mubr.bf16.vlgmr.msra.gmra.mrb[36].mxu0 %v12668_v33  ;;  %10844 = vmatmul.mubr.bf16.vlgmr.msra.gmra.mrb[36].mxu1 %v12673_v37  ;;  %v12719_v37 = vld [vmem:[%s14458_s13 + $0xbc8] sm:$0xff]  }
 0x370   : > { %12135 = vmatpush3.bf16.msra.mxu0 %v12676_v39  ;;  %12157 = vmatpush3.bf16.msra.mxu1 %v12678_v41  ;;  %v12720_v41 = vld [vmem:[%s14458_s13 + $0xb88] sm:$0xff]  }
 0x371   : > { %12136 = vmatprep.subr.bf16.mxu0 %v12679_v43  ;;  %12158 = vmatprep.subr.bf16.mxu1 %v12681_v48  ;;  %v12721_v43 = vld [vmem:[%s14458_s13 + $0xb50] sm:$0xff]  }
 0x372   : > { %10884 = vmatprep.mubr.bf16.mxu0 %v12708_v22  ;;  %10925 = vmatprep.mubr.bf16.mxu1 %v12713_v26 }
 0x374   : > { %12137 = vmatpush3.bf16.msra.mxu0 %v12680_v45  ;;  %12159 = vmatpush3.bf16.msra.mxu1 %v12682_v50 }
 0x375   : > { %12138 = vmatprep.subr.bf16.mxu0 %v12683_v53  ;;  %12160 = vmatprep.subr.bf16.mxu1 %v12685_v59  ;;  %v12725_v53 = vld [vmem:[%s14458_s13 + $0xb58] sm:$0xff]   ;;  %v12730_v59 = vld [vmem:[%s14458_s13 + $0xb20] sm:$0xff]  }
 0x378   : > { %12139 = vmatpush3.bf16.msra.mxu0 %v12684_v56  ;;  %12161 = vmatpush3.bf16.msra.mxu1 %v12686_v62  ;;  %v12727_v56 = vld [vmem:[%s14458_s13 + $0xbd8] sm:$0xff]   ;;  %v12733_v62 = vld [vmem:[%s14458_s13 + $0xb68] sm:$0xff]  }
 0x379   : > { %12140 = vmatprep.subr.bf16.mxu0 %v12687_v1  ;;  %12162 = vmatprep.subr.bf16.mxu1 %v12689_v4  ;;  %v12736_v1 = vld [vmem:[%s14458_s13 + $0xba8] sm:$0xff]   ;;  %v12739_v4 = vld [vmem:[%s14458_s13 + $0xbf0] sm:$0xff]  }
 0x37c   : > { %12141 = vmatpush3.bf16.msra.mxu0 %v12688_v2  ;;  %12163 = vmatpush3.bf16.msra.mxu1 %v12690_v5  ;;  %v12737_v2 = vld [vmem:[%s14458_s13 + $0xb70] sm:$0xff]  }
 0x37d   : > { %12142 = vmatprep.subr.bf16.mxu0 %v12691_v6  ;;  %12164 = vmatprep.subr.bf16.mxu1 %v12693_v8  ;;  %v12740_v5 = vld [vmem:[%s14458_s13 + $0xbb0] sm:$0xff]   ;;  %v12741_v6 = vld [vmem:[%s14458_s13 + $0xb78] sm:$0xff]  }
 0x37e   : > { %v11842_v42 = vpop.f32.mrb[12].mxu0  ;;  %v12743_v8 = vld [vmem:[%s14458_s13 + $0xbf8] sm:$0xff]  }
 0x37f   : > { %v11843_v44 = vpop.f32.mrb[13].mxu0  ;;  %v11864_v49 = vpop.f32.mrb[12].mxu1 }
 0x380   : > { %v11844_v46 = vadd.f32 %v11843_v44, %v11842_v42  ;;  %v11845_v47 = vpop.f32.mrb[14].mxu0  ;;  %v11865_v55 = vpop.f32.mrb[13].mxu1  ;;  %12143 = vmatpush3.bf16.msra.mxu0 %v12692_v7  ;;  %12165 = vmatpush3.bf16.msra.mxu1 %v12694_v9  ;;  %v12742_v7 = vld [vmem:[%s14458_s13 + $0xb38] sm:$0xff]   ;;  %v12744_v9 = vld [vmem:[%s15054_s0 + $0xb0] ss:$196 sps:$4 sm:$0xff]  }
 0x381   : > { %v11846_v52 = vpop.f32.mrb[15].mxu0  ;;  %v11866_v57 = vadd.f32 %v11865_v55, %v11864_v49  ;;  %v11867_v58 = vpop.f32.mrb[14].mxu1  ;;  %12144 = vmatprep.subr.bf16.mxu0 %v12695_v10  ;;  %12166 = vmatprep.subr.bf16.mxu1 %v12697_v12  ;;  %v12723_v49 = vld [vmem:[%s14458_s13 + $0xbd0] sm:$0xff]   ;;  %v12726_v55 = vld [vmem:[%s14458_s13 + $0xb18] sm:$0xff]   ;;  %v12800_v12 = vmov 0.0  }
 0x382   : > { %v10313_v51 = vadd.f32 %v11844_v46, %v14874_v11  ;;  %v11847_v54 = vadd.f32 %v11846_v52, %v11845_v47  ;;  %v11868_v61 = vpop.f32.mrb[15].mxu1  ;;  %v12696_v11 = vld [vmem:[%s14458_s13 + $0xa28] sm:$0xff]   ;;  %v12722_v47 = vld [vmem:[%s14458_s13 + $0xb10] sm:$0xff]  }
 0x383   : > { %v11869_v0 = vadd.f32 %v11868_v61, %v11867_v58  ;;  %v12724_v52 = vld [vmem:[%s14458_s13 + $0xb90] sm:$0xff]   ;;  %v12729_v58 = vld [vmem:[%s14458_s13 + $0xb60] sm:$0xff]  }
 0x384   : > { %v10316_v60 = vadd.f32 %v11847_v54, %v14878_v15  ;;  %v14924_v63 = vadd.f32 %v11866_v57, %v10313_v51  ;;  %12145 = vmatpush3.bf16.msra.mxu0 %v12696_v11  ;;  %12167 = vmatpush3.bf16.msra.mxu1 %v12698_v13  ;;  %v12700_v15 = vld [vmem:[%s14458_s13 + $0xa30] sm:$0xff]   ;;  %v12728_v57 = vld [vmem:[%s14458_s13 + $0xb98] sm:$0xff]   ;;  %v12732_v61 = vld [vmem:[%s14458_s13 + $0xba0] sm:$0xff]  }
 0x385   : > { %12146 = vmatprep.subr.bf16.mxu0 %v12699_v14  ;;  %12168 = vmatprep.subr.bf16.mxu1 %v12701_v16  ;;  %v12746_v10 = vld [vmem:[%s15054_s0 + $0xb4] ss:$196 sps:$4 sm:$0xff]   ;;  %v12750_v14 = vld [vmem:[%s15054_s0 + $0xbc] ss:$196 sps:$4 sm:$0xff]   ;;  %v12752_v16 = vld [vmem:[%s14458_s13 + $0xc08] sm:$0xff]  }
 0x386   : > { %v14928_v3 = vadd.f32 %v11869_v0, %v10316_v60  ;;  %v12731_v60 = vld [vmem:[%s14458_s13 + $0xbe0] sm:$0xff]   ;;  %v12735_v0 = vld [vmem:[%s14458_s13 + $0xbe8] sm:$0xff]   ;;  %v12747_v11 = vld [vmem:[%s14458_s13 + $0xbb8] sm:$0xff]  }
 0x387   : > { %v12748_v13 = vld [vmem:[%s15054_s0 + $0xb8] ss:$196 sps:$4 sm:$0xff]  }
 0x388   : > { %12147 = vmatpush3.bf16.msra.mxu0 %v12700_v15  ;;  %12169 = vmatpush3.bf16.msra.mxu1 %v12702_v17  ;;  %v12751_v15 = vld [vmem:[%s14458_s13 + $0xc00] sm:$0xff]  }
 0x389   : > { %12148 = vmatprep.subr.bf16.mxu0 %v12703_v18  ;;  %12170 = vmatprep.subr.bf16.mxu1 %v12705_v20 }
 0x38c   : > { %12149 = vmatpush3.bf16.msra.mxu0 %v12704_v19  ;;  %12171 = vmatpush3.bf16.msra.mxu1 %v12709_v23  ;;  %v12753_v19 = vld [vmem:[%s14458_s13 + $0xc10] sm:$0xff]  }
 0x38d   : > { %12178 = vmatprep.subr.bf16.mxu0 %v12710_v24  ;;  %12200 = vmatprep.subr.bf16.mxu1 %v12715_v28 }
 0x38f   : > { %10885 = vmatmul.mubr.bf16.vlgmr.msra.gmra.mrb[40].mxu0 %v12706_v21  ;;  %10926 = vmatmul.mubr.bf16.vlgmr.msra.gmra.mrb[40].mxu1 %v12711_v25 }
 0x390   : > { %12179 = vmatpush3.bf16.msra.mxu0 %v12714_v27  ;;  %12201 = vmatpush3.bf16.msra.mxu1 %v12716_v30 }
 0x391   : > { %12180 = vmatprep.subr.bf16.mxu0 %v12717_v32  ;;  %12202 = vmatprep.subr.bf16.mxu1 %v12719_v37  ;;  %v12757_v37 = vld [vmem:[%s14458_s13 + $0xc30] sm:$0xff]  }
 0x392   : > { %10966 = vmatprep.mubr.bf16.mxu0 %v12746_v10  ;;  %11007 = vmatprep.mubr.bf16.mxu1 %v12750_v14 }
 0x394   : > { %12181 = vmatpush3.bf16.msra.mxu0 %v12718_v35  ;;  %12203 = vmatpush3.bf16.msra.mxu1 %v12720_v41  ;;  %v12755_v35 = vld [vmem:[%s14458_s13 + $0xc20] sm:$0xff]  }
 0x395   : > { %12182 = vmatprep.subr.bf16.mxu0 %v12721_v43  ;;  %12204 = vmatprep.subr.bf16.mxu1 %v12723_v49 }
 0x398   : > { %12183 = vmatpush3.bf16.msra.mxu0 %v12722_v47  ;;  %12205 = vmatpush3.bf16.msra.mxu1 %v12724_v52 }
 0x399   : > { %12184 = vmatprep.subr.bf16.mxu0 %v12725_v53  ;;  %12206 = vmatprep.subr.bf16.mxu1 %v12727_v56 }
 0x39c   : > { %12185 = vmatpush3.bf16.msra.mxu0 %v12726_v55  ;;  %12207 = vmatpush3.bf16.msra.mxu1 %v12728_v57 }
 0x39d   : > { %12186 = vmatprep.subr.bf16.mxu0 %v12729_v58  ;;  %12208 = vmatprep.subr.bf16.mxu1 %v12731_v60 }
 0x39e   : > { %v11886_v29 = vpop.f32.mrb[16].mxu0 }
 0x39f   : > { %v11887_v31 = vpop.f32.mrb[17].mxu0  ;;  %v11908_v39 = vpop.f32.mrb[16].mxu1 }
 0x3a0   : > { %v11888_v33 = vadd.f32 %v11887_v31, %v11886_v29  ;;  %v11889_v34 = vpop.f32.mrb[18].mxu0  ;;  %v11909_v42 = vpop.f32.mrb[17].mxu1  ;;  %12187 = vmatpush3.bf16.msra.mxu0 %v12730_v59  ;;  %12209 = vmatpush3.bf16.msra.mxu1 %v12732_v61  ;;  %v12754_v31 = vld [vmem:[%s14458_s13 + $0xc18] sm:$0xff]  }
 0x3a1   : > { %v11890_v36 = vpop.f32.mrb[19].mxu0  ;;  %v11910_v45 = vadd.f32 %v11909_v42, %v11908_v39  ;;  %v11911_v46 = vpop.f32.mrb[18].mxu1  ;;  %12188 = vmatprep.subr.bf16.mxu0 %v12733_v62  ;;  %12210 = vmatprep.subr.bf16.mxu1 %v12735_v0  ;;  %v12759_v39 = vld [vmem:[%s15054_s0 + $0xc0] ss:$196 sps:$4 sm:$0xff]  }
 0x3a2   : > { %v10395_v38 = vadd.f32 %v11888_v33, %v14924_v63  ;;  %v11891_v40 = vadd.f32 %v11890_v36, %v11889_v34  ;;  %v11912_v48 = vpop.f32.mrb[19].mxu1  ;;  %v12734_v63 = vld [vmem:[%s14458_s13 + $0xb28] sm:$0xff]  }
 0x3a3   : > { %v11913_v51 = vadd.f32 %v11912_v48, %v11911_v46  ;;  %v12756_v36 = vld [vmem:[%s14458_s13 + $0xc28] sm:$0xff]  }
 0x3a4   : > { %v10398_v44 = vadd.f32 %v11891_v40, %v14928_v3  ;;  %v14973_v50 = vadd.f32 %v11910_v45, %v10395_v38  ;;  %12189 = vmatpush3.bf16.msra.mxu0 %v12734_v63  ;;  %12211 = vmatpush3.bf16.msra.mxu1 %v12736_v1  ;;  %v12738_v3 = vld [vmem:[%s14458_s13 + $0xb30] sm:$0xff]   ;;  %v12758_v38 = vld [vmem:[%s14458_s13 + $0xc38] sm:$0xff]   ;;  %s6593_s13 = scalar_select %p6592_p11, %s12790_s17, 1 }
 0x3a5   : > { %12190 = vmatprep.subr.bf16.mxu0 %v12737_v2  ;;  %12212 = vmatprep.subr.bf16.mxu1 %v12739_v4 }
 0x3a6   : > { %v14977_v54 = vadd.f32 %v11913_v51, %v10398_v44  ;;  %s6594_s14 = scalar_lea.vmem %s15056_s2, %s6593_s13  ;;  %s6597_s23 = scalar_lea.vmem %s15057_s3, %s6593_s13 }
 0x3a8   : > { %12191 = vmatpush3.bf16.msra.mxu0 %v12738_v3  ;;  %12213 = vmatpush3.bf16.msra.mxu1 %v12740_v5 }
 0x3a9   : > { %12192 = vmatprep.subr.bf16.mxu0 %v12741_v6  ;;  %12214 = vmatprep.subr.bf16.mxu1 %v12743_v8 }
 0x3ac   : > { %12193 = vmatpush3.bf16.msra.mxu0 %v12742_v7  ;;  %12215 = vmatpush3.bf16.msra.mxu1 %v12747_v11 }
 0x3ad   : > { %12231 = vmatprep.subr.bf16.mxu0 %v12800_v12 }
 0x3af   : > { %10967 = vmatmul.mubr.bf16.vlgmr.msra.gmra.mrb[44].mxu0 %v12744_v9  ;;  %11008 = vmatmul.mubr.bf16.vlgmr.msra.gmra.mrb[44].mxu1 %v12748_v13 }
 0x3b0   : > { %12247 = vmatprep.mubr.msk.bf16.mxu0 %vm12801_vm0, %v12800_v12  ;;  %12232 = vmatpush3.bf16.msra.mxu0 %v12751_v15 }
 0x3b1   : > { %12233 = vmatprep.subr.bf16.mxu0 %v12800_v12 }
 0x3b4   : > { %12234 = vmatpush3.bf16.msra.mxu0 %v12752_v16 }
 0x3b5   : > { %12235 = vmatprep.subr.bf16.mxu0 %v12800_v12 }
 0x3b8   : > { %12236 = vmatpush3.bf16.msra.mxu0 %v12753_v19 }
 0x3b9   : > { %12237 = vmatprep.subr.bf16.mxu0 %v12800_v12 }
 0x3bc   : > { %12238 = vmatpush3.bf16.msra.mxu0 %v12754_v31 }
 0x3bd   : > { %12239 = vmatprep.subr.bf16.mxu0 %v12800_v12 }
 0x3be   : > { %v11930_v17 = vpop.f32.mrb[20].mxu0 }
 0x3bf   : > { %v11931_v18 = vpop.f32.mrb[21].mxu0  ;;  %v11952_v22 = vpop.f32.mrb[20].mxu1 }
 0x3c0   : > { %v11932_v20 = vadd.f32 %v11931_v18, %v11930_v17  ;;  %v11933_v21 = vpop.f32.mrb[22].mxu0  ;;  %v11953_v26 = vpop.f32.mrb[21].mxu1  ;;  %12240 = vmatpush3.bf16.msra.mxu0 %v12755_v35 }
 0x3c1   : > { %v11934_v23 = vpop.f32.mrb[23].mxu0  ;;  %v11954_v27 = vadd.f32 %v11953_v26, %v11952_v22  ;;  %v11955_v28 = vpop.f32.mrb[22].mxu1  ;;  %12241 = vmatprep.subr.bf16.mxu0 %v12800_v12 }
 0x3c2   : > { %v10477_v24 = vadd.f32 %v11932_v20, %v14973_v50  ;;  %v11935_v25 = vadd.f32 %v11934_v23, %v11933_v21  ;;  %v11956_v30 = vpop.f32.mrb[23].mxu1 }
 0x3c3   : > { %v11957_v33 = vadd.f32 %v11956_v30, %v11955_v28 }
 0x3c4   : > { %v10480_v29 = vadd.f32 %v11935_v25, %v14977_v54  ;;  %v10518_v32 = vadd.f32 %v11954_v27, %v10477_v24  ;;  %12242 = vmatpush3.bf16.msra.mxu0 %v12756_v36 }
 0x3c5   : > { %12243 = vmatprep.subr.bf16.mxu0 %v12800_v12 }
 0x3c6   : > { %v10521_v34 = vadd.f32 %v11957_v33, %v10480_v29 }
 0x3c8   : > { %12244 = vmatpush3.bf16.msra.mxu0 %v12757_v37 }
 0x3c9   : > { %12245 = vmatprep.subr.bf16.mxu0 %v12800_v12 }
 0x3cc   : > { %12246 = vmatpush3.bf16.msra.mxu0 %v12758_v38 }
 0x3cf   : > { %12248 = vmatmul.mubr.bf16.vlgmr.msra.gmra.mrb[48].mxu0 %v12759_v39 }
 0x3de   : > { %v11974_v40 = vpop.f32.mrb[24].mxu0 }
 0x3df   : > { %v11975_v41 = vpop.f32.mrb[25].mxu0  ;;  %v11996_v44 = vpop.f32.mrb[24].mxu1 }
 0x3e0   : > { %v11976_v42 = vadd.f32 %v11975_v41, %v11974_v40  ;;  %v11977_v43 = vpop.f32.mrb[26].mxu0  ;;  %v11997_v48 = vpop.f32.mrb[25].mxu1 }
 0x3e1   : > { %v11978_v45 = vpop.f32.mrb[27].mxu0  ;;  %v11998_v49 = vadd.f32 %v11997_v48, %v11996_v44  ;;  %v11999_v50 = vpop.f32.mrb[26].mxu1 }
 0x3e2   : > { %v10559_v46 = vadd.f32 %v11976_v42, %v10518_v32  ;;  %v11979_v47 = vadd.f32 %v11978_v45, %v11977_v43  ;;  %v12000_v52 = vpop.f32.mrb[27].mxu1 }
 0x3e3   : > { %v12001_v54 = vadd.f32 %v12000_v52, %v11999_v50 }
 0x3e4   : > { %v10562_v51 = vadd.f32 %v11979_v47, %v10521_v34  ;;  %v10600_v53 = vadd.f32 %v11998_v49, %v10559_v46 }
 0x3e6   : > { %v10603_v55 = vadd.f32 %v12001_v54, %v10562_v51 }
 0x3fe   : > { %v12018_v56 = vpop.f32.mrb[28].mxu0 }
 0x3ff   : > { %v12019_v57 = vpop.f32.mrb[29].mxu0  ;;  %v12040_v62 = vpop.f32.mrb[28].mxu1 }
 0x400   : > { %v12020_v58 = vadd.f32 %v12019_v57, %v12018_v56  ;;  %v12021_v59 = vpop.f32.mrb[30].mxu0  ;;  %v12041_v0 = vpop.f32.mrb[29].mxu1 }
 0x401   : > { %v12022_v60 = vpop.f32.mrb[31].mxu0  ;;  %v12042_v2 = vadd.f32 %v12041_v0, %v12040_v62  ;;  %v12043_v3 = vpop.f32.mrb[30].mxu1 }
 0x402   : > { %v10641_v61 = vadd.f32 %v12020_v58, %v10600_v53  ;;  %v12023_v63 = vadd.f32 %v12022_v60, %v12021_v59  ;;  %v12044_v4 = vpop.f32.mrb[31].mxu1 }
 0x403   : > { %v12045_v6 = vadd.f32 %v12044_v4, %v12043_v3 }
 0x404   : > { %v10644_v1 = vadd.f32 %v12023_v63, %v10603_v55  ;;  %v10682_v5 = vadd.f32 %v12042_v2, %v10641_v61 }
 0x406   : > { %v10685_v7 = vadd.f32 %v12045_v6, %v10644_v1 }
 0x41f   : > { %v12084_v12 = vpop.f32.mrb[32].mxu1 }
 0x420   : > { %v12085_v16 = vpop.f32.mrb[33].mxu1 }
 0x421   : > { %v12086_v17 = vadd.f32 %v12085_v16, %v12084_v12  ;;  %v12087_v18 = vpop.f32.mrb[34].mxu1  ;;  %v11689_v12 = vld [vmem:[%s6597_s23] ss:$0 sm:$0xff] }
 0x422   : > { %v12062_v8 = vpop.f32.mrb[32].mxu0  ;;  %v12088_v20 = vpop.f32.mrb[35].mxu1 }
 0x423   : > { %v12063_v9 = vpop.f32.mrb[33].mxu0  ;;  %v12089_v22 = vadd.f32 %v12088_v20, %v12087_v18 }
 0x424   : > { %v12064_v10 = vadd.f32 %v12063_v9, %v12062_v8  ;;  %v12065_v11 = vpop.f32.mrb[34].mxu0  ;;  %v11688_v9 = vld [vmem:[%s6594_s14] ss:$0 sm:$0xff] }
 0x425   : > { %v12066_v13 = vpop.f32.mrb[35].mxu0 }
 0x426   : > { %v10723_v14 = vadd.f32 %v12064_v10, %v10682_v5  ;;  %v12067_v15 = vadd.f32 %v12066_v13, %v12065_v11 }
 0x428   : > { %v10726_v19 = vadd.f32 %v12067_v15, %v10685_v7  ;;  %v10764_v21 = vadd.f32 %v12086_v17, %v10723_v14 }
 0x42a   : > { %v10767_v23 = vadd.f32 %v12089_v22, %v10726_v19 }
 0x442   : > { %v12106_v24 = vpop.f32.mrb[36].mxu0  ;;  %v12128_v28 = vpop.f32.mrb[36].mxu1 }
 0x443   : > { %v12107_v25 = vpop.f32.mrb[37].mxu0  ;;  %v12129_v32 = vpop.f32.mrb[37].mxu1 }
 0x444   : > { %v12108_v26 = vadd.f32 %v12107_v25, %v12106_v24  ;;  %v12109_v27 = vpop.f32.mrb[38].mxu0  ;;  %v12130_v33 = vadd.f32 %v12129_v32, %v12128_v28  ;;  %v12131_v34 = vpop.f32.mrb[38].mxu1 }
 0x445   : > { %v12110_v29 = vpop.f32.mrb[39].mxu0  ;;  %v12132_v36 = vpop.f32.mrb[39].mxu1 }
 0x446   : > { %v10805_v30 = vadd.f32 %v12108_v26, %v10764_v21  ;;  %v12111_v31 = vadd.f32 %v12110_v29, %v12109_v27  ;;  %v12133_v38 = vadd.f32 %v12132_v36, %v12131_v34 }
 0x448   : > { %v10808_v35 = vadd.f32 %v12111_v31, %v10767_v23  ;;  %v10846_v37 = vadd.f32 %v12130_v33, %v10805_v30 }
 0x44a   : > { %v10849_v39 = vadd.f32 %v12133_v38, %v10808_v35 }
 0x462   : > { %v12150_v40 = vpop.f32.mrb[40].mxu0  ;;  %v12172_v46 = vpop.f32.mrb[40].mxu1 }
 0x463   : > { %v12151_v41 = vpop.f32.mrb[41].mxu0  ;;  %v12173_v48 = vpop.f32.mrb[41].mxu1 }
 0x464   : > { %v12152_v42 = vadd.f32 %v12151_v41, %v12150_v40  ;;  %v12153_v43 = vpop.f32.mrb[42].mxu0  ;;  %v12174_v50 = vadd.f32 %v12173_v48, %v12172_v46  ;;  %v12175_v51 = vpop.f32.mrb[42].mxu1 }
 0x465   : > { %v12154_v44 = vpop.f32.mrb[43].mxu0  ;;  %v12176_v52 = vpop.f32.mrb[43].mxu1 }
 0x466   : > { %v10887_v45 = vadd.f32 %v12152_v42, %v10846_v37  ;;  %v12155_v47 = vadd.f32 %v12154_v44, %v12153_v43  ;;  %v12177_v54 = vadd.f32 %v12176_v52, %v12175_v51 }
 0x468   : > { %v10890_v49 = vadd.f32 %v12155_v47, %v10849_v39  ;;  %v10928_v53 = vadd.f32 %v12174_v50, %v10887_v45 }
 0x46a   : > { %v10931_v55 = vadd.f32 %v12177_v54, %v10890_v49 }
 0x482   : > { %v12194_v56 = vpop.f32.mrb[44].mxu0  ;;  %v12216_v60 = vpop.f32.mrb[44].mxu1 }
 0x483   : > { %v12195_v57 = vpop.f32.mrb[45].mxu0  ;;  %v12217_v0 = vpop.f32.mrb[45].mxu1 }
 0x484   : > { %v12196_v58 = vadd.f32 %v12195_v57, %v12194_v56  ;;  %v12197_v59 = vpop.f32.mrb[46].mxu0  ;;  %v12218_v1 = vadd.f32 %v12217_v0, %v12216_v60  ;;  %v12219_v2 = vpop.f32.mrb[46].mxu1 }
 0x485   : > { %v12198_v61 = vpop.f32.mrb[47].mxu0  ;;  %v12220_v4 = vpop.f32.mrb[47].mxu1 }
 0x486   : > { %v10969_v62 = vadd.f32 %v12196_v58, %v10928_v53  ;;  %v12199_v63 = vadd.f32 %v12198_v61, %v12197_v59  ;;  %v12221_v5 = vadd.f32 %v12220_v4, %v12219_v2 }
 0x488   : > { %v10972_v3 = vadd.f32 %v12199_v63, %v10931_v55  ;;  %v11010_v6 = vadd.f32 %v12218_v1, %v10969_v62 }
 0x48a   : > { %v11013_v7 = vadd.f32 %v12221_v5, %v10972_v3 }
 0x4a2   : > { %v11050_v8 = vpop.f32.mrb[48].mxu0 }
 0x4a3   : > { %v11051_v10 = vadd.f32 %v11050_v8, %v11010_v6  ;;  %v12249_v11 = vpop.f32.mrb[49].mxu0 }
 0x4a4   : > { %v11053_v13 = vpop.f32.mrb[50].mxu0 }
 0x4a5   : > { %v11064_v14 = vmul.f32 %v11688_v9, %v11051_v10  ;;  %v11054_v15 = vadd.f32 %v11053_v13, %v11013_v7  ;;  %v12250_v16 = vpop.f32.mrb[51].mxu0 }
 0x4a7   : > { %v11073_v17 = vadd.f32 %v11689_v12, %v11064_v14  ;;  %v11065_v18 = vmul.f32 %v11688_v9, %v11054_v15 }
 0x4a8   : > { %11089 = sbr.rel (!%p12862_p6) target bundleno = 1207 (0x4b7), region = 92 }
 0x4a9   : > { %vm11075_vm1 = vcmp.ge.f32.partialorder %v11073_v17, 0.0  ;;  %v11077_v19 = vmul.f32 0.1, %v11073_v17  ;;  %v11074_v20 = vadd.f32 %v11689_v12, %v11065_v18 }
 0x4ab   : > { %v11079_v21 = vsel %vm11075_vm1, %v11073_v17, %v11077_v19  ;;  %vm11076_vm2 = vcmp.ge.f32.partialorder %v11074_v20, 0.0  ;;  %v11078_v22 = vmul.f32 0.1, %v11074_v20 }
 0x4ac   : > { %11081 = vst [vmem:[%s6584_s27] sm:$0xff] %v11079_v21 }
 0x4ad   : > { %v11080_v23 = vsel %vm11076_vm2, %v11074_v20, %v11078_v22 }
 0x4ae   : > { %11082 = vst [vmem:[%s6584_s27 + $0x8] sm:$0xff] %v11080_v23 }
 0x4b3   : > { %v11124_v24 = vld [vmem:[%s6584_s27] sm:$0xff] }
 0x4b4   : > { %11125 = vst [vmem:[%s11094_s29] sm:$0xff] %v11124_v24 }
 0x4b5   : > { %v11126_v25 = vld [vmem:[%s6584_s27 + $0x8] sm:$0xff] }
 0x4b6   : > { %11127 = vst [vmem:[%s11094_s29 + $0x10] sm:$0xff] %v11126_v25 }
 0x4b7 PF: > { %s14_s19 = sadd.s32 1, %s12798_s19   ;;  %s15060_s15 = smov %s12786_s16 }
 0x4b8   : > { %p11_p12 = scmp.ge.s32.totalorder %s14_s19, 4   ;;  %s15061_s16 = smov %s12867_s25 }
 0x4b9   : > { %s15062_s17 = smov %s12794_s18  ;;  %s15063_s18 = smov %s15065_s20 }
 0x4ba   :  { %13 = sbr.rel (!%p11_p12) target bundleno = 3 (0x3), region = 174 }

</bundles_post_ra>
